<compile_context>
chip_gen: v7x
topology: tpu7x:2x2x1
jax: 0.10.0
libtpu: 0.0.40
codegen_flags: <defaults>
</compile_context>

<pallas_src>
import functools

import jax
import jax.numpy as jnp
from jax.experimental import pallas as pl
from jax.experimental.pallas import tpu as pltpu


LANE = 128                      # TPU lane width: channel dims padded to a multiple of this
VMEM_LIMIT = 32 * 1024 * 1024   # explicit scoped-VMEM budget (safe on v5e/v6e/v7x)


def _pad128(n):
    return -(-n // LANE) * LANE


# ----------------------------------------------------------------------------
# Pallas kernels
# ----------------------------------------------------------------------------
def _gemm_bias_lrelu_kernel(x_ref, w_ref, b_ref, o_ref, *, alpha):
    """(tm, K) @ (K, Cp) on the MXU with fused bias (+ LeakyReLU) epilogue (f32 math)."""
    acc = jnp.dot(x_ref[...], w_ref[...], preferred_element_type=jnp.float32)
    acc = acc + b_ref[...]                                 # (1, Cp) broadcast
    if alpha is not None:
        acc = jnp.where(acc >= 0.0, acc, alpha * acc)
    o_ref[...] = acc.astype(o_ref.dtype)                   # bf16 (or f32 for the final conv)


def _gemm_instnorm_lrelu_kernel(x_ref, w_ref, g_ref, b_ref, o_ref, *, eps, alpha):
    """One sample's full (HW, K) @ (K, Cp) with fused InstanceNorm2d(affine)+LeakyReLU.

    Per-sample, per-channel statistics over the spatial axis are computed on the f32
    accumulator while it is still in VMEM (single pass: mean + mean-of-squares).
    Padded channels: acc == 0 -> mean = var = 0, gamma = beta = 0 -> output stays exactly 0.
    """
    acc = jnp.dot(x_ref[...], w_ref[...], preferred_element_type=jnp.float32)  # (HW, Cp)
    mean = jnp.mean(acc, axis=0, keepdims=True)
    msq = jnp.mean(acc * acc, axis=0, keepdims=True)
    var = jnp.maximum(msq - mean * mean, 0.0)              # biased variance (PyTorch semantics)
    y = (acc - mean) * jax.lax.rsqrt(var + eps) * g_ref[...] + b_ref[...]
    o_ref[...] = jnp.where(y >= 0.0, y, alpha * y).astype(o_ref.dtype)


# ----------------------------------------------------------------------------
# GEMM wrappers
# ----------------------------------------------------------------------------
def _pick_tile_m(M, K):
    if M <= 512:
        return M                                           # single full-extent block (legal)
    cap = 512 if K >= 2048 else 1024                       # v7x VMEM-friendly cap for big K
    for tm in (1024, 512, 256):
        if tm <= cap and M // tm >= 8:                     # >=4 steps per v7x TensorCore
            return tm
    for tm in (512, 256):
        if M // tm >= 2:
            return tm
    return 256


def pallas_gemm_bias_lrelu(X, Wp, bp, *, alpha, out_dtype):
    """X:(M,K) bf16, Wp:(K,Cp) bf16 (lane-dense), bp:(1,Cp) f32 -> (M,Cp) out_dtype."""
    M, K = X.shape
    Kw, Cp = Wp.shape
    assert K == Kw and Cp % LANE == 0
    tm = _pick_tile_m(M, K)
    Mpad = -(-M // tm) * tm
    if Mpad != M:                                          # ragged M: pad rows, slice after
        X = jnp.pad(X, ((0, Mpad - M), (0, 0)))
    cost = pl.CostEstimate(
        flops=2 * Mpad * K * Cp, transcendentals=0,
        bytes_accessed=Mpad * K * 2 + K * Cp * 2 + Mpad * Cp * jnp.dtype(out_dtype).itemsize)
    out = pl.pallas_call(
        functools.partial(_gemm_bias_lrelu_kernel, alpha=alpha),
        out_shape=jax.ShapeDtypeStruct((Mpad, Cp), out_dtype),
        grid=(Mpad // tm,),
        in_specs=[pl.BlockSpec((tm, K), lambda i: (i, 0)),
                  pl.BlockSpec((K, Cp), lambda i: (0, 0)),
                  pl.BlockSpec((1, Cp), lambda i: (0, 0))],
        out_specs=pl.BlockSpec((tm, Cp), lambda i: (i, 0)),
        compiler_params=pltpu.CompilerParams(
            dimension_semantics=("parallel",),
            vmem_limit_bytes=VMEM_LIMIT),
        cost_estimate=cost,
    )(X, Wp, bp)
    return out[:M] if Mpad != M else out


def pallas_gemm_instnorm_lrelu(X, Wp, gp, bp, *, N, HW, eps, alpha, out_dtype):
    """X:(N*HW,K) bf16, Wp:(K,Cp) bf16, gp/bp:(1,Cp) f32 -> (N*HW,Cp).  One grid step / sample."""
    M, K = X.shape
    _, Cp = Wp.shape
    assert M == N * HW and Cp % LANE == 0
    cost = pl.CostEstimate(
        flops=2 * M * K * Cp, transcendentals=N * Cp,
        bytes_accessed=M * K * 2 + K * Cp * 2 + M * Cp * jnp.dtype(out_dtype).itemsize)
    return pl.pallas_call(
        functools.partial(_gemm_instnorm_lrelu_kernel, eps=eps, alpha=alpha),
        out_shape=jax.ShapeDtypeStruct((M, Cp), out_dtype),
        grid=(N,),
        in_specs=[pl.BlockSpec((HW, K), lambda n: (n, 0)),
                  pl.BlockSpec((K, Cp), lambda n: (0, 0)),
                  pl.BlockSpec((1, Cp), lambda n: (0, 0)),
                  pl.BlockSpec((1, Cp), lambda n: (0, 0))],
        out_specs=pl.BlockSpec((HW, Cp), lambda n: (n, 0)),
        compiler_params=pltpu.CompilerParams(
            dimension_semantics=("parallel",),
            vmem_limit_bytes=VMEM_LIMIT),
        cost_estimate=cost,
    )(X, Wp, gp, bp)


# ----------------------------------------------------------------------------
# im2col (thin XLA glue, fused under jit; operands already bf16 so the
# materialized patch buffer is half the bytes of the previous f32 version)
# ----------------------------------------------------------------------------
# TODO(synk): fuse the patch gather into the GEMM via memory_space=pl.ANY + make_async_copy
# to remove the remaining im2col read amplification on the HBM-bound conv1.
def _im2col(x, k, stride, padding):
    N, H, W, C = x.shape
    Hout = (H + 2 * padding - k) // stride + 1
    Wout = (W + 2 * padding - k) // stride + 1
    if padding:
        x = jnp.pad(x, ((0, 0), (padding, padding), (padding, padding), (0, 0)))
    cols = []
    for di in range(k):
        for dj in range(k):
            cols.append(x[:, di:di + stride * (Hout - 1) + 1:stride,
                             dj:dj + stride * (Wout - 1) + 1:stride, :])
    patches = jnp.stack(cols, axis=3)                      # (N, Hout, Wout, k*k, C)
    return patches.reshape(N * Hout * Wout, k * k * C), Hout, Wout


# ----------------------------------------------------------------------------
# Parameters: raw (PyTorch layout) init + one-time packing
# ----------------------------------------------------------------------------
def init_discriminator_params(key, img_channels, fd):
    """Raw parameters in PyTorch Conv2d layout (Cout, Cin, k, k)."""
    k = 4
    keys = jax.random.split(key, 5)
    chans = [(img_channels, fd), (fd, fd * 2), (fd * 2, fd * 4), (fd * 4, fd * 8), (fd * 8, 1)]
    w = [0.02 * jax.random.normal(kk, (co, ci, k, k), jnp.float32) for kk, (ci, co) in zip(keys, chans)]
    return {
        "conv1_w": w[0], "conv1_b": jnp.zeros((fd,), jnp.float32),
        "block_w": w[1:4],
        "block_gamma": [jnp.ones((c,), jnp.float32) for c in (fd * 2, fd * 4, fd * 8)],
        "block_beta": [jnp.zeros((c,), jnp.float32) for c in (fd * 2, fd * 4, fd * 8)],
        "conv5_w": w[4], "conv5_b": jnp.zeros((1,), jnp.float32),
    }


def prepare_params(raw):
    """One-time packing (outside jit): weights -> bf16 (k*k*Cin_pad, Cp) in im2col row order,
    bias/gamma/beta -> padded f32 (1, Cp).  All pads are exactly zero (lane-zero invariant)."""
    def pack_w(w, cin_pad):
        Cout, Cin, k, _ = w.shape
        cp = _pad128(Cout)
        wt = jnp.transpose(w, (2, 3, 1, 0))                # (di, dj, ci, co) == im2col row order
        wt = jnp.pad(wt, ((0, 0), (0, 0), (0, cin_pad - Cin), (0, cp - Cout)))
        return wt.reshape(k * k * cin_pad, cp).astype(jnp.bfloat16)

    def pad_vec(v, cp):
        return jnp.pad(v.astype(jnp.float32), (0, cp - v.shape[0])).reshape(1, cp)

    fd = raw["conv1_w"].shape[0]
    img_c = raw["conv1_w"].shape[1]
    cp1 = _pad128(fd)
    packed = {"conv1": {"w": pack_w(raw["conv1_w"], img_c), "b": pad_vec(raw["conv1_b"], cp1)},
              "blocks": []}
    cin_pad = cp1
    for w, g, b in zip(raw["block_w"], raw["block_gamma"], raw["block_beta"]):
        cp = _pad128(w.shape[0])
        packed["blocks"].append({"w": pack_w(w, cin_pad),
                                 "gamma": pad_vec(g, cp),
                                 "beta": pad_vec(b, cp)})
        cin_pad = cp
    packed["conv5"] = {"w": pack_w(raw["conv5_w"], cin_pad), "b": pad_vec(raw["conv5_b"], _pad128(1))}
    return packed


# ----------------------------------------------------------------------------
# Forward pass
# ----------------------------------------------------------------------------
def discriminator_forward(params, x_nchw):
    k = 4
    x = jnp.transpose(x_nchw, (0, 2, 3, 1)).astype(jnp.bfloat16)       # NCHW -> NHWC, bf16
    N = x.shape[0]

    # layer 1: Conv2d(img_c, fd, 4, 2, 1) + bias + LeakyReLU(0.2), all in one GEMM epilogue.
    X, Ho, Wo = _im2col(x, k, stride=2, padding=1)
    p = params["conv1"]
    x = pallas_gemm_bias_lrelu(X, p["w"], p["b"], alpha=0.2,
                               out_dtype=jnp.bfloat16).reshape(N, Ho, Wo, -1)

    # blocks 2-4: Conv2d(bias=False) -> InstanceNorm2d(affine) -> LeakyReLU(0.2), fused epilogue.
    for blk in params["blocks"]:
        X, Ho, Wo = _im2col(x, k, stride=2, padding=1)
        x = pallas_gemm_instnorm_lrelu(X, blk["w"], blk["gamma"], blk["beta"],
                                       N=N, HW=Ho * Wo, eps=1e-5, alpha=0.2,
                                       out_dtype=jnp.bfloat16).reshape(N, Ho, Wo, -1)

    # final: Conv2d(fd*8, 1, kernel_size=4, stride=2, padding=0) + bias (no activation), f32 out.
    X, Ho, Wo = _im2col(x, k, stride=2, padding=0)
    p = params["conv5"]
    y = pallas_gemm_bias_lrelu(X, p["w"], p["b"], alpha=None,
                               out_dtype=jnp.float32).reshape(N, Ho, Wo, -1)
    y = y[:, :, :, :1]                                                 # true Cout = 1 (tiny slice)
    return jnp.transpose(y, (0, 3, 1, 2))                              # NHWC -> NCHW


# ----------------------------------------------------------------------------
if __name__ == "__main__":
    key = jax.random.PRNGKey(0)
    kx, kp = jax.random.split(key)

    # DCGAN/WGAN-GP critic topology implies 64x64 inputs (five stride-2 stages -> 1x1 output).
    batch, img_channels, features_d = 2, 3, 8
    x = jax.random.normal(kx, (batch, img_channels, 64, 64), jnp.float32)

    raw = init_discriminator_params(kp, img_channels, features_d)
    params = prepare_params(raw)            # one-time weight packing (bf16, lane-padded)

    fwd = jax.jit(discriminator_forward)
    out = jax.block_until_ready(fwd(params, x))

    assert out.shape == (batch, 1, 1, 1), out.shape
    assert bool(jnp.all(jnp.isfinite(out)))
    print("KERNEL_OK")
</pallas_src>

<mosaic_0001>
module attributes {stable_mosaic.version = 11 : i64} {
  func.func @_gemm_bias_lrelu_kernel(%arg0: i32, %arg1: memref<256x48xbf16, #tpu.memory_space<vmem>>, %arg2: memref<48x128xbf16, #tpu.memory_space<vmem>>, %arg3: memref<1x128xf32, #tpu.memory_space<vmem>>, %arg4: memref<256x128xbf16, #tpu.memory_space<vmem>>) attributes {dimension_semantics = [#tpu.dimension_semantics<parallel>], iteration_bounds = array<i64: 8>, scalar_prefetch = 0 : i64, scratch_operands = 0 : i64, tpu.core_type = #tpu.core_type<tc>, window_params = [{transform_indices = @transform_0, window_bounds = array<i64: 256, 48>}, {pipeline_mode = #tpu.pipeline_mode<synchronous>, transform_indices = @transform_1, window_bounds = array<i64: 48, 128>}, {pipeline_mode = #tpu.pipeline_mode<synchronous>, transform_indices = @transform_2, window_bounds = array<i64: 1, 128>}, {transform_indices = @transform_3, window_bounds = array<i64: 256, 128>}]} {
    %c0 = arith.constant 0 : index
    %c0_0 = arith.constant 0 : index
    %0 = vector.load %arg1[%c0, %c0_0] : memref<256x48xbf16, #tpu.memory_space<vmem>>, vector<256x48xbf16>
    %c0_1 = arith.constant 0 : index
    %c0_2 = arith.constant 0 : index
    %1 = vector.load %arg2[%c0_1, %c0_2] : memref<48x128xbf16, #tpu.memory_space<vmem>>, vector<48x128xbf16>
    %cst = arith.constant dense<0.000000e+00> : vector<256x128xf32>
    %2 = tpu.matmul %0, %1, %cst {dimension_numbers = #tpu.dot_dimension_numbers<[1], [0], [0], [1], [0, 0, 1, 1], [], []>} : vector<256x48xbf16>, vector<48x128xbf16>, vector<256x128xf32> -> vector<256x128xf32>
    %c0_3 = arith.constant 0 : index
    %c0_4 = arith.constant 0 : index
    %3 = vector.load %arg3[%c0_3, %c0_4] : memref<1x128xf32, #tpu.memory_space<vmem>>, vector<1x128xf32>
    %4 = vector.broadcast %3 : vector<1x128xf32> to vector<256x128xf32>
    %5 = arith.addf %2, %4 : vector<256x128xf32>
    %cst_5 = arith.constant 0.000000e+00 : f32
    %6 = vector.broadcast %cst_5 : f32 to vector<256x128xf32>
    %7 = arith.cmpf oge, %5, %6 : vector<256x128xf32>
    %cst_6 = arith.constant 2.000000e-01 : f32
    %8 = vector.broadcast %cst_6 : f32 to vector<256x128xf32>
    %9 = arith.mulf %8, %5 : vector<256x128xf32>
    %10 = arith.select %7, %5, %9 : vector<256x128xi1>, vector<256x128xf32>
    %11 = arith.truncf %10 : vector<256x128xf32> to vector<256x128xbf16>
    %c0_7 = arith.constant 0 : index
    %c0_8 = arith.constant 0 : index
    %12 = vector.load %arg4[%c0_7, %c0_8] : memref<256x128xbf16, #tpu.memory_space<vmem>>, vector<256x128xbf16>
    tpu.vector_store %arg4[%c0_7, %c0_8], %11 {strides = array<i32>} : memref<256x128xbf16, #tpu.memory_space<vmem>>, vector<256x128xbf16>,
    return
  }
  func.func @transform_0(%arg0: i32) -> (i32, i32) {
    %c0_i32 = arith.constant 0 : i32
    %c0_i32_0 = arith.constant 0 : i32
    return %arg0, %c0_i32 : i32, i32
  }
  func.func @transform_1(%arg0: i32) -> (i32, i32) {
    %c0_i32 = arith.constant 0 : i32
    %c0_i32_0 = arith.constant 0 : i32
    %c0_i32_1 = arith.constant 0 : i32
    return %c0_i32, %c0_i32_0 : i32, i32
  }
  func.func @transform_2(%arg0: i32) -> (i32, i32) {
    %c0_i32 = arith.constant 0 : i32
    %c0_i32_0 = arith.constant 0 : i32
    %c0_i32_1 = arith.constant 0 : i32
    return %c0_i32, %c0_i32_0 : i32, i32
  }
  func.func @transform_3(%arg0: i32) -> (i32, i32) {
    %c0_i32 = arith.constant 0 : i32
    %c0_i32_0 = arith.constant 0 : i32
    return %arg0, %c0_i32 : i32, i32
  }
}

module attributes {stable_mosaic.version = 11 : i64} {
  func.func @_gemm_instnorm_lrelu_kernel(%arg0: i32, %arg1: memref<256x2048xbf16, #tpu.memory_space<vmem>>, %arg2: memref<2048x128xbf16, #tpu.memory_space<vmem>>, %arg3: memref<1x128xf32, #tpu.memory_space<vmem>>, %arg4: memref<1x128xf32, #tpu.memory_space<vmem>>, %arg5: memref<256x128xbf16, #tpu.memory_space<vmem>>) attributes {dimension_semantics = [#tpu.dimension_semantics<parallel>], iteration_bounds = array<i64: 2>, scalar_prefetch = 0 : i64, scratch_operands = 0 : i64, tpu.core_type = #tpu.core_type<tc>, window_params = [{transform_indices = @transform_0, window_bounds = array<i64: 256, 2048>}, {pipeline_mode = #tpu.pipeline_mode<synchronous>, transform_indices = @transform_1, window_bounds = array<i64: 2048, 128>}, {pipeline_mode = #tpu.pipeline_mode<synchronous>, transform_indices = @transform_2, window_bounds = array<i64: 1, 128>}, {pipeline_mode = #tpu.pipeline_mode<synchronous>, transform_indices = @transform_3, window_bounds = array<i64: 1, 128>}, {transform_indices = @transform_4, window_bounds = array<i64: 256, 128>}]} {
    %c0 = arith.constant 0 : index
    %c0_0 = arith.constant 0 : index
    %0 = vector.load %arg1[%c0, %c0_0] : memref<256x2048xbf16, #tpu.memory_space<vmem>>, vector<256x2048xbf16>
    %c0_1 = arith.constant 0 : index
    %c0_2 = arith.constant 0 : index
    %1 = vector.load %arg2[%c0_1, %c0_2] : memref<2048x128xbf16, #tpu.memory_space<vmem>>, vector<2048x128xbf16>
    %cst = arith.constant dense<0.000000e+00> : vector<256x128xf32>
    %2 = tpu.matmul %0, %1, %cst {dimension_numbers = #tpu.dot_dimension_numbers<[1], [0], [0], [1], [0, 0, 1, 1], [], []>} : vector<256x2048xbf16>, vector<2048x128xbf16>, vector<256x128xf32> -> vector<256x128xf32>
    %cst_3 = arith.constant dense<0.000000e+00> : vector<128xf32>
    %3 = vector.multi_reduction <add>, %2, %cst_3 [0] : vector<256x128xf32> to vector<128xf32>
    %4 = vector.shape_cast %3 : vector<128xf32> to vector<1x128xf32>
    %cst_4 = arith.constant 2.560000e+02 : f32
    %5 = vector.broadcast %cst_4 : f32 to vector<1x128xf32>
    %6 = arith.divf %4, %5 : vector<1x128xf32>
    %7 = arith.mulf %2, %2 : vector<256x128xf32>
    %cst_5 = arith.constant dense<0.000000e+00> : vector<128xf32>
    %8 = vector.multi_reduction <add>, %7, %cst_5 [0] : vector<256x128xf32> to vector<128xf32>
    %9 = vector.shape_cast %8 : vector<128xf32> to vector<1x128xf32>
    %cst_6 = arith.constant 2.560000e+02 : f32
    %10 = vector.broadcast %cst_6 : f32 to vector<1x128xf32>
    %11 = arith.divf %9, %10 : vector<1x128xf32>
    %12 = arith.mulf %6, %6 : vector<1x128xf32>
    %13 = arith.subf %11, %12 : vector<1x128xf32>
    %cst_7 = arith.constant 0.000000e+00 : f32
    %14 = vector.broadcast %cst_7 : f32 to vector<1x128xf32>
    %15 = arith.maximumf %13, %14 : vector<1x128xf32>
    %16 = vector.broadcast %6 : vector<1x128xf32> to vector<256x128xf32>
    %17 = arith.subf %2, %16 : vector<256x128xf32>
    %cst_8 = arith.constant 9.99999974E-6 : f32
    %18 = vector.broadcast %cst_8 : f32 to vector<1x128xf32>
    %19 = arith.addf %15, %18 : vector<1x128xf32>
    %20 = math.rsqrt %19 : vector<1x128xf32>
    %21 = vector.broadcast %20 : vector<1x128xf32> to vector<256x128xf32>
    %22 = arith.mulf %17, %21 : vector<256x128xf32>
    %c0_9 = arith.constant 0 : index
    %c0_10 = arith.constant 0 : index
    %23 = vector.load %arg3[%c0_9, %c0_10] : memref<1x128xf32, #tpu.memory_space<vmem>>, vector<1x128xf32>
    %24 = vector.broadcast %23 : vector<1x128xf32> to vector<256x128xf32>
    %25 = arith.mulf %22, %24 : vector<256x128xf32>
    %c0_11 = arith.constant 0 : index
    %c0_12 = arith.constant 0 : index
    %26 = vector.load %arg4[%c0_11, %c0_12] : memref<1x128xf32, #tpu.memory_space<vmem>>, vector<1x128xf32>
    %27 = vector.broadcast %26 : vector<1x128xf32> to vector<256x128xf32>
    %28 = arith.addf %25, %27 : vector<256x128xf32>
    %cst_13 = arith.constant 0.000000e+00 : f32
    %29 = vector.broadcast %cst_13 : f32 to vector<256x128xf32>
    %30 = arith.cmpf oge, %28, %29 : vector<256x128xf32>
    %cst_14 = arith.constant 2.000000e-01 : f32
    %31 = vector.broadcast %cst_14 : f32 to vector<256x128xf32>
    %32 = arith.mulf %31, %28 : vector<256x128xf32>
    %33 = arith.select %30, %28, %32 : vector<256x128xi1>, vector<256x128xf32>
    %34 = arith.truncf %33 : vector<256x128xf32> to vector<256x128xbf16>
    %c0_15 = arith.constant 0 : index
    %c0_16 = arith.constant 0 : index
    %35 = vector.load %arg5[%c0_15, %c0_16] : memref<256x128xbf16, #tpu.memory_space<vmem>>, vector<256x128xbf16>
    tpu.vector_store %arg5[%c0_15, %c0_16], %34 {strides = array<i32>} : memref<256x128xbf16, #tpu.memory_space<vmem>>, vector<256x128xbf16>,
    return
  }
  func.func @transform_0(%arg0: i32) -> (i32, i32) {
    %c0_i32 = arith.constant 0 : i32
    %c0_i32_0 = arith.constant 0 : i32
    return %arg0, %c0_i32 : i32, i32
  }
  func.func @transform_1(%arg0: i32) -> (i32, i32) {
    %c0_i32 = arith.constant 0 : i32
    %c0_i32_0 = arith.constant 0 : i32
    %c0_i32_1 = arith.constant 0 : i32
    return %c0_i32, %c0_i32_0 : i32, i32
  }
  func.func @transform_2(%arg0: i32) -> (i32, i32) {
    %c0_i32 = arith.constant 0 : i32
    %c0_i32_0 = arith.constant 0 : i32
    %c0_i32_1 = arith.constant 0 : i32
    return %c0_i32, %c0_i32_0 : i32, i32
  }
  func.func @transform_3(%arg0: i32) -> (i32, i32) {
    %c0_i32 = arith.constant 0 : i32
    %c0_i32_0 = arith.constant 0 : i32
    %c0_i32_1 = arith.constant 0 : i32
    return %c0_i32, %c0_i32_0 : i32, i32
  }
  func.func @transform_4(%arg0: i32) -> (i32, i32) {
    %c0_i32 = arith.constant 0 : i32
    %c0_i32_0 = arith.constant 0 : i32
    return %arg0, %c0_i32 : i32, i32
  }
}

module attributes {stable_mosaic.version = 11 : i64} {
  func.func @_gemm_instnorm_lrelu_kernel(%arg0: i32, %arg1: memref<64x2048xbf16, #tpu.memory_space<vmem>>, %arg2: memref<2048x128xbf16, #tpu.memory_space<vmem>>, %arg3: memref<1x128xf32, #tpu.memory_space<vmem>>, %arg4: memref<1x128xf32, #tpu.memory_space<vmem>>, %arg5: memref<64x128xbf16, #tpu.memory_space<vmem>>) attributes {dimension_semantics = [#tpu.dimension_semantics<parallel>], iteration_bounds = array<i64: 2>, scalar_prefetch = 0 : i64, scratch_operands = 0 : i64, tpu.core_type = #tpu.core_type<tc>, window_params = [{transform_indices = @transform_0, window_bounds = array<i64: 64, 2048>}, {pipeline_mode = #tpu.pipeline_mode<synchronous>, transform_indices = @transform_1, window_bounds = array<i64: 2048, 128>}, {pipeline_mode = #tpu.pipeline_mode<synchronous>, transform_indices = @transform_2, window_bounds = array<i64: 1, 128>}, {pipeline_mode = #tpu.pipeline_mode<synchronous>, transform_indices = @transform_3, window_bounds = array<i64: 1, 128>}, {transform_indices = @transform_4, window_bounds = array<i64: 64, 128>}]} {
    %c0 = arith.constant 0 : index
    %c0_0 = arith.constant 0 : index
    %0 = vector.load %arg1[%c0, %c0_0] : memref<64x2048xbf16, #tpu.memory_space<vmem>>, vector<64x2048xbf16>
    %c0_1 = arith.constant 0 : index
    %c0_2 = arith.constant 0 : index
    %1 = vector.load %arg2[%c0_1, %c0_2] : memref<2048x128xbf16, #tpu.memory_space<vmem>>, vector<2048x128xbf16>
    %cst = arith.constant dense<0.000000e+00> : vector<64x128xf32>
    %2 = tpu.matmul %0, %1, %cst {dimension_numbers = #tpu.dot_dimension_numbers<[1], [0], [0], [1], [0, 0, 1, 1], [], []>} : vector<64x2048xbf16>, vector<2048x128xbf16>, vector<64x128xf32> -> vector<64x128xf32>
    %cst_3 = arith.constant dense<0.000000e+00> : vector<128xf32>
    %3 = vector.multi_reduction <add>, %2, %cst_3 [0] : vector<64x128xf32> to vector<128xf32>
    %4 = vector.shape_cast %3 : vector<128xf32> to vector<1x128xf32>
    %cst_4 = arith.constant 6.400000e+01 : f32
    %5 = vector.broadcast %cst_4 : f32 to vector<1x128xf32>
    %6 = arith.divf %4, %5 : vector<1x128xf32>
    %7 = arith.mulf %2, %2 : vector<64x128xf32>
    %cst_5 = arith.constant dense<0.000000e+00> : vector<128xf32>
    %8 = vector.multi_reduction <add>, %7, %cst_5 [0] : vector<64x128xf32> to vector<128xf32>
    %9 = vector.shape_cast %8 : vector<128xf32> to vector<1x128xf32>
    %cst_6 = arith.constant 6.400000e+01 : f32
    %10 = vector.broadcast %cst_6 : f32 to vector<1x128xf32>
    %11 = arith.divf %9, %10 : vector<1x128xf32>
    %12 = arith.mulf %6, %6 : vector<1x128xf32>
    %13 = arith.subf %11, %12 : vector<1x128xf32>
    %cst_7 = arith.constant 0.000000e+00 : f32
    %14 = vector.broadcast %cst_7 : f32 to vector<1x128xf32>
    %15 = arith.maximumf %13, %14 : vector<1x128xf32>
    %16 = vector.broadcast %6 : vector<1x128xf32> to vector<64x128xf32>
    %17 = arith.subf %2, %16 : vector<64x128xf32>
    %cst_8 = arith.constant 9.99999974E-6 : f32
    %18 = vector.broadcast %cst_8 : f32 to vector<1x128xf32>
    %19 = arith.addf %15, %18 : vector<1x128xf32>
    %20 = math.rsqrt %19 : vector<1x128xf32>
    %21 = vector.broadcast %20 : vector<1x128xf32> to vector<64x128xf32>
    %22 = arith.mulf %17, %21 : vector<64x128xf32>
    %c0_9 = arith.constant 0 : index
    %c0_10 = arith.constant 0 : index
    %23 = vector.load %arg3[%c0_9, %c0_10] : memref<1x128xf32, #tpu.memory_space<vmem>>, vector<1x128xf32>
    %24 = vector.broadcast %23 : vector<1x128xf32> to vector<64x128xf32>
    %25 = arith.mulf %22, %24 : vector<64x128xf32>
    %c0_11 = arith.constant 0 : index
    %c0_12 = arith.constant 0 : index
    %26 = vector.load %arg4[%c0_11, %c0_12] : memref<1x128xf32, #tpu.memory_space<vmem>>, vector<1x128xf32>
    %27 = vector.broadcast %26 : vector<1x128xf32> to vector<64x128xf32>
    %28 = arith.addf %25, %27 : vector<64x128xf32>
    %cst_13 = arith.constant 0.000000e+00 : f32
    %29 = vector.broadcast %cst_13 : f32 to vector<64x128xf32>
    %30 = arith.cmpf oge, %28, %29 : vector<64x128xf32>
    %cst_14 = arith.constant 2.000000e-01 : f32
    %31 = vector.broadcast %cst_14 : f32 to vector<64x128xf32>
    %32 = arith.mulf %31, %28 : vector<64x128xf32>
    %33 = arith.select %30, %28, %32 : vector<64x128xi1>, vector<64x128xf32>
    %34 = arith.truncf %33 : vector<64x128xf32> to vector<64x128xbf16>
    %c0_15 = arith.constant 0 : index
    %c0_16 = arith.constant 0 : index
    %35 = vector.load %arg5[%c0_15, %c0_16] : memref<64x128xbf16, #tpu.memory_space<vmem>>, vector<64x128xbf16>
    tpu.vector_store %arg5[%c0_15, %c0_16], %34 {strides = array<i32>} : memref<64x128xbf16, #tpu.memory_space<vmem>>, vector<64x128xbf16>,
    return
  }
  func.func @transform_0(%arg0: i32) -> (i32, i32) {
    %c0_i32 = arith.constant 0 : i32
    %c0_i32_0 = arith.constant 0 : i32
    return %arg0, %c0_i32 : i32, i32
  }
  func.func @transform_1(%arg0: i32) -> (i32, i32) {
    %c0_i32 = arith.constant 0 : i32
    %c0_i32_0 = arith.constant 0 : i32
    %c0_i32_1 = arith.constant 0 : i32
    return %c0_i32, %c0_i32_0 : i32, i32
  }
  func.func @transform_2(%arg0: i32) -> (i32, i32) {
    %c0_i32 = arith.constant 0 : i32
    %c0_i32_0 = arith.constant 0 : i32
    %c0_i32_1 = arith.constant 0 : i32
    return %c0_i32, %c0_i32_0 : i32, i32
  }
  func.func @transform_3(%arg0: i32) -> (i32, i32) {
    %c0_i32 = arith.constant 0 : i32
    %c0_i32_0 = arith.constant 0 : i32
    %c0_i32_1 = arith.constant 0 : i32
    return %c0_i32, %c0_i32_0 : i32, i32
  }
  func.func @transform_4(%arg0: i32) -> (i32, i32) {
    %c0_i32 = arith.constant 0 : i32
    %c0_i32_0 = arith.constant 0 : i32
    return %arg0, %c0_i32 : i32, i32
  }
}

module attributes {stable_mosaic.version = 11 : i64} {
  func.func @_gemm_instnorm_lrelu_kernel(%arg0: i32, %arg1: memref<16x2048xbf16, #tpu.memory_space<vmem>>, %arg2: memref<2048x128xbf16, #tpu.memory_space<vmem>>, %arg3: memref<1x128xf32, #tpu.memory_space<vmem>>, %arg4: memref<1x128xf32, #tpu.memory_space<vmem>>, %arg5: memref<16x128xbf16, #tpu.memory_space<vmem>>) attributes {dimension_semantics = [#tpu.dimension_semantics<parallel>], iteration_bounds = array<i64: 2>, scalar_prefetch = 0 : i64, scratch_operands = 0 : i64, tpu.core_type = #tpu.core_type<tc>, window_params = [{transform_indices = @transform_0, window_bounds = array<i64: 16, 2048>}, {pipeline_mode = #tpu.pipeline_mode<synchronous>, transform_indices = @transform_1, window_bounds = array<i64: 2048, 128>}, {pipeline_mode = #tpu.pipeline_mode<synchronous>, transform_indices = @transform_2, window_bounds = array<i64: 1, 128>}, {pipeline_mode = #tpu.pipeline_mode<synchronous>, transform_indices = @transform_3, window_bounds = array<i64: 1, 128>}, {transform_indices = @transform_4, window_bounds = array<i64: 16, 128>}]} {
    %c0 = arith.constant 0 : index
    %c0_0 = arith.constant 0 : index
    %0 = vector.load %arg1[%c0, %c0_0] : memref<16x2048xbf16, #tpu.memory_space<vmem>>, vector<16x2048xbf16>
    %c0_1 = arith.constant 0 : index
    %c0_2 = arith.constant 0 : index
    %1 = vector.load %arg2[%c0_1, %c0_2] : memref<2048x128xbf16, #tpu.memory_space<vmem>>, vector<2048x128xbf16>
    %cst = arith.constant dense<0.000000e+00> : vector<16x128xf32>
    %2 = tpu.matmul %0, %1, %cst {dimension_numbers = #tpu.dot_dimension_numbers<[1], [0], [0], [1], [0, 0, 1, 1], [], []>} : vector<16x2048xbf16>, vector<2048x128xbf16>, vector<16x128xf32> -> vector<16x128xf32>
    %cst_3 = arith.constant dense<0.000000e+00> : vector<128xf32>
    %3 = vector.multi_reduction <add>, %2, %cst_3 [0] : vector<16x128xf32> to vector<128xf32>
    %4 = vector.shape_cast %3 : vector<128xf32> to vector<1x128xf32>
    %cst_4 = arith.constant 1.600000e+01 : f32
    %5 = vector.broadcast %cst_4 : f32 to vector<1x128xf32>
    %6 = arith.divf %4, %5 : vector<1x128xf32>
    %7 = arith.mulf %2, %2 : vector<16x128xf32>
    %cst_5 = arith.constant dense<0.000000e+00> : vector<128xf32>
    %8 = vector.multi_reduction <add>, %7, %cst_5 [0] : vector<16x128xf32> to vector<128xf32>
    %9 = vector.shape_cast %8 : vector<128xf32> to vector<1x128xf32>
    %cst_6 = arith.constant 1.600000e+01 : f32
    %10 = vector.broadcast %cst_6 : f32 to vector<1x128xf32>
    %11 = arith.divf %9, %10 : vector<1x128xf32>
    %12 = arith.mulf %6, %6 : vector<1x128xf32>
    %13 = arith.subf %11, %12 : vector<1x128xf32>
    %cst_7 = arith.constant 0.000000e+00 : f32
    %14 = vector.broadcast %cst_7 : f32 to vector<1x128xf32>
    %15 = arith.maximumf %13, %14 : vector<1x128xf32>
    %16 = vector.broadcast %6 : vector<1x128xf32> to vector<16x128xf32>
    %17 = arith.subf %2, %16 : vector<16x128xf32>
    %cst_8 = arith.constant 9.99999974E-6 : f32
    %18 = vector.broadcast %cst_8 : f32 to vector<1x128xf32>
    %19 = arith.addf %15, %18 : vector<1x128xf32>
    %20 = math.rsqrt %19 : vector<1x128xf32>
    %21 = vector.broadcast %20 : vector<1x128xf32> to vector<16x128xf32>
    %22 = arith.mulf %17, %21 : vector<16x128xf32>
    %c0_9 = arith.constant 0 : index
    %c0_10 = arith.constant 0 : index
    %23 = vector.load %arg3[%c0_9, %c0_10] : memref<1x128xf32, #tpu.memory_space<vmem>>, vector<1x128xf32>
    %24 = vector.broadcast %23 : vector<1x128xf32> to vector<16x128xf32>
    %25 = arith.mulf %22, %24 : vector<16x128xf32>
    %c0_11 = arith.constant 0 : index
    %c0_12 = arith.constant 0 : index
    %26 = vector.load %arg4[%c0_11, %c0_12] : memref<1x128xf32, #tpu.memory_space<vmem>>, vector<1x128xf32>
    %27 = vector.broadcast %26 : vector<1x128xf32> to vector<16x128xf32>
    %28 = arith.addf %25, %27 : vector<16x128xf32>
    %cst_13 = arith.constant 0.000000e+00 : f32
    %29 = vector.broadcast %cst_13 : f32 to vector<16x128xf32>
    %30 = arith.cmpf oge, %28, %29 : vector<16x128xf32>
    %cst_14 = arith.constant 2.000000e-01 : f32
    %31 = vector.broadcast %cst_14 : f32 to vector<16x128xf32>
    %32 = arith.mulf %31, %28 : vector<16x128xf32>
    %33 = arith.select %30, %28, %32 : vector<16x128xi1>, vector<16x128xf32>
    %34 = arith.truncf %33 : vector<16x128xf32> to vector<16x128xbf16>
    %c0_15 = arith.constant 0 : index
    %c0_16 = arith.constant 0 : index
    %35 = vector.load %arg5[%c0_15, %c0_16] : memref<16x128xbf16, #tpu.memory_space<vmem>>, vector<16x128xbf16>
    tpu.vector_store %arg5[%c0_15, %c0_16], %34 {strides = array<i32>} : memref<16x128xbf16, #tpu.memory_space<vmem>>, vector<16x128xbf16>,
    return
  }
  func.func @transform_0(%arg0: i32) -> (i32, i32) {
    %c0_i32 = arith.constant 0 : i32
    %c0_i32_0 = arith.constant 0 : i32
    return %arg0, %c0_i32 : i32, i32
  }
  func.func @transform_1(%arg0: i32) -> (i32, i32) {
    %c0_i32 = arith.constant 0 : i32
    %c0_i32_0 = arith.constant 0 : i32
    %c0_i32_1 = arith.constant 0 : i32
    return %c0_i32, %c0_i32_0 : i32, i32
  }
  func.func @transform_2(%arg0: i32) -> (i32, i32) {
    %c0_i32 = arith.constant 0 : i32
    %c0_i32_0 = arith.constant 0 : i32
    %c0_i32_1 = arith.constant 0 : i32
    return %c0_i32, %c0_i32_0 : i32, i32
  }
  func.func @transform_3(%arg0: i32) -> (i32, i32) {
    %c0_i32 = arith.constant 0 : i32
    %c0_i32_0 = arith.constant 0 : i32
    %c0_i32_1 = arith.constant 0 : i32
    return %c0_i32, %c0_i32_0 : i32, i32
  }
  func.func @transform_4(%arg0: i32) -> (i32, i32) {
    %c0_i32 = arith.constant 0 : i32
    %c0_i32_0 = arith.constant 0 : i32
    return %arg0, %c0_i32 : i32, i32
  }
}

module attributes {stable_mosaic.version = 11 : i64} {
  func.func @_gemm_bias_lrelu_kernel(%arg0: i32, %arg1: memref<2x2048xbf16, #tpu.memory_space<vmem>>, %arg2: memref<2048x128xbf16, #tpu.memory_space<vmem>>, %arg3: memref<1x128xf32, #tpu.memory_space<vmem>>, %arg4: memref<2x128xf32, #tpu.memory_space<vmem>>) attributes {dimension_semantics = [#tpu.dimension_semantics<parallel>], iteration_bounds = array<i64: 1>, scalar_prefetch = 0 : i64, scratch_operands = 0 : i64, tpu.core_type = #tpu.core_type<tc>, window_params = [{transform_indices = @transform_0, window_bounds = array<i64: 2, 2048>}, {pipeline_mode = #tpu.pipeline_mode<synchronous>, transform_indices = @transform_1, window_bounds = array<i64: 2048, 128>}, {pipeline_mode = #tpu.pipeline_mode<synchronous>, transform_indices = @transform_2, window_bounds = array<i64: 1, 128>}, {transform_indices = @transform_3, window_bounds = array<i64: 2, 128>}]} {
    %c0 = arith.constant 0 : index
    %c0_0 = arith.constant 0 : index
    %0 = vector.load %arg1[%c0, %c0_0] : memref<2x2048xbf16, #tpu.memory_space<vmem>>, vector<2x2048xbf16>
    %c0_1 = arith.constant 0 : index
    %c0_2 = arith.constant 0 : index
    %1 = vector.load %arg2[%c0_1, %c0_2] : memref<2048x128xbf16, #tpu.memory_space<vmem>>, vector<2048x128xbf16>
    %cst = arith.constant dense<0.000000e+00> : vector<2x128xf32>
    %2 = tpu.matmul %0, %1, %cst {dimension_numbers = #tpu.dot_dimension_numbers<[1], [0], [0], [1], [0, 0, 1, 1], [], []>} : vector<2x2048xbf16>, vector<2048x128xbf16>, vector<2x128xf32> -> vector<2x128xf32>
    %c0_3 = arith.constant 0 : index
    %c0_4 = arith.constant 0 : index
    %3 = vector.load %arg3[%c0_3, %c0_4] : memref<1x128xf32, #tpu.memory_space<vmem>>, vector<1x128xf32>
    %4 = vector.broadcast %3 : vector<1x128xf32> to vector<2x128xf32>
    %5 = arith.addf %2, %4 : vector<2x128xf32>
    %c0_5 = arith.constant 0 : index
    %c0_6 = arith.constant 0 : index
    %6 = vector.load %arg4[%c0_5, %c0_6] : memref<2x128xf32, #tpu.memory_space<vmem>>, vector<2x128xf32>
    tpu.vector_store %arg4[%c0_5, %c0_6], %5 {strides = array<i32>} : memref<2x128xf32, #tpu.memory_space<vmem>>, vector<2x128xf32>,
    return
  }
  func.func @transform_0(%arg0: i32) -> (i32, i32) {
    %c0_i32 = arith.constant 0 : i32
    %c0_i32_0 = arith.constant 0 : i32
    return %arg0, %c0_i32 : i32, i32
  }
  func.func @transform_1(%arg0: i32) -> (i32, i32) {
    %c0_i32 = arith.constant 0 : i32
    %c0_i32_0 = arith.constant 0 : i32
    %c0_i32_1 = arith.constant 0 : i32
    return %c0_i32, %c0_i32_0 : i32, i32
  }
  func.func @transform_2(%arg0: i32) -> (i32, i32) {
    %c0_i32 = arith.constant 0 : i32
    %c0_i32_0 = arith.constant 0 : i32
    %c0_i32_1 = arith.constant 0 : i32
    return %c0_i32, %c0_i32_0 : i32, i32
  }
  func.func @transform_3(%arg0: i32) -> (i32, i32) {
    %c0_i32 = arith.constant 0 : i32
    %c0_i32_0 = arith.constant 0 : i32
    return %arg0, %c0_i32 : i32, i32
  }
}

</mosaic_0001>

<bundles_post_ra>
// kernel: discriminator_forward.5
= control target key start
LH: loop header
LB: loop body
LE: loop exit
PB: predicated region body
PF: predicated region fallthrough
CT: control target
= control target key end

     0   :  { %s1164_s12 = smov 0   ;;  %s1292_s0 = inlined_call_operand.vmem [shape: bf16[2048,48], index: 0, kind: input, shape index: {}]   ;;  %s1293_s1 = inlined_call_operand.vmem [shape: bf16[48,128], index: 1, kind: input, shape index: {}]   ;;  %s1294_s2 = inlined_call_operand.vmem [shape: f32[1,128], index: 2, kind: input, shape index: {}]   ;;  %s1295_s3 = inlined_call_operand.vmem [shape: bf16[2048,128], index: 3, kind: output, shape index: {}]  }
   0x1 LB: > { %s840_s13 = sadd.s32 4294967295, %s1142_s12   ;;  %p844_p0 = scmp.ge.s32.totalorder %s1142_s12, 1  ;;  %s1142_s12 = sphi %s1164_s12, %s13_s12  }
   0x2   : > { %p138_p1 = scmp.lt.s32.totalorder %s1142_s12, 9 }
   0x4   : > { %p139_p2 = pnand %p844_p0, %p138_p1 }
   0x5   : > { %v1117_v0 = vld [vmem:[%s1293_s1] sm:$0xff] (!%p139_p2)   ;;  %s845_s16 = sshll.u32 (!%p139_p2), %s840_s13, 5  ;;  %v1118_v1 = vld [vmem:[%s1293_s1 + $0x8] sm:$0xff] (!%p139_p2)   ;;  %v1119_v2 = vld [vmem:[%s1293_s1 + $0x10] sm:$0xff] (!%p139_p2)   ;;  %vm318_vm0 = vcmask (!%p139_p2), 392192  }
   0x6   : > { %142 = sbr.rel (%p139_p2) target bundleno = 273 (0x111), region = 32  ;;  %p163_p3 = scmp.lt.s32.totalorder (!%p139_p2), %s845_s16, 255  ;;  %1065 = vmatprep.subr.bf16.mxu0 (!%p139_p2), %v1117_v0  ;;  %1103 = vmatprep.subr.bf16.mxu1 (!%p139_p2), %v1117_v0  ;;  %v1226_v19 = vld [vmem:[%s1294_s2] ss:$0 sm:$0xff] (!%p139_p2) }
   0x7   : > { %1066 = vmatpush3.bf16.msra.mxu0 (!%p139_p2), %v1117_v0  ;;  %1106 = vmatpush3.bf16.msra.mxu1 (!%p139_p2), %v1117_v0 }
   0x8   : > { %1067 = vmatprep.subr.bf16.mxu0 (!%p139_p2), %v1118_v1  ;;  %1104 = vmatprep.subr.bf16.mxu1 (!%p139_p2), %v1118_v1 }
   0xb   : > { %1068 = vmatpush3.bf16.msra.mxu0 (!%p139_p2), %v1118_v1  ;;  %1107 = vmatpush3.bf16.msra.mxu1 (!%p139_p2), %v1118_v1 }
   0xc   : > { %1069 = vmatprep.subr.bf16.mxu0 (!%p139_p2), %v1119_v2  ;;  %1105 = vmatprep.subr.bf16.mxu1 (!%p139_p2), %v1119_v2 }
   0xd   : > { %s1297_s16 = smov (!%p163_p3, %s845_s16), 255 }
   0xe   : > { %s846_s21 = sshll.u32 %s1297_s16, 2 }
   0xf   : > { %s1189_s24 = scalar_lea.vmem %s1292_s0, %s846_s21  ;;  %1070 = vmatpush3.bf16.msra.mxu0 %v1119_v2  ;;  %1108 = vmatpush3.bf16.msra.mxu1 %v1119_v2  ;;  %s1243_s29 = scalar_lea.vmem %s1295_s3, %s846_s21 }
  0x10   : > { %v1120_v3 = vld [vmem:[%s1189_s24] sm:$0xff]   ;;  %v1122_v5 = vld [vmem:[%s1189_s24 + $0x8] sm:$0xff]   ;;  %v1124_v7 = vld [vmem:[%s1189_s24 + $0x10] sm:$0xff]  }
  0x11   : > { %v1121_v4 = vld [vmem:[%s1189_s24 + $0x40] sm:$0xff]   ;;  %1071 = vmatprep.mubr.msk.bf16.mxu0 %vm318_vm0, %v1120_v3  ;;  %v1123_v6 = vld [vmem:[%s1189_s24 + $0x48] sm:$0xff]   ;;  %v1125_v8 = vld [vmem:[%s1189_s24 + $0x50] sm:$0xff]  }
  0x12   : > { %1087 = vmatprep.mubr.msk.bf16.mxu1 %vm318_vm0, %v1121_v4  ;;  %1072 = vmatmul.mubr.msk.bf16.vlgmr.msra.gmra.mrb[0].mxu0 %vm318_vm0, %v1122_v5  ;;  %v1126_v9 = vld [vmem:[%s1189_s24 + $0x18] sm:$0xff]   ;;  %v1128_v11 = vld [vmem:[%s1189_s24 + $0x20] sm:$0xff]   ;;  %v1130_v13 = vld [vmem:[%s1189_s24 + $0x28] sm:$0xff]  }
  0x13   : > { %1088 = vmatmul.mubr.msk.bf16.vlgmr.msra.gmra.mrb[0].mxu1 %vm318_vm0, %v1123_v6  ;;  %1075 = vmatprep.mubr.msk.bf16.mxu0 %vm318_vm0, %v1124_v7  ;;  %v1127_v10 = vld [vmem:[%s1189_s24 + $0x58] sm:$0xff]   ;;  %v1129_v12 = vld [vmem:[%s1189_s24 + $0x60] sm:$0xff]   ;;  %v1131_v14 = vld [vmem:[%s1189_s24 + $0x68] sm:$0xff]  }
  0x14   : > { %1091 = vmatprep.mubr.msk.bf16.mxu1 %vm318_vm0, %v1125_v8  ;;  %v1132_v15 = vld [vmem:[%s1189_s24 + $0x30] sm:$0xff]   ;;  %v1134_v17 = vld [vmem:[%s1189_s24 + $0x38] sm:$0xff]  }
  0x15   : > { %v1133_v16 = vld [vmem:[%s1189_s24 + $0x70] sm:$0xff]   ;;  %v1135_v18 = vld [vmem:[%s1189_s24 + $0x78] sm:$0xff]  }
  0x1a   : > { %1076 = vmatmul.mubr.msk.bf16.gmra.mrb[4].mxu0 %vm318_vm0, %v1126_v9 }
  0x1b   : > { %1092 = vmatmul.mubr.msk.bf16.gmra.mrb[4].mxu1 %vm318_vm0, %v1127_v10  ;;  %1079 = vmatprep.mubr.msk.bf16.mxu0 %vm318_vm0, %v1128_v11 }
  0x1c   : > { %1095 = vmatprep.mubr.msk.bf16.mxu1 %vm318_vm0, %v1129_v12 }
  0x22   : > { %1080 = vmatmul.mubr.msk.bf16.gmra.mrb[8].mxu0 %vm318_vm0, %v1130_v13 }
  0x23   : > { %1096 = vmatmul.mubr.msk.bf16.gmra.mrb[8].mxu1 %vm318_vm0, %v1131_v14  ;;  %1083 = vmatprep.mubr.msk.bf16.mxu0 %vm318_vm0, %v1132_v15 }
  0x24   : > { %1099 = vmatprep.mubr.msk.bf16.mxu1 %vm318_vm0, %v1133_v16 }
  0x2a   : > { %1084 = vmatmul.mubr.msk.bf16.gmra.mrb[12].mxu0 %vm318_vm0, %v1134_v17 }
  0x2b   : > { %1100 = vmatmul.mubr.msk.bf16.gmra.mrb[12].mxu1 %vm318_vm0, %v1135_v18 }
  0xe5   : > { %v1073_v20 = vpop.f32.mrb[0].mxu0 }
  0xe6   : > { %v1089_v21 = vpop.f32.mrb[0].mxu1  ;;  %v410_v22 = vadd.f32 %v1073_v20, %v1226_v19  ;;  %v401_v24 = vpop.f32.mrb[1].mxu0 }
  0xe7   : > { %v474_v23 = vadd.f32 %v1089_v21, %v1226_v19  ;;  %v465_v25 = vpop.f32.mrb[1].mxu1  ;;  %v402_v26 = vadd.f32 %v1226_v19, %v401_v24  ;;  %v1074_v28 = vpop.f32.mrb[2].mxu0 }
  0xe8   : > { %v466_v27 = vadd.f32 %v1226_v19, %v465_v25  ;;  %v1090_v29 = vpop.f32.mrb[2].mxu1  ;;  %vm530_vm1 = vcmp.ge.f32.partialorder %v410_v22, 0.0  ;;  %v562_v30 = vmul.f32 0.2, %v410_v22  ;;  %v413_v34 = vadd.f32 %v1074_v28, %v1226_v19  ;;  %v404_v36 = vpop.f32.mrb[3].mxu0 }
  0xe9   : > { %vm546_vm2 = vcmp.ge.f32.partialorder %v474_v23, 0.0  ;;  %v578_v31 = vmul.f32 0.2, %v474_v23  ;;  %vm528_vm3 = vcmp.ge.f32.partialorder %v402_v26, 0.0  ;;  %v560_v32 = vmul.f32 0.2, %v402_v26 }
  0xea   : > { %vm544_vm4 = vcmp.ge.f32.partialorder %v466_v27, 0.0  ;;  %v576_v33 = vmul.f32 0.2, %v466_v27  ;;  %v477_v35 = vadd.f32 %v1090_v29, %v1226_v19  ;;  %v468_v37 = vpop.f32.mrb[3].mxu1  ;;  %v594_v38 = vsel %vm530_vm1, %v410_v22, %v562_v30 }
  0xeb   : > { %v610_v39 = vsel %vm546_vm2, %v474_v23, %v578_v31  ;;  %v405_v40 = vadd.f32 %v1226_v19, %v404_v36  ;;  %v469_v41 = vadd.f32 %v1226_v19, %v468_v37  ;;  %vm531_vm5 = vcmp.ge.f32.partialorder %v413_v34, 0.0 }
  0xec   : > { %v563_v42 = vmul.f32 0.2, %v413_v34  ;;  %vm547_vm6 = vcmp.ge.f32.partialorder %v477_v35, 0.0  ;;  %v579_v43 = vmul.f32 0.2, %v477_v35  ;;  %v592_v46 = vsel %vm528_vm3, %v402_v26, %v560_v32 }
  0xed   : > { %vm529_vm7 = vcmp.ge.f32.partialorder %v405_v40, 0.0  ;;  %v561_v44 = vmul.f32 0.2, %v405_v40  ;;  %vm545_vm8 = vcmp.ge.f32.partialorder %v469_v41, 0.0  ;;  %v577_v45 = vmul.f32 0.2, %v469_v41 }
  0xee   : > { %v608_v47 = vsel %vm544_vm4, %v466_v27, %v576_v33  ;;  %v595_v48 = vsel %vm531_vm5, %v413_v34, %v563_v42  ;;  %v611_v49 = vsel %vm547_vm6, %v477_v35, %v579_v43  ;;  %v1077_v50 = vpop.f32.mrb[4].mxu0  ;;  %v1093_v51 = vpop.f32.mrb[4].mxu1 }
  0xef   : > { %v959_v52 = vpack.c.bf16 %v595_v48, %v594_v38  ;;  %v999_v53 = vpack.c.bf16 %v611_v49, %v610_v39  ;;  %v593_v54 = vsel %vm529_vm7, %v405_v40, %v561_v44  ;;  %v609_v55 = vsel %vm545_vm8, %v469_v41, %v577_v45  ;;  %v417_v56 = vpop.f32.mrb[5].mxu0  ;;  %v481_v57 = vpop.f32.mrb[5].mxu1 }
  0xf0   : > { %v954_v58 = vpack.c.bf16 %v593_v54, %v592_v46  ;;  %v994_v59 = vpack.c.bf16 %v609_v55, %v608_v47  ;;  %v426_v60 = vadd.f32 %v1077_v50, %v1226_v19  ;;  %v490_v61 = vadd.f32 %v1093_v51, %v1226_v19  ;;  %v1078_v62 = vpop.f32.mrb[6].mxu0  ;;  %v1094_v63 = vpop.f32.mrb[6].mxu1 }
  0xf1   : > { %1031 = vst [vmem:[%s1243_s29 + $0x8] sm:$0xff] %v959_v52   ;;  %1039 = vst [vmem:[%s1243_s29 + $0x48] sm:$0xff] %v999_v53   ;;  %v418_v0 = vadd.f32 %v1226_v19, %v417_v56  ;;  %v482_v1 = vadd.f32 %v1226_v19, %v481_v57  ;;  %v429_v2 = vadd.f32 %v1078_v62, %v1226_v19  ;;  %v420_v4 = vpop.f32.mrb[7].mxu0  ;;  %v484_v5 = vpop.f32.mrb[7].mxu1 }
  0xf2   : > { %v493_v3 = vadd.f32 %v1094_v63, %v1226_v19  ;;  %955 = vst [vmem:[%s1243_s29] sm:$0xff] %v954_v58   ;;  %1038 = vst [vmem:[%s1243_s29 + $0x40] sm:$0xff] %v994_v59   ;;  %vm534_vm9 = vcmp.ge.f32.partialorder %v426_v60, 0.0  ;;  %v566_v6 = vmul.f32 0.2, %v426_v60  ;;  %vm550_vm10 = vcmp.ge.f32.partialorder %v490_v61, 0.0 }
  0xf3   : > { %v582_v7 = vmul.f32 0.2, %v490_v61  ;;  %vm532_vm11 = vcmp.ge.f32.partialorder %v418_v0, 0.0  ;;  %v564_v8 = vmul.f32 0.2, %v418_v0  ;;  %vm548_vm12 = vcmp.ge.f32.partialorder %v482_v1, 0.0 }
  0xf4   : > { %v598_v9 = vsel %vm534_vm9, %v426_v60, %v566_v6  ;;  %v580_v10 = vmul.f32 0.2, %v482_v1  ;;  %vm535_vm13 = vcmp.ge.f32.partialorder %v429_v2, 0.0  ;;  %v567_v11 = vmul.f32 0.2, %v429_v2 }
  0xf5   : > { %v614_v12 = vsel %vm550_vm10, %v490_v61, %v582_v7  ;;  %v596_v13 = vsel %vm532_vm11, %v418_v0, %v564_v8  ;;  %vm551_vm14 = vcmp.ge.f32.partialorder %v493_v3, 0.0  ;;  %v583_v14 = vmul.f32 0.2, %v493_v3  ;;  %v1081_v15 = vpop.f32.mrb[8].mxu0 }
  0xf6   : > { %v1097_v16 = vpop.f32.mrb[8].mxu1  ;;  %v599_v17 = vsel %vm535_vm13, %v429_v2, %v567_v11  ;;  %v421_v18 = vadd.f32 %v1226_v19, %v420_v4  ;;  %v485_v20 = vadd.f32 %v1226_v19, %v484_v5  ;;  %v442_v21 = vadd.f32 %v1081_v15, %v1226_v19  ;;  %v433_v22 = vpop.f32.mrb[9].mxu0 }
  0xf7   : > { %v497_v23 = vpop.f32.mrb[9].mxu1  ;;  %v969_v24 = vpack.c.bf16 %v599_v17, %v598_v9  ;;  %v615_v25 = vsel %vm551_vm14, %v493_v3, %v583_v14  ;;  %v506_v26 = vadd.f32 %v1097_v16, %v1226_v19  ;;  %v434_v27 = vadd.f32 %v1226_v19, %v433_v22  ;;  %v1082_v28 = vpop.f32.mrb[10].mxu0 }
  0xf8   : > { %v1098_v29 = vpop.f32.mrb[10].mxu1  ;;  %v1009_v30 = vpack.c.bf16 %v615_v25, %v614_v12  ;;  %vm533_vm15 = vcmp.ge.f32.partialorder %v421_v18, 0.0  ;;  %v565_v31 = vmul.f32 0.2, %v421_v18  ;;  %vm549_vm0 = vcmp.ge.f32.partialorder %v485_v20, 0.0  ;;  %v436_v32 = vpop.f32.mrb[11].mxu0 }
  0xf9   : > { %v500_v33 = vpop.f32.mrb[11].mxu1  ;;  %1033 = vst [vmem:[%s1243_s29 + $0x18] sm:$0xff] %v969_v24   ;;  %v581_v34 = vmul.f32 0.2, %v485_v20  ;;  %vm538_vm1 = vcmp.ge.f32.partialorder %v442_v21, 0.0  ;;  %vm554_vm2 = vcmp.ge.f32.partialorder %v506_v26, 0.0  ;;  %v612_v36 = vsel %vm548_vm12, %v482_v1, %v580_v10 }
  0xfa   : > { %v570_v35 = vmul.f32 0.2, %v442_v21  ;;  %1041 = vst [vmem:[%s1243_s29 + $0x58] sm:$0xff] %v1009_v30   ;;  %v597_v37 = vsel %vm533_vm15, %v421_v18, %v565_v31  ;;  %v586_v38 = vmul.f32 0.2, %v506_v26  ;;  %vm536_vm3 = vcmp.ge.f32.partialorder %v434_v27, 0.0 }
  0xfb   : > { %v964_v39 = vpack.c.bf16 %v597_v37, %v596_v13  ;;  %v613_v40 = vsel %vm549_vm0, %v485_v20, %v581_v34  ;;  %v568_v41 = vmul.f32 0.2, %v434_v27  ;;  %v498_v42 = vadd.f32 %v1226_v19, %v497_v23 }
  0xfc   : > { %v1004_v43 = vpack.c.bf16 %v613_v40, %v612_v36  ;;  %v602_v44 = vsel %vm538_vm1, %v442_v21, %v570_v35  ;;  %v618_v45 = vsel %vm554_vm2, %v506_v26, %v586_v38  ;;  %v445_v46 = vadd.f32 %v1082_v28, %v1226_v19 }
  0xfd   : > { %1032 = vst [vmem:[%s1243_s29 + $0x10] sm:$0xff] %v964_v39   ;;  %vm552_vm4 = vcmp.ge.f32.partialorder %v498_v42, 0.0  ;;  %v584_v47 = vmul.f32 0.2, %v498_v42  ;;  %v509_v48 = vadd.f32 %v1098_v29, %v1226_v19  ;;  %v437_v49 = vadd.f32 %v1226_v19, %v436_v32  ;;  %v1085_v50 = vpop.f32.mrb[12].mxu0 }
  0xfe   : > { %v1101_v51 = vpop.f32.mrb[12].mxu1  ;;  %1040 = vst [vmem:[%s1243_s29 + $0x50] sm:$0xff] %v1004_v43   ;;  %vm539_vm5 = vcmp.ge.f32.partialorder %v445_v46, 0.0  ;;  %v571_v52 = vmul.f32 0.2, %v445_v46  ;;  %v501_v53 = vadd.f32 %v1226_v19, %v500_v33  ;;  %v458_v54 = vadd.f32 %v1085_v50, %v1226_v19  ;;  %v449_v55 = vpop.f32.mrb[13].mxu0 }
  0xff   : > { %v513_v56 = vpop.f32.mrb[13].mxu1  ;;  %v600_v57 = vsel %vm536_vm3, %v434_v27, %v568_v41  ;;  %vm555_vm6 = vcmp.ge.f32.partialorder %v509_v48, 0.0  ;;  %v587_v58 = vmul.f32 0.2, %v509_v48  ;;  %vm537_vm7 = vcmp.ge.f32.partialorder %v437_v49, 0.0  ;;  %v1086_v59 = vpop.f32.mrb[14].mxu0 }
 0x100   : > { %v1102_v60 = vpop.f32.mrb[14].mxu1  ;;  %v603_v61 = vsel %vm539_vm5, %v445_v46, %v571_v52  ;;  %v569_v62 = vmul.f32 0.2, %v437_v49  ;;  %vm553_vm8 = vcmp.ge.f32.partialorder %v501_v53, 0.0  ;;  %v585_v63 = vmul.f32 0.2, %v501_v53 }
 0x101   : > { %v452_v0 = vpop.f32.mrb[15].mxu0  ;;  %v616_v1 = vsel %vm552_vm4, %v498_v42, %v584_v47  ;;  %v979_v2 = vpack.c.bf16 %v603_v61, %v602_v44  ;;  %v619_v3 = vsel %vm555_vm6, %v509_v48, %v587_v58  ;;  %v574_v4 = vmul.f32 0.2, %v458_v54  ;;  %v516_v5 = vpop.f32.mrb[15].mxu1 }
 0x102   : > { %v1019_v6 = vpack.c.bf16 %v619_v3, %v618_v45  ;;  %v601_v7 = vsel %vm537_vm7, %v437_v49, %v569_v62  ;;  %v617_v8 = vsel %vm553_vm8, %v501_v53, %v585_v63  ;;  %v522_v9 = vadd.f32 %v1101_v51, %v1226_v19 }
 0x103   : > { %1035 = vst [vmem:[%s1243_s29 + $0x28] sm:$0xff] %v979_v2   ;;  %v974_v10 = vpack.c.bf16 %v601_v7, %v600_v57  ;;  %v1014_v11 = vpack.c.bf16 %v617_v8, %v616_v1  ;;  %vm542_vm9 = vcmp.ge.f32.partialorder %v458_v54, 0.0  ;;  %v450_v12 = vadd.f32 %v1226_v19, %v449_v55 }
 0x104   : > { %1043 = vst [vmem:[%s1243_s29 + $0x68] sm:$0xff] %v1019_v6   ;;  %vm558_vm10 = vcmp.ge.f32.partialorder %v522_v9, 0.0  ;;  %v590_v13 = vmul.f32 0.2, %v522_v9  ;;  %v514_v14 = vadd.f32 %v1226_v19, %v513_v56  ;;  %v461_v15 = vadd.f32 %v1086_v59, %v1226_v19 }
 0x105   : > { %1034 = vst [vmem:[%s1243_s29 + $0x20] sm:$0xff] %v974_v10   ;;  %1042 = vst [vmem:[%s1243_s29 + $0x60] sm:$0xff] %v1014_v11   ;;  %v572_v16 = vmul.f32 0.2, %v450_v12  ;;  %v525_v17 = vadd.f32 %v1102_v60, %v1226_v19  ;;  %v453_v18 = vadd.f32 %v1226_v19, %v452_v0  ;;  %v606_v20 = vsel %vm542_vm9, %v458_v54, %v574_v4 }
 0x106   : > { %vm540_vm11 = vcmp.ge.f32.partialorder %v450_v12, 0.0  ;;  %vm543_vm12 = vcmp.ge.f32.partialorder %v461_v15, 0.0  ;;  %v622_v21 = vsel %vm558_vm10, %v522_v9, %v590_v13  ;;  %v575_v22 = vmul.f32 0.2, %v461_v15 }
 0x107   : > { %vm559_vm13 = vcmp.ge.f32.partialorder %v525_v17, 0.0  ;;  %v591_v23 = vmul.f32 0.2, %v525_v17  ;;  %vm556_vm14 = vcmp.ge.f32.partialorder %v514_v14, 0.0  ;;  %vm541_vm15 = vcmp.ge.f32.partialorder %v453_v18, 0.0 }
 0x108   : > { %v573_v24 = vmul.f32 0.2, %v453_v18  ;;  %v517_v25 = vadd.f32 %v1226_v19, %v516_v5  ;;  %v604_v26 = vsel %vm540_vm11, %v450_v12, %v572_v16  ;;  %v588_v27 = vmul.f32 0.2, %v514_v14 }
 0x109   : > { %v607_v28 = vsel %vm543_vm12, %v461_v15, %v575_v22  ;;  %v623_v29 = vsel %vm559_vm13, %v525_v17, %v591_v23 }
 0x10a   : > { %v989_v30 = vpack.c.bf16 %v607_v28, %v606_v20  ;;  %v1029_v31 = vpack.c.bf16 %v623_v29, %v622_v21  ;;  %v605_v32 = vsel %vm541_vm15, %v453_v18, %v573_v24  ;;  %vm557_vm0 = vcmp.ge.f32.partialorder %v517_v25, 0.0 }
 0x10b   : > { %v984_v33 = vpack.c.bf16 %v605_v32, %v604_v26  ;;  %v589_v34 = vmul.f32 0.2, %v517_v25  ;;  %v620_v35 = vsel %vm556_vm14, %v514_v14, %v588_v27 }
 0x10c   : > { %1037 = vst [vmem:[%s1243_s29 + $0x38] sm:$0xff] %v989_v30   ;;  %1045 = vst [vmem:[%s1243_s29 + $0x78] sm:$0xff] %v1029_v31  }
 0x10d   : > { %1036 = vst [vmem:[%s1243_s29 + $0x30] sm:$0xff] %v984_v33   ;;  %v621_v36 = vsel %vm557_vm0, %v517_v25, %v589_v34 }
 0x10e   : > { %v1024_v37 = vpack.c.bf16 %v621_v36, %v620_v35 }
 0x110   : > { %1044 = vst [vmem:[%s1243_s29 + $0x70] sm:$0xff] %v1024_v37  }
 0x111 PF: > { %s13_s12 = sadd.s32 1, %s1142_s12  }
 0x112   : > { %p10_p4 = scmp.ge.s32.totalorder %s13_s12, 10  }
 0x114   :  { %12 = sbr.rel (!%p10_p4) target bundleno = 1 (0x1), region = 62 }

// kernel: discriminator_forward.6
= control target key start
LH: loop header
LB: loop body
LE: loop exit
PB: predicated region body
PF: predicated region fallthrough
CT: control target
= control target key end

     0   :  { %s6246_s15 = smov 0   ;;  %s7737_s0 = inlined_call_operand.vmem [shape: bf16[512,2048], index: 0, kind: input, shape index: {}]   ;;  %s7738_s1 = inlined_call_operand.vmem [shape: bf16[2048,128], index: 1, kind: input, shape index: {}]   ;;  %s7739_s2 = inlined_call_operand.vmem [shape: f32[1,128], index: 2, kind: input, shape index: {}]   ;;  %s7740_s3 = inlined_call_operand.vmem [shape: f32[1,128], index: 3, kind: input, shape index: {}]   ;;  %s7741_s4 = inlined_call_operand.vmem [shape: bf16[512,128], index: 4, kind: output, shape index: {}]  }
   0x1 LB: > { %s4621_s16 = sadd.s32 4294967295, %s6219_s15   ;;  %p4625_p0 = scmp.ge.s32.totalorder %s6219_s15, 1  ;;  %s6219_s15 = sphi %s6246_s15, %s14_s15  }
   0x2   : > { %p164_p1 = scmp.lt.s32.totalorder %s6219_s15, 3 }
   0x4   : > { %p165_p2 = pnand %p4625_p0, %p164_p1 }
   0x5   : > { %v6083_v0 = vld [vmem:[%s7738_s1 + $0x40] sm:$0xff] (!%p165_p2)   ;;  %v6087_v4 = vld [vmem:[%s7738_s1 + $0x48] sm:$0xff] (!%p165_p2)   ;;  %v6091_v8 = vld [vmem:[%s7738_s1 + $0x50] sm:$0xff] (!%p165_p2)   ;;  %s4626_s25 = sshll.u32 (!%p165_p2), %s4621_s16, 5 }
   0x6   : > { %168 = sbr.rel (%p165_p2) target bundleno = 857 (0x359), region = 36  ;;  %v6084_v1 = vld [vmem:[%s7738_s1 + $0xc0] sm:$0xff] (!%p165_p2)   ;;  %5179 = vmatprep.subr.bf16.mxu0 (!%p165_p2), %v6083_v0  ;;  %v6088_v5 = vld [vmem:[%s7738_s1 + $0xc8] sm:$0xff] (!%p165_p2)   ;;  %v6092_v9 = vld [vmem:[%s7738_s1 + $0xd0] sm:$0xff] (!%p165_p2)   ;;  %p192_p3 = scmp.lt.s32.totalorder (!%p165_p2), %s4626_s25, 63 }
   0x7   : > { %v6085_v2 = vld [vmem:[%s7738_s1] sm:$0xff] (!%p165_p2)   ;;  %5291 = vmatprep.subr.bf16.mxu1 (!%p165_p2), %v6084_v1  ;;  %v6089_v6 = vld [vmem:[%s7738_s1 + $0x8] sm:$0xff] (!%p165_p2)   ;;  %v6093_v10 = vld [vmem:[%s7738_s1 + $0x10] sm:$0xff] (!%p165_p2)  }
   0x8   : > { %v6086_v3 = vld [vmem:[%s7738_s1 + $0x80] sm:$0xff] (!%p165_p2)   ;;  %5180 = vmatpush3.bf16.msra.mxu0 (!%p165_p2), %v6085_v2  ;;  %v6090_v7 = vld [vmem:[%s7738_s1 + $0x88] sm:$0xff] (!%p165_p2)   ;;  %v6094_v11 = vld [vmem:[%s7738_s1 + $0x90] sm:$0xff] (!%p165_p2)  }
   0x9   : > { %5292 = vmatpush3.bf16.msra.mxu1 (!%p165_p2), %v6086_v3  ;;  %5181 = vmatprep.subr.bf16.mxu0 (!%p165_p2), %v6087_v4  ;;  %v6095_v12 = vld [vmem:[%s7738_s1 + $0x58] sm:$0xff] (!%p165_p2)   ;;  %v6099_v16 = vld [vmem:[%s7738_s1 + $0x60] sm:$0xff] (!%p165_p2)   ;;  %v6103_v20 = vld [vmem:[%s7738_s1 + $0x68] sm:$0xff] (!%p165_p2)  }
   0xa   : > { %5293 = vmatprep.subr.bf16.mxu1 (!%p165_p2), %v6088_v5  ;;  %v6096_v13 = vld [vmem:[%s7738_s1 + $0xd8] sm:$0xff] (!%p165_p2)   ;;  %v6100_v17 = vld [vmem:[%s7738_s1 + $0xe0] sm:$0xff] (!%p165_p2)   ;;  %v6104_v21 = vld [vmem:[%s7738_s1 + $0xe8] sm:$0xff] (!%p165_p2)  }
   0xb   : > { %v6097_v14 = vld [vmem:[%s7738_s1 + $0x18] sm:$0xff] (!%p165_p2)   ;;  %v6101_v18 = vld [vmem:[%s7738_s1 + $0x20] sm:$0xff] (!%p165_p2)   ;;  %v6105_v22 = vld [vmem:[%s7738_s1 + $0x28] sm:$0xff] (!%p165_p2)  }
   0xc   : > { %5182 = vmatpush3.bf16.msra.mxu0 (!%p165_p2), %v6089_v6  ;;  %v6098_v15 = vld [vmem:[%s7738_s1 + $0x98] sm:$0xff] (!%p165_p2)   ;;  %v6102_v19 = vld [vmem:[%s7738_s1 + $0xa0] sm:$0xff] (!%p165_p2)   ;;  %v6106_v23 = vld [vmem:[%s7738_s1 + $0xa8] sm:$0xff] (!%p165_p2)  }
   0xd   : > { %5294 = vmatpush3.bf16.msra.mxu1 %v6090_v7  ;;  %5183 = vmatprep.subr.bf16.mxu0 %v6091_v8  ;;  %s7757_s25 = smov (!%p192_p3, %s4626_s25), 63  ;;  %v6107_v24 = vld [vmem:[%s7738_s1 + $0x70] sm:$0xff]   ;;  %v6111_v28 = vld [vmem:[%s7738_s1 + $0x78] sm:$0xff]   ;;  %v6115_v40 = vld [vmem:[%s7738_s1 + $0x140] sm:$0xff]  }
   0xe   : > { %5295 = vmatprep.subr.bf16.mxu1 %v6092_v9  ;;  %v6108_v25 = vld [vmem:[%s7738_s1 + $0xf0] sm:$0xff]   ;;  %s5051_s23 = sshll.u32 %s7757_s25, 6  ;;  %v6112_v29 = vld [vmem:[%s7738_s1 + $0xf8] sm:$0xff]   ;;  %v6116_v41 = vld [vmem:[%s7738_s1 + $0x100] sm:$0xff]   ;;  %s4630_s24 = sshll.u32 %s7757_s25, 2 }
   0xf   : > { %v6109_v26 = vld [vmem:[%s7738_s1 + $0x30] sm:$0xff]   ;;  %s6352_s7 = scalar_lea.vmem %s7737_s0, %s5051_s23  ;;  %v6113_v30 = vld [vmem:[%s7738_s1 + $0x38] sm:$0xff]   ;;  %v6117_v42 = vld [vmem:[%s7738_s1 + $0x1c0] sm:$0xff]   ;;  %s7696_s27 = scalar_lea.vmem %s7741_s4, %s4630_s24 }
  0x10   : > { %5184 = vmatpush3.bf16.msra.mxu0 %v6093_v10  ;;  %v6110_v27 = vld [vmem:[%s7738_s1 + $0xb0] sm:$0xff]   ;;  %v6114_v31 = vld [vmem:[%s7738_s1 + $0xb8] sm:$0xff]   ;;  %v205_v32 = vld [vmem:[%s6352_s7] sm:$0xff] }
  0x11   : > { %5296 = vmatpush3.bf16.msra.mxu1 %v6094_v11  ;;  %5185 = vmatprep.subr.bf16.mxu0 %v6095_v12  ;;  %v213_v33 = vld [vmem:[%s6352_s7 + $0x40] sm:$0xff]  ;;  %v206_v34 = vld [vmem:[%s6352_s7 + $0x8] sm:$0xff]  ;;  %v6123_v2 = vld [vmem:[%s7738_s1 + $0x150] sm:$0xff]  }
  0x12   : > { %5297 = vmatprep.subr.bf16.mxu1 %v6096_v13  ;;  %v4631_v35 = vcombine.low %v205_v32, %v213_v33  ;;  %v4632_v36 = vcombine.high %v205_v32, %v213_v33  ;;  %v214_v37 = vld [vmem:[%s6352_s7 + $0x48] sm:$0xff]  ;;  %v6118_v43 = vld [vmem:[%s7738_s1 + $0x180] sm:$0xff]   ;;  %v6124_v4 = vld [vmem:[%s7738_s1 + $0x110] sm:$0xff]  }
  0x13   : > { %v4633_v38 = vcombine.low %v206_v34, %v214_v37  ;;  %v4634_v39 = vcombine.high %v206_v34, %v214_v37  ;;  %v221_v44 = vld [vmem:[%s6352_s7 + $0x80] sm:$0xff]  ;;  %v222_v47 = vld [vmem:[%s6352_s7 + $0x88] sm:$0xff]  ;;  %v6125_v7 = vld [vmem:[%s7738_s1 + $0x1d0] sm:$0xff]  }
  0x14   : > { %5186 = vmatpush3.bf16.msra.mxu0 %v6097_v14  ;;  %2797 = vmatprep.mubr.bf16.mxu0 %v4632_v36  ;;  %v229_v45 = vld [vmem:[%s6352_s7 + $0xc0] sm:$0xff]  ;;  %v230_v48 = vld [vmem:[%s6352_s7 + $0xc8] sm:$0xff]  ;;  %v6126_v9 = vld [vmem:[%s7738_s1 + $0x190] sm:$0xff]  }
  0x15   : > { %5298 = vmatpush3.bf16.msra.mxu1 %v6098_v15  ;;  %5187 = vmatprep.subr.bf16.mxu0 %v6099_v16  ;;  %v4648_v46 = vcombine.high %v221_v44, %v229_v45  ;;  %v237_v49 = vld [vmem:[%s6352_s7 + $0x100] sm:$0xff]  ;;  %v4650_v50 = vcombine.high %v222_v47, %v230_v48  ;;  %v238_v52 = vld [vmem:[%s6352_s7 + $0x108] sm:$0xff]  ;;  %v4647_v54 = vcombine.low %v221_v44, %v229_v45  ;;  %v6127_v14 = vld [vmem:[%s7738_s1 + $0x158] sm:$0xff]  }
  0x16   : > { %5299 = vmatprep.subr.bf16.mxu1 %v6100_v17  ;;  %2958 = vmatprep.mubr.bf16.mxu1 %v4634_v39  ;;  %v245_v51 = vld [vmem:[%s6352_s7 + $0x140] sm:$0xff]  ;;  %v246_v53 = vld [vmem:[%s6352_s7 + $0x148] sm:$0xff]  ;;  %v4649_v56 = vcombine.low %v222_v47, %v230_v48  ;;  %v6128_v15 = vld [vmem:[%s7738_s1 + $0x118] sm:$0xff]  }
  0x17   : > { %v6119_v55 = vld [vmem:[%s7738_s1 + $0x148] sm:$0xff]   ;;  %v4664_v57 = vcombine.high %v237_v49, %v245_v51  ;;  %v4666_v59 = vcombine.high %v238_v52, %v246_v53  ;;  %v253_v62 = vld [vmem:[%s6352_s7 + $0x180] sm:$0xff]  ;;  %v4663_v3 = vcombine.low %v237_v49, %v245_v51  ;;  %v4665_v5 = vcombine.low %v238_v52, %v246_v53  ;;  %v6129_v17 = vld [vmem:[%s7738_s1 + $0x1d8] sm:$0xff]  }
  0x18   : > { %5188 = vmatpush3.bf16.msra.mxu0 %v6101_v18  ;;  %v6120_v58 = vld [vmem:[%s7738_s1 + $0x108] sm:$0xff]   ;;  %v261_v63 = vld [vmem:[%s6352_s7 + $0x1c0] sm:$0xff]  ;;  %v6140_v47 = vld [vmem:[%s7738_s1 + $0x130] sm:$0xff]  }
  0x19   : > { %5300 = vmatpush3.bf16.msra.mxu1 %v6102_v19  ;;  %5189 = vmatprep.subr.bf16.mxu0 %v6103_v20  ;;  %v6121_v60 = vld [vmem:[%s7738_s1 + $0x1c8] sm:$0xff]   ;;  %v4680_v6 = vcombine.high %v253_v62, %v261_v63  ;;  %v269_v10 = vld [vmem:[%s6352_s7 + $0x200] sm:$0xff]  ;;  %v4679_v16 = vcombine.low %v253_v62, %v261_v63  ;;  %v6130_v20 = vld [vmem:[%s7738_s1 + $0x198] sm:$0xff]  }
  0x1a   : > { %5301 = vmatprep.subr.bf16.mxu1 %v6104_v21  ;;  %v6122_v61 = vld [vmem:[%s7738_s1 + $0x188] sm:$0xff]   ;;  %v277_v11 = vld [vmem:[%s6352_s7 + $0x240] sm:$0xff]  ;;  %v6141_v48 = vld [vmem:[%s7738_s1 + $0x1f0] sm:$0xff]  }
  0x1b   : > { %v254_v0 = vld [vmem:[%s6352_s7 + $0x188] sm:$0xff]  ;;  %v4696_v19 = vcombine.high %v269_v10, %v277_v11  ;;  %v6142_v49 = vld [vmem:[%s7738_s1 + $0x1b0] sm:$0xff]   ;;  %v325_v51 = vld [vmem:[%s6352_s7 + $0x3c0] sm:$0xff] }
  0x1c   : > { %5190 = vmatpush3.bf16.msra.mxu0 %v6105_v22  ;;  %v262_v1 = vld [vmem:[%s6352_s7 + $0x1c8] sm:$0xff]  ;;  %v285_v22 = vld [vmem:[%s6352_s7 + $0x280] sm:$0xff] }
  0x1d   : > { %5302 = vmatpush3.bf16.msra.mxu1 %v6106_v23  ;;  %5191 = vmatprep.subr.bf16.mxu0 %v6107_v24  ;;  %v4682_v8 = vcombine.high %v254_v0, %v262_v1  ;;  %v270_v12 = vld [vmem:[%s6352_s7 + $0x208] sm:$0xff]  ;;  %v4681_v18 = vcombine.low %v254_v0, %v262_v1  ;;  %v293_v23 = vld [vmem:[%s6352_s7 + $0x2c0] sm:$0xff] }
  0x1e   : > { %5303 = vmatprep.subr.bf16.mxu1 %v6108_v25  ;;  %v278_v13 = vld [vmem:[%s6352_s7 + $0x248] sm:$0xff]  ;;  %v6131_v24 = vld [vmem:[%s7738_s1 + $0x160] sm:$0xff]   ;;  %v4712_v32 = vcombine.high %v285_v22, %v293_v23 }
  0x1f   : > { %v4698_v21 = vcombine.high %v270_v12, %v278_v13  ;;  %v286_v25 = vld [vmem:[%s6352_s7 + $0x288] sm:$0xff]  ;;  %v333_v62 = vld [vmem:[%s6352_s7 + $0x400] sm:$0xff] }
  0x20   : > { %5192 = vmatpush3.bf16.msra.mxu0 %v6109_v26  ;;  %v294_v26 = vld [vmem:[%s6352_s7 + $0x2c8] sm:$0xff]  ;;  %v341_v63 = vld [vmem:[%s6352_s7 + $0x440] sm:$0xff] }
  0x21   : > { %5304 = vmatpush3.bf16.msra.mxu1 %v6110_v27  ;;  %5193 = vmatprep.subr.bf16.mxu0 %v6111_v28  ;;  %v6132_v27 = vld [vmem:[%s7738_s1 + $0x120] sm:$0xff]   ;;  %v4714_v33 = vcombine.high %v286_v25, %v294_v26  ;;  %v6135_v34 = vld [vmem:[%s7738_s1 + $0x168] sm:$0xff]  }
  0x22   : > { %5305 = vmatprep.subr.bf16.mxu1 %v6112_v29  ;;  %v6133_v28 = vld [vmem:[%s7738_s1 + $0x1e0] sm:$0xff]   ;;  %v6136_v36 = vld [vmem:[%s7738_s1 + $0x128] sm:$0xff]  }
  0x23   : > { %v6134_v29 = vld [vmem:[%s7738_s1 + $0x1a0] sm:$0xff]   ;;  %v6137_v37 = vld [vmem:[%s7738_s1 + $0x1e8] sm:$0xff]  }
  0x24   : > { %5194 = vmatpush3.bf16.msra.mxu0 %v6113_v30  ;;  %v4695_v30 = vcombine.low %v269_v10, %v277_v11  ;;  %v6138_v39 = vld [vmem:[%s7738_s1 + $0x1a8] sm:$0xff]  }
  0x25   : > { %5306 = vmatpush3.bf16.msra.mxu1 %v6114_v31  ;;  %5403 = vmatprep.subr.bf16.mxu0 %v6115_v40  ;;  %v4697_v31 = vcombine.low %v270_v12, %v278_v13  ;;  %v302_v40 = vld [vmem:[%s6352_s7 + $0x308] sm:$0xff]  ;;  %v4759_v12 = vcombine.low %v333_v62, %v341_v63 }
  0x26   : > { %5515 = vmatprep.subr.bf16.mxu1 %v6117_v42  ;;  %v4711_v42 = vcombine.low %v285_v22, %v293_v23  ;;  %v318_v52 = vld [vmem:[%s6352_s7 + $0x388] sm:$0xff] }
  0x27   : > { %2798 = vmatmul.mubr.bf16.vlgmr.msra.gmra.mrb[0].mxu0 %v4631_v35  ;;  %v301_v35 = vld [vmem:[%s6352_s7 + $0x300] sm:$0xff]  ;;  %v326_v53 = vld [vmem:[%s6352_s7 + $0x3c8] sm:$0xff] }
  0x28   : > { %2959 = vmatmul.mubr.bf16.vlgmr.msra.gmra.mrb[0].mxu1 %v4633_v38  ;;  %5404 = vmatpush3.bf16.msra.mxu0 %v6116_v41  ;;  %v309_v38 = vld [vmem:[%s6352_s7 + $0x340] sm:$0xff]  ;;  %v310_v41 = vld [vmem:[%s6352_s7 + $0x348] sm:$0xff] }
  0x29   : > { %5516 = vmatpush3.bf16.msra.mxu1 %v6118_v43  ;;  %2805 = vmatprep.mubr.bf16.mxu0 %v4648_v46  ;;  %v4713_v43 = vcombine.low %v286_v25, %v294_v26  ;;  %v4728_v44 = vcombine.high %v301_v35, %v309_v38  ;;  %v4730_v45 = vcombine.high %v302_v40, %v310_v41  ;;  %v6139_v46 = vld [vmem:[%s7738_s1 + $0x170] sm:$0xff]   ;;  %v334_v0 = vld [vmem:[%s6352_s7 + $0x408] sm:$0xff]  ;;  %v389_v25 = vld [vmem:[%s6352_s7 + $0x5c0] sm:$0xff] }
  0x2a   : > { %2966 = vmatprep.mubr.bf16.mxu1 %v4650_v50  ;;  %5405 = vmatprep.subr.bf16.mxu0 %v6119_v55  ;;  %v317_v50 = vld [vmem:[%s6352_s7 + $0x380] sm:$0xff]  ;;  %v6143_v55 = vld [vmem:[%s7738_s1 + $0x178] sm:$0xff]   ;;  %v342_v1 = vld [vmem:[%s6352_s7 + $0x448] sm:$0xff] }
  0x2b   : > { %5517 = vmatprep.subr.bf16.mxu1 %v6121_v60  ;;  %v6145_v60 = vld [vmem:[%s7738_s1 + $0x1f8] sm:$0xff]   ;;  %v350_v10 = vld [vmem:[%s6352_s7 + $0x488] sm:$0xff]  ;;  %v4761_v13 = vcombine.low %v334_v0, %v342_v1 }
  0x2c   : > { %5406 = vmatpush3.bf16.msra.mxu0 %v6120_v58  ;;  %v6144_v58 = vld [vmem:[%s7738_s1 + $0x138] sm:$0xff]   ;;  %v358_v11 = vld [vmem:[%s6352_s7 + $0x4c8] sm:$0xff] }
  0x2d   : > { %5518 = vmatpush3.bf16.msra.mxu1 %v6122_v61  ;;  %5407 = vmatprep.subr.bf16.mxu0 %v6123_v2  ;;  %v6146_v61 = vld [vmem:[%s7738_s1 + $0x1b8] sm:$0xff]   ;;  %v6147_v2 = vld [vmem:[%s7738_s1 + $0x240] sm:$0xff]   ;;  %v382_v26 = vld [vmem:[%s6352_s7 + $0x588] sm:$0xff] }
  0x2e   : > { %5519 = vmatprep.subr.bf16.mxu1 %v6125_v7  ;;  %v4762_v7 = vcombine.high %v334_v0, %v342_v1  ;;  %v207_v0 = vld [vmem:[%s6352_s7 + $0x10] sm:$0xff] }
  0x2f   : > { %2806 = vmatmul.mubr.bf16.gmra.mrb[4].mxu0 %v4647_v54  ;;  %v4727_v54 = vcombine.low %v301_v35, %v309_v38  ;;  %v406_v35 = vld [vmem:[%s6352_s7 + $0x648] sm:$0xff]  ;;  %v215_v1 = vld [vmem:[%s6352_s7 + $0x50] sm:$0xff] }
  0x30   : > { %2967 = vmatmul.mubr.bf16.gmra.mrb[4].mxu1 %v4649_v56  ;;  %2813 = vmatprep.mubr.bf16.mxu0 %v4664_v57  ;;  %v4729_v56 = vcombine.low %v302_v40, %v310_v41  ;;  %v4744_v57 = vcombine.high %v317_v50, %v325_v51  ;;  %v413_v40 = vld [vmem:[%s6352_s7 + $0x680] sm:$0xff] }
  0x31   : > { %2974 = vmatprep.mubr.bf16.mxu1 %v4666_v59  ;;  %5408 = vmatpush3.bf16.msra.mxu0 %v6124_v4  ;;  %v4746_v59 = vcombine.high %v318_v52, %v326_v53  ;;  %v4745_v4 = vcombine.low %v318_v52, %v326_v53  ;;  %v421_v41 = vld [vmem:[%s6352_s7 + $0x6c0] sm:$0xff] }
  0x32   : > { %5520 = vmatpush3.bf16.msra.mxu1 %v6126_v9  ;;  %5409 = vmatprep.subr.bf16.mxu0 %v6127_v14  ;;  %v357_v9 = vld [vmem:[%s6352_s7 + $0x4c0] sm:$0xff]  ;;  %v4839_v52 = vcombine.low %v413_v40, %v421_v41 }
  0x33   : > { %5521 = vmatprep.subr.bf16.mxu1 %v6129_v17  ;;  %v373_v17 = vld [vmem:[%s6352_s7 + $0x540] sm:$0xff] }
  0x35   : > { %5410 = vmatpush3.bf16.msra.mxu0 %v6128_v15  ;;  %v4778_v15 = vcombine.high %v350_v10, %v358_v11 }
  0x36   : > { %5522 = vmatpush3.bf16.msra.mxu1 %v6130_v20  ;;  %5411 = vmatprep.subr.bf16.mxu0 %v6131_v24  ;;  %v381_v24 = vld [vmem:[%s6352_s7 + $0x580] sm:$0xff] }
  0x37   : > { %2814 = vmatmul.mubr.bf16.gmra.mrb[8].mxu0 %v4663_v3  ;;  %5523 = vmatprep.subr.bf16.mxu1 %v6133_v28  ;;  %v4743_v3 = vcombine.low %v317_v50, %v325_v51  ;;  %v430_v50 = vld [vmem:[%s6352_s7 + $0x708] sm:$0xff] }
  0x38   : > { %2975 = vmatmul.mubr.bf16.gmra.mrb[8].mxu1 %v4665_v5  ;;  %2821 = vmatprep.mubr.bf16.mxu0 %v4680_v6  ;;  %v4760_v5 = vcombine.high %v333_v62, %v341_v63  ;;  %v6149_v6 = vld [vmem:[%s7738_s1 + $0x2c0] sm:$0xff]   ;;  %v438_v51 = vld [vmem:[%s6352_s7 + $0x748] sm:$0xff] }
  0x39   : > { %2982 = vmatprep.mubr.bf16.mxu1 %v4682_v8  ;;  %5412 = vmatpush3.bf16.msra.mxu0 %v6132_v27  ;;  %v349_v8 = vld [vmem:[%s6352_s7 + $0x480] sm:$0xff]  ;;  %v390_v27 = vld [vmem:[%s6352_s7 + $0x5c8] sm:$0xff] }
  0x3a   : > { %5524 = vmatpush3.bf16.msra.mxu1 %v6134_v29  ;;  %5413 = vmatprep.subr.bf16.mxu0 %v6135_v34  ;;  %v4776_v14 = vcombine.high %v349_v8, %v357_v9  ;;  %v4775_v20 = vcombine.low %v349_v8, %v357_v9  ;;  %v398_v34 = vld [vmem:[%s6352_s7 + $0x608] sm:$0xff]  ;;  %v223_v8 = vld [vmem:[%s6352_s7 + $0x90] sm:$0xff] }
  0x3b   : > { %5525 = vmatprep.subr.bf16.mxu1 %v6137_v37  ;;  %v4809_v37 = vcombine.low %v382_v26, %v390_v27  ;;  %v231_v9 = vld [vmem:[%s6352_s7 + $0xd0] sm:$0xff] }
  0x3d   : > { %5414 = vmatpush3.bf16.msra.mxu0 %v6136_v36  ;;  %v4807_v36 = vcombine.low %v381_v24, %v389_v25 }
  0x3e   : > { %5526 = vmatpush3.bf16.msra.mxu1 %v6138_v39  ;;  %5415 = vmatprep.subr.bf16.mxu0 %v6139_v46  ;;  %v4826_v39 = vcombine.high %v398_v34, %v406_v35  ;;  %v4840_v46 = vcombine.high %v413_v40, %v421_v41  ;;  %v264_v40 = vld [vmem:[%s6352_s7 + $0x1d8] sm:$0xff] }
  0x3f   : > { %2822 = vmatmul.mubr.bf16.gmra.mrb[12].mxu0 %v4679_v16  ;;  %5527 = vmatprep.subr.bf16.mxu1 %v6141_v48  ;;  %v365_v16 = vld [vmem:[%s6352_s7 + $0x500] sm:$0xff]  ;;  %v6162_v41 = vld [vmem:[%s7738_s1 + $0x298] sm:$0xff]  }
  0x40   : > { %2983 = vmatmul.mubr.bf16.gmra.mrb[12].mxu1 %v4681_v18  ;;  %2829 = vmatprep.mubr.bf16.mxu0 %v4696_v19  ;;  %v366_v18 = vld [vmem:[%s6352_s7 + $0x508] sm:$0xff]  ;;  %v4792_v22 = vcombine.high %v365_v16, %v373_v17  ;;  %v4791_v28 = vcombine.low %v365_v16, %v373_v17  ;;  %v429_v48 = vld [vmem:[%s6352_s7 + $0x700] sm:$0xff]  ;;  %v4652_v16 = vcombine.high %v223_v8, %v231_v9 }
  0x41   : > { %2990 = vmatprep.mubr.bf16.mxu1 %v4698_v21  ;;  %5416 = vmatpush3.bf16.msra.mxu0 %v6140_v47  ;;  %v374_v19 = vld [vmem:[%s6352_s7 + $0x548] sm:$0xff]  ;;  %v4777_v21 = vcombine.low %v350_v10, %v358_v11  ;;  %v4635_v10 = vcombine.low %v207_v0, %v215_v1  ;;  %v224_v11 = vld [vmem:[%s6352_s7 + $0x98] sm:$0xff] }
  0x42   : > { %5528 = vmatpush3.bf16.msra.mxu1 %v6142_v49  ;;  %5417 = vmatprep.subr.bf16.mxu0 %v6143_v55  ;;  %v4794_v23 = vcombine.high %v366_v18, %v374_v19  ;;  %v4793_v29 = vcombine.low %v366_v18, %v374_v19  ;;  %v437_v49 = vld [vmem:[%s6352_s7 + $0x740] sm:$0xff]  ;;  %v4858_v55 = vcombine.high %v430_v50, %v438_v51  ;;  %v6151_v18 = vld [vmem:[%s7738_s1 + $0x248] sm:$0xff]  }
  0x43   : > { %5529 = vmatprep.subr.bf16.mxu1 %v6145_v60  ;;  %v4855_v60 = vcombine.low %v429_v48, %v437_v49  ;;  %v6153_v19 = vld [vmem:[%s7738_s1 + $0x2c8] sm:$0xff]  }
  0x45   : > { %5418 = vmatpush3.bf16.msra.mxu0 %v6144_v58  ;;  %v446_v58 = vld [vmem:[%s6352_s7 + $0x788] sm:$0xff] }
  0x46   : > { %5530 = vmatpush3.bf16.msra.mxu1 %v6146_v61  ;;  %5627 = vmatprep.subr.bf16.mxu0 %v6147_v2  ;;  %v4857_v61 = vcombine.low %v430_v50, %v438_v51  ;;  %v208_v2 = vld [vmem:[%s6352_s7 + $0x18] sm:$0xff]  ;;  %v6167_v50 = vld [vmem:[%s7738_s1 + $0x268] sm:$0xff]  }
  0x47   : > { %2830 = vmatmul.mubr.bf16.gmra.mrb[16].mxu0 %v4695_v30  ;;  %5739 = vmatprep.subr.bf16.mxu1 %v6149_v6  ;;  %v4808_v30 = vcombine.high %v381_v24, %v389_v25  ;;  %v4636_v6 = vcombine.high %v207_v0, %v215_v1  ;;  %v6155_v24 = vld [vmem:[%s7738_s1 + $0x250] sm:$0xff]   ;;  %v240_v25 = vld [vmem:[%s6352_s7 + $0x118] sm:$0xff]  ;;  %v6169_v51 = vld [vmem:[%s7738_s1 + $0x2e8] sm:$0xff]  }
  0x48   : > { %2991 = vmatmul.mubr.bf16.gmra.mrb[16].mxu1 %v4697_v31  ;;  %2837 = vmatprep.mubr.bf16.mxu0 %v4712_v32  ;;  %v4810_v31 = vcombine.high %v382_v26, %v390_v27  ;;  %v397_v32 = vld [vmem:[%s6352_s7 + $0x600] sm:$0xff]  ;;  %v248_v26 = vld [vmem:[%s6352_s7 + $0x158] sm:$0xff]  ;;  %v6157_v27 = vld [vmem:[%s7738_s1 + $0x2d0] sm:$0xff]  }
  0x49   : > { %2998 = vmatprep.mubr.bf16.mxu1 %v4714_v33  ;;  %v405_v33 = vld [vmem:[%s6352_s7 + $0x640] sm:$0xff]  ;;  %v6172_v0 = vld [vmem:[%s7738_s1 + $0x230] sm:$0xff]  }
  0x4a   : > { %v4824_v38 = vcombine.high %v397_v32, %v405_v33  ;;  %v6174_v1 = vld [vmem:[%s7738_s1 + $0x2b0] sm:$0xff]  }
  0x4f   : > { %2838 = vmatmul.mubr.bf16.gmra.mrb[20].mxu0 %v4711_v42  ;;  %v414_v42 = vld [vmem:[%s6352_s7 + $0x688] sm:$0xff] }
  0x50   : > { %2999 = vmatmul.mubr.bf16.gmra.mrb[20].mxu1 %v4713_v43  ;;  %2845 = vmatprep.mubr.bf16.mxu0 %v4728_v44  ;;  %v422_v43 = vld [vmem:[%s6352_s7 + $0x6c8] sm:$0xff]  ;;  %v4823_v44 = vcombine.low %v397_v32, %v405_v33  ;;  %v6156_v32 = vld [vmem:[%s7738_s1 + $0x210] sm:$0xff]  }
  0x51   : > { %3006 = vmatprep.mubr.bf16.mxu1 %v4730_v45  ;;  %v4825_v45 = vcombine.low %v398_v34, %v406_v35  ;;  %v4842_v47 = vcombine.high %v414_v42, %v422_v43  ;;  %v4841_v53 = vcombine.low %v414_v42, %v422_v43  ;;  %v6158_v33 = vld [vmem:[%s7738_s1 + $0x290] sm:$0xff]   ;;  %v6159_v34 = vld [vmem:[%s7738_s1 + $0x258] sm:$0xff]   ;;  %v6163_v42 = vld [vmem:[%s7738_s1 + $0x260] sm:$0xff]  }
  0x52   : > { %v6161_v35 = vld [vmem:[%s7738_s1 + $0x2d8] sm:$0xff]  }
  0x57   : > { %2846 = vmatmul.mubr.bf16.gmra.mrb[24].mxu0 %v4727_v54  ;;  %v4856_v54 = vcombine.high %v429_v48, %v437_v49  ;;  %v6164_v48 = vld [vmem:[%s7738_s1 + $0x220] sm:$0xff]  }
  0x58   : > { %3007 = vmatmul.mubr.bf16.gmra.mrb[24].mxu1 %v4729_v56  ;;  %2853 = vmatprep.mubr.bf16.mxu0 %v4744_v57  ;;  %v445_v56 = vld [vmem:[%s6352_s7 + $0x780] sm:$0xff] }
  0x59   : > { %3014 = vmatprep.mubr.bf16.mxu1 %v4746_v59  ;;  %v453_v57 = vld [vmem:[%s6352_s7 + $0x7c0] sm:$0xff]  ;;  %v454_v59 = vld [vmem:[%s6352_s7 + $0x7c8] sm:$0xff] }
  0x5a   : > { %v4872_v62 = vcombine.high %v445_v56, %v453_v57  ;;  %v4874_v63 = vcombine.high %v446_v58, %v454_v59  ;;  %v6166_v49 = vld [vmem:[%s7738_s1 + $0x2a0] sm:$0xff]  }
  0x5f   : > { %2854 = vmatmul.mubr.bf16.gmra.mrb[28].mxu0 %v4743_v3  ;;  %v216_v3 = vld [vmem:[%s6352_s7 + $0x58] sm:$0xff] }
  0x60   : > { %3015 = vmatmul.mubr.bf16.gmra.mrb[28].mxu1 %v4745_v4  ;;  %2861 = vmatprep.mubr.bf16.mxu0 %v4760_v5  ;;  %v4871_v4 = vcombine.low %v445_v56, %v453_v57  ;;  %v4873_v5 = vcombine.low %v446_v58, %v454_v59  ;;  %v280_v56 = vld [vmem:[%s6352_s7 + $0x258] sm:$0xff]  ;;  %v6170_v57 = vld [vmem:[%s7738_s1 + $0x2a8] sm:$0xff]   ;;  %v6171_v58 = vld [vmem:[%s7738_s1 + $0x270] sm:$0xff]  }
  0x61   : > { %3022 = vmatprep.mubr.bf16.mxu1 %v4762_v7  ;;  %v4638_v7 = vcombine.high %v208_v2, %v216_v3 }
  0x67   : > { %2862 = vmatmul.mubr.bf16.gmra.mrb[32].mxu0 %v4759_v12  ;;  %v232_v12 = vld [vmem:[%s6352_s7 + $0xd8] sm:$0xff] }
  0x68   : > { %3023 = vmatmul.mubr.bf16.gmra.mrb[32].mxu1 %v4761_v13  ;;  %2869 = vmatprep.mubr.bf16.mxu0 %v4776_v14  ;;  %v4637_v13 = vcombine.low %v208_v2, %v216_v3  ;;  %v6148_v14 = vld [vmem:[%s7738_s1 + $0x200] sm:$0xff]   ;;  %v4654_v17 = vcombine.high %v224_v11, %v232_v12  ;;  %v6175_v2 = vld [vmem:[%s7738_s1 + $0x278] sm:$0xff]  }
  0x69   : > { %3030 = vmatprep.mubr.bf16.mxu1 %v4778_v15  ;;  %v6150_v15 = vld [vmem:[%s7738_s1 + $0x280] sm:$0xff]   ;;  %v6177_v3 = vld [vmem:[%s7738_s1 + $0x2f8] sm:$0xff]  }
  0x6f   : > { %2870 = vmatmul.mubr.bf16.gmra.mrb[36].mxu0 %v4775_v20  ;;  %v239_v20 = vld [vmem:[%s6352_s7 + $0x110] sm:$0xff] }
  0x70   : > { %3031 = vmatmul.mubr.bf16.gmra.mrb[36].mxu1 %v4777_v21  ;;  %2877 = vmatprep.mubr.bf16.mxu0 %v4792_v22  ;;  %v6152_v21 = vld [vmem:[%s7738_s1 + $0x208] sm:$0xff]   ;;  %v247_v22 = vld [vmem:[%s6352_s7 + $0x150] sm:$0xff] }
  0x71   : > { %3038 = vmatprep.mubr.bf16.mxu1 %v4794_v23  ;;  %v6154_v23 = vld [vmem:[%s7738_s1 + $0x288] sm:$0xff]   ;;  %v4667_v43 = vcombine.low %v239_v20, %v247_v22 }
  0x77   : > { %2878 = vmatmul.mubr.bf16.gmra.mrb[40].mxu0 %v4791_v28  ;;  %v4651_v28 = vcombine.low %v223_v8, %v231_v9  ;;  %v296_v8 = vld [vmem:[%s6352_s7 + $0x2d8] sm:$0xff] }
  0x78   : > { %3039 = vmatmul.mubr.bf16.gmra.mrb[40].mxu1 %v4793_v29  ;;  %2885 = vmatprep.mubr.bf16.mxu0 %v4808_v30  ;;  %v4653_v29 = vcombine.low %v224_v11, %v232_v12  ;;  %v4668_v30 = vcombine.high %v239_v20, %v247_v22  ;;  %v6178_v9 = vld [vmem:[%s7738_s1 + $0x2b8] sm:$0xff]   ;;  %v6181_v12 = vld [vmem:[%s7738_s1 + $0x3c0] sm:$0xff]  }
  0x79   : > { %3046 = vmatprep.mubr.bf16.mxu1 %v4810_v31  ;;  %v4670_v31 = vcombine.high %v240_v25, %v248_v26 }
  0x7f   : > { %2886 = vmatmul.mubr.bf16.gmra.mrb[44].mxu0 %v4807_v36  ;;  %v255_v36 = vld [vmem:[%s6352_s7 + $0x190] sm:$0xff] }
  0x80   : > { %3047 = vmatmul.mubr.bf16.gmra.mrb[44].mxu1 %v4809_v37  ;;  %2893 = vmatprep.mubr.bf16.mxu0 %v4824_v38  ;;  %v263_v37 = vld [vmem:[%s6352_s7 + $0x1d0] sm:$0xff]  ;;  %v256_v38 = vld [vmem:[%s6352_s7 + $0x198] sm:$0xff] }
  0x81   : > { %3054 = vmatprep.mubr.bf16.mxu1 %v4826_v39  ;;  %v6160_v39 = vld [vmem:[%s7738_s1 + $0x218] sm:$0xff]   ;;  %v4683_v59 = vcombine.low %v255_v36, %v263_v37 }
  0x87   : > { %2894 = vmatmul.mubr.bf16.gmra.mrb[48].mxu0 %v4823_v44  ;;  %v6165_v44 = vld [vmem:[%s7738_s1 + $0x2e0] sm:$0xff]  }
  0x88   : > { %3055 = vmatmul.mubr.bf16.gmra.mrb[48].mxu1 %v4825_v45  ;;  %2901 = vmatprep.mubr.bf16.mxu0 %v4840_v46  ;;  %v4669_v45 = vcombine.low %v240_v25, %v248_v26  ;;  %v4684_v46 = vcombine.high %v255_v36, %v263_v37  ;;  %v327_v25 = vld [vmem:[%s6352_s7 + $0x3d0] sm:$0xff]  ;;  %v320_v26 = vld [vmem:[%s6352_s7 + $0x398] sm:$0xff] }
  0x89   : > { %3062 = vmatprep.mubr.bf16.mxu1 %v4842_v47  ;;  %v4686_v47 = vcombine.high %v256_v38, %v264_v40 }
  0x8f   : > { %2902 = vmatmul.mubr.bf16.gmra.mrb[52].mxu0 %v4839_v52  ;;  %v271_v52 = vld [vmem:[%s6352_s7 + $0x210] sm:$0xff] }
  0x90   : > { %3063 = vmatmul.mubr.bf16.gmra.mrb[52].mxu1 %v4841_v53  ;;  %2909 = vmatprep.mubr.bf16.mxu0 %v4856_v54  ;;  %v279_v53 = vld [vmem:[%s6352_s7 + $0x250] sm:$0xff]  ;;  %v272_v54 = vld [vmem:[%s6352_s7 + $0x218] sm:$0xff] }
  0x91   : > { %3070 = vmatprep.mubr.bf16.mxu1 %v4858_v55  ;;  %v6168_v55 = vld [vmem:[%s7738_s1 + $0x228] sm:$0xff]   ;;  %v4699_v11 = vcombine.low %v271_v52, %v279_v53 }
  0x97   : > { %2910 = vmatmul.mubr.bf16.gmra.mrb[56].mxu0 %v4855_v60  ;;  %v6173_v60 = vld [vmem:[%s7738_s1 + $0x2f0] sm:$0xff]  }
  0x98   : > { %3071 = vmatmul.mubr.bf16.gmra.mrb[56].mxu1 %v4857_v61  ;;  %2917 = vmatprep.mubr.bf16.mxu0 %v4872_v62  ;;  %v4685_v61 = vcombine.low %v256_v38, %v264_v40  ;;  %v4700_v62 = vcombine.high %v271_v52, %v279_v53  ;;  %v351_v40 = vld [vmem:[%s6352_s7 + $0x490] sm:$0xff] }
  0x99   : > { %3078 = vmatprep.mubr.bf16.mxu1 %v4874_v63  ;;  %v4702_v63 = vcombine.high %v272_v54, %v280_v56 }
  0x9f   : > { %2918 = vmatmul.mubr.bf16.gmra.mrb[60].mxu0 %v4871_v4  ;;  %v287_v4 = vld [vmem:[%s6352_s7 + $0x290] sm:$0xff] }
  0xa0   : > { %3079 = vmatmul.mubr.bf16.gmra.mrb[60].mxu1 %v4873_v5  ;;  %3119 = vmatprep.mubr.bf16.mxu0 %v4636_v6  ;;  %v295_v5 = vld [vmem:[%s6352_s7 + $0x2d0] sm:$0xff]  ;;  %v288_v6 = vld [vmem:[%s6352_s7 + $0x298] sm:$0xff] }
  0xa1   : > { %3280 = vmatprep.mubr.bf16.mxu1 %v4638_v7  ;;  %v6176_v7 = vld [vmem:[%s7738_s1 + $0x238] sm:$0xff]   ;;  %v4715_v20 = vcombine.low %v287_v4, %v295_v5 }
  0xa7   : > { %3120 = vmatmul.mubr.bf16.vlgmr.msra.gmra.mrb[64].mxu0 %v4635_v10  ;;  %v6179_v10 = vld [vmem:[%s7738_s1 + $0x340] sm:$0xff]  }
  0xa8   : > { %3281 = vmatmul.mubr.bf16.vlgmr.msra.gmra.mrb[64].mxu1 %v4637_v13  ;;  %5628 = vmatpush3.bf16.msra.mxu0 %v6148_v14  ;;  %v4701_v13 = vcombine.low %v272_v54, %v280_v56  ;;  %v4716_v14 = vcombine.high %v287_v4, %v295_v5  ;;  %v383_v56 = vld [vmem:[%s6352_s7 + $0x590] sm:$0xff]  ;;  %v408_v4 = vld [vmem:[%s6352_s7 + $0x658] sm:$0xff] }
  0xa9   : > { %5740 = vmatpush3.bf16.msra.mxu1 %v6150_v15  ;;  %3127 = vmatprep.mubr.bf16.mxu0 %v4652_v16  ;;  %v4718_v15 = vcombine.high %v288_v6, %v296_v8  ;;  %v303_v16 = vld [vmem:[%s6352_s7 + $0x310] sm:$0xff] }
  0xaa   : > { %3288 = vmatprep.mubr.bf16.mxu1 %v4654_v17  ;;  %5629 = vmatprep.subr.bf16.mxu0 %v6151_v18  ;;  %v311_v17 = vld [vmem:[%s6352_s7 + $0x350] sm:$0xff]  ;;  %v304_v18 = vld [vmem:[%s6352_s7 + $0x318] sm:$0xff] }
  0xab   : > { %5741 = vmatprep.subr.bf16.mxu1 %v6153_v19  ;;  %v312_v19 = vld [vmem:[%s6352_s7 + $0x358] sm:$0xff]  ;;  %v4732_v22 = vcombine.high %v303_v16, %v311_v17 }
  0xac   : > { %5630 = vmatpush3.bf16.msra.mxu0 %v6152_v21  ;;  %v4717_v21 = vcombine.low %v288_v6, %v296_v8 }
  0xad   : > { %5742 = vmatpush3.bf16.msra.mxu1 %v6154_v23  ;;  %5631 = vmatprep.subr.bf16.mxu0 %v6155_v24  ;;  %v4734_v23 = vcombine.high %v304_v18, %v312_v19  ;;  %v319_v24 = vld [vmem:[%s6352_s7 + $0x390] sm:$0xff] }
  0xae   : > { %5743 = vmatprep.subr.bf16.mxu1 %v6157_v27  ;;  %v328_v27 = vld [vmem:[%s6352_s7 + $0x3d8] sm:$0xff]  ;;  %v4747_v36 = vcombine.low %v319_v24, %v327_v25 }
  0xaf   : > { %3128 = vmatmul.mubr.bf16.gmra.mrb[68].mxu0 %v4651_v28  ;;  %v4731_v28 = vcombine.low %v303_v16, %v311_v17  ;;  %v4749_v37 = vcombine.low %v320_v26, %v328_v27 }
  0xb0   : > { %3289 = vmatmul.mubr.bf16.gmra.mrb[68].mxu1 %v4653_v29  ;;  %3135 = vmatprep.mubr.bf16.mxu0 %v4668_v30  ;;  %v4733_v29 = vcombine.low %v304_v18, %v312_v19  ;;  %v4748_v30 = vcombine.high %v319_v24, %v327_v25  ;;  %v416_v25 = vld [vmem:[%s6352_s7 + $0x698] sm:$0xff] }
  0xb1   : > { %3296 = vmatprep.mubr.bf16.mxu1 %v4670_v31  ;;  %5632 = vmatpush3.bf16.msra.mxu0 %v6156_v32  ;;  %v4750_v31 = vcombine.high %v320_v26, %v328_v27  ;;  %v335_v32 = vld [vmem:[%s6352_s7 + $0x410] sm:$0xff]  ;;  %v424_v26 = vld [vmem:[%s6352_s7 + $0x6d8] sm:$0xff] }
  0xb2   : > { %5744 = vmatpush3.bf16.msra.mxu1 %v6158_v33  ;;  %5633 = vmatprep.subr.bf16.mxu0 %v6159_v34  ;;  %v343_v33 = vld [vmem:[%s6352_s7 + $0x450] sm:$0xff]  ;;  %v336_v34 = vld [vmem:[%s6352_s7 + $0x418] sm:$0xff] }
  0xb3   : > { %5745 = vmatprep.subr.bf16.mxu1 %v6161_v35  ;;  %v344_v35 = vld [vmem:[%s6352_s7 + $0x458] sm:$0xff]  ;;  %v4764_v38 = vcombine.high %v335_v32, %v343_v33 }
  0xb5   : > { %5634 = vmatpush3.bf16.msra.mxu0 %v6160_v39  ;;  %v4766_v39 = vcombine.high %v336_v34, %v344_v35 }
  0xb6   : > { %5746 = vmatpush3.bf16.msra.mxu1 %v6162_v41  ;;  %5635 = vmatprep.subr.bf16.mxu0 %v6163_v42  ;;  %v359_v41 = vld [vmem:[%s6352_s7 + $0x4d0] sm:$0xff]  ;;  %v352_v42 = vld [vmem:[%s6352_s7 + $0x498] sm:$0xff] }
  0xb7   : > { %3136 = vmatmul.mubr.bf16.gmra.mrb[72].mxu0 %v4667_v43  ;;  %5747 = vmatprep.subr.bf16.mxu1 %v6165_v44  ;;  %v360_v43 = vld [vmem:[%s6352_s7 + $0x4d8] sm:$0xff]  ;;  %v4763_v44 = vcombine.low %v335_v32, %v343_v33  ;;  %v4779_v52 = vcombine.low %v351_v40, %v359_v41 }
  0xb8   : > { %3297 = vmatmul.mubr.bf16.gmra.mrb[72].mxu1 %v4669_v45  ;;  %3143 = vmatprep.mubr.bf16.mxu0 %v4684_v46  ;;  %v4765_v45 = vcombine.low %v336_v34, %v344_v35  ;;  %v4780_v46 = vcombine.high %v351_v40, %v359_v41  ;;  %v4781_v53 = vcombine.low %v352_v42, %v360_v43 }
  0xb9   : > { %3304 = vmatprep.mubr.bf16.mxu1 %v4686_v47  ;;  %5636 = vmatpush3.bf16.msra.mxu0 %v6164_v48  ;;  %v4782_v47 = vcombine.high %v352_v42, %v360_v43  ;;  %v367_v48 = vld [vmem:[%s6352_s7 + $0x510] sm:$0xff] }
  0xba   : > { %5748 = vmatpush3.bf16.msra.mxu1 %v6166_v49  ;;  %5637 = vmatprep.subr.bf16.mxu0 %v6167_v50  ;;  %v375_v49 = vld [vmem:[%s6352_s7 + $0x550] sm:$0xff]  ;;  %v368_v50 = vld [vmem:[%s6352_s7 + $0x518] sm:$0xff] }
  0xbb   : > { %5749 = vmatprep.subr.bf16.mxu1 %v6169_v51  ;;  %v376_v51 = vld [vmem:[%s6352_s7 + $0x558] sm:$0xff]  ;;  %v4796_v54 = vcombine.high %v367_v48, %v375_v49 }
  0xbd   : > { %5638 = vmatpush3.bf16.msra.mxu0 %v6168_v55  ;;  %v4798_v55 = vcombine.high %v368_v50, %v376_v51 }
  0xbe   : > { %5750 = vmatpush3.bf16.msra.mxu1 %v6170_v57  ;;  %5639 = vmatprep.subr.bf16.mxu0 %v6171_v58  ;;  %v391_v57 = vld [vmem:[%s6352_s7 + $0x5d0] sm:$0xff]  ;;  %v384_v58 = vld [vmem:[%s6352_s7 + $0x598] sm:$0xff] }
  0xbf   : > { %3144 = vmatmul.mubr.bf16.gmra.mrb[76].mxu0 %v4683_v59  ;;  %5751 = vmatprep.subr.bf16.mxu1 %v6173_v60  ;;  %v392_v59 = vld [vmem:[%s6352_s7 + $0x5d8] sm:$0xff]  ;;  %v4795_v60 = vcombine.low %v367_v48, %v375_v49 }
  0xc0   : > { %3305 = vmatmul.mubr.bf16.gmra.mrb[76].mxu1 %v4685_v61  ;;  %3151 = vmatprep.mubr.bf16.mxu0 %v4700_v62  ;;  %v4797_v61 = vcombine.low %v368_v50, %v376_v51  ;;  %v4812_v62 = vcombine.high %v383_v56, %v391_v57  ;;  %v440_v48 = vld [vmem:[%s6352_s7 + $0x758] sm:$0xff] }
  0xc1   : > { %3312 = vmatprep.mubr.bf16.mxu1 %v4702_v63  ;;  %5640 = vmatpush3.bf16.msra.mxu0 %v6172_v0  ;;  %v4814_v63 = vcombine.high %v384_v58, %v392_v59  ;;  %v399_v0 = vld [vmem:[%s6352_s7 + $0x610] sm:$0xff] }
  0xc2   : > { %5752 = vmatpush3.bf16.msra.mxu1 %v6174_v1  ;;  %5641 = vmatprep.subr.bf16.mxu0 %v6175_v2  ;;  %v407_v1 = vld [vmem:[%s6352_s7 + $0x650] sm:$0xff] }
  0xc3   : > { %5753 = vmatprep.subr.bf16.mxu1 %v6177_v3  ;;  %v400_v3 = vld [vmem:[%s6352_s7 + $0x618] sm:$0xff] }
  0xc4   : > { %v4830_v16 = vcombine.high %v400_v3, %v408_v4  ;;  %v4829_v33 = vcombine.low %v400_v3, %v408_v4  ;;  %v455_v3 = vld [vmem:[%s6352_s7 + $0x7d0] sm:$0xff] }
  0xc5   : > { %5642 = vmatpush3.bf16.msra.mxu0 %v6176_v7  ;;  %v4811_v7 = vcombine.low %v383_v56, %v391_v57 }
  0xc6   : > { %5754 = vmatpush3.bf16.msra.mxu1 %v6178_v9  ;;  %5851 = vmatprep.subr.bf16.mxu0 %v6179_v10 }
  0xc7   : > { %3152 = vmatmul.mubr.bf16.gmra.mrb[80].mxu0 %v4699_v11  ;;  %5963 = vmatprep.subr.bf16.mxu1 %v6181_v12  ;;  %v4813_v11 = vcombine.low %v384_v58, %v392_v59  ;;  %v4828_v12 = vcombine.high %v399_v0, %v407_v1 }
  0xc8   : > { %3313 = vmatmul.mubr.bf16.gmra.mrb[80].mxu1 %v4701_v13  ;;  %3159 = vmatprep.mubr.bf16.mxu0 %v4716_v14 }
  0xc9   : > { %3320 = vmatprep.mubr.bf16.mxu1 %v4718_v15 }
  0xcf   : > { %3160 = vmatmul.mubr.bf16.gmra.mrb[84].mxu0 %v4715_v20 }
  0xd0   : > { %3321 = vmatmul.mubr.bf16.gmra.mrb[84].mxu1 %v4717_v21  ;;  %3167 = vmatprep.mubr.bf16.mxu0 %v4732_v22  ;;  %v415_v22 = vld [vmem:[%s6352_s7 + $0x690] sm:$0xff] }
  0xd1   : > { %3328 = vmatprep.mubr.bf16.mxu1 %v4734_v23  ;;  %v423_v23 = vld [vmem:[%s6352_s7 + $0x6d0] sm:$0xff] }
  0xd2   : > { %v4844_v34 = vcombine.high %v415_v22, %v423_v23  ;;  %v4843_v51 = vcombine.low %v415_v22, %v423_v23 }
  0xd7   : > { %3168 = vmatmul.mubr.bf16.gmra.mrb[88].mxu0 %v4731_v28 }
  0xd8   : > { %3329 = vmatmul.mubr.bf16.gmra.mrb[88].mxu1 %v4733_v29  ;;  %3175 = vmatprep.mubr.bf16.mxu0 %v4748_v30  ;;  %v4827_v29 = vcombine.low %v399_v0, %v407_v1 }
  0xd9   : > { %3336 = vmatprep.mubr.bf16.mxu1 %v4750_v31 }
  0xdf   : > { %3176 = vmatmul.mubr.bf16.gmra.mrb[92].mxu0 %v4747_v36 }
  0xe0   : > { %3337 = vmatmul.mubr.bf16.gmra.mrb[92].mxu1 %v4749_v37  ;;  %3183 = vmatprep.mubr.bf16.mxu0 %v4764_v38  ;;  %v4846_v38 = vcombine.high %v416_v25, %v424_v26 }
  0xe1   : > { %3344 = vmatprep.mubr.bf16.mxu1 %v4766_v39 }
  0xe7   : > { %3184 = vmatmul.mubr.bf16.gmra.mrb[96].mxu0 %v4763_v44  ;;  %v431_v44 = vld [vmem:[%s6352_s7 + $0x710] sm:$0xff] }
  0xe8   : > { %3345 = vmatmul.mubr.bf16.gmra.mrb[96].mxu1 %v4765_v45  ;;  %3191 = vmatprep.mubr.bf16.mxu0 %v4780_v46  ;;  %v439_v45 = vld [vmem:[%s6352_s7 + $0x750] sm:$0xff] }
  0xe9   : > { %3352 = vmatprep.mubr.bf16.mxu1 %v4782_v47  ;;  %v432_v47 = vld [vmem:[%s6352_s7 + $0x718] sm:$0xff]  ;;  %v4860_v56 = vcombine.high %v431_v44, %v439_v45 }
  0xef   : > { %3192 = vmatmul.mubr.bf16.gmra.mrb[100].mxu0 %v4779_v52 }
  0xf0   : > { %3353 = vmatmul.mubr.bf16.gmra.mrb[100].mxu1 %v4781_v53  ;;  %3199 = vmatprep.mubr.bf16.mxu0 %v4796_v54 }
  0xf1   : > { %3360 = vmatprep.mubr.bf16.mxu1 %v4798_v55  ;;  %v4845_v55 = vcombine.low %v416_v25, %v424_v26  ;;  %v209_v26 = vld [vmem:[%s6352_s7 + $0x20] sm:$0xff] }
  0xf7   : > { %3200 = vmatmul.mubr.bf16.gmra.mrb[104].mxu0 %v4795_v60  ;;  %v4862_v60 = vcombine.high %v432_v47, %v440_v48 }
  0xf8   : > { %3361 = vmatmul.mubr.bf16.gmra.mrb[104].mxu1 %v4797_v61  ;;  %3207 = vmatprep.mubr.bf16.mxu0 %v4812_v62 }
  0xf9   : > { %3368 = vmatprep.mubr.bf16.mxu1 %v4814_v63 }
  0xfa   : > { %v5195_v2 = vpop.f32.mrb[0].mxu0 }
  0xfb   : > { %v5307_v5 = vpop.f32.mrb[0].mxu1  ;;  %v5196_v6 = vpop.f32.mrb[1].mxu0 }
  0xfc   : > { %v5197_v8 = vadd.f32 %v5196_v6, %v5195_v2  ;;  %v5308_v9 = vpop.f32.mrb[1].mxu1  ;;  %v5198_v10 = vpop.f32.mrb[2].mxu0  ;;  %v447_v2 = vld [vmem:[%s6352_s7 + $0x790] sm:$0xff]  ;;  %v456_v6 = vld [vmem:[%s6352_s7 + $0x7d8] sm:$0xff] }
  0xfd   : > { %v5309_v13 = vadd.f32 %v5308_v9, %v5307_v5  ;;  %v5310_v14 = vpop.f32.mrb[2].mxu1  ;;  %v5199_v15 = vpop.f32.mrb[3].mxu0  ;;  %v448_v5 = vld [vmem:[%s6352_s7 + $0x798] sm:$0xff]  ;;  %v4859_v9 = vcombine.low %v431_v44, %v439_v45 }
  0xfe   : > { %v5200_v17 = vadd.f32 %v5199_v15, %v5198_v10  ;;  %v5311_v18 = vpop.f32.mrb[3].mxu1 }
  0xff   : > { %v6674_v19 = vadd.f32 %v5309_v13, %v5197_v8  ;;  %v5312_v20 = vadd.f32 %v5311_v18, %v5310_v14  ;;  %3208 = vmatmul.mubr.bf16.gmra.mrb[108].mxu0 %v4811_v7  ;;  %v4861_v13 = vcombine.low %v432_v47, %v440_v48  ;;  %v4876_v14 = vcombine.high %v447_v2, %v455_v3 }
 0x100   : > { %3369 = vmatmul.mubr.bf16.gmra.mrb[108].mxu1 %v4813_v11  ;;  %3215 = vmatprep.mubr.bf16.mxu0 %v4828_v12  ;;  %v4878_v18 = vcombine.high %v448_v5, %v456_v6 }
 0x101   : > { %v6676_v21 = vadd.f32 %v5312_v20, %v5200_v17  ;;  %3376 = vmatprep.mubr.bf16.mxu1 %v4830_v16 }
 0x102   : > { %v5201_v24 = vpop.f32.mrb[4].mxu0 }
 0x103   : > { %v5313_v27 = vpop.f32.mrb[4].mxu1  ;;  %v5202_v28 = vpop.f32.mrb[5].mxu0 }
 0x104   : > { %v5203_v30 = vadd.f32 %v5202_v28, %v5201_v24  ;;  %v5314_v31 = vpop.f32.mrb[5].mxu1  ;;  %v5204_v32 = vpop.f32.mrb[6].mxu0 }
 0x105   : > { %v5315_v35 = vadd.f32 %v5314_v31, %v5313_v27  ;;  %v5316_v36 = vpop.f32.mrb[6].mxu1  ;;  %v5205_v37 = vpop.f32.mrb[7].mxu0  ;;  %v217_v27 = vld [vmem:[%s6352_s7 + $0x60] sm:$0xff] }
 0x106   : > { %v5206_v39 = vadd.f32 %v5205_v37, %v5204_v32  ;;  %v5317_v40 = vpop.f32.mrb[7].mxu1  ;;  %v4877_v37 = vcombine.low %v448_v5, %v456_v6 }
 0x107   : > { %v6682_v41 = vadd.f32 %v5315_v35, %v5203_v30  ;;  %v5318_v42 = vadd.f32 %v5317_v40, %v5316_v36  ;;  %3216 = vmatmul.mubr.bf16.gmra.mrb[112].mxu0 %v4827_v29  ;;  %v210_v29 = vld [vmem:[%s6352_s7 + $0x28] sm:$0xff] }
 0x108   : > { %3377 = vmatmul.mubr.bf16.gmra.mrb[112].mxu1 %v4829_v33  ;;  %3223 = vmatprep.mubr.bf16.mxu0 %v4844_v34  ;;  %v218_v30 = vld [vmem:[%s6352_s7 + $0x68] sm:$0xff]  ;;  %v4875_v33 = vcombine.low %v447_v2, %v455_v3 }
 0x109   : > { %v6684_v43 = vadd.f32 %v5318_v42, %v5206_v39  ;;  %3384 = vmatprep.mubr.bf16.mxu1 %v4846_v38  ;;  %v4640_v38 = vcombine.high %v209_v26, %v217_v27  ;;  %v4642_v44 = vcombine.high %v210_v29, %v218_v30 }
 0x10a   : > { %v5207_v46 = vpop.f32.mrb[8].mxu0 }
 0x10b   : > { %v5319_v49 = vpop.f32.mrb[8].mxu1  ;;  %v5208_v50 = vpop.f32.mrb[9].mxu0 }
 0x10c   : > { %v5209_v52 = vadd.f32 %v5208_v50, %v5207_v46  ;;  %v5320_v53 = vpop.f32.mrb[9].mxu1  ;;  %v5210_v54 = vpop.f32.mrb[10].mxu0 }
 0x10d   : > { %v5321_v57 = vadd.f32 %v5320_v53, %v5319_v49  ;;  %v5322_v58 = vpop.f32.mrb[10].mxu1  ;;  %v5211_v59 = vpop.f32.mrb[11].mxu0 }
 0x10e   : > { %v5212_v61 = vadd.f32 %v5211_v59, %v5210_v54  ;;  %v5323_v62 = vpop.f32.mrb[11].mxu1 }
 0x10f   : > { %v6690_v63 = vadd.f32 %v5321_v57, %v5209_v52  ;;  %v5324_v0 = vadd.f32 %v5323_v62, %v5322_v58  ;;  %3224 = vmatmul.mubr.bf16.gmra.mrb[116].mxu0 %v4843_v51  ;;  %v6711_v51 = vld [vmem:[%s6352_s7 + $0xa0] sm:$0xff]  ;;  %v234_v57 = vld [vmem:[%s6352_s7 + $0xe8] sm:$0xff] }
 0x110   : > { %3385 = vmatmul.mubr.bf16.gmra.mrb[116].mxu1 %v4845_v55  ;;  %3231 = vmatprep.mubr.bf16.mxu0 %v4860_v56  ;;  %v6714_v52 = vld [vmem:[%s6352_s7 + $0xe0] sm:$0xff]  ;;  %v4639_v55 = vcombine.low %v209_v26, %v217_v27  ;;  %v226_v56 = vld [vmem:[%s6352_s7 + $0xa8] sm:$0xff]  ;;  %v6189_v26 = vld [vmem:[%s7738_s1 + $0x3d0] sm:$0xff]  }
 0x111   : > { %v6692_v1 = vadd.f32 %v5324_v0, %v5212_v61  ;;  %3392 = vmatprep.mubr.bf16.mxu1 %v4862_v60  ;;  %v4641_v61 = vcombine.low %v210_v29, %v218_v30  ;;  %v6180_v62 = vld [vmem:[%s7738_s1 + $0x300] sm:$0xff]   ;;  %v4656_v5 = vcombine.high %v6711_v51, %v6714_v52  ;;  %v4655_v29 = vcombine.low %v6711_v51, %v6714_v52 }
 0x112   : > { %v5213_v4 = vpop.f32.mrb[12].mxu0  ;;  %v6781_v51 = vld [vmem:[%s6352_s7 + $0x1a0] sm:$0xff] }
 0x113   : > { %v5325_v7 = vpop.f32.mrb[12].mxu1  ;;  %v5214_v8 = vpop.f32.mrb[13].mxu0 }
 0x114   : > { %v5215_v10 = vadd.f32 %v5214_v8, %v5213_v4  ;;  %v5326_v11 = vpop.f32.mrb[13].mxu1  ;;  %v5216_v12 = vpop.f32.mrb[14].mxu0  ;;  %v6182_v4 = vld [vmem:[%s7738_s1 + $0x380] sm:$0xff]   ;;  %v4658_v8 = vcombine.high %v226_v56, %v234_v57 }
 0x115   : > { %v5327_v15 = vadd.f32 %v5326_v11, %v5325_v7  ;;  %v5328_v16 = vpop.f32.mrb[14].mxu1  ;;  %v5217_v17 = vpop.f32.mrb[15].mxu0 }
 0x116   : > { %v5218_v20 = vadd.f32 %v5217_v17, %v5216_v12  ;;  %v5329_v22 = vpop.f32.mrb[15].mxu1  ;;  %v6185_v12 = vld [vmem:[%s7738_s1 + $0x3c8] sm:$0xff]  }
 0x117   : > { %v6698_v23 = vadd.f32 %v5327_v15, %v5215_v10  ;;  %v5330_v24 = vadd.f32 %v5329_v22, %v5328_v16  ;;  %3232 = vmatmul.mubr.bf16.gmra.mrb[120].mxu0 %v4859_v9  ;;  %v6183_v9 = vld [vmem:[%s7738_s1 + $0x348] sm:$0xff]   ;;  %v6743_v16 = vld [vmem:[%s6352_s7 + $0x160] sm:$0xff] }
 0x118   : > { %3393 = vmatmul.mubr.bf16.gmra.mrb[120].mxu1 %v4861_v13  ;;  %3239 = vmatprep.mubr.bf16.mxu0 %v4876_v14  ;;  %v6735_v13 = vld [vmem:[%s6352_s7 + $0x120] sm:$0xff]  ;;  %v6184_v14 = vld [vmem:[%s7738_s1 + $0x308] sm:$0xff]  }
 0x119   : > { %v6700_v25 = vadd.f32 %v5330_v24, %v5218_v20  ;;  %3400 = vmatprep.mubr.bf16.mxu1 %v4878_v18  ;;  %v6186_v17 = vld [vmem:[%s7738_s1 + $0x388] sm:$0xff]   ;;  %v6187_v18 = vld [vmem:[%s7738_s1 + $0x350] sm:$0xff]  }
 0x11a   : > { %v5219_v28 = vpop.f32.mrb[16].mxu0  ;;  %v6752_v22 = vld [vmem:[%s6352_s7 + $0x128] sm:$0xff] }
 0x11b   : > { %v5331_v31 = vpop.f32.mrb[16].mxu1  ;;  %v5220_v32 = vpop.f32.mrb[17].mxu0  ;;  %v6755_v24 = vld [vmem:[%s6352_s7 + $0x168] sm:$0xff] }
 0x11c   : > { %v5221_v34 = vadd.f32 %v5220_v32, %v5219_v28  ;;  %v5332_v35 = vpop.f32.mrb[17].mxu1  ;;  %v5222_v36 = vpop.f32.mrb[18].mxu0 }
 0x11d   : > { %v5333_v39 = vadd.f32 %v5332_v35, %v5331_v31  ;;  %v5334_v40 = vpop.f32.mrb[18].mxu1  ;;  %v5223_v42 = vpop.f32.mrb[19].mxu0 }
 0x11e   : > { %v5224_v45 = vadd.f32 %v5223_v42, %v5222_v36  ;;  %v5335_v46 = vpop.f32.mrb[19].mxu1 }
 0x11f   : > { %v6706_v47 = vadd.f32 %v5333_v39, %v5221_v34  ;;  %v5336_v48 = vadd.f32 %v5335_v46, %v5334_v40  ;;  %3240 = vmatmul.mubr.bf16.gmra.mrb[124].mxu0 %v4875_v33  ;;  %v4657_v33 = vcombine.low %v226_v56, %v234_v57  ;;  %v4672_v34 = vcombine.high %v6735_v13, %v6743_v16  ;;  %v6188_v39 = vld [vmem:[%s7738_s1 + $0x310] sm:$0xff]   ;;  %v6795_v57 = vld [vmem:[%s6352_s7 + $0x1e8] sm:$0xff] }
 0x120   : > { %3401 = vmatmul.mubr.bf16.gmra.mrb[124].mxu1 %v4877_v37  ;;  %3441 = vmatprep.mubr.bf16.mxu0 %v4640_v38  ;;  %v4674_v38 = vcombine.high %v6752_v22, %v6755_v24 }
 0x121   : > { %v6708_v49 = vadd.f32 %v5336_v48, %v5224_v45  ;;  %3602 = vmatprep.mubr.bf16.mxu1 %v4642_v44  ;;  %v6190_v44 = vld [vmem:[%s7738_s1 + $0x390] sm:$0xff]   ;;  %v6191_v45 = vld [vmem:[%s7738_s1 + $0x358] sm:$0xff]  }
 0x122   : > { %v5225_v50 = vpop.f32.mrb[20].mxu0 }
 0x123   : > { %v5337_v53 = vpop.f32.mrb[20].mxu1  ;;  %v5226_v54 = vpop.f32.mrb[21].mxu0 }
 0x124   : > { %v5227_v58 = vadd.f32 %v5226_v54, %v5225_v50  ;;  %v5338_v59 = vpop.f32.mrb[21].mxu1  ;;  %v5228_v60 = vpop.f32.mrb[22].mxu0  ;;  %v6193_v50 = vld [vmem:[%s7738_s1 + $0x3d8] sm:$0xff]   ;;  %v6789_v54 = vld [vmem:[%s6352_s7 + $0x1a8] sm:$0xff] }
 0x125   : > { %v5339_v0 = vadd.f32 %v5338_v59, %v5337_v53  ;;  %v5340_v2 = vpop.f32.mrb[22].mxu1  ;;  %v5229_v3 = vpop.f32.mrb[23].mxu0  ;;  %v6786_v53 = vld [vmem:[%s6352_s7 + $0x1e0] sm:$0xff] }
 0x126   : > { %v5230_v6 = vadd.f32 %v5229_v3, %v5228_v60  ;;  %v5341_v7 = vpop.f32.mrb[23].mxu1  ;;  %v6195_v59 = vld [vmem:[%s7738_s1 + $0x360] sm:$0xff]  }
 0x127   : > { %v6729_v10 = vadd.f32 %v5339_v0, %v5227_v58  ;;  %v5342_v11 = vadd.f32 %v5341_v7, %v5340_v2  ;;  %3442 = vmatmul.mubr.bf16.vlgmr.msra.gmra.mrb[128].mxu0 %v4639_v55  ;;  %v6192_v55 = vld [vmem:[%s7738_s1 + $0x318] sm:$0xff]   ;;  %v6197_v0 = vld [vmem:[%s7738_s1 + $0x3e0] sm:$0xff]  }
 0x128   : > { %3603 = vmatmul.mubr.bf16.vlgmr.msra.gmra.mrb[128].mxu1 %v4641_v61  ;;  %5852 = vmatpush3.bf16.msra.mxu0 %v6180_v62  ;;  %v6194_v58 = vld [vmem:[%s7738_s1 + $0x398] sm:$0xff]   ;;  %v4671_v62 = vcombine.low %v6735_v13, %v6743_v16  ;;  %v6198_v16 = vld [vmem:[%s7738_s1 + $0x3a0] sm:$0xff]  }
 0x129   : > { %v6740_v15 = vadd.f32 %v5342_v11, %v5230_v6  ;;  %5964 = vmatpush3.bf16.msra.mxu1 %v6182_v4  ;;  %3449 = vmatprep.mubr.bf16.mxu0 %v4656_v5  ;;  %v4673_v5 = vcombine.low %v6752_v22, %v6755_v24  ;;  %v4688_v6 = vcombine.high %v6781_v51, %v6786_v53  ;;  %v6201_v22 = vld [vmem:[%s7738_s1 + $0x3e8] sm:$0xff]   ;;  %v6829_v24 = vld [vmem:[%s6352_s7 + $0x220] sm:$0xff] }
 0x12a   : > { %v5231_v20 = vpop.f32.mrb[24].mxu0  ;;  %3610 = vmatprep.mubr.bf16.mxu1 %v4658_v8  ;;  %5853 = vmatprep.subr.bf16.mxu0 %v6183_v9  ;;  %v4690_v11 = vcombine.high %v6789_v54, %v6795_v57 }
 0x12b   : > { %v5343_v27 = vpop.f32.mrb[24].mxu1  ;;  %v5232_v28 = vpop.f32.mrb[25].mxu0  ;;  %5965 = vmatprep.subr.bf16.mxu1 %v6185_v12  ;;  %v6196_v12 = vld [vmem:[%s7738_s1 + $0x320] sm:$0xff]  }
 0x12c   : > { %v5233_v30 = vadd.f32 %v5232_v28, %v5231_v20  ;;  %v5344_v31 = vpop.f32.mrb[25].mxu1  ;;  %v5234_v32 = vpop.f32.mrb[26].mxu0  ;;  %5854 = vmatpush3.bf16.msra.mxu0 %v6184_v14  ;;  %v6837_v28 = vld [vmem:[%s6352_s7 + $0x228] sm:$0xff] }
 0x12d   : > { %v5345_v35 = vadd.f32 %v5344_v31, %v5343_v27  ;;  %v5346_v36 = vpop.f32.mrb[26].mxu1  ;;  %v5235_v37 = vpop.f32.mrb[27].mxu0  ;;  %5966 = vmatpush3.bf16.msra.mxu1 %v6186_v17  ;;  %5855 = vmatprep.subr.bf16.mxu0 %v6187_v18  ;;  %v6199_v17 = vld [vmem:[%s7738_s1 + $0x368] sm:$0xff]   ;;  %v6834_v27 = vld [vmem:[%s6352_s7 + $0x260] sm:$0xff] }
 0x12e   : > { %v5236_v40 = vadd.f32 %v5235_v37, %v5234_v32  ;;  %v5347_v42 = vpop.f32.mrb[27].mxu1  ;;  %5967 = vmatprep.subr.bf16.mxu1 %v6189_v26  ;;  %v6843_v31 = vld [vmem:[%s6352_s7 + $0x268] sm:$0xff]  ;;  %v6205_v37 = vld [vmem:[%s7738_s1 + $0x3f0] sm:$0xff]  }
 0x12f   : > { %v6775_v46 = vadd.f32 %v5345_v35, %v5233_v30  ;;  %v5348_v48 = vadd.f32 %v5347_v42, %v5346_v36  ;;  %3450 = vmatmul.mubr.bf16.gmra.mrb[132].mxu0 %v4655_v29  ;;  %v6200_v29 = vld [vmem:[%s7738_s1 + $0x328] sm:$0xff]   ;;  %v4687_v36 = vcombine.low %v6781_v51, %v6786_v53  ;;  %v4689_v42 = vcombine.low %v6789_v54, %v6795_v57  ;;  %v6204_v53 = vld [vmem:[%s7738_s1 + $0x330] sm:$0xff]   ;;  %v6207_v57 = vld [vmem:[%s7738_s1 + $0x378] sm:$0xff]  }
 0x130   : > { %3611 = vmatmul.mubr.bf16.gmra.mrb[132].mxu1 %v4657_v33  ;;  %3457 = vmatprep.mubr.bf16.mxu0 %v4672_v34  ;;  %v6202_v32 = vld [vmem:[%s7738_s1 + $0x3a8] sm:$0xff]   ;;  %v6203_v33 = vld [vmem:[%s7738_s1 + $0x370] sm:$0xff]   ;;  %v4706_v51 = vcombine.high %v6837_v28, %v6843_v31 }
 0x131   : > { %v6783_v52 = vadd.f32 %v5348_v48, %v5236_v40  ;;  %3618 = vmatprep.mubr.bf16.mxu1 %v4674_v38  ;;  %5856 = vmatpush3.bf16.msra.mxu0 %v6188_v39  ;;  %v6206_v54 = vld [vmem:[%s7738_s1 + $0x3b0] sm:$0xff]  }
 0x132   : > { %v5237_v56 = vpop.f32.mrb[28].mxu0  ;;  %5968 = vmatpush3.bf16.msra.mxu1 %v6190_v44  ;;  %5857 = vmatprep.subr.bf16.mxu0 %v6191_v45  ;;  %v4704_v44 = vcombine.high %v6829_v24, %v6834_v27 }
 0x133   : > { %v5349_v60 = vpop.f32.mrb[28].mxu1  ;;  %v5238_v61 = vpop.f32.mrb[29].mxu0  ;;  %5969 = vmatprep.subr.bf16.mxu1 %v6193_v50 }
 0x134   : > { %v5239_v2 = vadd.f32 %v5238_v61, %v5237_v56  ;;  %v5350_v3 = vpop.f32.mrb[29].mxu1  ;;  %v5240_v4 = vpop.f32.mrb[30].mxu0 }
 0x135   : > { %v5351_v7 = vadd.f32 %v5350_v3, %v5349_v60  ;;  %v5352_v8 = vpop.f32.mrb[30].mxu1  ;;  %v5241_v9 = vpop.f32.mrb[31].mxu0  ;;  %5858 = vmatpush3.bf16.msra.mxu0 %v6192_v55  ;;  %v6209_v60 = vld [vmem:[%s7738_s1 + $0x3f8] sm:$0xff]  }
 0x136   : > { %v5242_v13 = vadd.f32 %v5241_v9, %v5240_v4  ;;  %v5353_v14 = vpop.f32.mrb[31].mxu1  ;;  %5970 = vmatpush3.bf16.msra.mxu1 %v6194_v58  ;;  %5859 = vmatprep.subr.bf16.mxu0 %v6195_v59  ;;  %v290_v4 = vld [vmem:[%s6352_s7 + $0x2a8] sm:$0xff]  ;;  %v4703_v9 = vcombine.low %v6829_v24, %v6834_v27 }
 0x137   : > { %v6823_v18 = vadd.f32 %v5351_v7, %v5239_v2  ;;  %v5354_v20 = vadd.f32 %v5353_v14, %v5352_v8  ;;  %3458 = vmatmul.mubr.bf16.gmra.mrb[136].mxu0 %v4671_v62  ;;  %5971 = vmatprep.subr.bf16.mxu1 %v6197_v0  ;;  %v289_v62 = vld [vmem:[%s6352_s7 + $0x2a0] sm:$0xff]  ;;  %v6208_v2 = vld [vmem:[%s7738_s1 + $0x338] sm:$0xff]   ;;  %v4705_v14 = vcombine.low %v6837_v28, %v6843_v31 }
 0x138   : > { %3619 = vmatmul.mubr.bf16.gmra.mrb[136].mxu1 %v4673_v5  ;;  %3465 = vmatprep.mubr.bf16.mxu0 %v4688_v6  ;;  %v297_v0 = vld [vmem:[%s6352_s7 + $0x2e0] sm:$0xff]  ;;  %v298_v5 = vld [vmem:[%s6352_s7 + $0x2e8] sm:$0xff]  ;;  %v6210_v6 = vld [vmem:[%s7738_s1 + $0x3b8] sm:$0xff]  }
 0x139   : > { %v6831_v26 = vadd.f32 %v5354_v20, %v5242_v13  ;;  %3626 = vmatprep.mubr.bf16.mxu1 %v4690_v11  ;;  %5860 = vmatpush3.bf16.msra.mxu0 %v6196_v12  ;;  %v305_v31 = vld [vmem:[%s6352_s7 + $0x320] sm:$0xff] }
 0x13a   : > { %v5243_v30 = vpop.f32.mrb[32].mxu0  ;;  %5972 = vmatpush3.bf16.msra.mxu1 %v6198_v16  ;;  %5861 = vmatprep.subr.bf16.mxu0 %v6199_v17  ;;  %v4720_v16 = vcombine.high %v289_v62, %v297_v0 }
 0x13b   : > { %v5355_v34 = vpop.f32.mrb[32].mxu1  ;;  %v5244_v35 = vpop.f32.mrb[33].mxu0  ;;  %5973 = vmatprep.subr.bf16.mxu1 %v6201_v22 }
 0x13c   : > { %v5245_v38 = vadd.f32 %v5244_v35, %v5243_v30  ;;  %v5356_v39 = vpop.f32.mrb[33].mxu1  ;;  %v5246_v40 = vpop.f32.mrb[34].mxu0  ;;  %v306_v35 = vld [vmem:[%s6352_s7 + $0x328] sm:$0xff] }
 0x13d   : > { %v5357_v45 = vadd.f32 %v5356_v39, %v5355_v34  ;;  %v5358_v48 = vpop.f32.mrb[34].mxu1  ;;  %v5247_v50 = vpop.f32.mrb[35].mxu0  ;;  %5862 = vmatpush3.bf16.msra.mxu0 %v6200_v29  ;;  %v4722_v29 = vcombine.high %v290_v4, %v298_v5  ;;  %v4719_v39 = vcombine.low %v289_v62, %v297_v0  ;;  %v321_v62 = vld [vmem:[%s6352_s7 + $0x3a0] sm:$0xff] }
 0x13e   : > { %v5248_v55 = vadd.f32 %v5247_v50, %v5246_v40  ;;  %v5359_v56 = vpop.f32.mrb[35].mxu1  ;;  %5974 = vmatpush3.bf16.msra.mxu1 %v6202_v32  ;;  %5863 = vmatprep.subr.bf16.mxu0 %v6203_v33  ;;  %v313_v33 = vld [vmem:[%s6352_s7 + $0x360] sm:$0xff] }
 0x13f   : > { %v6871_v58 = vadd.f32 %v5357_v45, %v5245_v38  ;;  %v5360_v59 = vadd.f32 %v5359_v56, %v5358_v48  ;;  %3466 = vmatmul.mubr.bf16.gmra.mrb[140].mxu0 %v4687_v36  ;;  %5975 = vmatprep.subr.bf16.mxu1 %v6205_v37  ;;  %v314_v36 = vld [vmem:[%s6352_s7 + $0x368] sm:$0xff]  ;;  %v4721_v45 = vcombine.low %v290_v4, %v298_v5  ;;  %v329_v0 = vld [vmem:[%s6352_s7 + $0x3e0] sm:$0xff] }
 0x140   : > { %3627 = vmatmul.mubr.bf16.gmra.mrb[140].mxu1 %v4689_v42  ;;  %3473 = vmatprep.mubr.bf16.mxu0 %v4704_v44  ;;  %v4736_v48 = vcombine.high %v305_v31, %v313_v33  ;;  %v330_v4 = vld [vmem:[%s6352_s7 + $0x3e8] sm:$0xff] }
 0x141   : > { %v6876_v61 = vadd.f32 %v5360_v59, %v5248_v55  ;;  %3634 = vmatprep.mubr.bf16.mxu1 %v4706_v51  ;;  %5864 = vmatpush3.bf16.msra.mxu0 %v6204_v53  ;;  %v4738_v55 = vcombine.high %v306_v35, %v314_v36 }
 0x142   : > { %v5249_v3 = vpop.f32.mrb[36].mxu0  ;;  %5976 = vmatpush3.bf16.msra.mxu1 %v6206_v54  ;;  %5865 = vmatprep.subr.bf16.mxu0 %v6207_v57 }
 0x143   : > { %v5361_v7 = vpop.f32.mrb[36].mxu1  ;;  %v5250_v8 = vpop.f32.mrb[37].mxu0  ;;  %5977 = vmatprep.subr.bf16.mxu1 %v6209_v60 }
 0x144   : > { %v5251_v11 = vadd.f32 %v5250_v8, %v5249_v3  ;;  %v5362_v12 = vpop.f32.mrb[37].mxu1  ;;  %v5252_v13 = vpop.f32.mrb[38].mxu0  ;;  %v322_v3 = vld [vmem:[%s6352_s7 + $0x3a8] sm:$0xff] }
 0x145   : > { %v5363_v17 = vadd.f32 %v5362_v12, %v5361_v7  ;;  %v5364_v20 = vpop.f32.mrb[38].mxu1  ;;  %v5253_v22 = vpop.f32.mrb[39].mxu0  ;;  %5866 = vmatpush3.bf16.msra.mxu0 %v6208_v2  ;;  %v4735_v7 = vcombine.low %v305_v31, %v313_v33  ;;  %v4737_v12 = vcombine.low %v306_v35, %v314_v36  ;;  %v337_v31 = vld [vmem:[%s6352_s7 + $0x420] sm:$0xff]  ;;  %v338_v35 = vld [vmem:[%s6352_s7 + $0x428] sm:$0xff] }
 0x146   : > { %v5254_v30 = vadd.f32 %v5253_v22, %v5252_v13  ;;  %v5365_v32 = vpop.f32.mrb[39].mxu1  ;;  %5978 = vmatpush3.bf16.msra.mxu1 %v6210_v6  ;;  %v4752_v13 = vcombine.high %v321_v62, %v329_v0  ;;  %v345_v33 = vld [vmem:[%s6352_s7 + $0x460] sm:$0xff]  ;;  %v346_v36 = vld [vmem:[%s6352_s7 + $0x468] sm:$0xff] }
 0x147   : > { %v6892_v24 = vadd.f32 %v5363_v17, %v5251_v11  ;;  %v5366_v27 = vadd.f32 %v5365_v32, %v5364_v20  ;;  %3474 = vmatmul.mubr.bf16.gmra.mrb[144].mxu0 %v4703_v9  ;;  %v4754_v20 = vcombine.high %v322_v3, %v330_v4 }
 0x148   : > { %3635 = vmatmul.mubr.bf16.gmra.mrb[144].mxu1 %v4705_v14  ;;  %3481 = vmatprep.mubr.bf16.mxu0 %v4720_v16 }
 0x149   : > { %v6894_v28 = vadd.f32 %v5366_v27, %v5254_v30  ;;  %3642 = vmatprep.mubr.bf16.mxu1 %v4722_v29 }
 0x14a   : > { %v5255_v34 = vpop.f32.mrb[40].mxu0 }
 0x14b   : > { %v5367_v37 = vpop.f32.mrb[40].mxu1  ;;  %v5256_v38 = vpop.f32.mrb[41].mxu0 }
 0x14c   : > { %v5257_v40 = vadd.f32 %v5256_v38, %v5255_v34  ;;  %v5368_v42 = vpop.f32.mrb[41].mxu1  ;;  %v5258_v44 = vpop.f32.mrb[42].mxu0 }
 0x14d   : > { %v5369_v50 = vadd.f32 %v5368_v42, %v5367_v37  ;;  %v5370_v51 = vpop.f32.mrb[42].mxu1  ;;  %v5259_v53 = vpop.f32.mrb[43].mxu0 }
 0x14e   : > { %v5260_v56 = vadd.f32 %v5259_v53, %v5258_v44  ;;  %v5371_v54 = vpop.f32.mrb[43].mxu1 }
 0x14f   : > { %v6900_v57 = vadd.f32 %v5369_v50, %v5257_v40  ;;  %v5372_v59 = vadd.f32 %v5371_v54, %v5370_v51  ;;  %3482 = vmatmul.mubr.bf16.gmra.mrb[148].mxu0 %v4719_v39  ;;  %v4751_v39 = vcombine.low %v321_v62, %v329_v0  ;;  %v353_v0 = vld [vmem:[%s6352_s7 + $0x4a0] sm:$0xff] }
 0x150   : > { %3643 = vmatmul.mubr.bf16.gmra.mrb[148].mxu1 %v4721_v45  ;;  %3489 = vmatprep.mubr.bf16.mxu0 %v4736_v48  ;;  %v4753_v45 = vcombine.low %v322_v3, %v330_v4  ;;  %v4768_v48 = vcombine.high %v337_v31, %v345_v33  ;;  %v361_v3 = vld [vmem:[%s6352_s7 + $0x4e0] sm:$0xff] }
 0x151   : > { %v6902_v60 = vadd.f32 %v5372_v59, %v5260_v56  ;;  %3650 = vmatprep.mubr.bf16.mxu1 %v4738_v55  ;;  %v4770_v55 = vcombine.high %v338_v35, %v346_v36 }
 0x152   : > { %v5261_v2 = vpop.f32.mrb[44].mxu0 }
 0x153   : > { %v5373_v5 = vpop.f32.mrb[44].mxu1  ;;  %v5262_v6 = vpop.f32.mrb[45].mxu0 }
 0x154   : > { %v5263_v8 = vadd.f32 %v5262_v6, %v5261_v2  ;;  %v5374_v9 = vpop.f32.mrb[45].mxu1  ;;  %v5264_v11 = vpop.f32.mrb[46].mxu0  ;;  %v362_v6 = vld [vmem:[%s6352_s7 + $0x4e8] sm:$0xff] }
 0x155   : > { %v5375_v14 = vadd.f32 %v5374_v9, %v5373_v5  ;;  %v5376_v16 = vpop.f32.mrb[46].mxu1  ;;  %v5265_v17 = vpop.f32.mrb[47].mxu0  ;;  %v354_v5 = vld [vmem:[%s6352_s7 + $0x4a8] sm:$0xff]  ;;  %v4767_v9 = vcombine.low %v337_v31, %v345_v33  ;;  %v369_v33 = vld [vmem:[%s6352_s7 + $0x520] sm:$0xff] }
 0x156   : > { %v5266_v22 = vadd.f32 %v5265_v17, %v5264_v11  ;;  %v5377_v29 = vpop.f32.mrb[47].mxu1 }
 0x157   : > { %v6908_v30 = vadd.f32 %v5375_v14, %v5263_v8  ;;  %v5378_v32 = vadd.f32 %v5377_v29, %v5376_v16  ;;  %3490 = vmatmul.mubr.bf16.gmra.mrb[152].mxu0 %v4735_v7  ;;  %v4769_v14 = vcombine.low %v338_v35, %v346_v36  ;;  %v4784_v16 = vcombine.high %v353_v0, %v361_v3  ;;  %v377_v35 = vld [vmem:[%s6352_s7 + $0x560] sm:$0xff] }
 0x158   : > { %3651 = vmatmul.mubr.bf16.gmra.mrb[152].mxu1 %v4737_v12  ;;  %3497 = vmatprep.mubr.bf16.mxu0 %v4752_v13  ;;  %v4786_v29 = vcombine.high %v354_v5, %v362_v6 }
 0x159   : > { %v6910_v27 = vadd.f32 %v5378_v32, %v5266_v22  ;;  %3658 = vmatprep.mubr.bf16.mxu1 %v4754_v20 }
 0x15a   : > { %v5267_v34 = vpop.f32.mrb[48].mxu0 }
 0x15b   : > { %v5379_v37 = vpop.f32.mrb[48].mxu1  ;;  %v5268_v38 = vpop.f32.mrb[49].mxu0 }
 0x15c   : > { %v5269_v40 = vadd.f32 %v5268_v38, %v5267_v34  ;;  %v5380_v42 = vpop.f32.mrb[49].mxu1  ;;  %v5270_v44 = vpop.f32.mrb[50].mxu0 }
 0x15d   : > { %v5381_v50 = vadd.f32 %v5380_v42, %v5379_v37  ;;  %v5382_v51 = vpop.f32.mrb[50].mxu1  ;;  %v5271_v53 = vpop.f32.mrb[51].mxu0 }
 0x15e   : > { %v5272_v56 = vadd.f32 %v5271_v53, %v5270_v44  ;;  %v5383_v54 = vpop.f32.mrb[51].mxu1  ;;  %v4785_v53 = vcombine.low %v354_v5, %v362_v6  ;;  %v393_v5 = vld [vmem:[%s6352_s7 + $0x5e0] sm:$0xff] }
 0x15f   : > { %v6916_v59 = vadd.f32 %v5381_v50, %v5269_v40  ;;  %v5384_v2 = vadd.f32 %v5383_v54, %v5382_v51  ;;  %3498 = vmatmul.mubr.bf16.gmra.mrb[156].mxu0 %v4751_v39  ;;  %v370_v39 = vld [vmem:[%s6352_s7 + $0x528] sm:$0xff] }
 0x160   : > { %3659 = vmatmul.mubr.bf16.gmra.mrb[156].mxu1 %v4753_v45  ;;  %3505 = vmatprep.mubr.bf16.mxu0 %v4768_v48  ;;  %v378_v40 = vld [vmem:[%s6352_s7 + $0x568] sm:$0xff]  ;;  %v4783_v45 = vcombine.low %v353_v0, %v361_v3  ;;  %v385_v3 = vld [vmem:[%s6352_s7 + $0x5a0] sm:$0xff] }
 0x161   : > { %v6918_v62 = vadd.f32 %v5384_v2, %v5272_v56  ;;  %3666 = vmatprep.mubr.bf16.mxu1 %v4770_v55  ;;  %v4800_v55 = vcombine.high %v369_v33, %v377_v35 }
 0x162   : > { %v5273_v4 = vpop.f32.mrb[52].mxu0 }
 0x163   : > { %v5385_v7 = vpop.f32.mrb[52].mxu1  ;;  %v5274_v8 = vpop.f32.mrb[53].mxu0 }
 0x164   : > { %v5275_v11 = vadd.f32 %v5274_v8, %v5273_v4  ;;  %v5386_v12 = vpop.f32.mrb[53].mxu1  ;;  %v5276_v13 = vpop.f32.mrb[54].mxu0  ;;  %v4802_v4 = vcombine.high %v370_v39, %v378_v40 }
 0x165   : > { %v5387_v17 = vadd.f32 %v5386_v12, %v5385_v7  ;;  %v5388_v20 = vpop.f32.mrb[54].mxu1  ;;  %v5277_v22 = vpop.f32.mrb[55].mxu0  ;;  %v386_v12 = vld [vmem:[%s6352_s7 + $0x5a8] sm:$0xff] }
 0x166   : > { %v5278_v32 = vadd.f32 %v5277_v22, %v5276_v13  ;;  %v5389_v34 = vpop.f32.mrb[55].mxu1  ;;  %v394_v13 = vld [vmem:[%s6352_s7 + $0x5e8] sm:$0xff] }
 0x167   : > { %v6924_v37 = vadd.f32 %v5387_v17, %v5275_v11  ;;  %v5390_v38 = vadd.f32 %v5389_v34, %v5388_v20  ;;  %3506 = vmatmul.mubr.bf16.gmra.mrb[160].mxu0 %v4767_v9  ;;  %v4799_v17 = vcombine.low %v369_v33, %v377_v35  ;;  %v4816_v34 = vcombine.high %v385_v3, %v393_v5  ;;  %v401_v35 = vld [vmem:[%s6352_s7 + $0x620] sm:$0xff] }
 0x168   : > { %3667 = vmatmul.mubr.bf16.gmra.mrb[160].mxu1 %v4769_v14  ;;  %3513 = vmatprep.mubr.bf16.mxu0 %v4784_v16 }
 0x169   : > { %v6926_v31 = vadd.f32 %v5390_v38, %v5278_v32  ;;  %3674 = vmatprep.mubr.bf16.mxu1 %v4786_v29  ;;  %v4801_v32 = vcombine.low %v370_v39, %v378_v40  ;;  %v409_v39 = vld [vmem:[%s6352_s7 + $0x660] sm:$0xff] }
 0x16a   : > { %v5279_v36 = vpop.f32.mrb[56].mxu0 }
 0x16b   : > { %v5391_v42 = vpop.f32.mrb[56].mxu1  ;;  %v5280_v44 = vpop.f32.mrb[57].mxu0 }
 0x16c   : > { %v5281_v48 = vadd.f32 %v5280_v44, %v5279_v36  ;;  %v5392_v50 = vpop.f32.mrb[57].mxu1  ;;  %v5282_v51 = vpop.f32.mrb[58].mxu0  ;;  %v4818_v44 = vcombine.high %v386_v12, %v394_v13 }
 0x16d   : > { %v5393_v56 = vadd.f32 %v5392_v50, %v5391_v42  ;;  %v5394_v54 = vpop.f32.mrb[58].mxu1  ;;  %v5283_v2 = vpop.f32.mrb[59].mxu0 }
 0x16e   : > { %v5284_v7 = vadd.f32 %v5283_v2, %v5282_v51  ;;  %v5395_v8 = vpop.f32.mrb[59].mxu1  ;;  %v4815_v2 = vcombine.low %v385_v3, %v393_v5 }
 0x16f   : > { %v6932_v9 = vadd.f32 %v5393_v56, %v5281_v48  ;;  %v5396_v11 = vadd.f32 %v5395_v8, %v5394_v54  ;;  %3514 = vmatmul.mubr.bf16.gmra.mrb[164].mxu0 %v4783_v45 }
 0x170   : > { %3675 = vmatmul.mubr.bf16.gmra.mrb[164].mxu1 %v4785_v53  ;;  %3521 = vmatprep.mubr.bf16.mxu0 %v4800_v55  ;;  %v402_v53 = vld [vmem:[%s6352_s7 + $0x628] sm:$0xff] }
 0x171   : > { %v6934_v0 = vadd.f32 %v5396_v11, %v5284_v7  ;;  %3682 = vmatprep.mubr.bf16.mxu1 %v4802_v4  ;;  %v410_v55 = vld [vmem:[%s6352_s7 + $0x668] sm:$0xff]  ;;  %v4817_v11 = vcombine.low %v386_v12, %v394_v13  ;;  %v417_v12 = vld [vmem:[%s6352_s7 + $0x6a0] sm:$0xff] }
 0x172   : > { %v5285_v6 = vpop.f32.mrb[60].mxu0  ;;  %v425_v13 = vld [vmem:[%s6352_s7 + $0x6e0] sm:$0xff] }
 0x173   : > { %v5397_v14 = vpop.f32.mrb[60].mxu1  ;;  %v5286_v16 = vpop.f32.mrb[61].mxu0 }
 0x174   : > { %v5287_v20 = vadd.f32 %v5286_v16, %v5285_v6  ;;  %v5398_v22 = vpop.f32.mrb[61].mxu1  ;;  %v5288_v29 = vpop.f32.mrb[62].mxu0  ;;  %v4832_v6 = vcombine.high %v401_v35, %v409_v39 }
 0x175   : > { %v5399_v38 = vadd.f32 %v5398_v22, %v5397_v14  ;;  %v5400_v36 = vpop.f32.mrb[62].mxu1  ;;  %v5289_v42 = vpop.f32.mrb[63].mxu0 }
 0x176   : > { %v5290_v45 = vadd.f32 %v5289_v42, %v5288_v29  ;;  %v5401_v48 = vpop.f32.mrb[63].mxu1  ;;  %v418_v42 = vld [vmem:[%s6352_s7 + $0x6a8] sm:$0xff] }
 0x177   : > { %v6940_v50 = vadd.f32 %v5399_v38, %v5287_v20  ;;  %v5402_v51 = vadd.f32 %v5401_v48, %v5400_v36  ;;  %3522 = vmatmul.mubr.bf16.gmra.mrb[168].mxu0 %v4799_v17  ;;  %v4834_v20 = vcombine.high %v402_v53, %v410_v55  ;;  %v4831_v48 = vcombine.low %v401_v35, %v409_v39 }
 0x178   : > { %3683 = vmatmul.mubr.bf16.gmra.mrb[168].mxu1 %v4801_v32  ;;  %3529 = vmatprep.mubr.bf16.mxu0 %v4816_v34 }
 0x179   : > { %v6942_v33 = vadd.f32 %v5402_v51, %v5290_v45  ;;  %3690 = vmatprep.mubr.bf16.mxu1 %v4818_v44  ;;  %v426_v44 = vld [vmem:[%s6352_s7 + $0x6e8] sm:$0xff] }
 0x17a   : > { %v5419_v40 = vpop.f32.mrb[64].mxu0 }
 0x17b   : > { %v5531_v56 = vpop.f32.mrb[64].mxu1  ;;  %v5420_v54 = vpop.f32.mrb[65].mxu0 }
 0x17c   : > { %v5421_v4 = vadd.f32 %v5420_v54, %v5419_v40  ;;  %v5532_v7 = vpop.f32.mrb[65].mxu1  ;;  %v5422_v8 = vpop.f32.mrb[66].mxu0  ;;  %v4833_v54 = vcombine.low %v402_v53, %v410_v55  ;;  %v433_v53 = vld [vmem:[%s6352_s7 + $0x720] sm:$0xff] }
 0x17d   : > { %v5533_v14 = vadd.f32 %v5532_v7, %v5531_v56  ;;  %v5534_v16 = vpop.f32.mrb[66].mxu1  ;;  %v5423_v17 = vpop.f32.mrb[67].mxu0  ;;  %v441_v55 = vld [vmem:[%s6352_s7 + $0x760] sm:$0xff] }
 0x17e   : > { %v3122_v22 = vadd.f32 %v5421_v4, %v6674_v19  ;;  %v5424_v29 = vadd.f32 %v5423_v17, %v5422_v8  ;;  %v5535_v32 = vpop.f32.mrb[67].mxu1  ;;  %v4850_v8 = vcombine.high %v418_v42, %v426_v44 }
 0x17f   : > { %v5536_v34 = vadd.f32 %v5535_v32, %v5534_v16  ;;  %3530 = vmatmul.mubr.bf16.gmra.mrb[172].mxu0 %v4815_v2  ;;  %v4848_v2 = vcombine.high %v417_v12, %v425_v13 }
 0x180   : > { %v6949_v3 = vadd.f32 %v5533_v14, %v3122_v22  ;;  %v3125_v5 = vadd.f32 %v5424_v29, %v6676_v21  ;;  %3691 = vmatmul.mubr.bf16.gmra.mrb[172].mxu1 %v4817_v11  ;;  %3537 = vmatprep.mubr.bf16.mxu0 %v4832_v6  ;;  %v434_v22 = vld [vmem:[%s6352_s7 + $0x728] sm:$0xff] }
 0x181   : > { %3698 = vmatprep.mubr.bf16.mxu1 %v4834_v20  ;;  %v442_v29 = vld [vmem:[%s6352_s7 + $0x768] sm:$0xff] }
 0x182   : > { %v6954_v38 = vadd.f32 %v5536_v34, %v3125_v5  ;;  %v5425_v36 = vpop.f32.mrb[68].mxu0  ;;  %v4847_v34 = vcombine.low %v417_v12, %v425_v13 }
 0x183   : > { %v5537_v45 = vpop.f32.mrb[68].mxu1  ;;  %v5426_v19 = vpop.f32.mrb[69].mxu0 }
 0x184   : > { %v5427_v51 = vadd.f32 %v5426_v19, %v5425_v36  ;;  %v5538_v40 = vpop.f32.mrb[69].mxu1  ;;  %v5428_v56 = vpop.f32.mrb[70].mxu0  ;;  %v4849_v19 = vcombine.low %v418_v42, %v426_v44  ;;  %v449_v42 = vld [vmem:[%s6352_s7 + $0x7a0] sm:$0xff] }
 0x185   : > { %v5539_v21 = vadd.f32 %v5538_v40, %v5537_v45  ;;  %v5540_v4 = vpop.f32.mrb[70].mxu1  ;;  %v5429_v7 = vpop.f32.mrb[71].mxu0  ;;  %v457_v44 = vld [vmem:[%s6352_s7 + $0x7e0] sm:$0xff] }
 0x186   : > { %v3130_v11 = vadd.f32 %v5427_v51, %v6682_v41  ;;  %v5430_v6 = vadd.f32 %v5429_v7, %v5428_v56  ;;  %v5541_v14 = vpop.f32.mrb[71].mxu1  ;;  %v4866_v56 = vcombine.high %v434_v22, %v442_v29 }
 0x187   : > { %v5542_v16 = vadd.f32 %v5541_v14, %v5540_v4  ;;  %3538 = vmatmul.mubr.bf16.gmra.mrb[176].mxu0 %v4831_v48  ;;  %v4864_v48 = vcombine.high %v433_v53, %v441_v55 }
 0x188   : > { %v6959_v35 = vadd.f32 %v5539_v21, %v3130_v11  ;;  %v3133_v39 = vadd.f32 %v5430_v6, %v6684_v43  ;;  %3699 = vmatmul.mubr.bf16.gmra.mrb[176].mxu1 %v4833_v54  ;;  %3545 = vmatprep.mubr.bf16.mxu0 %v4848_v2  ;;  %v450_v11 = vld [vmem:[%s6352_s7 + $0x7a8] sm:$0xff] }
 0x189   : > { %3706 = vmatprep.mubr.bf16.mxu1 %v4850_v8  ;;  %v458_v6 = vld [vmem:[%s6352_s7 + $0x7e8] sm:$0xff] }
 0x18a   : > { %v6964_v17 = vadd.f32 %v5542_v16, %v3133_v39  ;;  %v5431_v20 = vpop.f32.mrb[72].mxu0  ;;  %v4863_v16 = vcombine.low %v433_v53, %v441_v55 }
 0x18b   : > { %v5543_v32 = vpop.f32.mrb[72].mxu1  ;;  %v5432_v41 = vpop.f32.mrb[73].mxu0 }
 0x18c   : > { %v5433_v5 = vadd.f32 %v5432_v41, %v5431_v20  ;;  %v5544_v36 = vpop.f32.mrb[73].mxu1  ;;  %v5434_v45 = vpop.f32.mrb[74].mxu0  ;;  %v4865_v41 = vcombine.low %v434_v22, %v442_v29  ;;  %v211_v22 = vld [vmem:[%s6352_s7 + $0x30] sm:$0xff] }
 0x18d   : > { %v5545_v43 = vadd.f32 %v5544_v36, %v5543_v32  ;;  %v5546_v51 = vpop.f32.mrb[74].mxu1  ;;  %v5435_v40 = vpop.f32.mrb[75].mxu0  ;;  %v219_v29 = vld [vmem:[%s6352_s7 + $0x70] sm:$0xff] }
 0x18e   : > { %v3138_v54 = vadd.f32 %v5433_v5, %v6690_v63  ;;  %v5436_v2 = vadd.f32 %v5435_v40, %v5434_v45  ;;  %v5547_v21 = vpop.f32.mrb[75].mxu1  ;;  %v4882_v45 = vcombine.high %v450_v11, %v458_v6 }
 0x18f   : > { %v5548_v4 = vadd.f32 %v5547_v21, %v5546_v51  ;;  %3546 = vmatmul.mubr.bf16.gmra.mrb[180].mxu0 %v4847_v34  ;;  %v4880_v34 = vcombine.high %v449_v42, %v457_v44 }
 0x190   : > { %v6969_v12 = vadd.f32 %v5545_v43, %v3138_v54  ;;  %v3141_v13 = vadd.f32 %v5436_v2, %v6692_v1  ;;  %3707 = vmatmul.mubr.bf16.gmra.mrb[180].mxu1 %v4849_v19  ;;  %3553 = vmatprep.mubr.bf16.mxu0 %v4864_v48  ;;  %v212_v54 = vld [vmem:[%s6352_s7 + $0x38] sm:$0xff] }
 0x191   : > { %3714 = vmatprep.mubr.bf16.mxu1 %v4866_v56  ;;  %v220_v2 = vld [vmem:[%s6352_s7 + $0x78] sm:$0xff] }
 0x192   : > { %v6974_v7 = vadd.f32 %v5548_v4, %v3141_v13  ;;  %v5437_v8 = vpop.f32.mrb[76].mxu0  ;;  %v4879_v4 = vcombine.low %v449_v42, %v457_v44 }
 0x193   : > { %v5549_v14 = vpop.f32.mrb[76].mxu1  ;;  %v5438_v63 = vpop.f32.mrb[77].mxu0 }
 0x194   : > { %v5439_v39 = vadd.f32 %v5438_v63, %v5437_v8  ;;  %v5550_v20 = vpop.f32.mrb[77].mxu1  ;;  %v5440_v32 = vpop.f32.mrb[78].mxu0  ;;  %v4881_v63 = vcombine.low %v450_v11, %v458_v6  ;;  %v227_v11 = vld [vmem:[%s6352_s7 + $0xb0] sm:$0xff] }
 0x195   : > { %v5551_v1 = vadd.f32 %v5550_v20, %v5549_v14  ;;  %v5552_v5 = vpop.f32.mrb[78].mxu1  ;;  %v5441_v36 = vpop.f32.mrb[79].mxu0  ;;  %v235_v6 = vld [vmem:[%s6352_s7 + $0xf0] sm:$0xff] }
 0x196   : > { %v3146_v19 = vadd.f32 %v5439_v39, %v6698_v23  ;;  %v5442_v48 = vadd.f32 %v5441_v36, %v5440_v32  ;;  %v5553_v43 = vpop.f32.mrb[79].mxu1  ;;  %v4646_v32 = vcombine.high %v212_v54, %v220_v2 }
 0x197   : > { %v5554_v51 = vadd.f32 %v5553_v43, %v5552_v5  ;;  %3554 = vmatmul.mubr.bf16.gmra.mrb[184].mxu0 %v4863_v16  ;;  %v4644_v16 = vcombine.high %v211_v22, %v219_v29 }
 0x198   : > { %v6979_v53 = vadd.f32 %v5551_v1, %v3146_v19  ;;  %v3149_v55 = vadd.f32 %v5442_v48, %v6700_v25  ;;  %3715 = vmatmul.mubr.bf16.gmra.mrb[184].mxu1 %v4865_v41  ;;  %3561 = vmatprep.mubr.bf16.mxu0 %v4880_v34  ;;  %v228_v19 = vld [vmem:[%s6352_s7 + $0xb8] sm:$0xff] }
 0x199   : > { %3722 = vmatprep.mubr.bf16.mxu1 %v4882_v45  ;;  %v236_v48 = vld [vmem:[%s6352_s7 + $0xf8] sm:$0xff] }
 0x19a   : > { %v6984_v40 = vadd.f32 %v5554_v51, %v3149_v55  ;;  %v5443_v56 = vpop.f32.mrb[80].mxu0  ;;  %v4643_v51 = vcombine.low %v211_v22, %v219_v29 }
 0x19b   : > { %v5555_v21 = vpop.f32.mrb[80].mxu1  ;;  %v5444_v23 = vpop.f32.mrb[81].mxu0 }
 0x19c   : > { %v5445_v13 = vadd.f32 %v5444_v23, %v5443_v56  ;;  %v5556_v8 = vpop.f32.mrb[81].mxu1  ;;  %v5446_v14 = vpop.f32.mrb[82].mxu0  ;;  %v4645_v23 = vcombine.low %v212_v54, %v220_v2  ;;  %v243_v54 = vld [vmem:[%s6352_s7 + $0x130] sm:$0xff] }
 0x19d   : > { %v5557_v25 = vadd.f32 %v5556_v8, %v5555_v21  ;;  %v5558_v39 = vpop.f32.mrb[82].mxu1  ;;  %v5447_v20 = vpop.f32.mrb[83].mxu0  ;;  %v251_v2 = vld [vmem:[%s6352_s7 + $0x170] sm:$0xff] }
 0x19e   : > { %v3154_v41 = vadd.f32 %v5445_v13, %v6706_v47  ;;  %v5448_v34 = vadd.f32 %v5447_v20, %v5446_v14  ;;  %v5559_v1 = vpop.f32.mrb[83].mxu1  ;;  %v4662_v14 = vcombine.high %v228_v19, %v236_v48 }
 0x19f   : > { %v5560_v5 = vadd.f32 %v5559_v1, %v5558_v39  ;;  %3562 = vmatmul.mubr.bf16.gmra.mrb[188].mxu0 %v4879_v4  ;;  %v4660_v4 = vcombine.high %v227_v11, %v235_v6 }
 0x1a0   : > { %v6989_v42 = vadd.f32 %v5557_v25, %v3154_v41  ;;  %v3157_v44 = vadd.f32 %v5448_v34, %v6708_v49  ;;  %3723 = vmatmul.mubr.bf16.gmra.mrb[188].mxu1 %v4881_v63  ;;  %3763 = vmatprep.mubr.bf16.mxu0 %v4644_v16  ;;  %v244_v41 = vld [vmem:[%s6352_s7 + $0x138] sm:$0xff] }
 0x1a1   : > { %3924 = vmatprep.mubr.bf16.mxu1 %v4646_v32  ;;  %v252_v34 = vld [vmem:[%s6352_s7 + $0x178] sm:$0xff] }
 0x1a2   : > { %v6994_v36 = vadd.f32 %v5560_v5, %v3157_v44  ;;  %v5449_v45 = vpop.f32.mrb[84].mxu0  ;;  %v4659_v5 = vcombine.low %v227_v11, %v235_v6 }
 0x1a3   : > { %v5561_v43 = vpop.f32.mrb[84].mxu1  ;;  %v5450_v47 = vpop.f32.mrb[85].mxu0 }
 0x1a4   : > { %v5451_v55 = vadd.f32 %v5450_v47, %v5449_v45  ;;  %v5562_v56 = vpop.f32.mrb[85].mxu1  ;;  %v5452_v21 = vpop.f32.mrb[86].mxu0  ;;  %v4661_v47 = vcombine.low %v228_v19, %v236_v48  ;;  %v259_v19 = vld [vmem:[%s6352_s7 + $0x1b0] sm:$0xff] }
 0x1a5   : > { %v5563_v49 = vadd.f32 %v5562_v56, %v5561_v43  ;;  %v5564_v13 = vpop.f32.mrb[86].mxu1  ;;  %v5453_v8 = vpop.f32.mrb[87].mxu0  ;;  %v267_v48 = vld [vmem:[%s6352_s7 + $0x1f0] sm:$0xff] }
 0x1a6   : > { %v3162_v63 = vadd.f32 %v5451_v55, %v6729_v10  ;;  %v5454_v16 = vadd.f32 %v5453_v8, %v5452_v21  ;;  %v5565_v25 = vpop.f32.mrb[87].mxu1  ;;  %v4678_v21 = vcombine.high %v244_v41, %v252_v34 }
 0x1a7   : > { %v5566_v39 = vadd.f32 %v5565_v25, %v5564_v13  ;;  %3764 = vmatmul.mubr.bf16.vlgmr.msra.gmra.mrb[192].mxu0 %v4643_v51  ;;  %v4676_v51 = vcombine.high %v243_v54, %v251_v2 }
 0x1a8   : > { %v6999_v22 = vadd.f32 %v5563_v49, %v3162_v63  ;;  %v3165_v29 = vadd.f32 %v5454_v16, %v6740_v15  ;;  %3925 = vmatmul.mubr.bf16.vlgmr.msra.gmra.mrb[192].mxu1 %v4645_v23  ;;  %3771 = vmatprep.mubr.bf16.mxu0 %v4660_v4  ;;  %v260_v63 = vld [vmem:[%s6352_s7 + $0x1b8] sm:$0xff] }
 0x1a9   : > { %3932 = vmatprep.mubr.bf16.mxu1 %v4662_v14  ;;  %v268_v16 = vld [vmem:[%s6352_s7 + $0x1f8] sm:$0xff] }
 0x1aa   : > { %v7004_v20 = vadd.f32 %v5566_v39, %v3165_v29  ;;  %v5455_v32 = vpop.f32.mrb[88].mxu0  ;;  %v4675_v39 = vcombine.low %v243_v54, %v251_v2 }
 0x1ab   : > { %v5567_v1 = vpop.f32.mrb[88].mxu1  ;;  %v5456_v10 = vpop.f32.mrb[89].mxu0 }
 0x1ac   : > { %v5457_v44 = vadd.f32 %v5456_v10, %v5455_v32  ;;  %v5568_v45 = vpop.f32.mrb[89].mxu1  ;;  %v5458_v43 = vpop.f32.mrb[90].mxu0  ;;  %v4677_v10 = vcombine.low %v244_v41, %v252_v34  ;;  %v275_v41 = vld [vmem:[%s6352_s7 + $0x230] sm:$0xff] }
 0x1ad   : > { %v5569_v15 = vadd.f32 %v5568_v45, %v5567_v1  ;;  %v5570_v55 = vpop.f32.mrb[90].mxu1  ;;  %v5459_v56 = vpop.f32.mrb[91].mxu0  ;;  %v283_v34 = vld [vmem:[%s6352_s7 + $0x270] sm:$0xff] }
 0x1ae   : > { %v3170_v23 = vadd.f32 %v5457_v44, %v6775_v46  ;;  %v5460_v4 = vadd.f32 %v5459_v56, %v5458_v43  ;;  %v5571_v49 = vpop.f32.mrb[91].mxu1  ;;  %v4694_v43 = vcombine.high %v260_v63, %v268_v16 }
 0x1af   : > { %v5572_v13 = vadd.f32 %v5571_v49, %v5570_v55  ;;  %3772 = vmatmul.mubr.bf16.gmra.mrb[196].mxu0 %v4659_v5  ;;  %v4692_v5 = vcombine.high %v259_v19, %v267_v48 }
 0x1b0   : > { %v7009_v11 = vadd.f32 %v5569_v15, %v3170_v23  ;;  %v3173_v6 = vadd.f32 %v5460_v4, %v6783_v52  ;;  %3933 = vmatmul.mubr.bf16.gmra.mrb[196].mxu1 %v4661_v47  ;;  %3779 = vmatprep.mubr.bf16.mxu0 %v4676_v51  ;;  %v276_v23 = vld [vmem:[%s6352_s7 + $0x238] sm:$0xff] }
 0x1b1   : > { %3940 = vmatprep.mubr.bf16.mxu1 %v4678_v21  ;;  %v284_v4 = vld [vmem:[%s6352_s7 + $0x278] sm:$0xff] }
 0x1b2   : > { %v7014_v8 = vadd.f32 %v5572_v13, %v3173_v6  ;;  %v5461_v14 = vpop.f32.mrb[92].mxu0  ;;  %v4691_v13 = vcombine.low %v259_v19, %v267_v48 }
 0x1b3   : > { %v5573_v25 = vpop.f32.mrb[92].mxu1  ;;  %v5462_v46 = vpop.f32.mrb[93].mxu0 }
 0x1b4   : > { %v5463_v29 = vadd.f32 %v5462_v46, %v5461_v14  ;;  %v5574_v32 = vpop.f32.mrb[93].mxu1  ;;  %v5464_v1 = vpop.f32.mrb[94].mxu0  ;;  %v4693_v46 = vcombine.low %v260_v63, %v268_v16  ;;  %v291_v63 = vld [vmem:[%s6352_s7 + $0x2b0] sm:$0xff] }
 0x1b5   : > { %v5575_v52 = vadd.f32 %v5574_v32, %v5573_v25  ;;  %v5576_v44 = vpop.f32.mrb[94].mxu1  ;;  %v5465_v45 = vpop.f32.mrb[95].mxu0  ;;  %v299_v16 = vld [vmem:[%s6352_s7 + $0x2f0] sm:$0xff] }
 0x1b6   : > { %v3178_v47 = vadd.f32 %v5463_v29, %v6823_v18  ;;  %v5466_v51 = vadd.f32 %v5465_v45, %v5464_v1  ;;  %v5577_v15 = vpop.f32.mrb[95].mxu1  ;;  %v4710_v1 = vcombine.high %v276_v23, %v284_v4 }
 0x1b7   : > { %v5578_v55 = vadd.f32 %v5577_v15, %v5576_v44  ;;  %3780 = vmatmul.mubr.bf16.gmra.mrb[200].mxu0 %v4675_v39  ;;  %v4708_v39 = vcombine.high %v275_v41, %v283_v34 }
 0x1b8   : > { %v7019_v54 = vadd.f32 %v5575_v52, %v3178_v47  ;;  %v3181_v2 = vadd.f32 %v5466_v51, %v6831_v26  ;;  %3941 = vmatmul.mubr.bf16.gmra.mrb[200].mxu1 %v4677_v10  ;;  %3787 = vmatprep.mubr.bf16.mxu0 %v4692_v5  ;;  %v292_v47 = vld [vmem:[%s6352_s7 + $0x2b8] sm:$0xff] }
 0x1b9   : > { %3948 = vmatprep.mubr.bf16.mxu1 %v4694_v43  ;;  %v300_v51 = vld [vmem:[%s6352_s7 + $0x2f8] sm:$0xff] }
 0x1ba   : > { %v7024_v56 = vadd.f32 %v5578_v55, %v3181_v2  ;;  %v5467_v21 = vpop.f32.mrb[96].mxu0  ;;  %v4707_v55 = vcombine.low %v275_v41, %v283_v34 }
 0x1bb   : > { %v5579_v49 = vpop.f32.mrb[96].mxu1  ;;  %v5468_v18 = vpop.f32.mrb[97].mxu0 }
 0x1bc   : > { %v5469_v6 = vadd.f32 %v5468_v18, %v5467_v21  ;;  %v5580_v14 = vpop.f32.mrb[97].mxu1  ;;  %v5470_v25 = vpop.f32.mrb[98].mxu0  ;;  %v4709_v18 = vcombine.low %v276_v23, %v284_v4  ;;  %v307_v23 = vld [vmem:[%s6352_s7 + $0x330] sm:$0xff] }
 0x1bd   : > { %v5581_v26 = vadd.f32 %v5580_v14, %v5579_v49  ;;  %v5582_v29 = vpop.f32.mrb[98].mxu1  ;;  %v5471_v32 = vpop.f32.mrb[99].mxu0  ;;  %v315_v4 = vld [vmem:[%s6352_s7 + $0x370] sm:$0xff] }
 0x1be   : > { %v3186_v10 = vadd.f32 %v5469_v6, %v6871_v58  ;;  %v5472_v5 = vadd.f32 %v5471_v32, %v5470_v25  ;;  %v5583_v52 = vpop.f32.mrb[99].mxu1  ;;  %v4726_v25 = vcombine.high %v292_v47, %v300_v51 }
 0x1bf   : > { %v5584_v44 = vadd.f32 %v5583_v52, %v5582_v29  ;;  %3788 = vmatmul.mubr.bf16.gmra.mrb[204].mxu0 %v4691_v13  ;;  %v4724_v13 = vcombine.high %v291_v63, %v299_v16 }
 0x1c0   : > { %v7029_v19 = vadd.f32 %v5581_v26, %v3186_v10  ;;  %v3189_v48 = vadd.f32 %v5472_v5, %v6876_v61  ;;  %3949 = vmatmul.mubr.bf16.gmra.mrb[204].mxu1 %v4693_v46  ;;  %3795 = vmatprep.mubr.bf16.mxu0 %v4708_v39  ;;  %v308_v10 = vld [vmem:[%s6352_s7 + $0x338] sm:$0xff] }
 0x1c1   : > { %3956 = vmatprep.mubr.bf16.mxu1 %v4710_v1  ;;  %v316_v5 = vld [vmem:[%s6352_s7 + $0x378] sm:$0xff] }
 0x1c2   : > { %v7034_v45 = vadd.f32 %v5584_v44, %v3189_v48  ;;  %v5473_v43 = vpop.f32.mrb[100].mxu0  ;;  %v4723_v44 = vcombine.low %v291_v63, %v299_v16 }
 0x1c3   : > { %v5585_v15 = vpop.f32.mrb[100].mxu1  ;;  %v5474_v58 = vpop.f32.mrb[101].mxu0 }
 0x1c4   : > { %v5475_v2 = vadd.f32 %v5474_v58, %v5473_v43  ;;  %v5586_v21 = vpop.f32.mrb[101].mxu1  ;;  %v5476_v49 = vpop.f32.mrb[102].mxu0  ;;  %v4725_v58 = vcombine.low %v292_v47, %v300_v51  ;;  %v323_v47 = vld [vmem:[%s6352_s7 + $0x3b0] sm:$0xff] }
 0x1c5   : > { %v5587_v61 = vadd.f32 %v5586_v21, %v5585_v15  ;;  %v5588_v6 = vpop.f32.mrb[102].mxu1  ;;  %v5477_v14 = vpop.f32.mrb[103].mxu0  ;;  %v331_v51 = vld [vmem:[%s6352_s7 + $0x3f0] sm:$0xff] }
 0x1c6   : > { %v3194_v46 = vadd.f32 %v5475_v2, %v6892_v24  ;;  %v5478_v39 = vadd.f32 %v5477_v14, %v5476_v49  ;;  %v5589_v26 = vpop.f32.mrb[103].mxu1  ;;  %v4742_v49 = vcombine.high %v308_v10, %v316_v5 }
 0x1c7   : > { %v5590_v29 = vadd.f32 %v5589_v26, %v5588_v6  ;;  %3796 = vmatmul.mubr.bf16.gmra.mrb[208].mxu0 %v4707_v55  ;;  %v4740_v55 = vcombine.high %v307_v23, %v315_v4 }
 0x1c8   : > { %v7039_v41 = vadd.f32 %v5587_v61, %v3194_v46  ;;  %v3197_v34 = vadd.f32 %v5478_v39, %v6894_v28  ;;  %3957 = vmatmul.mubr.bf16.gmra.mrb[208].mxu1 %v4709_v18  ;;  %3803 = vmatprep.mubr.bf16.mxu0 %v4724_v13  ;;  %v324_v46 = vld [vmem:[%s6352_s7 + $0x3b8] sm:$0xff] }
 0x1c9   : > { %3964 = vmatprep.mubr.bf16.mxu1 %v4726_v25  ;;  %v332_v39 = vld [vmem:[%s6352_s7 + $0x3f8] sm:$0xff] }
 0x1ca   : > { %v7044_v32 = vadd.f32 %v5590_v29, %v3197_v34  ;;  %v5479_v1 = vpop.f32.mrb[104].mxu0  ;;  %v4739_v29 = vcombine.low %v307_v23, %v315_v4 }
 0x1cb   : > { %v5591_v52 = vpop.f32.mrb[104].mxu1  ;;  %v5480_v24 = vpop.f32.mrb[105].mxu0 }
 0x1cc   : > { %v5481_v48 = vadd.f32 %v5480_v24, %v5479_v1  ;;  %v5592_v43 = vpop.f32.mrb[105].mxu1  ;;  %v5482_v15 = vpop.f32.mrb[106].mxu0  ;;  %v4741_v24 = vcombine.low %v308_v10, %v316_v5  ;;  %v339_v10 = vld [vmem:[%s6352_s7 + $0x430] sm:$0xff] }
 0x1cd   : > { %v5593_v28 = vadd.f32 %v5592_v43, %v5591_v52  ;;  %v5594_v2 = vpop.f32.mrb[106].mxu1  ;;  %v5483_v21 = vpop.f32.mrb[107].mxu0  ;;  %v347_v5 = vld [vmem:[%s6352_s7 + $0x470] sm:$0xff] }
 0x1ce   : > { %v3202_v18 = vadd.f32 %v5481_v48, %v6900_v57  ;;  %v5484_v13 = vadd.f32 %v5483_v21, %v5482_v15  ;;  %v5595_v61 = vpop.f32.mrb[107].mxu1  ;;  %v4758_v15 = vcombine.high %v324_v46, %v332_v39 }
 0x1cf   : > { %v5596_v6 = vadd.f32 %v5595_v61, %v5594_v2  ;;  %3804 = vmatmul.mubr.bf16.gmra.mrb[212].mxu0 %v4723_v44  ;;  %v4756_v44 = vcombine.high %v323_v47, %v331_v51 }
 0x1d0   : > { %v7049_v63 = vadd.f32 %v5593_v28, %v3202_v18  ;;  %v3205_v16 = vadd.f32 %v5484_v13, %v6902_v60  ;;  %3965 = vmatmul.mubr.bf16.gmra.mrb[212].mxu1 %v4725_v58  ;;  %3811 = vmatprep.mubr.bf16.mxu0 %v4740_v55  ;;  %v340_v18 = vld [vmem:[%s6352_s7 + $0x438] sm:$0xff] }
 0x1d1   : > { %3972 = vmatprep.mubr.bf16.mxu1 %v4742_v49  ;;  %v348_v13 = vld [vmem:[%s6352_s7 + $0x478] sm:$0xff] }
 0x1d2   : > { %v7054_v14 = vadd.f32 %v5596_v6, %v3205_v16  ;;  %v5485_v25 = vpop.f32.mrb[108].mxu0  ;;  %v4755_v6 = vcombine.low %v323_v47, %v331_v51 }
 0x1d3   : > { %v5597_v26 = vpop.f32.mrb[108].mxu1  ;;  %v5486_v57 = vpop.f32.mrb[109].mxu0 }
 0x1d4   : > { %v5487_v34 = vadd.f32 %v5486_v57, %v5485_v25  ;;  %v5598_v1 = vpop.f32.mrb[109].mxu1  ;;  %v5488_v52 = vpop.f32.mrb[110].mxu0  ;;  %v4757_v57 = vcombine.low %v324_v46, %v332_v39  ;;  %v355_v46 = vld [vmem:[%s6352_s7 + $0x4b0] sm:$0xff] }
 0x1d5   : > { %v5599_v60 = vadd.f32 %v5598_v1, %v5597_v26  ;;  %v5600_v48 = vpop.f32.mrb[110].mxu1  ;;  %v5489_v43 = vpop.f32.mrb[111].mxu0  ;;  %v363_v39 = vld [vmem:[%s6352_s7 + $0x4f0] sm:$0xff] }
 0x1d6   : > { %v3210_v58 = vadd.f32 %v5487_v34, %v6908_v30  ;;  %v5490_v55 = vadd.f32 %v5489_v43, %v5488_v52  ;;  %v5601_v28 = vpop.f32.mrb[111].mxu1  ;;  %v4774_v52 = vcombine.high %v340_v18, %v348_v13 }
 0x1d7   : > { %v5602_v2 = vadd.f32 %v5601_v28, %v5600_v48  ;;  %3812 = vmatmul.mubr.bf16.gmra.mrb[216].mxu0 %v4739_v29  ;;  %v4772_v29 = vcombine.high %v339_v10, %v347_v5 }
 0x1d8   : > { %v7059_v23 = vadd.f32 %v5599_v60, %v3210_v58  ;;  %v3213_v4 = vadd.f32 %v5490_v55, %v6910_v27  ;;  %3973 = vmatmul.mubr.bf16.gmra.mrb[216].mxu1 %v4741_v24  ;;  %3819 = vmatprep.mubr.bf16.mxu0 %v4756_v44  ;;  %v356_v58 = vld [vmem:[%s6352_s7 + $0x4b8] sm:$0xff] }
 0x1d9   : > { %3980 = vmatprep.mubr.bf16.mxu1 %v4758_v15  ;;  %v364_v55 = vld [vmem:[%s6352_s7 + $0x4f8] sm:$0xff] }
 0x1da   : > { %v7064_v21 = vadd.f32 %v5602_v2, %v3213_v4  ;;  %v5491_v49 = vpop.f32.mrb[112].mxu0  ;;  %v4771_v2 = vcombine.low %v339_v10, %v347_v5 }
 0x1db   : > { %v5603_v61 = vpop.f32.mrb[112].mxu1  ;;  %v5492_v30 = vpop.f32.mrb[113].mxu0 }
 0x1dc   : > { %v5493_v16 = vadd.f32 %v5492_v30, %v5491_v49  ;;  %v5604_v25 = vpop.f32.mrb[113].mxu1  ;;  %v5494_v26 = vpop.f32.mrb[114].mxu0  ;;  %v4773_v30 = vcombine.low %v340_v18, %v348_v13  ;;  %v371_v18 = vld [vmem:[%s6352_s7 + $0x530] sm:$0xff] }
 0x1dd   : > { %v5605_v27 = vadd.f32 %v5604_v25, %v5603_v61  ;;  %v5606_v34 = vpop.f32.mrb[114].mxu1  ;;  %v5495_v1 = vpop.f32.mrb[115].mxu0  ;;  %v379_v13 = vld [vmem:[%s6352_s7 + $0x570] sm:$0xff] }
 0x1de   : > { %v3218_v24 = vadd.f32 %v5493_v16, %v6916_v59  ;;  %v5496_v44 = vadd.f32 %v5495_v1, %v5494_v26  ;;  %v5607_v60 = vpop.f32.mrb[115].mxu1  ;;  %v4790_v26 = vcombine.high %v356_v58, %v364_v55 }
 0x1df   : > { %v5608_v48 = vadd.f32 %v5607_v60, %v5606_v34  ;;  %3820 = vmatmul.mubr.bf16.gmra.mrb[220].mxu0 %v4755_v6  ;;  %v4788_v6 = vcombine.high %v355_v46, %v363_v39 }
 0x1e0   : > { %v7069_v47 = vadd.f32 %v5605_v27, %v3218_v24  ;;  %v3221_v51 = vadd.f32 %v5496_v44, %v6918_v62  ;;  %3981 = vmatmul.mubr.bf16.gmra.mrb[220].mxu1 %v4757_v57  ;;  %3827 = vmatprep.mubr.bf16.mxu0 %v4772_v29  ;;  %v372_v24 = vld [vmem:[%s6352_s7 + $0x538] sm:$0xff] }
 0x1e1   : > { %3988 = vmatprep.mubr.bf16.mxu1 %v4774_v52  ;;  %v380_v44 = vld [vmem:[%s6352_s7 + $0x578] sm:$0xff] }
 0x1e2   : > { %v7074_v43 = vadd.f32 %v5608_v48, %v3221_v51  ;;  %v5497_v15 = vpop.f32.mrb[116].mxu0  ;;  %v4787_v48 = vcombine.low %v355_v46, %v363_v39 }
 0x1e3   : > { %v5609_v28 = vpop.f32.mrb[116].mxu1  ;;  %v5498_v59 = vpop.f32.mrb[117].mxu0 }
 0x1e4   : > { %v5499_v4 = vadd.f32 %v5498_v59, %v5497_v15  ;;  %v5610_v49 = vpop.f32.mrb[117].mxu1  ;;  %v5500_v61 = vpop.f32.mrb[118].mxu0  ;;  %v4789_v59 = vcombine.low %v356_v58, %v364_v55  ;;  %v387_v58 = vld [vmem:[%s6352_s7 + $0x5b0] sm:$0xff] }
 0x1e5   : > { %v5611_v62 = vadd.f32 %v5610_v49, %v5609_v28  ;;  %v5612_v16 = vpop.f32.mrb[118].mxu1  ;;  %v5501_v25 = vpop.f32.mrb[119].mxu0  ;;  %v395_v55 = vld [vmem:[%s6352_s7 + $0x5f0] sm:$0xff] }
 0x1e6   : > { %v3226_v57 = vadd.f32 %v5499_v4, %v6924_v37  ;;  %v5502_v29 = vadd.f32 %v5501_v25, %v5500_v61  ;;  %v5613_v27 = vpop.f32.mrb[119].mxu1  ;;  %v4806_v61 = vcombine.high %v372_v24, %v380_v44 }
 0x1e7   : > { %v5614_v34 = vadd.f32 %v5613_v27, %v5612_v16  ;;  %3828 = vmatmul.mubr.bf16.gmra.mrb[224].mxu0 %v4771_v2  ;;  %v4804_v2 = vcombine.high %v371_v18, %v379_v13 }
 0x1e8   : > { %v7079_v10 = vadd.f32 %v5611_v62, %v3226_v57  ;;  %v3229_v5 = vadd.f32 %v5502_v29, %v6926_v31  ;;  %3989 = vmatmul.mubr.bf16.gmra.mrb[224].mxu1 %v4773_v30  ;;  %3835 = vmatprep.mubr.bf16.mxu0 %v4788_v6  ;;  %v388_v57 = vld [vmem:[%s6352_s7 + $0x5b8] sm:$0xff] }
 0x1e9   : > { %3996 = vmatprep.mubr.bf16.mxu1 %v4790_v26  ;;  %v396_v29 = vld [vmem:[%s6352_s7 + $0x5f8] sm:$0xff] }
 0x1ea   : > { %v7084_v1 = vadd.f32 %v5614_v34, %v3229_v5  ;;  %v5503_v52 = vpop.f32.mrb[120].mxu0  ;;  %v4803_v34 = vcombine.low %v371_v18, %v379_v13 }
 0x1eb   : > { %v5615_v60 = vpop.f32.mrb[120].mxu1  ;;  %v5504_v37 = vpop.f32.mrb[121].mxu0 }
 0x1ec   : > { %v5505_v51 = vadd.f32 %v5504_v37, %v5503_v52  ;;  %v5616_v15 = vpop.f32.mrb[121].mxu1  ;;  %v5506_v28 = vpop.f32.mrb[122].mxu0  ;;  %v4805_v37 = vcombine.low %v372_v24, %v380_v44  ;;  %v403_v24 = vld [vmem:[%s6352_s7 + $0x630] sm:$0xff] }
 0x1ed   : > { %v5617_v31 = vadd.f32 %v5616_v15, %v5615_v60  ;;  %v5618_v4 = vpop.f32.mrb[122].mxu1  ;;  %v5507_v49 = vpop.f32.mrb[123].mxu0  ;;  %v411_v44 = vld [vmem:[%s6352_s7 + $0x670] sm:$0xff] }
 0x1ee   : > { %v3234_v30 = vadd.f32 %v5505_v51, %v6932_v9  ;;  %v5508_v6 = vadd.f32 %v5507_v49, %v5506_v28  ;;  %v5619_v62 = vpop.f32.mrb[123].mxu1  ;;  %v4822_v28 = vcombine.high %v388_v57, %v396_v29 }
 0x1ef   : > { %v5620_v16 = vadd.f32 %v5619_v62, %v5618_v4  ;;  %3836 = vmatmul.mubr.bf16.gmra.mrb[228].mxu0 %v4787_v48  ;;  %v4820_v48 = vcombine.high %v387_v58, %v395_v55 }
 0x1f0   : > { %v7089_v46 = vadd.f32 %v5617_v31, %v3234_v30  ;;  %v3237_v39 = vadd.f32 %v5508_v6, %v6934_v0  ;;  %3997 = vmatmul.mubr.bf16.gmra.mrb[228].mxu1 %v4789_v59  ;;  %3843 = vmatprep.mubr.bf16.mxu0 %v4804_v2  ;;  %v404_v30 = vld [vmem:[%s6352_s7 + $0x638] sm:$0xff] }
 0x1f1   : > { %4004 = vmatprep.mubr.bf16.mxu1 %v4806_v61  ;;  %v412_v6 = vld [vmem:[%s6352_s7 + $0x678] sm:$0xff] }
 0x1f2   : > { %v7094_v25 = vadd.f32 %v5620_v16, %v3237_v39  ;;  %v5509_v26 = vpop.f32.mrb[124].mxu0  ;;  %v4819_v16 = vcombine.low %v387_v58, %v395_v55 }
 0x1f3   : > { %v5621_v27 = vpop.f32.mrb[124].mxu1  ;;  %v5510_v9 = vpop.f32.mrb[125].mxu0 }
 0x1f4   : > { %v5511_v5 = vadd.f32 %v5510_v9, %v5509_v26  ;;  %v5622_v52 = vpop.f32.mrb[125].mxu1  ;;  %v5512_v60 = vpop.f32.mrb[126].mxu0  ;;  %v4821_v9 = vcombine.low %v388_v57, %v396_v29  ;;  %v419_v57 = vld [vmem:[%s6352_s7 + $0x6b0] sm:$0xff] }
 0x1f5   : > { %v5623_v0 = vadd.f32 %v5622_v52, %v5621_v27  ;;  %v5624_v51 = vpop.f32.mrb[126].mxu1  ;;  %v5513_v15 = vpop.f32.mrb[127].mxu0  ;;  %v427_v29 = vld [vmem:[%s6352_s7 + $0x6f0] sm:$0xff] }
 0x1f6   : > { %v3242_v59 = vadd.f32 %v5511_v5, %v6940_v50  ;;  %v5514_v2 = vadd.f32 %v5513_v15, %v5512_v60  ;;  %v5625_v31 = vpop.f32.mrb[127].mxu1  ;;  %v4838_v60 = vcombine.high %v404_v30, %v412_v6 }
 0x1f7   : > { %v5626_v4 = vadd.f32 %v5625_v31, %v5624_v51  ;;  %3844 = vmatmul.mubr.bf16.gmra.mrb[232].mxu0 %v4803_v34  ;;  %v4836_v34 = vcombine.high %v403_v24, %v411_v44 }
 0x1f8   : > { %v7099_v18 = vadd.f32 %v5623_v0, %v3242_v59  ;;  %v3245_v13 = vadd.f32 %v5514_v2, %v6942_v33  ;;  %4005 = vmatmul.mubr.bf16.gmra.mrb[232].mxu1 %v4805_v37  ;;  %3851 = vmatprep.mubr.bf16.mxu0 %v4820_v48  ;;  %v420_v59 = vld [vmem:[%s6352_s7 + $0x6b8] sm:$0xff] }
 0x1f9   : > { %4012 = vmatprep.mubr.bf16.mxu1 %v4822_v28  ;;  %v428_v2 = vld [vmem:[%s6352_s7 + $0x6f8] sm:$0xff] }
 0x1fa   : > { %v7104_v49 = vadd.f32 %v5626_v4, %v3245_v13  ;;  %v5643_v61 = vpop.f32.mrb[128].mxu0  ;;  %v4835_v4 = vcombine.low %v403_v24, %v411_v44 }
 0x1fb   : > { %v5755_v62 = vpop.f32.mrb[128].mxu1  ;;  %v5644_v50 = vpop.f32.mrb[129].mxu0 }
 0x1fc   : > { %v5645_v39 = vadd.f32 %v5644_v50, %v5643_v61  ;;  %v5756_v26 = vpop.f32.mrb[129].mxu1  ;;  %v5646_v27 = vpop.f32.mrb[130].mxu0  ;;  %v4837_v50 = vcombine.low %v404_v30, %v412_v6  ;;  %v435_v30 = vld [vmem:[%s6352_s7 + $0x730] sm:$0xff] }
 0x1fd   : > { %v5757_v33 = vadd.f32 %v5756_v26, %v5755_v62  ;;  %v5758_v5 = vpop.f32.mrb[130].mxu1  ;;  %v5647_v52 = vpop.f32.mrb[131].mxu0  ;;  %v443_v6 = vld [vmem:[%s6352_s7 + $0x770] sm:$0xff] }
 0x1fe   : > { %v3444_v37 = vadd.f32 %v5645_v39, %v6949_v3  ;;  %v5648_v48 = vadd.f32 %v5647_v52, %v5646_v27  ;;  %v5759_v0 = vpop.f32.mrb[131].mxu1  ;;  %v4854_v27 = vcombine.high %v420_v59, %v428_v2 }
 0x1ff   : > { %v5760_v51 = vadd.f32 %v5759_v0, %v5758_v5  ;;  %3852 = vmatmul.mubr.bf16.gmra.mrb[236].mxu0 %v4819_v16  ;;  %v4852_v16 = vcombine.high %v419_v57, %v427_v29 }
 0x200   : > { %v7109_v58 = vadd.f32 %v5757_v33, %v3444_v37  ;;  %v3447_v55 = vadd.f32 %v5648_v48, %v6954_v38  ;;  %4013 = vmatmul.mubr.bf16.gmra.mrb[236].mxu1 %v4821_v9  ;;  %3859 = vmatprep.mubr.bf16.mxu0 %v4836_v34  ;;  %v436_v37 = vld [vmem:[%s6352_s7 + $0x738] sm:$0xff] }
 0x201   : > { %4020 = vmatprep.mubr.bf16.mxu1 %v4838_v60  ;;  %v444_v48 = vld [vmem:[%s6352_s7 + $0x778] sm:$0xff] }
 0x202   : > { %v7114_v15 = vadd.f32 %v5760_v51, %v3447_v55  ;;  %v5649_v28 = vpop.f32.mrb[132].mxu0  ;;  %v4851_v51 = vcombine.low %v419_v57, %v427_v29 }
 0x203   : > { %v5761_v31 = vpop.f32.mrb[132].mxu1  ;;  %v5650_v3 = vpop.f32.mrb[133].mxu0 }
 0x204   : > { %v5651_v13 = vadd.f32 %v5650_v3, %v5649_v28  ;;  %v5762_v61 = vpop.f32.mrb[133].mxu1  ;;  %v5652_v62 = vpop.f32.mrb[134].mxu0  ;;  %v4853_v3 = vcombine.low %v420_v59, %v428_v2  ;;  %v451_v59 = vld [vmem:[%s6352_s7 + $0x7b0] sm:$0xff] }
 0x205   : > { %v5763_v38 = vadd.f32 %v5762_v61, %v5761_v31  ;;  %v5764_v39 = vpop.f32.mrb[134].mxu1  ;;  %v5653_v26 = vpop.f32.mrb[135].mxu0  ;;  %v459_v2 = vld [vmem:[%s6352_s7 + $0x7f0] sm:$0xff] }
 0x206   : > { %v3452_v9 = vadd.f32 %v5651_v13, %v6959_v35  ;;  %v5654_v34 = vadd.f32 %v5653_v26, %v5652_v62  ;;  %v5765_v33 = vpop.f32.mrb[135].mxu1  ;;  %v4870_v62 = vcombine.high %v436_v37, %v444_v48 }
 0x207   : > { %v5766_v5 = vadd.f32 %v5765_v33, %v5764_v39  ;;  %3860 = vmatmul.mubr.bf16.gmra.mrb[240].mxu0 %v4835_v4  ;;  %v4868_v4 = vcombine.high %v435_v30, %v443_v6 }
 0x208   : > { %v7119_v24 = vadd.f32 %v5763_v38, %v3452_v9  ;;  %v3455_v44 = vadd.f32 %v5654_v34, %v6964_v17  ;;  %4021 = vmatmul.mubr.bf16.gmra.mrb[240].mxu1 %v4837_v50  ;;  %3867 = vmatprep.mubr.bf16.mxu0 %v4852_v16  ;;  %v452_v9 = vld [vmem:[%s6352_s7 + $0x7b8] sm:$0xff] }
 0x209   : > { %4028 = vmatprep.mubr.bf16.mxu1 %v4854_v27  ;;  %v460_v34 = vld [vmem:[%s6352_s7 + $0x7f8] sm:$0xff] }
 0x20a   : > { %v7124_v52 = vadd.f32 %v5766_v5, %v3455_v44  ;;  %v5655_v60 = vpop.f32.mrb[136].mxu0  ;;  %v4867_v5 = vcombine.low %v435_v30, %v443_v6 }
 0x20b   : > { %v5767_v0 = vpop.f32.mrb[136].mxu1  ;;  %v5656_v35 = vpop.f32.mrb[137].mxu0 }
 0x20c   : > { %v5657_v55 = vadd.f32 %v5656_v35, %v5655_v60  ;;  %v5768_v28 = vpop.f32.mrb[137].mxu1  ;;  %v5658_v31 = vpop.f32.mrb[138].mxu0  ;;  %v4869_v35 = vcombine.low %v436_v37, %v444_v48 }
 0x20d   : > { %v5769_v17 = vadd.f32 %v5768_v28, %v5767_v0  ;;  %v5770_v13 = vpop.f32.mrb[138].mxu1  ;;  %v5659_v61 = vpop.f32.mrb[139].mxu0 }
 0x20e   : > { %v3460_v50 = vadd.f32 %v5657_v55, %v6969_v12  ;;  %v5660_v16 = vadd.f32 %v5659_v61, %v5658_v31  ;;  %v5771_v38 = vpop.f32.mrb[139].mxu1  ;;  %v4886_v31 = vcombine.high %v452_v9, %v460_v34 }
 0x20f   : > { %v5772_v39 = vadd.f32 %v5771_v38, %v5770_v13  ;;  %3868 = vmatmul.mubr.bf16.gmra.mrb[244].mxu0 %v4851_v51  ;;  %v4884_v51 = vcombine.high %v451_v59, %v459_v2 }
 0x210   : > { %v7129_v57 = vadd.f32 %v5769_v17, %v3460_v50  ;;  %v3463_v29 = vadd.f32 %v5660_v16, %v6974_v7  ;;  %4029 = vmatmul.mubr.bf16.gmra.mrb[244].mxu1 %v4853_v3  ;;  %3875 = vmatprep.mubr.bf16.mxu0 %v4868_v4  ;;  %v4883_v50 = vcombine.low %v451_v59, %v459_v2 }
 0x211   : > { %4036 = vmatprep.mubr.bf16.mxu1 %v4870_v62 }
 0x212   : > { %v7134_v26 = vadd.f32 %v5772_v39, %v3463_v29  ;;  %v5661_v27 = vpop.f32.mrb[140].mxu0  ;;  %v4885_v39 = vcombine.low %v452_v9, %v460_v34 }
 0x213   : > { %v5773_v33 = vpop.f32.mrb[140].mxu1  ;;  %v5662_v12 = vpop.f32.mrb[141].mxu0 }
 0x214   : > { %v5663_v44 = vadd.f32 %v5662_v12, %v5661_v27  ;;  %v5774_v60 = vpop.f32.mrb[141].mxu1  ;;  %v5664_v0 = vpop.f32.mrb[142].mxu0 }
 0x215   : > { %v5775_v55 = vadd.f32 %v5774_v60, %v5773_v33  ;;  %v5776_v7 = vpop.f32.mrb[142].mxu1  ;;  %v5665_v28 = vpop.f32.mrb[143].mxu0 }
 0x216   : > { %v3468_v3 = vadd.f32 %v5663_v44, %v6979_v53  ;;  %v5666_v4 = vadd.f32 %v5665_v28, %v5664_v0  ;;  %v5777_v17 = vpop.f32.mrb[143].mxu1 }
 0x217   : > { %v5778_v13 = vadd.f32 %v5777_v17, %v5776_v7  ;;  %3876 = vmatmul.mubr.bf16.gmra.mrb[248].mxu0 %v4867_v5 }
 0x218   : > { %v7139_v61 = vadd.f32 %v5775_v55, %v3468_v3  ;;  %v3471_v62 = vadd.f32 %v5666_v4, %v6984_v40  ;;  %4037 = vmatmul.mubr.bf16.gmra.mrb[248].mxu1 %v4869_v35  ;;  %3883 = vmatprep.mubr.bf16.mxu0 %v4884_v51 }
 0x219   : > { %4044 = vmatprep.mubr.bf16.mxu1 %v4886_v31 }
 0x21a   : > { %v7142_v30 = vadd.f32 %v5778_v13, %v3471_v62  ;;  %v5667_v6 = vpop.f32.mrb[144].mxu0 }
 0x21b   : > { %v5779_v37 = vpop.f32.mrb[144].mxu1  ;;  %v5668_v48 = vpop.f32.mrb[145].mxu0 }
 0x21c   : > { %v5669_v16 = vadd.f32 %v5668_v48, %v5667_v6  ;;  %v5780_v38 = vpop.f32.mrb[145].mxu1  ;;  %v5670_v53 = vpop.f32.mrb[146].mxu0 }
 0x21d   : > { %v5781_v29 = vadd.f32 %v5780_v38, %v5779_v37  ;;  %v5782_v27 = vpop.f32.mrb[146].mxu1  ;;  %v5671_v33 = vpop.f32.mrb[147].mxu0 }
 0x21e   : > { %v3476_v12 = vadd.f32 %v5669_v16, %v6989_v42  ;;  %v5672_v5 = vadd.f32 %v5671_v33, %v5670_v53  ;;  %v5783_v40 = vpop.f32.mrb[147].mxu1 }
 0x21f   : > { %v5784_v44 = vadd.f32 %v5783_v40, %v5782_v27  ;;  %3884 = vmatmul.mubr.bf16.gmra.mrb[252].mxu0 %v4883_v50 }
 0x220   : > { %v7145_v60 = vadd.f32 %v5781_v29, %v3476_v12  ;;  %v3479_v0 = vadd.f32 %v5672_v5, %v6994_v36  ;;  %4045 = vmatmul.mubr.bf16.gmra.mrb[252].mxu1 %v4885_v39 }
 0x222   : > { %v7148_v35 = vadd.f32 %v5784_v44, %v3479_v0  ;;  %v5673_v59 = vpop.f32.mrb[148].mxu0 }
 0x223   : > { %v5785_v2 = vpop.f32.mrb[148].mxu1  ;;  %v5674_v51 = vpop.f32.mrb[149].mxu0 }
 0x224   : > { %v5675_v9 = vadd.f32 %v5674_v51, %v5673_v59  ;;  %v5786_v34 = vpop.f32.mrb[149].mxu1  ;;  %v5676_v55 = vpop.f32.mrb[150].mxu0 }
 0x225   : > { %v5787_v7 = vadd.f32 %v5786_v34, %v5785_v2  ;;  %v5788_v28 = vpop.f32.mrb[150].mxu1  ;;  %v5677_v42 = vpop.f32.mrb[151].mxu0 }
 0x226   : > { %v3484_v31 = vadd.f32 %v5675_v9, %v6999_v22  ;;  %v5678_v3 = vadd.f32 %v5677_v42, %v5676_v55  ;;  %v5789_v4 = vpop.f32.mrb[151].mxu1 }
 0x227   : > { %v5790_v17 = vadd.f32 %v5789_v4, %v5788_v28 }
 0x228   : > { %v7151_v13 = vadd.f32 %v5787_v7, %v3484_v31  ;;  %v3487_v36 = vadd.f32 %v5678_v3, %v7004_v20 }
 0x22a   : > { %v7154_v62 = vadd.f32 %v5790_v17, %v3487_v36  ;;  %v5679_v6 = vpop.f32.mrb[152].mxu0 }
 0x22b   : > { %v5791_v37 = vpop.f32.mrb[152].mxu1  ;;  %v5680_v48 = vpop.f32.mrb[153].mxu0 }
 0x22c   : > { %v5681_v50 = vadd.f32 %v5680_v48, %v5679_v6  ;;  %v5792_v16 = vpop.f32.mrb[153].mxu1  ;;  %v5682_v38 = vpop.f32.mrb[154].mxu0 }
 0x22d   : > { %v5793_v53 = vadd.f32 %v5792_v16, %v5791_v37  ;;  %v5794_v39 = vpop.f32.mrb[154].mxu1  ;;  %v5683_v29 = vpop.f32.mrb[155].mxu0 }
 0x22e   : > { %v3492_v22 = vadd.f32 %v5681_v50, %v7009_v11  ;;  %v5684_v27 = vadd.f32 %v5683_v29, %v5682_v38  ;;  %v5795_v33 = vpop.f32.mrb[155].mxu1 }
 0x22f   : > { %v5796_v12 = vadd.f32 %v5795_v33, %v5794_v39 }
 0x230   : > { %v7157_v5 = vadd.f32 %v5793_v53, %v3492_v22  ;;  %v3495_v20 = vadd.f32 %v5684_v27, %v7014_v8 }
 0x232   : > { %v7160_v40 = vadd.f32 %v5796_v12, %v3495_v20  ;;  %v5685_v44 = vpop.f32.mrb[156].mxu0 }
 0x233   : > { %v5797_v0 = vpop.f32.mrb[156].mxu1  ;;  %v5686_v59 = vpop.f32.mrb[157].mxu0 }
 0x234   : > { %v5687_v2 = vadd.f32 %v5686_v59, %v5685_v44  ;;  %v5798_v51 = vpop.f32.mrb[157].mxu1  ;;  %v5688_v9 = vpop.f32.mrb[158].mxu0 }
 0x235   : > { %v5799_v34 = vadd.f32 %v5798_v51, %v5797_v0  ;;  %v5800_v55 = vpop.f32.mrb[158].mxu1  ;;  %v5689_v7 = vpop.f32.mrb[159].mxu0 }
 0x236   : > { %v3500_v11 = vadd.f32 %v5687_v2, %v7019_v54  ;;  %v5690_v28 = vadd.f32 %v5689_v7, %v5688_v9  ;;  %v5801_v42 = vpop.f32.mrb[159].mxu1 }
 0x237   : > { %v5802_v31 = vadd.f32 %v5801_v42, %v5800_v55 }
 0x238   : > { %v7163_v3 = vadd.f32 %v5799_v34, %v3500_v11  ;;  %v3503_v8 = vadd.f32 %v5690_v28, %v7024_v56 }
 0x23a   : > { %v7166_v4 = vadd.f32 %v5802_v31, %v3503_v8  ;;  %v5691_v17 = vpop.f32.mrb[160].mxu0 }
 0x23b   : > { %v5803_v36 = vpop.f32.mrb[160].mxu1  ;;  %v5692_v6 = vpop.f32.mrb[161].mxu0 }
 0x23c   : > { %v5693_v37 = vadd.f32 %v5692_v6, %v5691_v17  ;;  %v5804_v48 = vpop.f32.mrb[161].mxu1  ;;  %v5694_v50 = vpop.f32.mrb[162].mxu0 }
 0x23d   : > { %v5805_v16 = vadd.f32 %v5804_v48, %v5803_v36  ;;  %v5806_v38 = vpop.f32.mrb[162].mxu1  ;;  %v5695_v53 = vpop.f32.mrb[163].mxu0 }
 0x23e   : > { %v3508_v54 = vadd.f32 %v5693_v37, %v7029_v19  ;;  %v5696_v39 = vadd.f32 %v5695_v53, %v5694_v50  ;;  %v5807_v29 = vpop.f32.mrb[163].mxu1 }
 0x23f   : > { %v5808_v22 = vadd.f32 %v5807_v29, %v5806_v38 }
 0x240   : > { %v7169_v27 = vadd.f32 %v5805_v16, %v3508_v54  ;;  %v3511_v56 = vadd.f32 %v5696_v39, %v7034_v45 }
 0x242   : > { %v7172_v33 = vadd.f32 %v5808_v22, %v3511_v56  ;;  %v5697_v12 = vpop.f32.mrb[164].mxu0 }
 0x243   : > { %v5809_v20 = vpop.f32.mrb[164].mxu1  ;;  %v5698_v44 = vpop.f32.mrb[165].mxu0 }
 0x244   : > { %v5699_v0 = vadd.f32 %v5698_v44, %v5697_v12  ;;  %v5810_v59 = vpop.f32.mrb[165].mxu1  ;;  %v5700_v2 = vpop.f32.mrb[166].mxu0 }
 0x245   : > { %v5811_v51 = vadd.f32 %v5810_v59, %v5809_v20  ;;  %v5812_v9 = vpop.f32.mrb[166].mxu1  ;;  %v5701_v34 = vpop.f32.mrb[167].mxu0 }
 0x246   : > { %v3516_v19 = vadd.f32 %v5699_v0, %v7039_v41  ;;  %v5702_v55 = vadd.f32 %v5701_v34, %v5700_v2  ;;  %v5813_v7 = vpop.f32.mrb[167].mxu1 }
 0x247   : > { %v5814_v11 = vadd.f32 %v5813_v7, %v5812_v9 }
 0x248   : > { %v7175_v28 = vadd.f32 %v5811_v51, %v3516_v19  ;;  %v3519_v45 = vadd.f32 %v5702_v55, %v7044_v32 }
 0x24a   : > { %v7178_v42 = vadd.f32 %v5814_v11, %v3519_v45  ;;  %v5703_v31 = vpop.f32.mrb[168].mxu0 }
 0x24b   : > { %v5815_v8 = vpop.f32.mrb[168].mxu1  ;;  %v5704_v17 = vpop.f32.mrb[169].mxu0 }
 0x24c   : > { %v5705_v36 = vadd.f32 %v5704_v17, %v5703_v31  ;;  %v5816_v6 = vpop.f32.mrb[169].mxu1  ;;  %v5706_v37 = vpop.f32.mrb[170].mxu0 }
 0x24d   : > { %v5817_v48 = vadd.f32 %v5816_v6, %v5815_v8  ;;  %v5818_v50 = vpop.f32.mrb[170].mxu1  ;;  %v5707_v16 = vpop.f32.mrb[171].mxu0 }
 0x24e   : > { %v3524_v41 = vadd.f32 %v5705_v36, %v7049_v63  ;;  %v5708_v38 = vadd.f32 %v5707_v16, %v5706_v37  ;;  %v5819_v53 = vpop.f32.mrb[171].mxu1 }
 0x24f   : > { %v5820_v54 = vadd.f32 %v5819_v53, %v5818_v50 }
 0x250   : > { %v7181_v39 = vadd.f32 %v5817_v48, %v3524_v41  ;;  %v3527_v32 = vadd.f32 %v5708_v38, %v7054_v14 }
 0x252   : > { %v7184_v29 = vadd.f32 %v5820_v54, %v3527_v32  ;;  %v5709_v22 = vpop.f32.mrb[172].mxu0 }
 0x253   : > { %v5821_v56 = vpop.f32.mrb[172].mxu1  ;;  %v5710_v12 = vpop.f32.mrb[173].mxu0 }
 0x254   : > { %v5711_v20 = vadd.f32 %v5710_v12, %v5709_v22  ;;  %v5822_v44 = vpop.f32.mrb[173].mxu1  ;;  %v5712_v0 = vpop.f32.mrb[174].mxu0 }
 0x255   : > { %v5823_v59 = vadd.f32 %v5822_v44, %v5821_v56  ;;  %v5824_v2 = vpop.f32.mrb[174].mxu1  ;;  %v5713_v51 = vpop.f32.mrb[175].mxu0 }
 0x256   : > { %v3532_v63 = vadd.f32 %v5711_v20, %v7059_v23  ;;  %v5714_v9 = vadd.f32 %v5713_v51, %v5712_v0  ;;  %v5825_v34 = vpop.f32.mrb[175].mxu1 }
 0x257   : > { %v5826_v19 = vadd.f32 %v5825_v34, %v5824_v2 }
 0x258   : > { %v7187_v55 = vadd.f32 %v5823_v59, %v3532_v63  ;;  %v3535_v14 = vadd.f32 %v5714_v9, %v7064_v21 }
 0x25a   : > { %v7190_v7 = vadd.f32 %v5826_v19, %v3535_v14  ;;  %v5715_v11 = vpop.f32.mrb[176].mxu0 }
 0x25b   : > { %v5827_v45 = vpop.f32.mrb[176].mxu1  ;;  %v5716_v31 = vpop.f32.mrb[177].mxu0 }
 0x25c   : > { %v5717_v8 = vadd.f32 %v5716_v31, %v5715_v11  ;;  %v5828_v17 = vpop.f32.mrb[177].mxu1  ;;  %v5718_v36 = vpop.f32.mrb[178].mxu0 }
 0x25d   : > { %v5829_v6 = vadd.f32 %v5828_v17, %v5827_v45  ;;  %v5830_v37 = vpop.f32.mrb[178].mxu1  ;;  %v5719_v48 = vpop.f32.mrb[179].mxu0 }
 0x25e   : > { %v3540_v23 = vadd.f32 %v5717_v8, %v7069_v47  ;;  %v5720_v50 = vadd.f32 %v5719_v48, %v5718_v36  ;;  %v5831_v16 = vpop.f32.mrb[179].mxu1 }
 0x25f   : > { %v5832_v41 = vadd.f32 %v5831_v16, %v5830_v37 }
 0x260   : > { %v7193_v38 = vadd.f32 %v5829_v6, %v3540_v23  ;;  %v3543_v21 = vadd.f32 %v5720_v50, %v7074_v43 }
 0x262   : > { %v7196_v53 = vadd.f32 %v5832_v41, %v3543_v21  ;;  %v5721_v54 = vpop.f32.mrb[180].mxu0 }
 0x263   : > { %v5833_v32 = vpop.f32.mrb[180].mxu1  ;;  %v5722_v22 = vpop.f32.mrb[181].mxu0 }
 0x264   : > { %v5723_v56 = vadd.f32 %v5722_v22, %v5721_v54  ;;  %v5834_v12 = vpop.f32.mrb[181].mxu1  ;;  %v5724_v20 = vpop.f32.mrb[182].mxu0 }
 0x265   : > { %v5835_v44 = vadd.f32 %v5834_v12, %v5833_v32  ;;  %v5836_v0 = vpop.f32.mrb[182].mxu1  ;;  %v5725_v59 = vpop.f32.mrb[183].mxu0 }
 0x266   : > { %v3548_v47 = vadd.f32 %v5723_v56, %v7079_v10  ;;  %v5726_v2 = vadd.f32 %v5725_v59, %v5724_v20  ;;  %v5837_v51 = vpop.f32.mrb[183].mxu1 }
 0x267   : > { %v5838_v63 = vadd.f32 %v5837_v51, %v5836_v0 }
 0x268   : > { %v7199_v9 = vadd.f32 %v5835_v44, %v3548_v47  ;;  %v3551_v43 = vadd.f32 %v5726_v2, %v7084_v1 }
 0x26a   : > { %v7202_v34 = vadd.f32 %v5838_v63, %v3551_v43  ;;  %v5727_v19 = vpop.f32.mrb[184].mxu0 }
 0x26b   : > { %v5839_v14 = vpop.f32.mrb[184].mxu1  ;;  %v5728_v11 = vpop.f32.mrb[185].mxu0 }
 0x26c   : > { %v5729_v45 = vadd.f32 %v5728_v11, %v5727_v19  ;;  %v5840_v31 = vpop.f32.mrb[185].mxu1  ;;  %v5730_v8 = vpop.f32.mrb[186].mxu0 }
 0x26d   : > { %v5841_v17 = vadd.f32 %v5840_v31, %v5839_v14  ;;  %v5842_v36 = vpop.f32.mrb[186].mxu1  ;;  %v5731_v6 = vpop.f32.mrb[187].mxu0 }
 0x26e   : > { %v3556_v10 = vadd.f32 %v5729_v45, %v7089_v46  ;;  %v5732_v37 = vadd.f32 %v5731_v6, %v5730_v8  ;;  %v5843_v48 = vpop.f32.mrb[187].mxu1 }
 0x26f   : > { %v5844_v23 = vadd.f32 %v5843_v48, %v5842_v36 }
 0x270   : > { %v7205_v50 = vadd.f32 %v5841_v17, %v3556_v10  ;;  %v3559_v1 = vadd.f32 %v5732_v37, %v7094_v25 }
 0x272   : > { %v7208_v16 = vadd.f32 %v5844_v23, %v3559_v1  ;;  %v5733_v41 = vpop.f32.mrb[188].mxu0 }
 0x273   : > { %v5845_v21 = vpop.f32.mrb[188].mxu1  ;;  %v5734_v54 = vpop.f32.mrb[189].mxu0 }
 0x274   : > { %v5735_v32 = vadd.f32 %v5734_v54, %v5733_v41  ;;  %v5846_v22 = vpop.f32.mrb[189].mxu1  ;;  %v5736_v56 = vpop.f32.mrb[190].mxu0 }
 0x275   : > { %v5847_v12 = vadd.f32 %v5846_v22, %v5845_v21  ;;  %v5848_v20 = vpop.f32.mrb[190].mxu1  ;;  %v5737_v44 = vpop.f32.mrb[191].mxu0 }
 0x276   : > { %v3564_v46 = vadd.f32 %v5735_v32, %v7099_v18  ;;  %v5738_v0 = vadd.f32 %v5737_v44, %v5736_v56  ;;  %v5849_v59 = vpop.f32.mrb[191].mxu1 }
 0x277   : > { %v5850_v47 = vadd.f32 %v5849_v59, %v5848_v20 }
 0x278   : > { %v7211_v2 = vadd.f32 %v5847_v12, %v3564_v46  ;;  %v3567_v25 = vadd.f32 %v5738_v0, %v7104_v49 }
 0x27a   : > { %v7214_v51 = vadd.f32 %v5850_v47, %v3567_v25  ;;  %v5867_v63 = vpop.f32.mrb[192].mxu0 }
 0x27b   : > { %v5979_v43 = vpop.f32.mrb[192].mxu1  ;;  %v5868_v19 = vpop.f32.mrb[193].mxu0 }
 0x27c   : > { %v5869_v14 = vadd.f32 %v5868_v19, %v5867_v63  ;;  %v5980_v11 = vpop.f32.mrb[193].mxu1  ;;  %v5870_v45 = vpop.f32.mrb[194].mxu0 }
 0x27d   : > { %v5981_v31 = vadd.f32 %v5980_v11, %v5979_v43  ;;  %v5982_v8 = vpop.f32.mrb[194].mxu1  ;;  %v5871_v17 = vpop.f32.mrb[195].mxu0 }
 0x27e   : > { %v3766_v18 = vadd.f32 %v5869_v14, %v7109_v58  ;;  %v5872_v36 = vadd.f32 %v5871_v17, %v5870_v45  ;;  %v5983_v6 = vpop.f32.mrb[195].mxu1 }
 0x27f   : > { %v5984_v10 = vadd.f32 %v5983_v6, %v5982_v8 }
 0x280   : > { %v7217_v37 = vadd.f32 %v5981_v31, %v3766_v18  ;;  %v3769_v49 = vadd.f32 %v5872_v36, %v7114_v15 }
 0x282   : > { %v7220_v48 = vadd.f32 %v5984_v10, %v3769_v49  ;;  %v5873_v23 = vpop.f32.mrb[196].mxu0 }
 0x283   : > { %v5985_v1 = vpop.f32.mrb[196].mxu1  ;;  %v5874_v41 = vpop.f32.mrb[197].mxu0 }
 0x284   : > { %v5875_v21 = vadd.f32 %v5874_v41, %v5873_v23  ;;  %v5986_v54 = vpop.f32.mrb[197].mxu1  ;;  %v5876_v32 = vpop.f32.mrb[198].mxu0 }
 0x285   : > { %v5987_v22 = vadd.f32 %v5986_v54, %v5985_v1  ;;  %v5988_v56 = vpop.f32.mrb[198].mxu1  ;;  %v5877_v12 = vpop.f32.mrb[199].mxu0 }
 0x286   : > { %v3774_v58 = vadd.f32 %v5875_v21, %v7119_v24  ;;  %v5878_v20 = vadd.f32 %v5877_v12, %v5876_v32  ;;  %v5989_v44 = vpop.f32.mrb[199].mxu1 }
 0x287   : > { %v5990_v46 = vadd.f32 %v5989_v44, %v5988_v56  ;;  %v4053_v44 = vadd.f32 %v7220_v48, %v7217_v37 }
 0x288   : > { %v7223_v0 = vadd.f32 %v5987_v22, %v3774_v58  ;;  %v3777_v15 = vadd.f32 %v5878_v20, %v7124_v52 }
 0x28a   : > { %v7226_v59 = vadd.f32 %v5990_v46, %v3777_v15  ;;  %v5879_v47 = vpop.f32.mrb[200].mxu0  ;;  %v4094_v46 = vmul.f32 %v7223_v0, %v7223_v0 }
 0x28b   : > { %v5991_v25 = vpop.f32.mrb[200].mxu1  ;;  %v5880_v63 = vpop.f32.mrb[201].mxu0 }
 0x28c   : > { %v5881_v43 = vadd.f32 %v5880_v63, %v5879_v47  ;;  %v5992_v19 = vpop.f32.mrb[201].mxu1  ;;  %v5882_v14 = vpop.f32.mrb[202].mxu0  ;;  %v4054_v63 = vadd.f32 %v4053_v44, %v7223_v0 }
 0x28d   : > { %v5993_v11 = vadd.f32 %v5992_v19, %v5991_v25  ;;  %v5994_v45 = vpop.f32.mrb[202].mxu1  ;;  %v5883_v31 = vpop.f32.mrb[203].mxu0 }
 0x28e   : > { %v3782_v24 = vadd.f32 %v5881_v43, %v7129_v57  ;;  %v5884_v8 = vadd.f32 %v5883_v31, %v5882_v14  ;;  %v5995_v17 = vpop.f32.mrb[203].mxu1  ;;  %v4093_v57 = vmul.f32 %v7220_v48, %v7220_v48 }
 0x28f   : > { %v5996_v18 = vadd.f32 %v5995_v17, %v5994_v45  ;;  %v4095_v45 = vmul.f32 %v7226_v59, %v7226_v59 }
 0x290   : > { %v7229_v36 = vadd.f32 %v5993_v11, %v3782_v24  ;;  %v3785_v52 = vadd.f32 %v5884_v8, %v7134_v26  ;;  %v4092_v26 = vmul.f32 %v7217_v37, %v7217_v37 }
 0x292   : > { %v7232_v6 = vadd.f32 %v5996_v18, %v3785_v52  ;;  %v5885_v10 = vpop.f32.mrb[204].mxu0  ;;  %v4124_v25 = vadd.f32 %v4093_v57, %v4092_v26 }
 0x293   : > { %v5997_v49 = vpop.f32.mrb[204].mxu1  ;;  %v5886_v23 = vpop.f32.mrb[205].mxu0 }
 0x294   : > { %v5887_v1 = vadd.f32 %v5886_v23, %v5885_v10  ;;  %v5998_v41 = vpop.f32.mrb[205].mxu1  ;;  %v5888_v21 = vpop.f32.mrb[206].mxu0  ;;  %v4125_v11 = vadd.f32 %v4124_v25, %v4094_v46  ;;  %v4096_v10 = vmul.f32 %v7229_v36, %v7229_v36 }
 0x295   : > { %v5999_v54 = vadd.f32 %v5998_v41, %v5997_v49  ;;  %v6000_v32 = vpop.f32.mrb[206].mxu1  ;;  %v5889_v22 = vpop.f32.mrb[207].mxu0 }
 0x296   : > { %v3790_v56 = vadd.f32 %v5887_v1, %v7139_v61  ;;  %v5890_v12 = vadd.f32 %v5889_v22, %v5888_v21  ;;  %v6001_v58 = vpop.f32.mrb[207].mxu1  ;;  %v4126_v21 = vadd.f32 %v4125_v11, %v4095_v45 }
 0x297   : > { %v6002_v20 = vadd.f32 %v6001_v58, %v6000_v32 }
 0x298   : > { %v7243_v15 = vadd.f32 %v5999_v54, %v3790_v56  ;;  %v3793_v47 = vadd.f32 %v5890_v12, %v7142_v30  ;;  %v4055_v30 = vadd.f32 %v4054_v63, %v7226_v59  ;;  %v4127_v57 = vadd.f32 %v4126_v21, %v4096_v10 }
 0x299   : > { %v4097_v56 = vmul.f32 %v7232_v6, %v7232_v6 }
 0x29a   : > { %v7247_v61 = vadd.f32 %v6002_v20, %v3793_v47  ;;  %v5891_v43 = vpop.f32.mrb[208].mxu0  ;;  %v4056_v54 = vadd.f32 %v4055_v30, %v7229_v36  ;;  %v4098_v44 = vmul.f32 %v7243_v15, %v7243_v15 }
 0x29b   : > { %v6003_v19 = vpop.f32.mrb[208].mxu1  ;;  %v5892_v14 = vpop.f32.mrb[209].mxu0 }
 0x29c   : > { %v5893_v31 = vadd.f32 %v5892_v14, %v5891_v43  ;;  %v6004_v24 = vpop.f32.mrb[209].mxu1  ;;  %v5894_v8 = vpop.f32.mrb[210].mxu0 }
 0x29d   : > { %v6005_v17 = vadd.f32 %v6004_v24, %v6003_v19  ;;  %v6006_v18 = vpop.f32.mrb[210].mxu1  ;;  %v5895_v52 = vpop.f32.mrb[211].mxu0  ;;  %v4128_v19 = vadd.f32 %v4127_v57, %v4097_v56 }
 0x29e   : > { %v3798_v49 = vadd.f32 %v5893_v31, %v7145_v60  ;;  %v5896_v23 = vadd.f32 %v5895_v52, %v5894_v8  ;;  %v6007_v1 = vpop.f32.mrb[211].mxu1  ;;  %v4057_v60 = vadd.f32 %v4056_v54, %v7232_v6 }
 0x29f   : > { %v6008_v41 = vadd.f32 %v6007_v1, %v6006_v18  ;;  %v4129_v8 = vadd.f32 %v4128_v19, %v4098_v44 }
 0x2a0   : > { %v7256_v32 = vadd.f32 %v6005_v17, %v3798_v49  ;;  %v3801_v22 = vadd.f32 %v5896_v23, %v7148_v35  ;;  %v4058_v14 = vadd.f32 %v4057_v60, %v7243_v15  ;;  %v4099_v17 = vmul.f32 %v7247_v61, %v7247_v61 }
 0x2a2   : > { %v7261_v12 = vadd.f32 %v6008_v41, %v3801_v22  ;;  %v5897_v58 = vpop.f32.mrb[212].mxu0  ;;  %v4059_v30 = vadd.f32 %v4058_v14, %v7247_v61  ;;  %v4100_v10 = vmul.f32 %v7256_v32, %v7256_v32  ;;  %v4130_v41 = vadd.f32 %v4129_v8, %v4099_v17 }
 0x2a3   : > { %v6009_v26 = vpop.f32.mrb[212].mxu1  ;;  %v5898_v20 = vpop.f32.mrb[213].mxu0 }
 0x2a4   : > { %v5899_v46 = vadd.f32 %v5898_v20, %v5897_v58  ;;  %v6010_v47 = vpop.f32.mrb[213].mxu1  ;;  %v5900_v25 = vpop.f32.mrb[214].mxu0  ;;  %v4060_v21 = vadd.f32 %v4059_v30, %v7256_v32  ;;  %v4101_v20 = vmul.f32 %v7261_v12, %v7261_v12 }
 0x2a5   : > { %v6011_v63 = vadd.f32 %v6010_v47, %v6009_v26  ;;  %v6012_v43 = vpop.f32.mrb[214].mxu1  ;;  %v5901_v35 = vpop.f32.mrb[215].mxu0 }
 0x2a6   : > { %v3806_v11 = vadd.f32 %v5899_v46, %v7151_v13  ;;  %v5902_v45 = vadd.f32 %v5901_v35, %v5900_v25  ;;  %v6013_v31 = vpop.f32.mrb[215].mxu1  ;;  %v4061_v25 = vadd.f32 %v4060_v21, %v7261_v12 }
 0x2a7   : > { %v6014_v24 = vadd.f32 %v6013_v31, %v6012_v43 }
 0x2a8   : > { %v7270_v18 = vadd.f32 %v6011_v63, %v3806_v11  ;;  %v3809_v52 = vadd.f32 %v5902_v45, %v7154_v62  ;;  %v4131_v62 = vadd.f32 %v4130_v41, %v4100_v10 }
 0x2aa   : > { %v7276_v49 = vadd.f32 %v6014_v24, %v3809_v52  ;;  %v5903_v23 = vpop.f32.mrb[216].mxu0  ;;  %v4102_v63 = vmul.f32 %v7270_v18, %v7270_v18  ;;  %v4132_v19 = vadd.f32 %v4131_v62, %v4101_v20  ;;  %v4062_v14 = vadd.f32 %v4061_v25, %v7270_v18 }
 0x2ab   : > { %v6015_v13 = vpop.f32.mrb[216].mxu1  ;;  %v5904_v1 = vpop.f32.mrb[217].mxu0 }
 0x2ac   : > { %v5905_v54 = vadd.f32 %v5904_v1, %v5903_v23  ;;  %v6016_v22 = vpop.f32.mrb[217].mxu1  ;;  %v5906_v57 = vpop.f32.mrb[218].mxu0  ;;  %v4133_v24 = vadd.f32 %v4132_v19, %v4102_v63  ;;  %v4103_v8 = vmul.f32 %v7276_v49, %v7276_v49 }
 0x2ad   : > { %v6017_v56 = vadd.f32 %v6016_v22, %v6015_v13  ;;  %v6018_v58 = vpop.f32.mrb[218].mxu1  ;;  %v5907_v26 = vpop.f32.mrb[219].mxu0 }
 0x2ae   : > { %v3814_v60 = vadd.f32 %v5905_v54, %v7157_v5  ;;  %v5908_v44 = vadd.f32 %v5907_v26, %v5906_v57  ;;  %v6019_v46 = vpop.f32.mrb[219].mxu1  ;;  %v4134_v57 = vadd.f32 %v4133_v24, %v4103_v8 }
 0x2af   : > { %v6020_v47 = vadd.f32 %v6019_v46, %v6018_v58 }
 0x2b0   : > { %v7285_v43 = vadd.f32 %v6017_v56, %v3814_v60  ;;  %v3817_v35 = vadd.f32 %v5908_v44, %v7160_v40  ;;  %v4063_v40 = vadd.f32 %v4062_v14, %v7276_v49 }
 0x2b2   : > { %v7289_v11 = vadd.f32 %v6020_v47, %v3817_v35  ;;  %v5909_v45 = vpop.f32.mrb[220].mxu0  ;;  %v4104_v1 = vmul.f32 %v7285_v43, %v7285_v43  ;;  %v4064_v56 = vadd.f32 %v4063_v40, %v7285_v43 }
 0x2b3   : > { %v6021_v31 = vpop.f32.mrb[220].mxu1  ;;  %v5910_v5 = vpop.f32.mrb[221].mxu0 }
 0x2b4   : > { %v5911_v17 = vadd.f32 %v5910_v5, %v5909_v45  ;;  %v6022_v52 = vpop.f32.mrb[221].mxu1  ;;  %v5912_v30 = vpop.f32.mrb[222].mxu0  ;;  %v4135_v62 = vadd.f32 %v4134_v57, %v4104_v1  ;;  %v4105_v20 = vmul.f32 %v7289_v11, %v7289_v11 }
 0x2b5   : > { %v6023_v10 = vadd.f32 %v6022_v52, %v6021_v31  ;;  %v6024_v23 = vpop.f32.mrb[222].mxu1  ;;  %v5913_v13 = vpop.f32.mrb[223].mxu0 }
 0x2b6   : > { %v3822_v41 = vadd.f32 %v5911_v17, %v7163_v3  ;;  %v5914_v21 = vadd.f32 %v5913_v13, %v5912_v30  ;;  %v6025_v54 = vpop.f32.mrb[223].mxu1  ;;  %v4065_v3 = vadd.f32 %v4064_v56, %v7289_v11  ;;  %v4136_v31 = vadd.f32 %v4135_v62, %v4105_v20 }
 0x2b7   : > { %v6026_v22 = vadd.f32 %v6025_v54, %v6024_v23 }
 0x2b8   : > { %v7298_v58 = vadd.f32 %v6023_v10, %v3822_v41  ;;  %v3825_v26 = vadd.f32 %v5914_v21, %v7166_v4 }
 0x2ba   : > { %v7303_v60 = vadd.f32 %v6026_v22, %v3825_v26  ;;  %v5915_v44 = vpop.f32.mrb[224].mxu0  ;;  %v4106_v25 = vmul.f32 %v7298_v58, %v7298_v58  ;;  %v4066_v5 = vadd.f32 %v4065_v3, %v7298_v58 }
 0x2bb   : > { %v6027_v46 = vpop.f32.mrb[224].mxu1  ;;  %v5916_v47 = vpop.f32.mrb[225].mxu0 }
 0x2bc   : > { %v5917_v63 = vadd.f32 %v5916_v47, %v5915_v44  ;;  %v6028_v35 = vpop.f32.mrb[225].mxu1  ;;  %v5918_v19 = vpop.f32.mrb[226].mxu0  ;;  %v4137_v30 = vadd.f32 %v4136_v31, %v4106_v25  ;;  %v4107_v10 = vmul.f32 %v7303_v60, %v7303_v60  ;;  %v4067_v40 = vadd.f32 %v4066_v5, %v7303_v60 }
 0x2bd   : > { %v6029_v14 = vadd.f32 %v6028_v35, %v6027_v46  ;;  %v6030_v45 = vpop.f32.mrb[226].mxu1  ;;  %v5919_v4 = vpop.f32.mrb[227].mxu0 }
 0x2be   : > { %v3830_v24 = vadd.f32 %v5917_v63, %v7169_v27  ;;  %v5920_v8 = vadd.f32 %v5919_v4, %v5918_v19  ;;  %v6031_v17 = vpop.f32.mrb[227].mxu1  ;;  %v4138_v22 = vadd.f32 %v4137_v30, %v4107_v10 }
 0x2bf   : > { %v6032_v52 = vadd.f32 %v6031_v17, %v6030_v45 }
 0x2c0   : > { %v7312_v23 = vadd.f32 %v6029_v14, %v3830_v24  ;;  %v3833_v13 = vadd.f32 %v5920_v8, %v7172_v33 }
 0x2c2   : > { %v4108_v1 = vmul.f32 %v7312_v23, %v7312_v23  ;;  %v7318_v41 = vadd.f32 %v6032_v52, %v3833_v13  ;;  %v5921_v21 = vpop.f32.mrb[228].mxu0  ;;  %v4068_v57 = vadd.f32 %v4067_v40, %v7312_v23 }
 0x2c3   : > { %v6033_v27 = vpop.f32.mrb[228].mxu1  ;;  %v5922_v54 = vpop.f32.mrb[229].mxu0 }
 0x2c4   : > { %v5923_v56 = vadd.f32 %v5922_v54, %v5921_v21  ;;  %v6034_v26 = vpop.f32.mrb[229].mxu1  ;;  %v5924_v62 = vpop.f32.mrb[230].mxu0  ;;  %v4139_v33 = vadd.f32 %v4138_v22, %v4108_v1  ;;  %v4109_v47 = vmul.f32 %v7318_v41, %v7318_v41  ;;  %v4069_v19 = vadd.f32 %v4068_v57, %v7318_v41 }
 0x2c5   : > { %v6035_v20 = vadd.f32 %v6034_v26, %v6033_v27  ;;  %v6036_v44 = vpop.f32.mrb[230].mxu1  ;;  %v5925_v46 = vpop.f32.mrb[231].mxu0 }
 0x2c6   : > { %v3838_v3 = vadd.f32 %v5923_v56, %v7175_v28  ;;  %v5926_v25 = vadd.f32 %v5925_v46, %v5924_v62  ;;  %v6037_v63 = vpop.f32.mrb[231].mxu1  ;;  %v4140_v4 = vadd.f32 %v4139_v33, %v4109_v47 }
 0x2c7   : > { %v6038_v35 = vadd.f32 %v6037_v63, %v6036_v44 }
 0x2c8   : > { %v7325_v14 = vadd.f32 %v6035_v20, %v3838_v3  ;;  %v3841_v45 = vadd.f32 %v5926_v25, %v7178_v42 }
 0x2ca   : > { %v4070_v31 = vadd.f32 %v4069_v19, %v7325_v14  ;;  %v4110_v5 = vmul.f32 %v7325_v14, %v7325_v14  ;;  %v7331_v24 = vadd.f32 %v6038_v35, %v3841_v45  ;;  %v5927_v8 = vpop.f32.mrb[232].mxu0 }
 0x2cb   : > { %v6039_v17 = vpop.f32.mrb[232].mxu1  ;;  %v5928_v28 = vpop.f32.mrb[233].mxu0 }
 0x2cc   : > { %v4141_v52 = vadd.f32 %v4140_v4, %v4110_v5  ;;  %v4071_v30 = vadd.f32 %v4070_v31, %v7331_v24  ;;  %v4111_v10 = vmul.f32 %v7331_v24, %v7331_v24  ;;  %v5929_v13 = vadd.f32 %v5928_v28, %v5927_v8  ;;  %v6040_v40 = vpop.f32.mrb[233].mxu1  ;;  %v5930_v42 = vpop.f32.mrb[234].mxu0 }
 0x2cd   : > { %v6041_v1 = vadd.f32 %v6040_v40, %v6039_v17  ;;  %v6042_v21 = vpop.f32.mrb[234].mxu1  ;;  %v5931_v27 = vpop.f32.mrb[235].mxu0 }
 0x2ce   : > { %v4142_v54 = vadd.f32 %v4141_v52, %v4111_v10  ;;  %v3846_v22 = vadd.f32 %v5929_v13, %v7181_v39  ;;  %v5932_v57 = vadd.f32 %v5931_v27, %v5930_v42  ;;  %v6043_v56 = vpop.f32.mrb[235].mxu1 }
 0x2cf   : > { %v6044_v26 = vadd.f32 %v6043_v56, %v6042_v21 }
 0x2d0   : > { %v7337_v62 = vadd.f32 %v6041_v1, %v3846_v22  ;;  %v3849_v20 = vadd.f32 %v5932_v57, %v7184_v29 }
 0x2d2   : > { %v4072_v44 = vadd.f32 %v4071_v30, %v7337_v62  ;;  %v4112_v46 = vmul.f32 %v7337_v62, %v7337_v62  ;;  %v7343_v33 = vadd.f32 %v6044_v26, %v3849_v20  ;;  %v5933_v47 = vpop.f32.mrb[236].mxu0 }
 0x2d3   : > { %v6045_v3 = vpop.f32.mrb[236].mxu1  ;;  %v5934_v25 = vpop.f32.mrb[237].mxu0 }
 0x2d4   : > { %v4143_v63 = vadd.f32 %v4142_v54, %v4112_v46  ;;  %v4073_v39 = vadd.f32 %v4072_v44, %v7343_v33  ;;  %v4113_v35 = vmul.f32 %v7343_v33, %v7343_v33  ;;  %v5935_v19 = vadd.f32 %v5934_v25, %v5933_v47  ;;  %v6046_v45 = vpop.f32.mrb[237].mxu1  ;;  %v5936_v4 = vpop.f32.mrb[238].mxu0 }
 0x2d5   : > { %v6047_v29 = vadd.f32 %v6046_v45, %v6045_v3  ;;  %v6048_v31 = vpop.f32.mrb[238].mxu1  ;;  %v5937_v5 = vpop.f32.mrb[239].mxu0 }
 0x2d6   : > { %v4144_v8 = vadd.f32 %v4143_v63, %v4113_v35  ;;  %v3854_v17 = vadd.f32 %v5935_v19, %v7187_v55  ;;  %v5938_v28 = vadd.f32 %v5937_v5, %v5936_v4  ;;  %v6049_v52 = vpop.f32.mrb[239].mxu1 }
 0x2d7   : > { %v6050_v30 = vadd.f32 %v6049_v52, %v6048_v31 }
 0x2d8   : > { %v7349_v10 = vadd.f32 %v6047_v29, %v3854_v17  ;;  %v3857_v13 = vadd.f32 %v5938_v28, %v7190_v7 }
 0x2da   : > { %v4074_v40 = vadd.f32 %v4073_v39, %v7349_v10  ;;  %v4114_v42 = vmul.f32 %v7349_v10, %v7349_v10  ;;  %v7355_v1 = vadd.f32 %v6050_v30, %v3857_v13  ;;  %v5939_v21 = vpop.f32.mrb[240].mxu0 }
 0x2db   : > { %v6051_v27 = vpop.f32.mrb[240].mxu1  ;;  %v5940_v54 = vpop.f32.mrb[241].mxu0 }
 0x2dc   : > { %v4145_v22 = vadd.f32 %v4144_v8, %v4114_v42  ;;  %v4075_v55 = vadd.f32 %v4074_v40, %v7355_v1  ;;  %v4115_v57 = vmul.f32 %v7355_v1, %v7355_v1  ;;  %v5941_v56 = vadd.f32 %v5940_v54, %v5939_v21  ;;  %v6052_v26 = vpop.f32.mrb[241].mxu1  ;;  %v5942_v20 = vpop.f32.mrb[242].mxu0 }
 0x2dd   : > { %v6053_v7 = vadd.f32 %v6052_v26, %v6051_v27  ;;  %v6054_v44 = vpop.f32.mrb[242].mxu1  ;;  %v5943_v46 = vpop.f32.mrb[243].mxu0 }
 0x2de   : > { %v4146_v47 = vadd.f32 %v4145_v22, %v4115_v57  ;;  %v3862_v3 = vadd.f32 %v5941_v56, %v7193_v38  ;;  %v5944_v25 = vadd.f32 %v5943_v46, %v5942_v20  ;;  %v6055_v63 = vpop.f32.mrb[243].mxu1 }
 0x2df   : > { %v6056_v39 = vadd.f32 %v6055_v63, %v6054_v44 }
 0x2e0   : > { %v7361_v35 = vadd.f32 %v6053_v7, %v3862_v3  ;;  %v3865_v19 = vadd.f32 %v5944_v25, %v7196_v53 }
 0x2e2   : > { %v4076_v45 = vadd.f32 %v4075_v55, %v7361_v35  ;;  %v4116_v4 = vmul.f32 %v7361_v35, %v7361_v35  ;;  %v7367_v29 = vadd.f32 %v6056_v39, %v3865_v19  ;;  %v5945_v31 = vpop.f32.mrb[244].mxu0 }
 0x2e3   : > { %v6057_v5 = vpop.f32.mrb[244].mxu1  ;;  %v5946_v8 = vpop.f32.mrb[245].mxu0 }
 0x2e4   : > { %v4147_v17 = vadd.f32 %v4146_v47, %v4116_v4  ;;  %v4077_v38 = vadd.f32 %v4076_v45, %v7367_v29  ;;  %v4117_v28 = vmul.f32 %v7367_v29, %v7367_v29  ;;  %v5947_v52 = vadd.f32 %v5946_v8, %v5945_v31  ;;  %v6058_v30 = vpop.f32.mrb[245].mxu1  ;;  %v5948_v13 = vpop.f32.mrb[246].mxu0 }
 0x2e5   : > { %v6059_v53 = vadd.f32 %v6058_v30, %v6057_v5  ;;  %v6060_v40 = vpop.f32.mrb[246].mxu1  ;;  %v5949_v42 = vpop.f32.mrb[247].mxu0 }
 0x2e6   : > { %v4148_v21 = vadd.f32 %v4147_v17, %v4117_v28  ;;  %v3870_v27 = vadd.f32 %v5947_v52, %v7199_v9  ;;  %v5950_v54 = vadd.f32 %v5949_v42, %v5948_v13  ;;  %v6061_v22 = vpop.f32.mrb[247].mxu1 }
 0x2e7   : > { %v6062_v55 = vadd.f32 %v6061_v22, %v6060_v40 }
 0x2e8   : > { %v7373_v57 = vadd.f32 %v6059_v53, %v3870_v27  ;;  %v3873_v56 = vadd.f32 %v5950_v54, %v7202_v34 }
 0x2ea   : > { %v4078_v26 = vadd.f32 %v4077_v38, %v7373_v57  ;;  %v4118_v20 = vmul.f32 %v7373_v57, %v7373_v57  ;;  %v7379_v7 = vadd.f32 %v6062_v55, %v3873_v56  ;;  %v5951_v44 = vpop.f32.mrb[248].mxu0 }
 0x2eb   : > { %v6063_v46 = vpop.f32.mrb[248].mxu1  ;;  %v5952_v47 = vpop.f32.mrb[249].mxu0 }
 0x2ec   : > { %v4149_v3 = vadd.f32 %v4148_v21, %v4118_v20  ;;  %v4079_v9 = vadd.f32 %v4078_v26, %v7379_v7  ;;  %v4119_v25 = vmul.f32 %v7379_v7, %v7379_v7  ;;  %v5953_v63 = vadd.f32 %v5952_v47, %v5951_v44  ;;  %v6064_v39 = vpop.f32.mrb[249].mxu1  ;;  %v5954_v19 = vpop.f32.mrb[250].mxu0 }
 0x2ed   : > { %v6065_v34 = vadd.f32 %v6064_v39, %v6063_v46  ;;  %v6066_v45 = vpop.f32.mrb[250].mxu1  ;;  %v5955_v4 = vpop.f32.mrb[251].mxu0 }
 0x2ee   : > { %v4150_v31 = vadd.f32 %v4149_v3, %v4119_v25  ;;  %v3878_v5 = vadd.f32 %v5953_v63, %v7205_v50  ;;  %v5956_v8 = vadd.f32 %v5955_v4, %v5954_v19  ;;  %v6067_v17 = vpop.f32.mrb[251].mxu1 }
 0x2ef   : > { %v6068_v38 = vadd.f32 %v6067_v17, %v6066_v45 }
 0x2f0   : > { %v7385_v28 = vadd.f32 %v6065_v34, %v3878_v5  ;;  %v3881_v52 = vadd.f32 %v5956_v8, %v7208_v16 }
 0x2f2   : > { %v4080_v30 = vadd.f32 %v4079_v9, %v7385_v28  ;;  %v4120_v13 = vmul.f32 %v7385_v28, %v7385_v28  ;;  %v7391_v53 = vadd.f32 %v6068_v38, %v3881_v52  ;;  %v5957_v40 = vpop.f32.mrb[252].mxu0 }
 0x2f3   : > { %v6069_v42 = vpop.f32.mrb[252].mxu1  ;;  %v5958_v21 = vpop.f32.mrb[253].mxu0 }
 0x2f4   : > { %v4151_v27 = vadd.f32 %v4150_v31, %v4120_v13  ;;  %v4081_v50 = vadd.f32 %v4080_v30, %v7391_v53  ;;  %v4121_v54 = vmul.f32 %v7391_v53, %v7391_v53  ;;  %v5959_v22 = vadd.f32 %v5958_v21, %v5957_v40  ;;  %v6070_v55 = vpop.f32.mrb[253].mxu1  ;;  %v5960_v56 = vpop.f32.mrb[254].mxu0 }
 0x2f5   : > { %v6071_v16 = vadd.f32 %v6070_v55, %v6069_v42  ;;  %v6072_v26 = vpop.f32.mrb[254].mxu1  ;;  %v5961_v20 = vpop.f32.mrb[255].mxu0 }
 0x2f6   : > { %v4152_v44 = vadd.f32 %v4151_v27, %v4121_v54  ;;  %v3886_v46 = vadd.f32 %v5959_v22, %v7211_v2  ;;  %v5962_v47 = vadd.f32 %v5961_v20, %v5960_v56  ;;  %v6073_v3 = vpop.f32.mrb[255].mxu1 }
 0x2f7   : > { %v6074_v9 = vadd.f32 %v6073_v3, %v6072_v26 }
 0x2f8   : > { %v7397_v25 = vadd.f32 %v6071_v16, %v3886_v46  ;;  %v3889_v63 = vadd.f32 %v5962_v47, %v7214_v51 }
 0x2fa   : > { %v4082_v39 = vadd.f32 %v4081_v50, %v7397_v25  ;;  %v4122_v19 = vmul.f32 %v7397_v25, %v7397_v25  ;;  %v7403_v34 = vadd.f32 %v6074_v9, %v3889_v63 }
 0x2fc   : > { %v4153_v45 = vadd.f32 %v4152_v44, %v4122_v19  ;;  %v4083_v4 = vadd.f32 %v4082_v39, %v7403_v34  ;;  %v4123_v2 = vmul.f32 %v7403_v34, %v7403_v34 }
 0x2fe   : > { %v4084_v31 = vrot.slane %v4083_v4, 4  ;;  %v4154_v5 = vadd.f32 %v4153_v45, %v4123_v2 }
 0x300   : > { %v4085_v8 = vadd.f32 %v4084_v31, %v4083_v4  ;;  %v4155_v17 = vrot.slane %v4154_v5, 4 }
 0x302   : > { %v4086_v38 = vrot.slane %v4085_v8, 2  ;;  %v4156_v52 = vadd.f32 %v4155_v17, %v4154_v5 }
 0x304   : > { %v4087_v51 = vadd.f32 %v4086_v38, %v4085_v8  ;;  %v4157_v30 = vrot.slane %v4156_v52, 2 }
 0x306   : > { %v4088_v13 = vrot.slane %v4087_v51, 1  ;;  %v4158_v40 = vadd.f32 %v4157_v30, %v4156_v52 }
 0x308   : > { %v4089_v42 = vadd.f32 %v4088_v13, %v4087_v51  ;;  %v4159_v21 = vrot.slane %v4158_v40, 1 }
 0x30a   : > { %v7408_v27 = vmul.f32 0.00390625, %v4089_v42  ;;  %v4160_v50 = vadd.f32 %v4159_v21, %v4158_v40 }
 0x30c   : > { %v4161_v54 = vmul.f32 0.00390625, %v4160_v50  ;;  %v4162_v22 = vmul.f32 %v7408_v27, %v7408_v27  ;;  %v4182_v16 = vsub.f32 %v7318_v41, %v7408_v27  ;;  %v4183_v26 = vsub.f32 %v7325_v14, %v7408_v27 }
 0x30d   : > { %v4184_v20 = vsub.f32 %v7331_v24, %v7408_v27  ;;  %v4185_v44 = vsub.f32 %v7337_v62, %v7408_v27  ;;  %v4186_v46 = vsub.f32 %v7343_v33, %v7408_v27  ;;  %v4187_v47 = vsub.f32 %v7349_v10, %v7408_v27 }
 0x30e   : > { %v4163_v55 = vsub.f32 %v4161_v54, %v4162_v22  ;;  %v4188_v3 = vsub.f32 %v7355_v1, %v7408_v27  ;;  %v4189_v41 = vsub.f32 %v7361_v35, %v7408_v27  ;;  %v4190_v14 = vsub.f32 %v7367_v29, %v7408_v27 }
 0x30f   : > { %v4191_v24 = vsub.f32 %v7373_v57, %v7408_v27  ;;  %v4192_v62 = vsub.f32 %v7379_v7, %v7408_v27  ;;  %v4193_v33 = vsub.f32 %v7385_v28, %v7408_v27  ;;  %v4194_v10 = vsub.f32 %v7391_v53, %v7408_v27 }
 0x310   : > { %v4164_v56 = vmax.f32 %v4163_v55, 0.0  ;;  %v4195_v1 = vsub.f32 %v7397_v25, %v7408_v27  ;;  %v4196_v35 = vsub.f32 %v7403_v34, %v7408_v27  ;;  %v4165_v29 = vsub.f32 %v7217_v37, %v7408_v27 }
 0x311   : > { %v4166_v57 = vsub.f32 %v7220_v48, %v7408_v27  ;;  %v4167_v7 = vsub.f32 %v7223_v0, %v7408_v27  ;;  %v4168_v28 = vsub.f32 %v7226_v59, %v7408_v27  ;;  %v4169_v53 = vsub.f32 %v7229_v36, %v7408_v27 }
 0x312   : > { %v4197_v9 = vadd.f32 1e-05, %v4164_v56  ;;  %v4170_v25 = vsub.f32 %v7232_v6, %v7408_v27  ;;  %v4171_v63 = vsub.f32 %v7243_v15, %v7408_v27  ;;  %v4172_v37 = vsub.f32 %v7247_v61, %v7408_v27 }
 0x313   : > { %v4173_v48 = vsub.f32 %v7256_v32, %v7408_v27  ;;  %v4174_v0 = vsub.f32 %v7261_v12, %v7408_v27  ;;  %v4175_v59 = vsub.f32 %v7270_v18, %v7408_v27  ;;  %v4176_v36 = vsub.f32 %v7276_v49, %v7408_v27 }
 0x314   : > { %6211 = vrsqrt.f32 %v4197_v9  ;;  %v4177_v6 = vsub.f32 %v7285_v43, %v7408_v27  ;;  %v4178_v15 = vsub.f32 %v7289_v11, %v7408_v27  ;;  %v4179_v61 = vsub.f32 %v7298_v58, %v7408_v27 }
 0x315   : > { %v4180_v32 = vsub.f32 %v7303_v60, %v7408_v27  ;;  %v4181_v12 = vsub.f32 %v7312_v23, %v7408_v27 }
 0x31e   : > { %v6212_v39 = vpop.eup %6211 }
 0x31f   : > { %v4199_v18 = vmul.f32 %v6212_v39, %v4165_v29  ;;  %v4200_v19 = vmul.f32 %v6212_v39, %v4166_v57  ;;  %v4201_v34 = vmul.f32 %v6212_v39, %v4167_v7  ;;  %v4202_v49 = vmul.f32 %v6212_v39, %v4168_v28  ;;  %v5015_v57 = vld [vmem:[%s7739_s2] ss:$0 sm:$0xff] }
 0x320   : > { %v4203_v45 = vmul.f32 %v6212_v39, %v4169_v53  ;;  %v4204_v4 = vmul.f32 %v6212_v39, %v4170_v25  ;;  %v4205_v43 = vmul.f32 %v6212_v39, %v4171_v63  ;;  %v4206_v2 = vmul.f32 %v6212_v39, %v4172_v37 }
 0x321   : > { %v4207_v31 = vmul.f32 %v6212_v39, %v4173_v48  ;;  %v4208_v5 = vmul.f32 %v6212_v39, %v4174_v0  ;;  %v4209_v11 = vmul.f32 %v6212_v39, %v4175_v59  ;;  %v4210_v8 = vmul.f32 %v6212_v39, %v4176_v36  ;;  %v5016_v36 = vld [vmem:[%s7740_s3] ss:$0 sm:$0xff] }
 0x322   : > { %v4211_v17 = vmul.f32 %v6212_v39, %v4177_v6  ;;  %v4212_v58 = vmul.f32 %v6212_v39, %v4178_v15  ;;  %v4213_v38 = vmul.f32 %v6212_v39, %v4179_v61  ;;  %v4214_v52 = vmul.f32 %v6212_v39, %v4180_v32 }
 0x323   : > { %v4215_v60 = vmul.f32 %v6212_v39, %v4181_v12  ;;  %v4216_v51 = vmul.f32 %v6212_v39, %v4182_v16  ;;  %v4217_v30 = vmul.f32 %v6212_v39, %v4183_v26  ;;  %v4218_v23 = vmul.f32 %v6212_v39, %v4184_v20 }
 0x324   : > { %v4219_v13 = vmul.f32 %v6212_v39, %v4185_v44  ;;  %v4220_v40 = vmul.f32 %v6212_v39, %v4186_v46  ;;  %v4221_v42 = vmul.f32 %v6212_v39, %v4187_v47  ;;  %v4222_v21 = vmul.f32 %v6212_v39, %v4188_v3 }
 0x325   : > { %v4223_v27 = vmul.f32 %v6212_v39, %v4189_v41  ;;  %v4224_v50 = vmul.f32 %v6212_v39, %v4190_v14  ;;  %v4225_v54 = vmul.f32 %v6212_v39, %v4191_v24  ;;  %v4226_v22 = vmul.f32 %v6212_v39, %v4192_v62 }
 0x326   : > { %v4227_v55 = vmul.f32 %v6212_v39, %v4193_v33  ;;  %v4228_v56 = vmul.f32 %v6212_v39, %v4194_v10  ;;  %v4229_v9 = vmul.f32 %v6212_v39, %v4195_v1  ;;  %v4230_v29 = vmul.f32 %v6212_v39, %v4196_v35 }
 0x327   : > { %v4238_v7 = vmul.f32 %v5015_v57, %v4199_v18  ;;  %v4239_v16 = vmul.f32 %v5015_v57, %v4200_v19  ;;  %v4240_v26 = vmul.f32 %v5015_v57, %v4201_v34  ;;  %v4241_v20 = vmul.f32 %v5015_v57, %v4202_v49 }
 0x328   : > { %v4242_v44 = vmul.f32 %v5015_v57, %v4203_v45  ;;  %v4243_v46 = vmul.f32 %v5015_v57, %v4204_v4  ;;  %v4244_v47 = vmul.f32 %v5015_v57, %v4205_v43  ;;  %v4245_v3 = vmul.f32 %v5015_v57, %v4206_v2 }
 0x329   : > { %v4246_v41 = vmul.f32 %v5015_v57, %v4207_v31  ;;  %v4247_v14 = vmul.f32 %v5015_v57, %v4208_v5  ;;  %v4248_v24 = vmul.f32 %v5015_v57, %v4209_v11  ;;  %v4249_v62 = vmul.f32 %v5015_v57, %v4210_v8 }
 0x32a   : > { %v4250_v33 = vmul.f32 %v5015_v57, %v4211_v17  ;;  %v4251_v10 = vmul.f32 %v5015_v57, %v4212_v58  ;;  %v4252_v1 = vmul.f32 %v5015_v57, %v4213_v38  ;;  %v4253_v35 = vmul.f32 %v5015_v57, %v4214_v52 }
 0x32b   : > { %v4254_v28 = vmul.f32 %v5015_v57, %v4215_v60  ;;  %v4255_v53 = vmul.f32 %v5015_v57, %v4216_v51  ;;  %v4256_v25 = vmul.f32 %v5015_v57, %v4217_v30  ;;  %v4257_v63 = vmul.f32 %v5015_v57, %v4218_v23 }
 0x32c   : > { %v4258_v37 = vmul.f32 %v5015_v57, %v4219_v13  ;;  %v4259_v48 = vmul.f32 %v5015_v57, %v4220_v40  ;;  %v4260_v0 = vmul.f32 %v5015_v57, %v4221_v42  ;;  %v4261_v59 = vmul.f32 %v5015_v57, %v4222_v21 }
 0x32d   : > { %v4262_v6 = vmul.f32 %v5015_v57, %v4223_v27  ;;  %v4263_v39 = vmul.f32 %v5015_v57, %v4224_v50  ;;  %v4264_v15 = vmul.f32 %v5015_v57, %v4225_v54  ;;  %v4265_v61 = vmul.f32 %v5015_v57, %v4226_v22 }
 0x32e   : > { %v4266_v32 = vmul.f32 %v5015_v57, %v4227_v55  ;;  %v4267_v12 = vmul.f32 %v5015_v57, %v4228_v56  ;;  %v4268_v18 = vmul.f32 %v5015_v57, %v4229_v9  ;;  %v4269_v19 = vmul.f32 %v5015_v57, %v4230_v29 }
 0x32f   : > { %v7482_v34 = vadd.f32 %v5016_v36, %v4238_v7  ;;  %v7484_v49 = vadd.f32 %v5016_v36, %v4239_v16  ;;  %v7486_v45 = vadd.f32 %v5016_v36, %v4240_v26  ;;  %v7488_v4 = vadd.f32 %v5016_v36, %v4241_v20 }
 0x330   : > { %v7490_v43 = vadd.f32 %v5016_v36, %v4242_v44  ;;  %v7492_v2 = vadd.f32 %v5016_v36, %v4243_v46  ;;  %v7494_v31 = vadd.f32 %v5016_v36, %v4244_v47  ;;  %v7496_v5 = vadd.f32 %v5016_v36, %v4245_v3 }
 0x331   : > { %v7498_v11 = vadd.f32 %v5016_v36, %v4246_v41  ;;  %v7500_v8 = vadd.f32 %v5016_v36, %v4247_v14  ;;  %v7502_v17 = vadd.f32 %v5016_v36, %v4248_v24  ;;  %v7504_v58 = vadd.f32 %v5016_v36, %v4249_v62 }
 0x332   : > { %v7506_v38 = vadd.f32 %v5016_v36, %v4250_v33  ;;  %v7508_v52 = vadd.f32 %v5016_v36, %v4251_v10  ;;  %v7510_v60 = vadd.f32 %v5016_v36, %v4252_v1  ;;  %v7512_v51 = vadd.f32 %v5016_v36, %v4253_v35 }
 0x333   : > { %v7514_v30 = vadd.f32 %v5016_v36, %v4254_v28  ;;  %v7516_v23 = vadd.f32 %v5016_v36, %v4255_v53  ;;  %v7518_v13 = vadd.f32 %v5016_v36, %v4256_v25  ;;  %v7520_v40 = vadd.f32 %v5016_v36, %v4257_v63 }
 0x334   : > { %v7522_v42 = vadd.f32 %v5016_v36, %v4258_v37  ;;  %v7524_v21 = vadd.f32 %v5016_v36, %v4259_v48  ;;  %v7526_v27 = vadd.f32 %v5016_v36, %v4260_v0  ;;  %v7528_v50 = vadd.f32 %v5016_v36, %v4261_v59 }
 0x335   : > { %v7530_v54 = vadd.f32 %v5016_v36, %v4262_v6  ;;  %v7532_v22 = vadd.f32 %v5016_v36, %v4263_v39  ;;  %v7534_v55 = vadd.f32 %v5016_v36, %v4264_v15  ;;  %v7536_v56 = vadd.f32 %v5016_v36, %v4265_v61 }
 0x336   : > { %v7538_v9 = vadd.f32 %v5016_v36, %v4266_v32  ;;  %v7540_v29 = vadd.f32 %v5016_v36, %v4267_v12  ;;  %vm4309_vm0 = vcmp.ge.f32.partialorder %v7482_v34, 0.0  ;;  %vm4310_vm1 = vcmp.ge.f32.partialorder %v7484_v49, 0.0 }
 0x337   : > { %vm4311_vm2 = vcmp.ge.f32.partialorder %v7486_v45, 0.0  ;;  %vm4312_vm3 = vcmp.ge.f32.partialorder %v7488_v4, 0.0  ;;  %vm4313_vm4 = vcmp.ge.f32.partialorder %v7490_v43, 0.0  ;;  %vm4314_vm5 = vcmp.ge.f32.partialorder %v7492_v2, 0.0 }
 0x338   : > { %vm4315_vm6 = vcmp.ge.f32.partialorder %v7494_v31, 0.0  ;;  %vm4316_vm7 = vcmp.ge.f32.partialorder %v7496_v5, 0.0  ;;  %vm4317_vm8 = vcmp.ge.f32.partialorder %v7498_v11, 0.0  ;;  %v7552_v57 = vadd.f32 %v5016_v36, %v4268_v18 }
 0x339   : > { %v4341_v7 = vmul.f32 0.2, %v7482_v34  ;;  %v4342_v16 = vmul.f32 0.2, %v7484_v49  ;;  %v4343_v26 = vmul.f32 0.2, %v7486_v45  ;;  %v7561_v20 = vadd.f32 %v5016_v36, %v4269_v19 }
 0x33a   : > { %vm4324_vm15 = vcmp.ge.f32.partialorder %v7512_v51, 0.0  ;;  %vm4325_vm10 = vcmp.ge.f32.partialorder %v7514_v30, 0.0  ;;  %v4344_v44 = vmul.f32 0.2, %v7488_v4  ;;  %v4345_v46 = vmul.f32 0.2, %v7490_v43 }
 0x33b   : > { %v4346_v47 = vmul.f32 0.2, %v7492_v2  ;;  %vm4330_vm14 = vcmp.ge.f32.partialorder %v7524_v21, 0.0  ;;  %v4347_v3 = vmul.f32 0.2, %v7494_v31  ;;  %v7580_v24 = vsel %vm4309_vm0, %v7482_v34, %v4341_v7 }
 0x33c   : > { %v4348_v41 = vmul.f32 0.2, %v7496_v5  ;;  %v4349_v14 = vmul.f32 0.2, %v7498_v11  ;;  %vm4334_vm9 = vcmp.ge.f32.partialorder %v7532_v22, 0.0  ;;  %v7592_v1 = vsel %vm4310_vm1, %v7484_v49, %v4342_v16 }
 0x33d   : > { %v4350_v62 = vmul.f32 0.2, %v7500_v8  ;;  %v4351_v33 = vmul.f32 0.2, %v7502_v17  ;;  %v4352_v10 = vmul.f32 0.2, %v7504_v58  ;;  %v4375_v25 = vsel %vm4311_vm2, %v7486_v45, %v4343_v26 }
 0x33e   : > { %vm4336_vm11 = vcmp.ge.f32.partialorder %v7536_v56, 0.0  ;;  %vm4337_vm13 = vcmp.ge.f32.partialorder %v7538_v9, 0.0  ;;  %vm4338_vm12 = vcmp.ge.f32.partialorder %v7540_v29, 0.0  ;;  %v4353_v35 = vmul.f32 0.2, %v7506_v38 }
 0x33f   : > { %v4354_v28 = vmul.f32 0.2, %v7508_v52  ;;  %v4355_v53 = vmul.f32 0.2, %v7510_v60  ;;  %vm4339_vm1 = vcmp.ge.f32.partialorder %v7552_v57, 0.0  ;;  %vm4340_vm0 = vcmp.ge.f32.partialorder %v7561_v20, 0.0 }
 0x340   : > { %v4356_v63 = vmul.f32 0.2, %v7512_v51  ;;  %v4357_v37 = vmul.f32 0.2, %v7514_v30  ;;  %v4358_v48 = vmul.f32 0.2, %v7516_v23  ;;  %v4376_v0 = vsel %vm4312_vm3, %v7488_v4, %v4344_v44 }
 0x341   : > { %v4359_v59 = vmul.f32 0.2, %v7518_v13  ;;  %v4360_v36 = vmul.f32 0.2, %v7520_v40  ;;  %v4361_v6 = vmul.f32 0.2, %v7522_v42  ;;  %v4377_v39 = vsel %vm4313_vm4, %v7490_v43, %v4345_v46 }
 0x342   : > { %v4362_v15 = vmul.f32 0.2, %v7524_v21  ;;  %v4363_v61 = vmul.f32 0.2, %v7526_v27  ;;  %v4364_v32 = vmul.f32 0.2, %v7528_v50  ;;  %v4378_v12 = vsel %vm4314_vm5, %v7492_v2, %v4346_v47 }
 0x343   : > { %v4365_v18 = vmul.f32 0.2, %v7530_v54  ;;  %v4366_v19 = vmul.f32 0.2, %v7532_v22  ;;  %v4367_v34 = vmul.f32 0.2, %v7534_v55  ;;  %v4379_v49 = vsel %vm4315_vm6, %v7494_v31, %v4347_v3 }
 0x344   : > { %v4368_v45 = vmul.f32 0.2, %v7536_v56  ;;  %v4369_v4 = vmul.f32 0.2, %v7538_v9  ;;  %v4370_v43 = vmul.f32 0.2, %v7540_v29  ;;  %v4380_v2 = vsel %vm4316_vm7, %v7496_v5, %v4348_v41 }
 0x345   : > { %v4371_v7 = vmul.f32 0.2, %v7552_v57  ;;  %v4372_v16 = vmul.f32 0.2, %v7561_v20  ;;  %v4381_v26 = vsel %vm4317_vm8, %v7498_v11, %v4349_v14  ;;  %vm7742_vm2 = vcmp.ge.f32.partialorder %v7500_v8, 0.0 }
 0x346   : > { %v4382_v31 = vsel %vm7742_vm2, %v7500_v8, %v4350_v62  ;;  %vm7743_vm3 = vcmp.ge.f32.partialorder %v7502_v17, 0.0  ;;  %vm7744_vm4 = vcmp.ge.f32.partialorder %v7504_v58, 0.0  ;;  %vm7745_vm5 = vcmp.ge.f32.partialorder %v7506_v38, 0.0 }
 0x347   : > { %v4383_v44 = vsel %vm7743_vm3, %v7502_v17, %v4351_v33  ;;  %v4384_v5 = vsel %vm7744_vm4, %v7504_v58, %v4352_v10  ;;  %v4385_v46 = vsel %vm7745_vm5, %v7506_v38, %v4353_v35  ;;  %vm7746_vm6 = vcmp.ge.f32.partialorder %v7508_v52, 0.0 }
 0x348   : > { %v4386_v11 = vsel %vm7746_vm6, %v7508_v52, %v4354_v28  ;;  %vm7747_vm7 = vcmp.ge.f32.partialorder %v7510_v60, 0.0  ;;  %v4388_v17 = vsel %vm4324_vm15, %v7512_v51, %v4356_v63  ;;  %v4389_v58 = vsel %vm4325_vm10, %v7514_v30, %v4357_v37 }
 0x349   : > { %v4387_v8 = vsel %vm7747_vm7, %v7510_v60, %v4355_v53  ;;  %vm7748_vm8 = vcmp.ge.f32.partialorder %v7516_v23, 0.0  ;;  %vm7749_vm2 = vcmp.ge.f32.partialorder %v7518_v13, 0.0  ;;  %vm7750_vm3 = vcmp.ge.f32.partialorder %v7520_v40, 0.0 }
 0x34a   : > { %v4390_v38 = vsel %vm7748_vm8, %v7516_v23, %v4358_v48  ;;  %v4391_v52 = vsel %vm7749_vm2, %v7518_v13, %v4359_v59  ;;  %v4392_v60 = vsel %vm7750_vm3, %v7520_v40, %v4360_v36  ;;  %vm7751_vm4 = vcmp.ge.f32.partialorder %v7522_v42, 0.0 }
 0x34b   : > { %v4393_v51 = vsel %vm7751_vm4, %v7522_v42, %v4361_v6  ;;  %v4394_v30 = vsel %vm4330_vm14, %v7524_v21, %v4362_v15  ;;  %vm7752_vm10 = vcmp.ge.f32.partialorder %v7526_v27, 0.0  ;;  %vm7753_vm15 = vcmp.ge.f32.partialorder %v7528_v50, 0.0 }
 0x34c   : > { %v4395_v23 = vsel %vm7752_vm10, %v7526_v27, %v4363_v61  ;;  %v4396_v13 = vsel %vm7753_vm15, %v7528_v50, %v4364_v32  ;;  %vm7754_vm5 = vcmp.ge.f32.partialorder %v7530_v54, 0.0  ;;  %v4398_v42 = vsel %vm4334_vm9, %v7532_v22, %v4366_v19 }
 0x34d   : > { %v4397_v40 = vsel %vm7754_vm5, %v7530_v54, %v4365_v18  ;;  %vm7755_vm14 = vcmp.ge.f32.partialorder %v7534_v55, 0.0  ;;  %v4400_v27 = vsel %vm4336_vm11, %v7536_v56, %v4368_v45  ;;  %v4401_v50 = vsel %vm4337_vm13, %v7538_v9, %v4369_v4 }
 0x34e   : > { %v4399_v21 = vsel %vm7755_vm14, %v7534_v55, %v4367_v34  ;;  %v4402_v54 = vsel %vm4338_vm12, %v7540_v29, %v4370_v43  ;;  %v4403_v22 = vsel %vm4339_vm1, %v7552_v57, %v4371_v7  ;;  %v4404_v55 = vsel %vm4340_vm0, %v7561_v20, %v4372_v16 }
 0x34f   : > { %v5087_v56 = vpack.c.bf16 %v7592_v1, %v7580_v24  ;;  %v5092_v9 = vpack.c.bf16 %v4376_v0, %v4375_v25  ;;  %v5097_v47 = vpack.c.bf16 %v4378_v12, %v4377_v39  ;;  %v5102_v3 = vpack.c.bf16 %v4380_v2, %v4379_v49 }
 0x350   : > { %v5107_v41 = vpack.c.bf16 %v4382_v31, %v4381_v26  ;;  %v5112_v29 = vpack.c.bf16 %v4384_v5, %v4383_v44  ;;  %v5117_v57 = vpack.c.bf16 %v4386_v11, %v4385_v46  ;;  %v5122_v14 = vpack.c.bf16 %v4388_v17, %v4387_v8 }
 0x351   : > { %5088 = vst [vmem:[%s7696_s27] sm:$0xff] %v5087_v56   ;;  %5164 = vst [vmem:[%s7696_s27 + $0x8] sm:$0xff] %v5092_v9   ;;  %v5127_v62 = vpack.c.bf16 %v4390_v38, %v4389_v58  ;;  %v5132_v20 = vpack.c.bf16 %v4392_v60, %v4391_v52  ;;  %v5137_v24 = vpack.c.bf16 %v4394_v30, %v4393_v51 }
 0x352   : > { %5165 = vst [vmem:[%s7696_s27 + $0x10] sm:$0xff] %v5097_v47   ;;  %5166 = vst [vmem:[%s7696_s27 + $0x18] sm:$0xff] %v5102_v3   ;;  %v5142_v33 = vpack.c.bf16 %v4396_v13, %v4395_v23  ;;  %v5147_v10 = vpack.c.bf16 %v4398_v42, %v4397_v40  ;;  %v5152_v1 = vpack.c.bf16 %v4400_v27, %v4399_v21 }
 0x353   : > { %5167 = vst [vmem:[%s7696_s27 + $0x20] sm:$0xff] %v5107_v41   ;;  %5168 = vst [vmem:[%s7696_s27 + $0x28] sm:$0xff] %v5112_v29   ;;  %v5157_v35 = vpack.c.bf16 %v4402_v54, %v4401_v50  ;;  %v5162_v28 = vpack.c.bf16 %v4404_v55, %v4403_v22 }
 0x354   : > { %5169 = vst [vmem:[%s7696_s27 + $0x30] sm:$0xff] %v5117_v57   ;;  %5170 = vst [vmem:[%s7696_s27 + $0x38] sm:$0xff] %v5122_v14  }
 0x355   : > { %5171 = vst [vmem:[%s7696_s27 + $0x40] sm:$0xff] %v5127_v62   ;;  %5172 = vst [vmem:[%s7696_s27 + $0x48] sm:$0xff] %v5132_v20  }
 0x356   : > { %5173 = vst [vmem:[%s7696_s27 + $0x50] sm:$0xff] %v5137_v24   ;;  %5174 = vst [vmem:[%s7696_s27 + $0x58] sm:$0xff] %v5142_v33  }
 0x357   : > { %5175 = vst [vmem:[%s7696_s27 + $0x60] sm:$0xff] %v5147_v10   ;;  %5176 = vst [vmem:[%s7696_s27 + $0x68] sm:$0xff] %v5152_v1  }
 0x358   : > { %5177 = vst [vmem:[%s7696_s27 + $0x70] sm:$0xff] %v5157_v35   ;;  %5178 = vst [vmem:[%s7696_s27 + $0x78] sm:$0xff] %v5162_v28  }
 0x359 PF: > { %s14_s15 = sadd.s32 1, %s6219_s15  }
 0x35a   : > { %p11_p4 = scmp.ge.s32.totalorder %s14_s15, 4  }
 0x35c   :  { %13 = sbr.rel (!%p11_p4) target bundleno = 1 (0x1), region = 66 }

// kernel: discriminator_forward.7
= control target key start
LH: loop header
LB: loop body
LE: loop exit
PB: predicated region body
PF: predicated region fallthrough
CT: control target
= control target key end

     0   :  { %s3078_s15 = smov 0   ;;  %s3631_s0 = inlined_call_operand.vmem [shape: bf16[128,2048], index: 0, kind: input, shape index: {}]   ;;  %s3632_s1 = inlined_call_operand.vmem [shape: bf16[2048,128], index: 1, kind: input, shape index: {}]   ;;  %s3633_s2 = inlined_call_operand.vmem [shape: f32[1,128], index: 2, kind: input, shape index: {}]   ;;  %s3634_s3 = inlined_call_operand.vmem [shape: f32[1,128], index: 3, kind: input, shape index: {}]   ;;  %s3635_s4 = inlined_call_operand.vmem [shape: bf16[128,128], index: 4, kind: output, shape index: {}]  }
   0x1 LB: > { %s2341_s16 = sadd.s32 4294967295, %s3051_s15   ;;  %p2345_p0 = scmp.ge.s32.totalorder %s3051_s15, 1  ;;  %s3051_s15 = sphi %s3078_s15, %s14_s15  }
   0x2   : > { %p164_p1 = scmp.lt.s32.totalorder %s3051_s15, 3 }
   0x4   : > { %p165_p2 = pnand %p2345_p0, %p164_p1 }
   0x5   : > { %v2915_v0 = vld [vmem:[%s3632_s1 + $0x40] sm:$0xff] (!%p165_p2)   ;;  %v2919_v4 = vld [vmem:[%s3632_s1 + $0x48] sm:$0xff] (!%p165_p2)   ;;  %v2923_v8 = vld [vmem:[%s3632_s1 + $0x50] sm:$0xff] (!%p165_p2)   ;;  %s2346_s25 = sshll.u32 (!%p165_p2), %s2341_s16, 3 }
   0x6   : > { %168 = sbr.rel (%p165_p2) target bundleno = 431 (0x1af), region = 36  ;;  %v2916_v1 = vld [vmem:[%s3632_s1 + $0xc0] sm:$0xff] (!%p165_p2)   ;;  %2587 = vmatprep.subr.bf16.mxu0 (!%p165_p2), %v2915_v0  ;;  %v2920_v5 = vld [vmem:[%s3632_s1 + $0xc8] sm:$0xff] (!%p165_p2)   ;;  %v2924_v9 = vld [vmem:[%s3632_s1 + $0xd0] sm:$0xff] (!%p165_p2)   ;;  %p192_p3 = scmp.lt.s32.totalorder (!%p165_p2), %s2346_s25, 15 }
   0x7   : > { %v2917_v2 = vld [vmem:[%s3632_s1] sm:$0xff] (!%p165_p2)   ;;  %2627 = vmatprep.subr.bf16.mxu1 (!%p165_p2), %v2916_v1  ;;  %v2921_v6 = vld [vmem:[%s3632_s1 + $0x8] sm:$0xff] (!%p165_p2)   ;;  %v2925_v10 = vld [vmem:[%s3632_s1 + $0x10] sm:$0xff] (!%p165_p2)  }
   0x8   : > { %v2918_v3 = vld [vmem:[%s3632_s1 + $0x80] sm:$0xff] (!%p165_p2)   ;;  %2588 = vmatpush3.bf16.msra.mxu0 (!%p165_p2), %v2917_v2  ;;  %v2922_v7 = vld [vmem:[%s3632_s1 + $0x88] sm:$0xff] (!%p165_p2)   ;;  %v2926_v11 = vld [vmem:[%s3632_s1 + $0x90] sm:$0xff] (!%p165_p2)  }
   0x9   : > { %2628 = vmatpush3.bf16.msra.mxu1 (!%p165_p2), %v2918_v3  ;;  %2589 = vmatprep.subr.bf16.mxu0 (!%p165_p2), %v2919_v4  ;;  %v2927_v12 = vld [vmem:[%s3632_s1 + $0x58] sm:$0xff] (!%p165_p2)   ;;  %v2931_v16 = vld [vmem:[%s3632_s1 + $0x60] sm:$0xff] (!%p165_p2)   ;;  %v2935_v20 = vld [vmem:[%s3632_s1 + $0x68] sm:$0xff] (!%p165_p2)  }
   0xa   : > { %2629 = vmatprep.subr.bf16.mxu1 (!%p165_p2), %v2920_v5  ;;  %v2928_v13 = vld [vmem:[%s3632_s1 + $0xd8] sm:$0xff] (!%p165_p2)   ;;  %v2932_v17 = vld [vmem:[%s3632_s1 + $0xe0] sm:$0xff] (!%p165_p2)   ;;  %v2936_v21 = vld [vmem:[%s3632_s1 + $0xe8] sm:$0xff] (!%p165_p2)  }
   0xb   : > { %v2929_v14 = vld [vmem:[%s3632_s1 + $0x18] sm:$0xff] (!%p165_p2)   ;;  %v2933_v18 = vld [vmem:[%s3632_s1 + $0x20] sm:$0xff] (!%p165_p2)   ;;  %v2937_v22 = vld [vmem:[%s3632_s1 + $0x28] sm:$0xff] (!%p165_p2)  }
   0xc   : > { %2590 = vmatpush3.bf16.msra.mxu0 (!%p165_p2), %v2921_v6  ;;  %v2930_v15 = vld [vmem:[%s3632_s1 + $0x98] sm:$0xff] (!%p165_p2)   ;;  %v2934_v19 = vld [vmem:[%s3632_s1 + $0xa0] sm:$0xff] (!%p165_p2)   ;;  %v2938_v23 = vld [vmem:[%s3632_s1 + $0xa8] sm:$0xff] (!%p165_p2)  }
   0xd   : > { %2630 = vmatpush3.bf16.msra.mxu1 %v2922_v7  ;;  %2591 = vmatprep.subr.bf16.mxu0 %v2923_v8  ;;  %s3637_s25 = smov (!%p192_p3, %s2346_s25), 15  ;;  %v2939_v24 = vld [vmem:[%s3632_s1 + $0x70] sm:$0xff]   ;;  %v2943_v28 = vld [vmem:[%s3632_s1 + $0x78] sm:$0xff]   ;;  %v2947_v40 = vld [vmem:[%s3632_s1 + $0x140] sm:$0xff]  }
   0xe   : > { %2631 = vmatprep.subr.bf16.mxu1 %v2924_v9  ;;  %v2940_v25 = vld [vmem:[%s3632_s1 + $0xf0] sm:$0xff]   ;;  %s2555_s23 = sshll.u32 %s3637_s25, 6  ;;  %v2944_v29 = vld [vmem:[%s3632_s1 + $0xf8] sm:$0xff]   ;;  %v2948_v41 = vld [vmem:[%s3632_s1 + $0x1c0] sm:$0xff]   ;;  %s2350_s24 = sshll.u32 %s3637_s25, 2 }
   0xf   : > { %v2941_v26 = vld [vmem:[%s3632_s1 + $0x30] sm:$0xff]   ;;  %s3184_s7 = scalar_lea.vmem %s3631_s0, %s2555_s23  ;;  %v2945_v30 = vld [vmem:[%s3632_s1 + $0x38] sm:$0xff]   ;;  %v2949_v42 = vld [vmem:[%s3632_s1 + $0x100] sm:$0xff]   ;;  %s202_s25 = scalar_lea.vmem %s3635_s4, %s2350_s24 }
  0x10   : > { %2592 = vmatpush3.bf16.msra.mxu0 %v2925_v10  ;;  %v2942_v27 = vld [vmem:[%s3632_s1 + $0xb0] sm:$0xff]   ;;  %v2946_v31 = vld [vmem:[%s3632_s1 + $0xb8] sm:$0xff]   ;;  %v205_v32 = vld [vmem:[%s3184_s7] sm:$0xff] }
  0x11   : > { %2632 = vmatpush3.bf16.msra.mxu1 %v2926_v11  ;;  %2593 = vmatprep.subr.bf16.mxu0 %v2927_v12  ;;  %v213_v33 = vld [vmem:[%s3184_s7 + $0x40] sm:$0xff]  ;;  %v206_v34 = vld [vmem:[%s3184_s7 + $0x8] sm:$0xff]  ;;  %v2955_v56 = vld [vmem:[%s3632_s1 + $0x150] sm:$0xff]  }
  0x12   : > { %2633 = vmatprep.subr.bf16.mxu1 %v2928_v13  ;;  %v2351_v35 = vcombine.low %v205_v32, %v213_v33  ;;  %v2352_v36 = vcombine.high %v205_v32, %v213_v33  ;;  %v214_v37 = vld [vmem:[%s3184_s7 + $0x48] sm:$0xff]  ;;  %v2950_v43 = vld [vmem:[%s3632_s1 + $0x180] sm:$0xff]   ;;  %v2956_v57 = vld [vmem:[%s3632_s1 + $0x1d0] sm:$0xff]  }
  0x13   : > { %v2353_v38 = vcombine.low %v206_v34, %v214_v37  ;;  %v2354_v39 = vcombine.high %v206_v34, %v214_v37  ;;  %v2951_v44 = vld [vmem:[%s3632_s1 + $0x148] sm:$0xff]   ;;  %v221_v48 = vld [vmem:[%s3184_s7 + $0x80] sm:$0xff]  ;;  %v2957_v58 = vld [vmem:[%s3632_s1 + $0x110] sm:$0xff]  }
  0x14   : > { %2594 = vmatpush3.bf16.msra.mxu0 %v2929_v14  ;;  %1645 = vmatprep.mubr.bf16.mxu0 %v2352_v36  ;;  %v2952_v45 = vld [vmem:[%s3632_s1 + $0x1c8] sm:$0xff]   ;;  %v229_v49 = vld [vmem:[%s3184_s7 + $0xc0] sm:$0xff]  ;;  %v2958_v59 = vld [vmem:[%s3632_s1 + $0x190] sm:$0xff]  }
  0x15   : > { %2634 = vmatpush3.bf16.msra.mxu1 %v2930_v15  ;;  %2595 = vmatprep.subr.bf16.mxu0 %v2931_v16  ;;  %v2953_v46 = vld [vmem:[%s3632_s1 + $0x108] sm:$0xff]   ;;  %v2368_v50 = vcombine.high %v221_v48, %v229_v49  ;;  %v2367_v53 = vcombine.low %v221_v48, %v229_v49  ;;  %v2959_v60 = vld [vmem:[%s3632_s1 + $0x158] sm:$0xff]   ;;  %v237_v0 = vld [vmem:[%s3184_s7 + $0x100] sm:$0xff] }
  0x16   : > { %2635 = vmatprep.subr.bf16.mxu1 %v2932_v17  ;;  %1710 = vmatprep.mubr.bf16.mxu1 %v2354_v39  ;;  %v2954_v47 = vld [vmem:[%s3632_s1 + $0x188] sm:$0xff]   ;;  %v2960_v61 = vld [vmem:[%s3632_s1 + $0x1d8] sm:$0xff]   ;;  %v245_v1 = vld [vmem:[%s3184_s7 + $0x140] sm:$0xff] }
  0x17   : > { %v222_v51 = vld [vmem:[%s3184_s7 + $0x88] sm:$0xff]  ;;  %v2961_v62 = vld [vmem:[%s3632_s1 + $0x118] sm:$0xff]   ;;  %v2384_v4 = vcombine.high %v237_v0, %v245_v1  ;;  %v2383_v6 = vcombine.low %v237_v0, %v245_v1  ;;  %v2963_v8 = vld [vmem:[%s3632_s1 + $0x160] sm:$0xff]  }
  0x18   : > { %2596 = vmatpush3.bf16.msra.mxu0 %v2933_v18  ;;  %v230_v52 = vld [vmem:[%s3184_s7 + $0xc8] sm:$0xff]  ;;  %v2962_v63 = vld [vmem:[%s3632_s1 + $0x198] sm:$0xff]   ;;  %v2964_v9 = vld [vmem:[%s3632_s1 + $0x1e0] sm:$0xff]  }
  0x19   : > { %2636 = vmatpush3.bf16.msra.mxu1 %v2934_v19  ;;  %2597 = vmatprep.subr.bf16.mxu0 %v2935_v20  ;;  %v2370_v54 = vcombine.high %v222_v51, %v230_v52  ;;  %v2369_v55 = vcombine.low %v222_v51, %v230_v52  ;;  %v238_v2 = vld [vmem:[%s3184_s7 + $0x108] sm:$0xff]  ;;  %v2965_v10 = vld [vmem:[%s3632_s1 + $0x120] sm:$0xff]   ;;  %v207_v32 = vld [vmem:[%s3184_s7 + $0x10] sm:$0xff] }
  0x1a   : > { %2637 = vmatprep.subr.bf16.mxu1 %v2936_v21  ;;  %v246_v3 = vld [vmem:[%s3184_s7 + $0x148] sm:$0xff]  ;;  %v2966_v11 = vld [vmem:[%s3632_s1 + $0x1a0] sm:$0xff]   ;;  %v215_v33 = vld [vmem:[%s3184_s7 + $0x50] sm:$0xff] }
  0x1b   : > { %v2386_v5 = vcombine.high %v238_v2, %v246_v3  ;;  %v2385_v7 = vcombine.low %v238_v2, %v246_v3  ;;  %v2967_v12 = vld [vmem:[%s3632_s1 + $0x168] sm:$0xff]   ;;  %v253_v16 = vld [vmem:[%s3184_s7 + $0x180] sm:$0xff]  ;;  %v2355_v34 = vcombine.low %v207_v32, %v215_v33  ;;  %v208_v36 = vld [vmem:[%s3184_s7 + $0x18] sm:$0xff] }
  0x1c   : > { %2598 = vmatpush3.bf16.msra.mxu0 %v2937_v22  ;;  %v2968_v13 = vld [vmem:[%s3632_s1 + $0x1e8] sm:$0xff]   ;;  %v261_v17 = vld [vmem:[%s3184_s7 + $0x1c0] sm:$0xff]  ;;  %v216_v37 = vld [vmem:[%s3184_s7 + $0x58] sm:$0xff] }
  0x1d   : > { %2638 = vmatpush3.bf16.msra.mxu1 %v2938_v23  ;;  %2599 = vmatprep.subr.bf16.mxu0 %v2939_v24  ;;  %v2969_v14 = vld [vmem:[%s3632_s1 + $0x128] sm:$0xff]   ;;  %v2400_v19 = vcombine.high %v253_v16, %v261_v17  ;;  %v2399_v21 = vcombine.low %v253_v16, %v261_v17  ;;  %v2971_v24 = vld [vmem:[%s3632_s1 + $0x170] sm:$0xff]   ;;  %v2358_v39 = vcombine.high %v208_v36, %v216_v37  ;;  %v232_v51 = vld [vmem:[%s3184_s7 + $0xd8] sm:$0xff] }
  0x1e   : > { %2639 = vmatprep.subr.bf16.mxu1 %v2940_v25  ;;  %v2970_v15 = vld [vmem:[%s3632_s1 + $0x1a8] sm:$0xff]   ;;  %v2972_v25 = vld [vmem:[%s3632_s1 + $0x1f0] sm:$0xff]   ;;  %v240_v2 = vld [vmem:[%s3184_s7 + $0x118] sm:$0xff] }
  0x1f   : > { %v254_v18 = vld [vmem:[%s3184_s7 + $0x188] sm:$0xff]  ;;  %v223_v48 = vld [vmem:[%s3184_s7 + $0x90] sm:$0xff] }
  0x20   : > { %2600 = vmatpush3.bf16.msra.mxu0 %v2941_v26  ;;  %v262_v20 = vld [vmem:[%s3184_s7 + $0x1c8] sm:$0xff]  ;;  %v2973_v26 = vld [vmem:[%s3632_s1 + $0x130] sm:$0xff]  }
  0x21   : > { %2640 = vmatpush3.bf16.msra.mxu1 %v2942_v27  ;;  %2601 = vmatprep.subr.bf16.mxu0 %v2943_v28  ;;  %v2402_v22 = vcombine.high %v254_v18, %v262_v20  ;;  %v2401_v23 = vcombine.low %v254_v18, %v262_v20  ;;  %v2974_v27 = vld [vmem:[%s3632_s1 + $0x1b0] sm:$0xff]   ;;  %v2975_v28 = vld [vmem:[%s3632_s1 + $0x178] sm:$0xff]  }
  0x22   : > { %2641 = vmatprep.subr.bf16.mxu1 %v2944_v29  ;;  %v2976_v29 = vld [vmem:[%s3632_s1 + $0x1f8] sm:$0xff]   ;;  %v231_v49 = vld [vmem:[%s3184_s7 + $0xd0] sm:$0xff] }
  0x23   : > { %v2372_v52 = vcombine.high %v223_v48, %v231_v49  ;;  %v239_v0 = vld [vmem:[%s3184_s7 + $0x110] sm:$0xff]  ;;  %v264_v20 = vld [vmem:[%s3184_s7 + $0x1d8] sm:$0xff] }
  0x24   : > { %2602 = vmatpush3.bf16.msra.mxu0 %v2945_v30  ;;  %v2977_v30 = vld [vmem:[%s3632_s1 + $0x138] sm:$0xff]   ;;  %v247_v1 = vld [vmem:[%s3184_s7 + $0x150] sm:$0xff] }
  0x25   : > { %2642 = vmatpush3.bf16.msra.mxu1 %v2946_v31  ;;  %2667 = vmatprep.subr.bf16.mxu0 %v2947_v40  ;;  %v2978_v31 = vld [vmem:[%s3632_s1 + $0x1b8] sm:$0xff]   ;;  %v2979_v40 = vld [vmem:[%s3632_s1 + $0x240] sm:$0xff]   ;;  %v2388_v3 = vcombine.high %v239_v0, %v247_v1  ;;  %v255_v16 = vld [vmem:[%s3184_s7 + $0x190] sm:$0xff] }
  0x26   : > { %2707 = vmatprep.subr.bf16.mxu1 %v2948_v41  ;;  %v2980_v41 = vld [vmem:[%s3632_s1 + $0x2c0] sm:$0xff]   ;;  %v263_v17 = vld [vmem:[%s3184_s7 + $0x1d0] sm:$0xff] }
  0x27   : > { %1646 = vmatmul.mubr.bf16.vlgmr.msra.gmra.mrb[0].mxu0 %v2351_v35  ;;  %v2356_v35 = vcombine.high %v207_v32, %v215_v33  ;;  %v2404_v18 = vcombine.high %v255_v16, %v263_v17  ;;  %v209_v32 = vld [vmem:[%s3184_s7 + $0x20] sm:$0xff] }
  0x28   : > { %1711 = vmatmul.mubr.bf16.vlgmr.msra.gmra.mrb[0].mxu1 %v2353_v38  ;;  %2668 = vmatpush3.bf16.msra.mxu0 %v2949_v42  ;;  %v2357_v38 = vcombine.low %v208_v36, %v216_v37  ;;  %v2981_v42 = vld [vmem:[%s3632_s1 + $0x200] sm:$0xff]  }
  0x29   : > { %2708 = vmatpush3.bf16.msra.mxu1 %v2950_v43  ;;  %2669 = vmatprep.subr.bf16.mxu0 %v2951_v44  ;;  %v2982_v43 = vld [vmem:[%s3632_s1 + $0x280] sm:$0xff]   ;;  %v2983_v44 = vld [vmem:[%s3632_s1 + $0x248] sm:$0xff]  }
  0x2a   : > { %2709 = vmatprep.subr.bf16.mxu1 %v2952_v45  ;;  %1653 = vmatprep.mubr.bf16.mxu0 %v2368_v50  ;;  %v2984_v45 = vld [vmem:[%s3632_s1 + $0x2c8] sm:$0xff]   ;;  %v224_v50 = vld [vmem:[%s3184_s7 + $0x98] sm:$0xff]  ;;  %v217_v33 = vld [vmem:[%s3184_s7 + $0x60] sm:$0xff] }
  0x2b   : > { %1718 = vmatprep.mubr.bf16.mxu1 %v2370_v54  ;;  %v2371_v54 = vcombine.low %v223_v48, %v231_v49  ;;  %v2359_v36 = vcombine.low %v209_v32, %v217_v33  ;;  %v2360_v37 = vcombine.high %v209_v32, %v217_v33  ;;  %v225_v48 = vld [vmem:[%s3184_s7 + $0xa0] sm:$0xff]  ;;  %v211_v32 = vld [vmem:[%s3184_s7 + $0x30] sm:$0xff] }
  0x2c   : > { %2670 = vmatpush3.bf16.msra.mxu0 %v2953_v46  ;;  %v2985_v46 = vld [vmem:[%s3632_s1 + $0x208] sm:$0xff]   ;;  %v233_v49 = vld [vmem:[%s3184_s7 + $0xe0] sm:$0xff]  ;;  %v219_v33 = vld [vmem:[%s3184_s7 + $0x70] sm:$0xff] }
  0x2d   : > { %2710 = vmatpush3.bf16.msra.mxu1 %v2954_v47  ;;  %2671 = vmatprep.subr.bf16.mxu0 %v2955_v56  ;;  %v2986_v47 = vld [vmem:[%s3632_s1 + $0x288] sm:$0xff]   ;;  %v2987_v56 = vld [vmem:[%s3632_s1 + $0x250] sm:$0xff]  }
  0x2e   : > { %2711 = vmatprep.subr.bf16.mxu1 %v2956_v57  ;;  %v2988_v57 = vld [vmem:[%s3632_s1 + $0x2d0] sm:$0xff]  }
  0x2f   : > { %1654 = vmatmul.mubr.bf16.gmra.mrb[4].mxu0 %v2367_v53  ;;  %v2374_v53 = vcombine.high %v224_v50, %v232_v51 }
  0x30   : > { %1719 = vmatmul.mubr.bf16.gmra.mrb[4].mxu1 %v2369_v55  ;;  %2672 = vmatpush3.bf16.msra.mxu0 %v2957_v58  ;;  %v2373_v55 = vcombine.low %v224_v50, %v232_v51  ;;  %v2989_v58 = vld [vmem:[%s3632_s1 + $0x210] sm:$0xff]   ;;  %v226_v50 = vld [vmem:[%s3184_s7 + $0xa8] sm:$0xff]  ;;  %v2376_v51 = vcombine.high %v225_v48, %v233_v49 }
  0x31   : > { %2712 = vmatpush3.bf16.msra.mxu1 %v2958_v59  ;;  %2673 = vmatprep.subr.bf16.mxu0 %v2959_v60  ;;  %v2990_v59 = vld [vmem:[%s3632_s1 + $0x290] sm:$0xff]   ;;  %v2991_v60 = vld [vmem:[%s3632_s1 + $0x258] sm:$0xff]  }
  0x32   : > { %2713 = vmatprep.subr.bf16.mxu1 %v2960_v61  ;;  %1661 = vmatprep.mubr.bf16.mxu0 %v2384_v4  ;;  %v2992_v61 = vld [vmem:[%s3632_s1 + $0x2d8] sm:$0xff]  }
  0x33   : > { %1726 = vmatprep.mubr.bf16.mxu1 %v2386_v5  ;;  %v248_v4 = vld [vmem:[%s3184_s7 + $0x158] sm:$0xff]  ;;  %v2387_v5 = vcombine.low %v239_v0, %v247_v1  ;;  %v241_v0 = vld [vmem:[%s3184_s7 + $0x120] sm:$0xff] }
  0x34   : > { %2674 = vmatpush3.bf16.msra.mxu0 %v2961_v62  ;;  %v2993_v62 = vld [vmem:[%s3632_s1 + $0x218] sm:$0xff]   ;;  %v249_v1 = vld [vmem:[%s3184_s7 + $0x160] sm:$0xff] }
  0x35   : > { %2714 = vmatpush3.bf16.msra.mxu1 %v2962_v63  ;;  %2675 = vmatprep.subr.bf16.mxu0 %v2963_v8  ;;  %v2994_v63 = vld [vmem:[%s3632_s1 + $0x298] sm:$0xff]   ;;  %v2995_v8 = vld [vmem:[%s3632_s1 + $0x260] sm:$0xff]  }
  0x36   : > { %2715 = vmatprep.subr.bf16.mxu1 %v2964_v9  ;;  %v2996_v9 = vld [vmem:[%s3632_s1 + $0x2e0] sm:$0xff]  }
  0x37   : > { %1662 = vmatmul.mubr.bf16.gmra.mrb[8].mxu0 %v2383_v6  ;;  %v2390_v6 = vcombine.high %v240_v2, %v248_v4 }
  0x38   : > { %1727 = vmatmul.mubr.bf16.gmra.mrb[8].mxu1 %v2385_v7  ;;  %2676 = vmatpush3.bf16.msra.mxu0 %v2965_v10  ;;  %v2389_v7 = vcombine.low %v240_v2, %v248_v4  ;;  %v2997_v10 = vld [vmem:[%s3632_s1 + $0x220] sm:$0xff]   ;;  %v2392_v2 = vcombine.high %v241_v0, %v249_v1  ;;  %v250_v4 = vld [vmem:[%s3184_s7 + $0x168] sm:$0xff] }
  0x39   : > { %2716 = vmatpush3.bf16.msra.mxu1 %v2966_v11  ;;  %2677 = vmatprep.subr.bf16.mxu0 %v2967_v12  ;;  %v2998_v11 = vld [vmem:[%s3632_s1 + $0x2a0] sm:$0xff]   ;;  %v2999_v12 = vld [vmem:[%s3632_s1 + $0x268] sm:$0xff]  }
  0x3a   : > { %2717 = vmatprep.subr.bf16.mxu1 %v2968_v13  ;;  %1669 = vmatprep.mubr.bf16.mxu0 %v2400_v19  ;;  %v3000_v13 = vld [vmem:[%s3632_s1 + $0x2e8] sm:$0xff]   ;;  %v256_v19 = vld [vmem:[%s3184_s7 + $0x198] sm:$0xff] }
  0x3b   : > { %1734 = vmatprep.mubr.bf16.mxu1 %v2402_v22  ;;  %v2406_v22 = vcombine.high %v256_v19, %v264_v20 }
  0x3c   : > { %2678 = vmatpush3.bf16.msra.mxu0 %v2969_v14  ;;  %v3001_v14 = vld [vmem:[%s3632_s1 + $0x228] sm:$0xff]  }
  0x3d   : > { %2718 = vmatpush3.bf16.msra.mxu1 %v2970_v15  ;;  %2679 = vmatprep.subr.bf16.mxu0 %v2971_v24  ;;  %v3002_v15 = vld [vmem:[%s3632_s1 + $0x2a8] sm:$0xff]   ;;  %v3003_v24 = vld [vmem:[%s3632_s1 + $0x270] sm:$0xff]  }
  0x3e   : > { %2719 = vmatprep.subr.bf16.mxu1 %v2972_v25  ;;  %v3004_v25 = vld [vmem:[%s3632_s1 + $0x2f0] sm:$0xff]  }
  0x3f   : > { %1670 = vmatmul.mubr.bf16.gmra.mrb[12].mxu0 %v2399_v21  ;;  %v2403_v21 = vcombine.low %v255_v16, %v263_v17  ;;  %v257_v16 = vld [vmem:[%s3184_s7 + $0x1a0] sm:$0xff] }
  0x40   : > { %1735 = vmatmul.mubr.bf16.gmra.mrb[12].mxu1 %v2401_v23  ;;  %2680 = vmatpush3.bf16.msra.mxu0 %v2973_v26  ;;  %v2405_v23 = vcombine.low %v256_v19, %v264_v20  ;;  %v3005_v26 = vld [vmem:[%s3632_s1 + $0x230] sm:$0xff]   ;;  %v265_v17 = vld [vmem:[%s3184_s7 + $0x1e0] sm:$0xff]  ;;  %v266_v19 = vld [vmem:[%s3184_s7 + $0x1e8] sm:$0xff] }
  0x41   : > { %2720 = vmatpush3.bf16.msra.mxu1 %v2974_v27  ;;  %2681 = vmatprep.subr.bf16.mxu0 %v2975_v28  ;;  %v3006_v27 = vld [vmem:[%s3632_s1 + $0x2b0] sm:$0xff]   ;;  %v3007_v28 = vld [vmem:[%s3632_s1 + $0x278] sm:$0xff]   ;;  %v2408_v20 = vcombine.high %v257_v16, %v265_v17 }
  0x42   : > { %2721 = vmatprep.subr.bf16.mxu1 %v2976_v29  ;;  %1775 = vmatprep.mubr.bf16.mxu0 %v2356_v35  ;;  %v3008_v29 = vld [vmem:[%s3632_s1 + $0x2f8] sm:$0xff]   ;;  %v218_v35 = vld [vmem:[%s3184_s7 + $0x68] sm:$0xff] }
  0x43   : > { %1840 = vmatprep.mubr.bf16.mxu1 %v2358_v39 }
  0x44   : > { %2682 = vmatpush3.bf16.msra.mxu0 %v2977_v30  ;;  %v3009_v30 = vld [vmem:[%s3632_s1 + $0x238] sm:$0xff]  }
  0x45   : > { %2722 = vmatpush3.bf16.msra.mxu1 %v2978_v31  ;;  %2747 = vmatprep.subr.bf16.mxu0 %v2979_v40  ;;  %v3010_v31 = vld [vmem:[%s3632_s1 + $0x2b8] sm:$0xff]   ;;  %v3011_v40 = vld [vmem:[%s3632_s1 + $0x340] sm:$0xff]  }
  0x46   : > { %2787 = vmatprep.subr.bf16.mxu1 %v2980_v41  ;;  %v3012_v41 = vld [vmem:[%s3632_s1 + $0x3c0] sm:$0xff]  }
  0x47   : > { %1776 = vmatmul.mubr.bf16.vlgmr.msra.gmra.mrb[16].mxu0 %v2355_v34  ;;  %v210_v34 = vld [vmem:[%s3184_s7 + $0x28] sm:$0xff] }
  0x48   : > { %1841 = vmatmul.mubr.bf16.vlgmr.msra.gmra.mrb[16].mxu1 %v2357_v38  ;;  %2748 = vmatpush3.bf16.msra.mxu0 %v2981_v42  ;;  %v2361_v38 = vcombine.low %v210_v34, %v218_v35  ;;  %v2362_v39 = vcombine.high %v210_v34, %v218_v35  ;;  %v3013_v42 = vld [vmem:[%s3632_s1 + $0x300] sm:$0xff]   ;;  %v212_v34 = vld [vmem:[%s3184_s7 + $0x38] sm:$0xff]  ;;  %v2363_v35 = vcombine.low %v211_v32, %v219_v33 }
  0x49   : > { %2788 = vmatpush3.bf16.msra.mxu1 %v2982_v43  ;;  %2749 = vmatprep.subr.bf16.mxu0 %v2983_v44  ;;  %v3014_v43 = vld [vmem:[%s3632_s1 + $0x380] sm:$0xff]   ;;  %v3015_v44 = vld [vmem:[%s3632_s1 + $0x348] sm:$0xff]  }
  0x4a   : > { %2789 = vmatprep.subr.bf16.mxu1 %v2984_v45  ;;  %1783 = vmatprep.mubr.bf16.mxu0 %v2372_v52  ;;  %v3016_v45 = vld [vmem:[%s3632_s1 + $0x3c8] sm:$0xff]  }
  0x4b   : > { %1848 = vmatprep.mubr.bf16.mxu1 %v2374_v53  ;;  %v234_v52 = vld [vmem:[%s3184_s7 + $0xe8] sm:$0xff]  ;;  %v2375_v53 = vcombine.low %v225_v48, %v233_v49  ;;  %v244_v48 = vld [vmem:[%s3184_s7 + $0x138] sm:$0xff] }
  0x4c   : > { %2750 = vmatpush3.bf16.msra.mxu0 %v2985_v46  ;;  %v3017_v46 = vld [vmem:[%s3632_s1 + $0x308] sm:$0xff]   ;;  %v252_v49 = vld [vmem:[%s3184_s7 + $0x178] sm:$0xff] }
  0x4d   : > { %2790 = vmatpush3.bf16.msra.mxu1 %v2986_v47  ;;  %2751 = vmatprep.subr.bf16.mxu0 %v2987_v56  ;;  %v3018_v47 = vld [vmem:[%s3632_s1 + $0x388] sm:$0xff]   ;;  %v3019_v56 = vld [vmem:[%s3632_s1 + $0x350] sm:$0xff]  }
  0x4e   : > { %2791 = vmatprep.subr.bf16.mxu1 %v2988_v57  ;;  %v3020_v57 = vld [vmem:[%s3632_s1 + $0x3d0] sm:$0xff]  }
  0x4f   : > { %1784 = vmatmul.mubr.bf16.gmra.mrb[20].mxu0 %v2371_v54  ;;  %v2378_v54 = vcombine.high %v226_v50, %v234_v52 }
  0x50   : > { %1849 = vmatmul.mubr.bf16.gmra.mrb[20].mxu1 %v2373_v55  ;;  %2752 = vmatpush3.bf16.msra.mxu0 %v2989_v58  ;;  %v2377_v55 = vcombine.low %v226_v50, %v234_v52  ;;  %v3021_v58 = vld [vmem:[%s3632_s1 + $0x310] sm:$0xff]  }
  0x51   : > { %2792 = vmatpush3.bf16.msra.mxu1 %v2990_v59  ;;  %2753 = vmatprep.subr.bf16.mxu0 %v2991_v60  ;;  %v3022_v59 = vld [vmem:[%s3632_s1 + $0x390] sm:$0xff]   ;;  %v3023_v60 = vld [vmem:[%s3632_s1 + $0x358] sm:$0xff]  }
  0x52   : > { %2793 = vmatprep.subr.bf16.mxu1 %v2992_v61  ;;  %1791 = vmatprep.mubr.bf16.mxu0 %v2388_v3  ;;  %v3024_v61 = vld [vmem:[%s3632_s1 + $0x3d8] sm:$0xff]   ;;  %v242_v3 = vld [vmem:[%s3184_s7 + $0x128] sm:$0xff] }
  0x53   : > { %1856 = vmatprep.mubr.bf16.mxu1 %v2390_v6  ;;  %v2394_v6 = vcombine.high %v242_v3, %v250_v4 }
  0x54   : > { %2754 = vmatpush3.bf16.msra.mxu0 %v2993_v62  ;;  %v3025_v62 = vld [vmem:[%s3632_s1 + $0x318] sm:$0xff]  }
  0x55   : > { %2794 = vmatpush3.bf16.msra.mxu1 %v2994_v63  ;;  %2755 = vmatprep.subr.bf16.mxu0 %v2995_v8  ;;  %v3026_v63 = vld [vmem:[%s3632_s1 + $0x398] sm:$0xff]   ;;  %v3027_v8 = vld [vmem:[%s3632_s1 + $0x360] sm:$0xff]  }
  0x56   : > { %2795 = vmatprep.subr.bf16.mxu1 %v2996_v9  ;;  %v3028_v9 = vld [vmem:[%s3632_s1 + $0x3e0] sm:$0xff]  }
  0x57   : > { %1792 = vmatmul.mubr.bf16.gmra.mrb[24].mxu0 %v2387_v5  ;;  %v2391_v5 = vcombine.low %v241_v0, %v249_v1 }
  0x58   : > { %1857 = vmatmul.mubr.bf16.gmra.mrb[24].mxu1 %v2389_v7  ;;  %2756 = vmatpush3.bf16.msra.mxu0 %v2997_v10  ;;  %v2393_v7 = vcombine.low %v242_v3, %v250_v4  ;;  %v3029_v10 = vld [vmem:[%s3632_s1 + $0x320] sm:$0xff]  }
  0x59   : > { %2796 = vmatpush3.bf16.msra.mxu1 %v2998_v11  ;;  %2757 = vmatprep.subr.bf16.mxu0 %v2999_v12  ;;  %v3030_v11 = vld [vmem:[%s3632_s1 + $0x3a0] sm:$0xff]   ;;  %v3031_v12 = vld [vmem:[%s3632_s1 + $0x368] sm:$0xff]  }
  0x5a   : > { %2797 = vmatprep.subr.bf16.mxu1 %v3000_v13  ;;  %1799 = vmatprep.mubr.bf16.mxu0 %v2404_v18  ;;  %v3032_v13 = vld [vmem:[%s3632_s1 + $0x3e8] sm:$0xff]  }
  0x5b   : > { %1864 = vmatprep.mubr.bf16.mxu1 %v2406_v22  ;;  %v258_v18 = vld [vmem:[%s3184_s7 + $0x1a8] sm:$0xff]  ;;  %v2407_v22 = vcombine.low %v257_v16, %v265_v17 }
  0x5c   : > { %2758 = vmatpush3.bf16.msra.mxu0 %v3001_v14  ;;  %v3033_v14 = vld [vmem:[%s3632_s1 + $0x328] sm:$0xff]  }
  0x5d   : > { %2798 = vmatpush3.bf16.msra.mxu1 %v3002_v15  ;;  %2759 = vmatprep.subr.bf16.mxu0 %v3003_v24  ;;  %v3034_v15 = vld [vmem:[%s3632_s1 + $0x3a8] sm:$0xff]   ;;  %v3035_v24 = vld [vmem:[%s3632_s1 + $0x370] sm:$0xff]  }
  0x5e   : > { %2799 = vmatprep.subr.bf16.mxu1 %v3004_v25  ;;  %v3036_v25 = vld [vmem:[%s3632_s1 + $0x3f0] sm:$0xff]  }
  0x5f   : > { %1800 = vmatmul.mubr.bf16.gmra.mrb[28].mxu0 %v2403_v21  ;;  %v2410_v21 = vcombine.high %v258_v18, %v266_v19 }
  0x60   : > { %1865 = vmatmul.mubr.bf16.gmra.mrb[28].mxu1 %v2405_v23  ;;  %2760 = vmatpush3.bf16.msra.mxu0 %v3005_v26  ;;  %v2409_v23 = vcombine.low %v258_v18, %v266_v19  ;;  %v3037_v26 = vld [vmem:[%s3632_s1 + $0x330] sm:$0xff]  }
  0x61   : > { %2800 = vmatpush3.bf16.msra.mxu1 %v3006_v27  ;;  %2761 = vmatprep.subr.bf16.mxu0 %v3007_v28  ;;  %v3038_v27 = vld [vmem:[%s3632_s1 + $0x3b0] sm:$0xff]   ;;  %v3039_v28 = vld [vmem:[%s3632_s1 + $0x378] sm:$0xff]  }
  0x62   : > { %2801 = vmatprep.subr.bf16.mxu1 %v3008_v29  ;;  %1905 = vmatprep.mubr.bf16.mxu0 %v2360_v37  ;;  %v3040_v29 = vld [vmem:[%s3632_s1 + $0x3f8] sm:$0xff]  }
  0x63   : > { %1970 = vmatprep.mubr.bf16.mxu1 %v2362_v39  ;;  %v220_v37 = vld [vmem:[%s3184_s7 + $0x78] sm:$0xff]  ;;  %v235_v39 = vld [vmem:[%s3184_s7 + $0xf0] sm:$0xff] }
  0x64   : > { %2762 = vmatpush3.bf16.msra.mxu0 %v3009_v30  ;;  %v3041_v30 = vld [vmem:[%s3632_s1 + $0x338] sm:$0xff]  }
  0x65   : > { %2802 = vmatpush3.bf16.msra.mxu1 %v3010_v31  ;;  %2827 = vmatprep.subr.bf16.mxu0 %v3011_v40  ;;  %v3042_v31 = vld [vmem:[%s3632_s1 + $0x3b8] sm:$0xff]   ;;  %v2365_v40 = vcombine.low %v212_v34, %v220_v37 }
  0x66   : > { %2867 = vmatprep.subr.bf16.mxu1 %v3012_v41  ;;  %v2366_v41 = vcombine.high %v212_v34, %v220_v37 }
  0x67   : > { %1906 = vmatmul.mubr.bf16.vlgmr.msra.gmra.mrb[32].mxu0 %v2359_v36  ;;  %v2364_v36 = vcombine.high %v211_v32, %v219_v33 }
  0x68   : > { %1971 = vmatmul.mubr.bf16.vlgmr.msra.gmra.mrb[32].mxu1 %v2361_v38  ;;  %2828 = vmatpush3.bf16.msra.mxu0 %v3013_v42  ;;  %v227_v38 = vld [vmem:[%s3184_s7 + $0xb0] sm:$0xff] }
  0x69   : > { %2868 = vmatpush3.bf16.msra.mxu1 %v3014_v43  ;;  %2829 = vmatprep.subr.bf16.mxu0 %v3015_v44  ;;  %v2380_v42 = vcombine.high %v227_v38, %v235_v39  ;;  %v228_v43 = vld [vmem:[%s3184_s7 + $0xb8] sm:$0xff]  ;;  %v2379_v50 = vcombine.low %v227_v38, %v235_v39 }
  0x6a   : > { %2869 = vmatprep.subr.bf16.mxu1 %v3016_v45  ;;  %1913 = vmatprep.mubr.bf16.mxu0 %v2376_v51  ;;  %v236_v44 = vld [vmem:[%s3184_s7 + $0xf8] sm:$0xff] }
  0x6b   : > { %1978 = vmatprep.mubr.bf16.mxu1 %v2378_v54  ;;  %v2382_v45 = vcombine.high %v228_v43, %v236_v44  ;;  %v2381_v51 = vcombine.low %v228_v43, %v236_v44  ;;  %v259_v54 = vld [vmem:[%s3184_s7 + $0x1b0] sm:$0xff] }
  0x6c   : > { %2830 = vmatpush3.bf16.msra.mxu0 %v3017_v46  ;;  %v243_v46 = vld [vmem:[%s3184_s7 + $0x130] sm:$0xff] }
  0x6d   : > { %2870 = vmatpush3.bf16.msra.mxu1 %v3018_v47  ;;  %2831 = vmatprep.subr.bf16.mxu0 %v3019_v56  ;;  %v251_v47 = vld [vmem:[%s3184_s7 + $0x170] sm:$0xff]  ;;  %v260_v56 = vld [vmem:[%s3184_s7 + $0x1b8] sm:$0xff] }
  0x6e   : > { %2871 = vmatprep.subr.bf16.mxu1 %v3020_v57  ;;  %v2396_v52 = vcombine.high %v243_v46, %v251_v47  ;;  %v268_v57 = vld [vmem:[%s3184_s7 + $0x1f8] sm:$0xff] }
  0x6f   : > { %1914 = vmatmul.mubr.bf16.gmra.mrb[36].mxu0 %v2375_v53  ;;  %v2398_v53 = vcombine.high %v244_v48, %v252_v49 }
  0x70   : > { %1979 = vmatmul.mubr.bf16.gmra.mrb[36].mxu1 %v2377_v55  ;;  %2832 = vmatpush3.bf16.msra.mxu0 %v3021_v58  ;;  %v267_v55 = vld [vmem:[%s3184_s7 + $0x1f0] sm:$0xff]  ;;  %v2395_v58 = vcombine.low %v243_v46, %v251_v47 }
  0x71   : > { %2872 = vmatpush3.bf16.msra.mxu1 %v3022_v59  ;;  %2833 = vmatprep.subr.bf16.mxu0 %v3023_v60  ;;  %v2397_v59 = vcombine.low %v244_v48, %v252_v49  ;;  %v2412_v60 = vcombine.high %v259_v54, %v267_v55 }
  0x72   : > { %2873 = vmatprep.subr.bf16.mxu1 %v3024_v61  ;;  %1921 = vmatprep.mubr.bf16.mxu0 %v2392_v2  ;;  %v2414_v61 = vcombine.high %v260_v56, %v268_v57 }
  0x73   : > { %1986 = vmatprep.mubr.bf16.mxu1 %v2394_v6 }
  0x74   : > { %2834 = vmatpush3.bf16.msra.mxu0 %v3025_v62  ;;  %v2411_v62 = vcombine.low %v259_v54, %v267_v55 }
  0x75   : > { %2874 = vmatpush3.bf16.msra.mxu1 %v3026_v63  ;;  %2835 = vmatprep.subr.bf16.mxu0 %v3027_v8  ;;  %v2413_v63 = vcombine.low %v260_v56, %v268_v57 }
  0x76   : > { %2875 = vmatprep.subr.bf16.mxu1 %v3028_v9 }
  0x77   : > { %1922 = vmatmul.mubr.bf16.gmra.mrb[40].mxu0 %v2391_v5 }
  0x78   : > { %1987 = vmatmul.mubr.bf16.gmra.mrb[40].mxu1 %v2393_v7  ;;  %2836 = vmatpush3.bf16.msra.mxu0 %v3029_v10 }
  0x79   : > { %2876 = vmatpush3.bf16.msra.mxu1 %v3030_v11  ;;  %2837 = vmatprep.subr.bf16.mxu0 %v3031_v12 }
  0x7a   : > { %2877 = vmatprep.subr.bf16.mxu1 %v3032_v13  ;;  %1929 = vmatprep.mubr.bf16.mxu0 %v2408_v20 }
  0x7b   : > { %1994 = vmatprep.mubr.bf16.mxu1 %v2410_v21 }
  0x7c   : > { %2838 = vmatpush3.bf16.msra.mxu0 %v3033_v14 }
  0x7d   : > { %2878 = vmatpush3.bf16.msra.mxu1 %v3034_v15  ;;  %2839 = vmatprep.subr.bf16.mxu0 %v3035_v24 }
  0x7e   : > { %2879 = vmatprep.subr.bf16.mxu1 %v3036_v25 }
  0x7f   : > { %1930 = vmatmul.mubr.bf16.gmra.mrb[44].mxu0 %v2407_v22 }
  0x80   : > { %1995 = vmatmul.mubr.bf16.gmra.mrb[44].mxu1 %v2409_v23  ;;  %2840 = vmatpush3.bf16.msra.mxu0 %v3037_v26 }
  0x81   : > { %2880 = vmatpush3.bf16.msra.mxu1 %v3038_v27  ;;  %2841 = vmatprep.subr.bf16.mxu0 %v3039_v28 }
  0x82   : > { %2881 = vmatprep.subr.bf16.mxu1 %v3040_v29  ;;  %2035 = vmatprep.mubr.bf16.mxu0 %v2364_v36 }
  0x83   : > { %2100 = vmatprep.mubr.bf16.mxu1 %v2366_v41 }
  0x84   : > { %2842 = vmatpush3.bf16.msra.mxu0 %v3041_v30 }
  0x85   : > { %2882 = vmatpush3.bf16.msra.mxu1 %v3042_v31 }
  0x87   : > { %2036 = vmatmul.mubr.bf16.vlgmr.msra.gmra.mrb[48].mxu0 %v2363_v35 }
  0x88   : > { %2101 = vmatmul.mubr.bf16.vlgmr.msra.gmra.mrb[48].mxu1 %v2365_v40  ;;  %2043 = vmatprep.mubr.bf16.mxu0 %v2380_v42 }
  0x89   : > { %2108 = vmatprep.mubr.bf16.mxu1 %v2382_v45 }
  0x8f   : > { %2044 = vmatmul.mubr.bf16.gmra.mrb[52].mxu0 %v2379_v50 }
  0x90   : > { %2109 = vmatmul.mubr.bf16.gmra.mrb[52].mxu1 %v2381_v51  ;;  %2051 = vmatprep.mubr.bf16.mxu0 %v2396_v52 }
  0x91   : > { %2116 = vmatprep.mubr.bf16.mxu1 %v2398_v53 }
  0x97   : > { %2052 = vmatmul.mubr.bf16.gmra.mrb[56].mxu0 %v2395_v58 }
  0x98   : > { %2117 = vmatmul.mubr.bf16.gmra.mrb[56].mxu1 %v2397_v59  ;;  %2059 = vmatprep.mubr.bf16.mxu0 %v2412_v60 }
  0x99   : > { %2124 = vmatprep.mubr.bf16.mxu1 %v2414_v61 }
  0x9f   : > { %2060 = vmatmul.mubr.bf16.gmra.mrb[60].mxu0 %v2411_v62 }
  0xa0   : > { %2125 = vmatmul.mubr.bf16.gmra.mrb[60].mxu1 %v2413_v63 }
  0xfa   : > { %v2603_v0 = vpop.f32.mrb[0].mxu0 }
  0xfb   : > { %v2643_v1 = vpop.f32.mrb[0].mxu1  ;;  %v2604_v2 = vpop.f32.mrb[1].mxu0 }
  0xfc   : > { %v2605_v3 = vadd.f32 %v2604_v2, %v2603_v0  ;;  %v2644_v4 = vpop.f32.mrb[1].mxu1  ;;  %v2606_v5 = vpop.f32.mrb[2].mxu0 }
  0xfd   : > { %v2645_v6 = vadd.f32 %v2644_v4, %v2643_v1  ;;  %v2646_v7 = vpop.f32.mrb[2].mxu1  ;;  %v2607_v8 = vpop.f32.mrb[3].mxu0 }
  0xfe   : > { %v2608_v9 = vadd.f32 %v2607_v8, %v2606_v5  ;;  %v2647_v10 = vpop.f32.mrb[3].mxu1 }
  0xff   : > { %v1713_v11 = vadd.f32 %v2645_v6, %v2605_v3  ;;  %v2648_v12 = vadd.f32 %v2647_v10, %v2646_v7 }
 0x101   : > { %v1716_v13 = vadd.f32 %v2648_v12, %v2608_v9 }
 0x102   : > { %v2609_v14 = vpop.f32.mrb[4].mxu0 }
 0x103   : > { %v2649_v15 = vpop.f32.mrb[4].mxu1  ;;  %v2610_v16 = vpop.f32.mrb[5].mxu0 }
 0x104   : > { %v2611_v17 = vadd.f32 %v2610_v16, %v2609_v14  ;;  %v2650_v18 = vpop.f32.mrb[5].mxu1  ;;  %v2612_v19 = vpop.f32.mrb[6].mxu0 }
 0x105   : > { %v2651_v20 = vadd.f32 %v2650_v18, %v2649_v15  ;;  %v2652_v21 = vpop.f32.mrb[6].mxu1  ;;  %v2613_v22 = vpop.f32.mrb[7].mxu0 }
 0x106   : > { %v2614_v23 = vadd.f32 %v2613_v22, %v2612_v19  ;;  %v2653_v24 = vpop.f32.mrb[7].mxu1 }
 0x107   : > { %v1721_v25 = vadd.f32 %v2651_v20, %v2611_v17  ;;  %v2654_v26 = vadd.f32 %v2653_v24, %v2652_v21 }
 0x109   : > { %v1724_v27 = vadd.f32 %v2654_v26, %v2614_v23 }
 0x10a   : > { %v2615_v28 = vpop.f32.mrb[8].mxu0 }
 0x10b   : > { %v2655_v29 = vpop.f32.mrb[8].mxu1  ;;  %v2616_v30 = vpop.f32.mrb[9].mxu0 }
 0x10c   : > { %v2656_v31 = vpop.f32.mrb[9].mxu1  ;;  %v2617_v32 = vadd.f32 %v2616_v30, %v2615_v28  ;;  %v2618_v34 = vpop.f32.mrb[10].mxu0 }
 0x10d   : > { %v2657_v33 = vadd.f32 %v2656_v31, %v2655_v29  ;;  %v2658_v35 = vpop.f32.mrb[10].mxu1  ;;  %v2619_v36 = vpop.f32.mrb[11].mxu0 }
 0x10e   : > { %v2659_v37 = vpop.f32.mrb[11].mxu1  ;;  %v2620_v39 = vadd.f32 %v2619_v36, %v2618_v34 }
 0x10f   : > { %v1729_v38 = vadd.f32 %v2657_v33, %v2617_v32  ;;  %v2660_v40 = vadd.f32 %v2659_v37, %v2658_v35 }
 0x111   : > { %v1732_v41 = vadd.f32 %v2660_v40, %v2620_v39 }
 0x112   : > { %v2621_v42 = vpop.f32.mrb[12].mxu0 }
 0x113   : > { %v2661_v43 = vpop.f32.mrb[12].mxu1  ;;  %v2622_v44 = vpop.f32.mrb[13].mxu0 }
 0x114   : > { %v2623_v45 = vadd.f32 %v2622_v44, %v2621_v42  ;;  %v2662_v46 = vpop.f32.mrb[13].mxu1  ;;  %v2624_v47 = vpop.f32.mrb[14].mxu0 }
 0x115   : > { %v2663_v48 = vadd.f32 %v2662_v46, %v2661_v43  ;;  %v2664_v49 = vpop.f32.mrb[14].mxu1  ;;  %v2625_v50 = vpop.f32.mrb[15].mxu0 }
 0x116   : > { %v2626_v51 = vadd.f32 %v2625_v50, %v2624_v47  ;;  %v2665_v52 = vpop.f32.mrb[15].mxu1 }
 0x117   : > { %v1737_v53 = vadd.f32 %v2663_v48, %v2623_v45  ;;  %v2666_v54 = vadd.f32 %v2665_v52, %v2664_v49 }
 0x119   : > { %v3544_v55 = vadd.f32 %v2666_v54, %v2626_v51 }
 0x11a   : > { %v2683_v56 = vpop.f32.mrb[16].mxu0 }
 0x11b   : > { %v2723_v57 = vpop.f32.mrb[16].mxu1  ;;  %v2684_v58 = vpop.f32.mrb[17].mxu0 }
 0x11c   : > { %v2685_v59 = vadd.f32 %v2684_v58, %v2683_v56  ;;  %v2724_v60 = vpop.f32.mrb[17].mxu1  ;;  %v2686_v61 = vpop.f32.mrb[18].mxu0 }
 0x11d   : > { %v2725_v62 = vadd.f32 %v2724_v60, %v2723_v57  ;;  %v2726_v63 = vpop.f32.mrb[18].mxu1  ;;  %v2687_v0 = vpop.f32.mrb[19].mxu0 }
 0x11e   : > { %v1778_v1 = vadd.f32 %v2685_v59, %v1713_v11  ;;  %v2688_v2 = vadd.f32 %v2687_v0, %v2686_v61  ;;  %v2727_v3 = vpop.f32.mrb[19].mxu1 }
 0x11f   : > { %v2728_v4 = vadd.f32 %v2727_v3, %v2726_v63 }
 0x120   : > { %v1843_v5 = vadd.f32 %v2725_v62, %v1778_v1  ;;  %v1781_v6 = vadd.f32 %v2688_v2, %v1716_v13 }
 0x122   : > { %v3546_v7 = vadd.f32 %v2728_v4, %v1781_v6  ;;  %v2689_v8 = vpop.f32.mrb[20].mxu0 }
 0x123   : > { %v2729_v9 = vpop.f32.mrb[20].mxu1  ;;  %v2690_v10 = vpop.f32.mrb[21].mxu0 }
 0x124   : > { %v2730_v12 = vpop.f32.mrb[21].mxu1  ;;  %v2691_v14 = vadd.f32 %v2690_v10, %v2689_v8  ;;  %v2692_v16 = vpop.f32.mrb[22].mxu0 }
 0x125   : > { %v2731_v15 = vadd.f32 %v2730_v12, %v2729_v9  ;;  %v2732_v17 = vpop.f32.mrb[22].mxu1  ;;  %v2693_v18 = vpop.f32.mrb[23].mxu0 }
 0x126   : > { %v2733_v19 = vpop.f32.mrb[23].mxu1  ;;  %v1786_v20 = vadd.f32 %v2691_v14, %v1721_v25  ;;  %v2694_v21 = vadd.f32 %v2693_v18, %v2692_v16 }
 0x127   : > { %v2734_v11 = vadd.f32 %v2733_v19, %v2732_v17 }
 0x128   : > { %v1851_v22 = vadd.f32 %v2731_v15, %v1786_v20  ;;  %v1789_v23 = vadd.f32 %v2694_v21, %v1724_v27 }
 0x12a   : > { %v3548_v24 = vadd.f32 %v2734_v11, %v1789_v23  ;;  %v2695_v13 = vpop.f32.mrb[24].mxu0 }
 0x12b   : > { %v2735_v26 = vpop.f32.mrb[24].mxu1  ;;  %v2696_v28 = vpop.f32.mrb[25].mxu0 }
 0x12c   : > { %v2697_v29 = vadd.f32 %v2696_v28, %v2695_v13  ;;  %v2736_v30 = vpop.f32.mrb[25].mxu1  ;;  %v2698_v31 = vpop.f32.mrb[26].mxu0 }
 0x12d   : > { %v2737_v32 = vadd.f32 %v2736_v30, %v2735_v26  ;;  %v2738_v33 = vpop.f32.mrb[26].mxu1  ;;  %v2699_v34 = vpop.f32.mrb[27].mxu0 }
 0x12e   : > { %v1794_v35 = vadd.f32 %v2697_v29, %v1729_v38  ;;  %v2700_v36 = vadd.f32 %v2699_v34, %v2698_v31  ;;  %v2739_v37 = vpop.f32.mrb[27].mxu1 }
 0x12f   : > { %v2740_v39 = vadd.f32 %v2739_v37, %v2738_v33 }
 0x130   : > { %v1859_v25 = vadd.f32 %v2737_v32, %v1794_v35  ;;  %v1797_v40 = vadd.f32 %v2700_v36, %v1732_v41 }
 0x132   : > { %v3550_v42 = vadd.f32 %v2740_v39, %v1797_v40  ;;  %v2701_v27 = vpop.f32.mrb[28].mxu0 }
 0x133   : > { %v2741_v43 = vpop.f32.mrb[28].mxu1  ;;  %v2702_v44 = vpop.f32.mrb[29].mxu0 }
 0x134   : > { %v2703_v45 = vadd.f32 %v2702_v44, %v2701_v27  ;;  %v2742_v46 = vpop.f32.mrb[29].mxu1  ;;  %v2704_v47 = vpop.f32.mrb[30].mxu0 }
 0x135   : > { %v2743_v48 = vadd.f32 %v2742_v46, %v2741_v43  ;;  %v2744_v49 = vpop.f32.mrb[30].mxu1  ;;  %v2705_v50 = vpop.f32.mrb[31].mxu0 }
 0x136   : > { %v1802_v51 = vadd.f32 %v2703_v45, %v1737_v53  ;;  %v2706_v52 = vadd.f32 %v2705_v50, %v2704_v47  ;;  %v2745_v54 = vpop.f32.mrb[31].mxu1 }
 0x137   : > { %v2746_v38 = vadd.f32 %v2745_v54, %v2744_v49 }
 0x138   : > { %v1867_v56 = vadd.f32 %v2743_v48, %v1802_v51  ;;  %v1805_v57 = vadd.f32 %v2706_v52, %v3544_v55 }
 0x13a   : > { %v3553_v58 = vadd.f32 %v2746_v38, %v1805_v57  ;;  %v2763_v41 = vpop.f32.mrb[32].mxu0 }
 0x13b   : > { %v2803_v59 = vpop.f32.mrb[32].mxu1  ;;  %v2764_v60 = vpop.f32.mrb[33].mxu0 }
 0x13c   : > { %v2804_v61 = vpop.f32.mrb[33].mxu1  ;;  %v2765_v62 = vadd.f32 %v2764_v60, %v2763_v41  ;;  %v2766_v0 = vpop.f32.mrb[34].mxu0 }
 0x13d   : > { %v2805_v63 = vadd.f32 %v2804_v61, %v2803_v59  ;;  %v2806_v1 = vpop.f32.mrb[34].mxu1  ;;  %v2767_v2 = vpop.f32.mrb[35].mxu0 }
 0x13e   : > { %v2807_v3 = vpop.f32.mrb[35].mxu1  ;;  %v1908_v4 = vadd.f32 %v2765_v62, %v1843_v5  ;;  %v2768_v53 = vadd.f32 %v2767_v2, %v2766_v0 }
 0x13f   : > { %v2808_v6 = vadd.f32 %v2807_v3, %v2806_v1 }
 0x140   : > { %v1973_v8 = vadd.f32 %v2805_v63, %v1908_v4  ;;  %v1911_v9 = vadd.f32 %v2768_v53, %v3546_v7 }
 0x142   : > { %v3556_v10 = vadd.f32 %v2808_v6, %v1911_v9  ;;  %v2769_v55 = vpop.f32.mrb[36].mxu0 }
 0x143   : > { %v2809_v12 = vpop.f32.mrb[36].mxu1  ;;  %v2770_v14 = vpop.f32.mrb[37].mxu0 }
 0x144   : > { %v2771_v15 = vadd.f32 %v2770_v14, %v2769_v55  ;;  %v2810_v16 = vpop.f32.mrb[37].mxu1  ;;  %v2772_v17 = vpop.f32.mrb[38].mxu0 }
 0x145   : > { %v2811_v18 = vadd.f32 %v2810_v16, %v2809_v12  ;;  %v2812_v19 = vpop.f32.mrb[38].mxu1  ;;  %v2773_v20 = vpop.f32.mrb[39].mxu0 }
 0x146   : > { %v1916_v21 = vadd.f32 %v2771_v15, %v1851_v22  ;;  %v2774_v11 = vadd.f32 %v2773_v20, %v2772_v17  ;;  %v2813_v23 = vpop.f32.mrb[39].mxu1 }
 0x147   : > { %v2814_v5 = vadd.f32 %v2813_v23, %v2812_v19 }
 0x148   : > { %v3558_v13 = vadd.f32 %v2811_v18, %v1916_v21  ;;  %v1919_v26 = vadd.f32 %v2774_v11, %v3548_v24 }
 0x14a   : > { %v3561_v7 = vadd.f32 %v2814_v5, %v1919_v26  ;;  %v2775_v28 = vpop.f32.mrb[40].mxu0 }
 0x14b   : > { %v2815_v29 = vpop.f32.mrb[40].mxu1  ;;  %v2776_v30 = vpop.f32.mrb[41].mxu0 }
 0x14c   : > { %v2777_v31 = vadd.f32 %v2776_v30, %v2775_v28  ;;  %v2816_v32 = vpop.f32.mrb[41].mxu1  ;;  %v2778_v33 = vpop.f32.mrb[42].mxu0 }
 0x14d   : > { %v2817_v34 = vadd.f32 %v2816_v32, %v2815_v29  ;;  %v2818_v35 = vpop.f32.mrb[42].mxu1  ;;  %v2779_v36 = vpop.f32.mrb[43].mxu0 }
 0x14e   : > { %v1924_v37 = vadd.f32 %v2777_v31, %v1859_v25  ;;  %v2780_v22 = vadd.f32 %v2779_v36, %v2778_v33  ;;  %v2819_v39 = vpop.f32.mrb[43].mxu1 }
 0x14f   : > { %v2820_v40 = vadd.f32 %v2819_v39, %v2818_v35 }
 0x150   : > { %v3563_v27 = vadd.f32 %v2817_v34, %v1924_v37  ;;  %v1927_v43 = vadd.f32 %v2780_v22, %v3550_v42 }
 0x152   : > { %v3566_v24 = vadd.f32 %v2820_v40, %v1927_v43  ;;  %v2781_v44 = vpop.f32.mrb[44].mxu0 }
 0x153   : > { %v2821_v45 = vpop.f32.mrb[44].mxu1  ;;  %v2782_v46 = vpop.f32.mrb[45].mxu0 }
 0x154   : > { %v2822_v47 = vpop.f32.mrb[45].mxu1  ;;  %v2783_v48 = vadd.f32 %v2782_v46, %v2781_v44  ;;  %v2784_v50 = vpop.f32.mrb[46].mxu0 }
 0x155   : > { %v2823_v49 = vadd.f32 %v2822_v47, %v2821_v45  ;;  %v2824_v51 = vpop.f32.mrb[46].mxu1  ;;  %v2785_v52 = vpop.f32.mrb[47].mxu0 }
 0x156   : > { %v2825_v54 = vpop.f32.mrb[47].mxu1  ;;  %v1932_v25 = vadd.f32 %v2783_v48, %v1867_v56  ;;  %v2786_v38 = vadd.f32 %v2785_v52, %v2784_v50 }
 0x157   : > { %v2826_v57 = vadd.f32 %v2825_v54, %v2824_v51 }
 0x158   : > { %v3568_v41 = vadd.f32 %v2823_v49, %v1932_v25  ;;  %v1935_v59 = vadd.f32 %v2786_v38, %v3553_v58 }
 0x15a   : > { %v3571_v42 = vadd.f32 %v2826_v57, %v1935_v59  ;;  %v2843_v60 = vpop.f32.mrb[48].mxu0 }
 0x15b   : > { %v2883_v61 = vpop.f32.mrb[48].mxu1  ;;  %v2844_v62 = vpop.f32.mrb[49].mxu0 }
 0x15c   : > { %v2845_v63 = vadd.f32 %v2844_v62, %v2843_v60  ;;  %v2884_v0 = vpop.f32.mrb[49].mxu1  ;;  %v2846_v1 = vpop.f32.mrb[50].mxu0 }
 0x15d   : > { %v2885_v2 = vadd.f32 %v2884_v0, %v2883_v61  ;;  %v2886_v3 = vpop.f32.mrb[50].mxu1  ;;  %v2847_v4 = vpop.f32.mrb[51].mxu0 }
 0x15e   : > { %v2038_v53 = vadd.f32 %v2845_v63, %v1973_v8  ;;  %v2848_v6 = vadd.f32 %v2847_v4, %v2846_v1  ;;  %v2887_v56 = vpop.f32.mrb[51].mxu1 }
 0x15f   : > { %v2888_v9 = vadd.f32 %v2887_v56, %v2886_v3 }
 0x160   : > { %v3573_v55 = vadd.f32 %v2885_v2, %v2038_v53  ;;  %v2041_v12 = vadd.f32 %v2848_v6, %v3556_v10 }
 0x162   : > { %v3576_v58 = vadd.f32 %v2888_v9, %v2041_v12  ;;  %v2849_v14 = vpop.f32.mrb[52].mxu0  ;;  %v2148_v17 = vmul.f32 %v3573_v55, %v3573_v55 }
 0x163   : > { %v2889_v15 = vpop.f32.mrb[52].mxu1  ;;  %v2850_v16 = vpop.f32.mrb[53].mxu0 }
 0x164   : > { %v2133_v18 = vadd.f32 %v3576_v58, %v3573_v55  ;;  %v2149_v8 = vmul.f32 %v3576_v58, %v3576_v58  ;;  %v2851_v19 = vadd.f32 %v2850_v16, %v2849_v14  ;;  %v2890_v20 = vpop.f32.mrb[53].mxu1  ;;  %v2852_v21 = vpop.f32.mrb[54].mxu0 }
 0x165   : > { %v2891_v11 = vadd.f32 %v2890_v20, %v2889_v15  ;;  %v2892_v23 = vpop.f32.mrb[54].mxu1  ;;  %v2853_v10 = vpop.f32.mrb[55].mxu0 }
 0x166   : > { %v2156_v5 = vadd.f32 %v2149_v8, %v2148_v17  ;;  %v2046_v26 = vadd.f32 %v2851_v19, %v3558_v13  ;;  %v2854_v28 = vadd.f32 %v2853_v10, %v2852_v21  ;;  %v2893_v29 = vpop.f32.mrb[55].mxu1 }
 0x167   : > { %v2894_v30 = vadd.f32 %v2893_v29, %v2892_v23 }
 0x168   : > { %v3585_v31 = vadd.f32 %v2891_v11, %v2046_v26  ;;  %v2049_v32 = vadd.f32 %v2854_v28, %v3561_v7 }
 0x16a   : > { %v2134_v33 = vadd.f32 %v2133_v18, %v3585_v31  ;;  %v2150_v34 = vmul.f32 %v3585_v31, %v3585_v31  ;;  %v3591_v35 = vadd.f32 %v2894_v30, %v2049_v32  ;;  %v2855_v36 = vpop.f32.mrb[56].mxu0 }
 0x16b   : > { %v2895_v37 = vpop.f32.mrb[56].mxu1  ;;  %v2856_v22 = vpop.f32.mrb[57].mxu0 }
 0x16c   : > { %v2157_v39 = vadd.f32 %v2156_v5, %v2150_v34  ;;  %v2135_v13 = vadd.f32 %v2134_v33, %v3591_v35  ;;  %v2151_v40 = vmul.f32 %v3591_v35, %v3591_v35  ;;  %v2857_v43 = vadd.f32 %v2856_v22, %v2855_v36  ;;  %v2896_v44 = vpop.f32.mrb[57].mxu1  ;;  %v2858_v45 = vpop.f32.mrb[58].mxu0 }
 0x16d   : > { %v2897_v7 = vadd.f32 %v2896_v44, %v2895_v37  ;;  %v2898_v46 = vpop.f32.mrb[58].mxu1  ;;  %v2859_v47 = vpop.f32.mrb[59].mxu0 }
 0x16e   : > { %v2158_v48 = vadd.f32 %v2157_v39, %v2151_v40  ;;  %v2054_v49 = vadd.f32 %v2857_v43, %v3563_v27  ;;  %v2860_v50 = vadd.f32 %v2859_v47, %v2858_v45  ;;  %v2899_v51 = vpop.f32.mrb[59].mxu1 }
 0x16f   : > { %v2900_v52 = vadd.f32 %v2899_v51, %v2898_v46 }
 0x170   : > { %v3597_v54 = vadd.f32 %v2897_v7, %v2054_v49  ;;  %v2057_v25 = vadd.f32 %v2860_v50, %v3566_v24 }
 0x172   : > { %v2136_v38 = vadd.f32 %v2135_v13, %v3597_v54  ;;  %v2152_v57 = vmul.f32 %v3597_v54, %v3597_v54  ;;  %v2122_v59 = vadd.f32 %v2900_v52, %v2057_v25  ;;  %v2861_v60 = vpop.f32.mrb[60].mxu0 }
 0x173   : > { %v2901_v61 = vpop.f32.mrb[60].mxu1  ;;  %v2862_v62 = vpop.f32.mrb[61].mxu0 }
 0x174   : > { %v2159_v63 = vadd.f32 %v2158_v48, %v2152_v57  ;;  %v2137_v0 = vadd.f32 %v2136_v38, %v2122_v59  ;;  %v2153_v1 = vmul.f32 %v2122_v59, %v2122_v59  ;;  %v2863_v27 = vadd.f32 %v2862_v62, %v2861_v60  ;;  %v2902_v2 = vpop.f32.mrb[61].mxu1  ;;  %v2864_v3 = vpop.f32.mrb[62].mxu0  ;;  %v2544_v57 = vld [vmem:[%s3634_s3] ss:$0 sm:$0xff] }
 0x175   : > { %v2903_v4 = vadd.f32 %v2902_v2, %v2901_v61  ;;  %v2904_v53 = vpop.f32.mrb[62].mxu1  ;;  %v2865_v6 = vpop.f32.mrb[63].mxu0 }
 0x176   : > { %v2160_v56 = vadd.f32 %v2159_v63, %v2153_v1  ;;  %v2062_v24 = vadd.f32 %v2863_v27, %v3568_v41  ;;  %v2866_v9 = vadd.f32 %v2865_v6, %v2864_v3  ;;  %v2905_v12 = vpop.f32.mrb[63].mxu1 }
 0x177   : > { %v2906_v14 = vadd.f32 %v2905_v12, %v2904_v53 }
 0x178   : > { %v2127_v15 = vadd.f32 %v2903_v4, %v2062_v24  ;;  %v2065_v16 = vadd.f32 %v2866_v9, %v3571_v42 }
 0x17a   : > { %v2138_v17 = vadd.f32 %v2137_v0, %v2127_v15  ;;  %v2154_v18 = vmul.f32 %v2127_v15, %v2127_v15  ;;  %v2130_v8 = vadd.f32 %v2906_v14, %v2065_v16 }
 0x17c   : > { %v2161_v19 = vadd.f32 %v2160_v56, %v2154_v18  ;;  %v2139_v20 = vadd.f32 %v2138_v17, %v2130_v8  ;;  %v2155_v21 = vmul.f32 %v2130_v8, %v2130_v8 }
 0x17e   : > { %v2140_v11 = vrot.slane %v2139_v20, 4  ;;  %v2162_v23 = vadd.f32 %v2161_v19, %v2155_v21 }
 0x180   : > { %v2141_v10 = vadd.f32 %v2140_v11, %v2139_v20  ;;  %v2163_v5 = vrot.slane %v2162_v23, 4 }
 0x182   : > { %v2142_v26 = vrot.slane %v2141_v10, 2  ;;  %v2164_v28 = vadd.f32 %v2163_v5, %v2162_v23 }
 0x184   : > { %v2143_v29 = vadd.f32 %v2142_v26, %v2141_v10  ;;  %v2165_v41 = vrot.slane %v2164_v28, 2 }
 0x186   : > { %v2144_v30 = vrot.slane %v2143_v29, 1  ;;  %v2166_v32 = vadd.f32 %v2165_v41, %v2164_v28 }
 0x188   : > { %v2145_v33 = vadd.f32 %v2144_v30, %v2143_v29  ;;  %v2167_v34 = vrot.slane %v2166_v32, 1 }
 0x18a   : > { %v2147_v36 = vmul.f32 0.015625, %v2145_v33  ;;  %v2168_v42 = vadd.f32 %v2167_v34, %v2166_v32 }
 0x18c   : > { %v2169_v37 = vmul.f32 0.015625, %v2168_v42  ;;  %v2170_v22 = vmul.f32 %v2147_v36, %v2147_v36  ;;  %v2173_v39 = vsub.f32 %v3573_v55, %v2147_v36  ;;  %v2174_v13 = vsub.f32 %v3576_v58, %v2147_v36  ;;  %v2543_v55 = vld [vmem:[%s3633_s2] ss:$0 sm:$0xff] }
 0x18d   : > { %v2175_v40 = vsub.f32 %v3585_v31, %v2147_v36  ;;  %v2176_v43 = vsub.f32 %v3591_v35, %v2147_v36  ;;  %v2177_v44 = vsub.f32 %v3597_v54, %v2147_v36  ;;  %v2178_v45 = vsub.f32 %v2122_v59, %v2147_v36 }
 0x18e   : > { %v2171_v7 = vsub.f32 %v2169_v37, %v2170_v22  ;;  %v2179_v46 = vsub.f32 %v2127_v15, %v2147_v36  ;;  %v2180_v47 = vsub.f32 %v2130_v8, %v2147_v36 }
 0x190   : > { %v2172_v48 = vmax.f32 %v2171_v7, 0.0 }
 0x192   : > { %v2181_v49 = vadd.f32 1e-05, %v2172_v48 }
 0x194   : > { %3043 = vrsqrt.f32 %v2181_v49 }
 0x19e   : > { %v3044_v50 = vpop.eup %3043 }
 0x19f   : > { %v2183_v51 = vmul.f32 %v3044_v50, %v2173_v39  ;;  %v2184_v58 = vmul.f32 %v3044_v50, %v2174_v13  ;;  %v2185_v52 = vmul.f32 %v3044_v50, %v2175_v40  ;;  %v2186_v31 = vmul.f32 %v3044_v50, %v2176_v43 }
 0x1a0   : > { %v2187_v25 = vmul.f32 %v3044_v50, %v2177_v44  ;;  %v2188_v35 = vmul.f32 %v3044_v50, %v2178_v45  ;;  %v2189_v38 = vmul.f32 %v3044_v50, %v2179_v46  ;;  %v2190_v54 = vmul.f32 %v3044_v50, %v2180_v47 }
 0x1a1   : > { %v2198_v59 = vmul.f32 %v2543_v55, %v2183_v51  ;;  %v2199_v60 = vmul.f32 %v2543_v55, %v2184_v58  ;;  %v2200_v61 = vmul.f32 %v2543_v55, %v2185_v52  ;;  %v2201_v62 = vmul.f32 %v2543_v55, %v2186_v31 }
 0x1a2   : > { %v2202_v63 = vmul.f32 %v2543_v55, %v2187_v25  ;;  %v2203_v0 = vmul.f32 %v2543_v55, %v2188_v35  ;;  %v2204_v1 = vmul.f32 %v2543_v55, %v2189_v38  ;;  %v2205_v27 = vmul.f32 %v2543_v55, %v2190_v54 }
 0x1a3   : > { %v2213_v2 = vadd.f32 %v2544_v57, %v2198_v59  ;;  %v2214_v3 = vadd.f32 %v2544_v57, %v2199_v60  ;;  %v2215_v4 = vadd.f32 %v2544_v57, %v2200_v61  ;;  %v2216_v53 = vadd.f32 %v2544_v57, %v2201_v62 }
 0x1a4   : > { %v2217_v6 = vadd.f32 %v2544_v57, %v2202_v63  ;;  %v2218_v56 = vadd.f32 %v2544_v57, %v2203_v0  ;;  %v2219_v24 = vadd.f32 %v2544_v57, %v2204_v1  ;;  %v2220_v9 = vadd.f32 %v2544_v57, %v2205_v27 }
 0x1a5   : > { %vm2221_vm0 = vcmp.ge.f32.partialorder %v2213_v2, 0.0  ;;  %vm2222_vm1 = vcmp.ge.f32.partialorder %v2214_v3, 0.0  ;;  %vm2223_vm2 = vcmp.ge.f32.partialorder %v2215_v4, 0.0  ;;  %vm2224_vm3 = vcmp.ge.f32.partialorder %v2216_v53, 0.0 }
 0x1a6   : > { %vm2225_vm4 = vcmp.ge.f32.partialorder %v2217_v6, 0.0  ;;  %vm2226_vm5 = vcmp.ge.f32.partialorder %v2218_v56, 0.0  ;;  %vm2227_vm6 = vcmp.ge.f32.partialorder %v2219_v24, 0.0  ;;  %vm2228_vm7 = vcmp.ge.f32.partialorder %v2220_v9, 0.0 }
 0x1a7   : > { %v2229_v12 = vmul.f32 0.2, %v2213_v2  ;;  %v2230_v14 = vmul.f32 0.2, %v2214_v3  ;;  %v2231_v15 = vmul.f32 0.2, %v2215_v4 }
 0x1a8   : > { %v2232_v16 = vmul.f32 0.2, %v2216_v53  ;;  %v2233_v17 = vmul.f32 0.2, %v2217_v6  ;;  %v2234_v18 = vmul.f32 0.2, %v2218_v56 }
 0x1a9   : > { %v2235_v8 = vmul.f32 0.2, %v2219_v24  ;;  %v2236_v19 = vmul.f32 0.2, %v2220_v9  ;;  %v2237_v20 = vsel %vm2221_vm0, %v2213_v2, %v2229_v12  ;;  %v2238_v21 = vsel %vm2222_vm1, %v2214_v3, %v2230_v14 }
 0x1aa   : > { %v2239_v11 = vsel %vm2223_vm2, %v2215_v4, %v2231_v15  ;;  %v2240_v23 = vsel %vm2224_vm3, %v2216_v53, %v2232_v16  ;;  %v2241_v10 = vsel %vm2225_vm4, %v2217_v6, %v2233_v17  ;;  %v2242_v5 = vsel %vm2226_vm5, %v2218_v56, %v2234_v18 }
 0x1ab   : > { %v2243_v26 = vsel %vm2227_vm6, %v2219_v24, %v2235_v8  ;;  %v2244_v28 = vsel %vm2228_vm7, %v2220_v9, %v2236_v19  ;;  %v2567_v29 = vpack.c.bf16 %v2238_v21, %v2237_v20  ;;  %v2572_v41 = vpack.c.bf16 %v2240_v23, %v2239_v11 }
 0x1ac   : > { %v2577_v30 = vpack.c.bf16 %v2242_v5, %v2241_v10  ;;  %v2582_v32 = vpack.c.bf16 %v2244_v28, %v2243_v26 }
 0x1ad   : > { %2568 = vst [vmem:[%s202_s25] sm:$0xff] %v2567_v29   ;;  %2584 = vst [vmem:[%s202_s25 + $0x8] sm:$0xff] %v2572_v41  }
 0x1ae   : > { %2585 = vst [vmem:[%s202_s25 + $0x10] sm:$0xff] %v2577_v30   ;;  %2586 = vst [vmem:[%s202_s25 + $0x18] sm:$0xff] %v2582_v32  }
 0x1af PF: > { %s14_s15 = sadd.s32 1, %s3051_s15  }
 0x1b0   : > { %p11_p4 = scmp.ge.s32.totalorder %s14_s15, 4  }
 0x1b2   :  { %13 = sbr.rel (!%p11_p4) target bundleno = 1 (0x1), region = 66 }

// kernel: discriminator_forward.8
= control target key start
LH: loop header
LB: loop body
LE: loop exit
PB: predicated region body
PF: predicated region fallthrough
CT: control target
= control target key end

     0   :  { %s2286_s15 = smov 0   ;;  %s2717_s0 = inlined_call_operand.vmem [shape: bf16[32,2048], index: 0, kind: input, shape index: {}]   ;;  %s2718_s1 = inlined_call_operand.vmem [shape: bf16[2048,128], index: 1, kind: input, shape index: {}]   ;;  %s2719_s2 = inlined_call_operand.vmem [shape: f32[1,128], index: 2, kind: input, shape index: {}]   ;;  %s2720_s3 = inlined_call_operand.vmem [shape: f32[1,128], index: 3, kind: input, shape index: {}]   ;;  %s2721_s4 = inlined_call_operand.vmem [shape: bf16[32,128], index: 4, kind: output, shape index: {}]  }
   0x1 LB: > { %s1771_s16 = sadd.s32 4294967295, %s2259_s15   ;;  %p1775_p0 = scmp.ge.s32.totalorder %s2259_s15, 1  ;;  %s2259_s15 = sphi %s2286_s15, %s14_s15  }
   0x2   : > { %p164_p1 = scmp.lt.s32.totalorder %s2259_s15, 3 }
   0x4   : > { %p165_p2 = pnand %p1775_p0, %p164_p1 }
   0x5   : > { %v2123_v0 = vld [vmem:[%s2718_s1 + $0x40] sm:$0xff] (!%p165_p2)   ;;  %v2127_v4 = vld [vmem:[%s2718_s1 + $0x48] sm:$0xff] (!%p165_p2)   ;;  %v2131_v8 = vld [vmem:[%s2718_s1 + $0x50] sm:$0xff] (!%p165_p2)   ;;  %s1776_s25 = sshll.u32 (!%p165_p2), %s1771_s16, 1 }
   0x6   : > { %168 = sbr.rel (%p165_p2) target bundleno = 403 (0x193), region = 36  ;;  %v2124_v1 = vld [vmem:[%s2718_s1 + $0xc0] sm:$0xff] (!%p165_p2)   ;;  %1939 = vmatprep.subr.bf16.mxu0 (!%p165_p2), %v2123_v0  ;;  %v2128_v5 = vld [vmem:[%s2718_s1 + $0xc8] sm:$0xff] (!%p165_p2)   ;;  %v2132_v9 = vld [vmem:[%s2718_s1 + $0xd0] sm:$0xff] (!%p165_p2)   ;;  %p192_p3 = scmp.lt.s32.totalorder (!%p165_p2), %s1776_s25, 3 }
   0x7   : > { %v2125_v2 = vld [vmem:[%s2718_s1] sm:$0xff] (!%p165_p2)   ;;  %1961 = vmatprep.subr.bf16.mxu1 (!%p165_p2), %v2124_v1  ;;  %v2129_v6 = vld [vmem:[%s2718_s1 + $0x8] sm:$0xff] (!%p165_p2)   ;;  %v2133_v10 = vld [vmem:[%s2718_s1 + $0x10] sm:$0xff] (!%p165_p2)  }
   0x8   : > { %v2126_v3 = vld [vmem:[%s2718_s1 + $0x80] sm:$0xff] (!%p165_p2)   ;;  %1940 = vmatpush3.bf16.msra.mxu0 (!%p165_p2), %v2125_v2  ;;  %v2130_v7 = vld [vmem:[%s2718_s1 + $0x88] sm:$0xff] (!%p165_p2)   ;;  %v2134_v11 = vld [vmem:[%s2718_s1 + $0x90] sm:$0xff] (!%p165_p2)  }
   0x9   : > { %1962 = vmatpush3.bf16.msra.mxu1 (!%p165_p2), %v2126_v3  ;;  %1941 = vmatprep.subr.bf16.mxu0 (!%p165_p2), %v2127_v4  ;;  %v2135_v12 = vld [vmem:[%s2718_s1 + $0x58] sm:$0xff] (!%p165_p2)   ;;  %v2139_v16 = vld [vmem:[%s2718_s1 + $0x60] sm:$0xff] (!%p165_p2)   ;;  %v2143_v20 = vld [vmem:[%s2718_s1 + $0x68] sm:$0xff] (!%p165_p2)  }
   0xa   : > { %1963 = vmatprep.subr.bf16.mxu1 (!%p165_p2), %v2128_v5  ;;  %v2136_v13 = vld [vmem:[%s2718_s1 + $0xd8] sm:$0xff] (!%p165_p2)   ;;  %v2140_v17 = vld [vmem:[%s2718_s1 + $0xe0] sm:$0xff] (!%p165_p2)   ;;  %v2144_v21 = vld [vmem:[%s2718_s1 + $0xe8] sm:$0xff] (!%p165_p2)  }
   0xb   : > { %v2137_v14 = vld [vmem:[%s2718_s1 + $0x18] sm:$0xff] (!%p165_p2)   ;;  %v2141_v18 = vld [vmem:[%s2718_s1 + $0x20] sm:$0xff] (!%p165_p2)   ;;  %v2145_v22 = vld [vmem:[%s2718_s1 + $0x28] sm:$0xff] (!%p165_p2)  }
   0xc   : > { %1942 = vmatpush3.bf16.msra.mxu0 (!%p165_p2), %v2129_v6  ;;  %v2138_v15 = vld [vmem:[%s2718_s1 + $0x98] sm:$0xff] (!%p165_p2)   ;;  %v2142_v19 = vld [vmem:[%s2718_s1 + $0xa0] sm:$0xff] (!%p165_p2)   ;;  %v2146_v23 = vld [vmem:[%s2718_s1 + $0xa8] sm:$0xff] (!%p165_p2)  }
   0xd   : > { %1964 = vmatpush3.bf16.msra.mxu1 %v2130_v7  ;;  %1943 = vmatprep.subr.bf16.mxu0 %v2131_v8  ;;  %s2723_s25 = smov (!%p192_p3, %s1776_s25), 3  ;;  %v2147_v24 = vld [vmem:[%s2718_s1 + $0x70] sm:$0xff]   ;;  %v2151_v28 = vld [vmem:[%s2718_s1 + $0x78] sm:$0xff]   ;;  %v2155_v40 = vld [vmem:[%s2718_s1 + $0x140] sm:$0xff]  }
   0xe   : > { %1965 = vmatprep.subr.bf16.mxu1 %v2132_v9  ;;  %v2148_v25 = vld [vmem:[%s2718_s1 + $0xf0] sm:$0xff]   ;;  %s1931_s23 = sshll.u32 %s2723_s25, 6  ;;  %v2152_v29 = vld [vmem:[%s2718_s1 + $0xf8] sm:$0xff]   ;;  %v2156_v41 = vld [vmem:[%s2718_s1 + $0x1c0] sm:$0xff]   ;;  %s1780_s24 = sshll.u32 %s2723_s25, 2 }
   0xf   : > { %v2149_v26 = vld [vmem:[%s2718_s1 + $0x30] sm:$0xff]   ;;  %s2392_s7 = scalar_lea.vmem %s2717_s0, %s1931_s23  ;;  %v2153_v30 = vld [vmem:[%s2718_s1 + $0x38] sm:$0xff]   ;;  %v2157_v42 = vld [vmem:[%s2718_s1 + $0x100] sm:$0xff]   ;;  %s202_s28 = scalar_lea.vmem %s2721_s4, %s1780_s24 }
  0x10   : > { %1944 = vmatpush3.bf16.msra.mxu0 %v2133_v10  ;;  %v2150_v27 = vld [vmem:[%s2718_s1 + $0xb0] sm:$0xff]   ;;  %v2154_v31 = vld [vmem:[%s2718_s1 + $0xb8] sm:$0xff]   ;;  %v205_v32 = vld [vmem:[%s2392_s7] sm:$0xff] }
  0x11   : > { %1966 = vmatpush3.bf16.msra.mxu1 %v2134_v11  ;;  %1945 = vmatprep.subr.bf16.mxu0 %v2135_v12  ;;  %v213_v33 = vld [vmem:[%s2392_s7 + $0x40] sm:$0xff]  ;;  %v206_v34 = vld [vmem:[%s2392_s7 + $0x8] sm:$0xff]  ;;  %v2163_v48 = vld [vmem:[%s2718_s1 + $0x150] sm:$0xff]  }
  0x12   : > { %1967 = vmatprep.subr.bf16.mxu1 %v2136_v13  ;;  %v1781_v35 = vcombine.low %v205_v32, %v213_v33  ;;  %v1782_v36 = vcombine.high %v205_v32, %v213_v33  ;;  %v214_v37 = vld [vmem:[%s2392_s7 + $0x48] sm:$0xff]  ;;  %v2158_v43 = vld [vmem:[%s2718_s1 + $0x180] sm:$0xff]   ;;  %v2164_v49 = vld [vmem:[%s2718_s1 + $0x1d0] sm:$0xff]  }
  0x13   : > { %v1783_v38 = vcombine.low %v206_v34, %v214_v37  ;;  %v1784_v39 = vcombine.high %v206_v34, %v214_v37  ;;  %v2159_v44 = vld [vmem:[%s2718_s1 + $0x148] sm:$0xff]   ;;  %v2165_v50 = vld [vmem:[%s2718_s1 + $0x110] sm:$0xff]   ;;  %v2167_v52 = vld [vmem:[%s2718_s1 + $0x158] sm:$0xff]  }
  0x14   : > { %1946 = vmatpush3.bf16.msra.mxu0 %v2137_v14  ;;  %1357 = vmatprep.mubr.bf16.mxu0 %v1782_v36  ;;  %v2160_v45 = vld [vmem:[%s2718_s1 + $0x1c8] sm:$0xff]   ;;  %v2166_v51 = vld [vmem:[%s2718_s1 + $0x190] sm:$0xff]   ;;  %v2168_v53 = vld [vmem:[%s2718_s1 + $0x1d8] sm:$0xff]  }
  0x15   : > { %1968 = vmatpush3.bf16.msra.mxu1 %v2138_v15  ;;  %1947 = vmatprep.subr.bf16.mxu0 %v2139_v16  ;;  %v2161_v46 = vld [vmem:[%s2718_s1 + $0x108] sm:$0xff]   ;;  %v2169_v54 = vld [vmem:[%s2718_s1 + $0x118] sm:$0xff]   ;;  %v2171_v56 = vld [vmem:[%s2718_s1 + $0x160] sm:$0xff]  }
  0x16   : > { %1969 = vmatprep.subr.bf16.mxu1 %v2140_v17  ;;  %1398 = vmatprep.mubr.bf16.mxu1 %v1784_v39  ;;  %v2162_v47 = vld [vmem:[%s2718_s1 + $0x188] sm:$0xff]   ;;  %v2170_v55 = vld [vmem:[%s2718_s1 + $0x198] sm:$0xff]   ;;  %v2172_v57 = vld [vmem:[%s2718_s1 + $0x1e0] sm:$0xff]  }
  0x17   : > { %v2173_v58 = vld [vmem:[%s2718_s1 + $0x120] sm:$0xff]   ;;  %v2175_v60 = vld [vmem:[%s2718_s1 + $0x168] sm:$0xff]   ;;  %v2179_v0 = vld [vmem:[%s2718_s1 + $0x170] sm:$0xff]  }
  0x18   : > { %1948 = vmatpush3.bf16.msra.mxu0 %v2141_v18  ;;  %v2174_v59 = vld [vmem:[%s2718_s1 + $0x1a0] sm:$0xff]   ;;  %v2176_v61 = vld [vmem:[%s2718_s1 + $0x1e8] sm:$0xff]   ;;  %v2180_v1 = vld [vmem:[%s2718_s1 + $0x1f0] sm:$0xff]  }
  0x19   : > { %1970 = vmatpush3.bf16.msra.mxu1 %v2142_v19  ;;  %1949 = vmatprep.subr.bf16.mxu0 %v2143_v20  ;;  %v2177_v62 = vld [vmem:[%s2718_s1 + $0x128] sm:$0xff]   ;;  %v2181_v2 = vld [vmem:[%s2718_s1 + $0x130] sm:$0xff]   ;;  %v2183_v4 = vld [vmem:[%s2718_s1 + $0x178] sm:$0xff]  }
  0x1a   : > { %1971 = vmatprep.subr.bf16.mxu1 %v2144_v21  ;;  %v2178_v63 = vld [vmem:[%s2718_s1 + $0x1a8] sm:$0xff]   ;;  %v2182_v3 = vld [vmem:[%s2718_s1 + $0x1b0] sm:$0xff]   ;;  %v2184_v5 = vld [vmem:[%s2718_s1 + $0x1f8] sm:$0xff]  }
  0x1b   : > { %v2185_v6 = vld [vmem:[%s2718_s1 + $0x138] sm:$0xff]   ;;  %v207_v8 = vld [vmem:[%s2392_s7 + $0x10] sm:$0xff]  ;;  %v2187_v16 = vld [vmem:[%s2718_s1 + $0x240] sm:$0xff]  }
  0x1c   : > { %1950 = vmatpush3.bf16.msra.mxu0 %v2145_v22  ;;  %v2186_v7 = vld [vmem:[%s2718_s1 + $0x1b8] sm:$0xff]   ;;  %v215_v9 = vld [vmem:[%s2392_s7 + $0x50] sm:$0xff]  ;;  %v2188_v17 = vld [vmem:[%s2718_s1 + $0x2c0] sm:$0xff]  }
  0x1d   : > { %1972 = vmatpush3.bf16.msra.mxu1 %v2146_v23  ;;  %1951 = vmatprep.subr.bf16.mxu0 %v2147_v24  ;;  %v1785_v10 = vcombine.low %v207_v8, %v215_v9  ;;  %v1786_v11 = vcombine.high %v207_v8, %v215_v9  ;;  %v208_v12 = vld [vmem:[%s2392_s7 + $0x18] sm:$0xff]  ;;  %v2189_v18 = vld [vmem:[%s2718_s1 + $0x200] sm:$0xff]   ;;  %v2191_v20 = vld [vmem:[%s2718_s1 + $0x248] sm:$0xff]  }
  0x1e   : > { %1973 = vmatprep.subr.bf16.mxu1 %v2148_v25  ;;  %v216_v13 = vld [vmem:[%s2392_s7 + $0x58] sm:$0xff]  ;;  %v2190_v19 = vld [vmem:[%s2718_s1 + $0x280] sm:$0xff]   ;;  %v2192_v21 = vld [vmem:[%s2718_s1 + $0x2c8] sm:$0xff]  }
  0x1f   : > { %v1787_v14 = vcombine.low %v208_v12, %v216_v13  ;;  %v1788_v15 = vcombine.high %v208_v12, %v216_v13  ;;  %v2193_v22 = vld [vmem:[%s2718_s1 + $0x208] sm:$0xff]   ;;  %v2195_v24 = vld [vmem:[%s2718_s1 + $0x250] sm:$0xff]   ;;  %v2203_v32 = vld [vmem:[%s2718_s1 + $0x260] sm:$0xff]  }
  0x20   : > { %1952 = vmatpush3.bf16.msra.mxu0 %v2149_v26  ;;  %v2194_v23 = vld [vmem:[%s2718_s1 + $0x288] sm:$0xff]   ;;  %v2196_v25 = vld [vmem:[%s2718_s1 + $0x2d0] sm:$0xff]   ;;  %v2204_v33 = vld [vmem:[%s2718_s1 + $0x2e0] sm:$0xff]  }
  0x21   : > { %1974 = vmatpush3.bf16.msra.mxu1 %v2150_v27  ;;  %1953 = vmatprep.subr.bf16.mxu0 %v2151_v28  ;;  %v2197_v26 = vld [vmem:[%s2718_s1 + $0x210] sm:$0xff]   ;;  %v2199_v28 = vld [vmem:[%s2718_s1 + $0x258] sm:$0xff]   ;;  %v2205_v34 = vld [vmem:[%s2718_s1 + $0x220] sm:$0xff]  }
  0x22   : > { %1975 = vmatprep.subr.bf16.mxu1 %v2152_v29  ;;  %v2198_v27 = vld [vmem:[%s2718_s1 + $0x290] sm:$0xff]   ;;  %v2200_v29 = vld [vmem:[%s2718_s1 + $0x2d8] sm:$0xff]   ;;  %v2207_v36 = vld [vmem:[%s2718_s1 + $0x268] sm:$0xff]  }
  0x23   : > { %v2208_v37 = vld [vmem:[%s2718_s1 + $0x2e8] sm:$0xff]   ;;  %v2235_v8 = vld [vmem:[%s2718_s1 + $0x360] sm:$0xff]  }
  0x24   : > { %1954 = vmatpush3.bf16.msra.mxu0 %v2153_v30  ;;  %v2201_v30 = vld [vmem:[%s2718_s1 + $0x218] sm:$0xff]   ;;  %v2210_v39 = vld [vmem:[%s2718_s1 + $0x2a8] sm:$0xff]   ;;  %v2236_v9 = vld [vmem:[%s2718_s1 + $0x3e0] sm:$0xff]  }
  0x25   : > { %1976 = vmatpush3.bf16.msra.mxu1 %v2154_v31  ;;  %1983 = vmatprep.subr.bf16.mxu0 %v2155_v40  ;;  %v2202_v31 = vld [vmem:[%s2718_s1 + $0x298] sm:$0xff]   ;;  %v2211_v40 = vld [vmem:[%s2718_s1 + $0x270] sm:$0xff]   ;;  %v2239_v12 = vld [vmem:[%s2718_s1 + $0x368] sm:$0xff]  }
  0x26   : > { %2005 = vmatprep.subr.bf16.mxu1 %v2156_v41  ;;  %v2212_v41 = vld [vmem:[%s2718_s1 + $0x2f0] sm:$0xff]   ;;  %v2240_v13 = vld [vmem:[%s2718_s1 + $0x3e8] sm:$0xff]  }
  0x27   : > { %1358 = vmatmul.mubr.bf16.vlgmr.msra.gmra.mrb[0].mxu0 %v1781_v35  ;;  %v2206_v35 = vld [vmem:[%s2718_s1 + $0x2a0] sm:$0xff]  }
  0x28   : > { %1399 = vmatmul.mubr.bf16.vlgmr.msra.gmra.mrb[0].mxu1 %v1783_v38  ;;  %1984 = vmatpush3.bf16.msra.mxu0 %v2157_v42  ;;  %v2209_v38 = vld [vmem:[%s2718_s1 + $0x228] sm:$0xff]   ;;  %v2213_v42 = vld [vmem:[%s2718_s1 + $0x230] sm:$0xff]  }
  0x29   : > { %2006 = vmatpush3.bf16.msra.mxu1 %v2158_v43  ;;  %1985 = vmatprep.subr.bf16.mxu0 %v2159_v44  ;;  %v2214_v43 = vld [vmem:[%s2718_s1 + $0x2b0] sm:$0xff]   ;;  %v2215_v44 = vld [vmem:[%s2718_s1 + $0x278] sm:$0xff]  }
  0x2a   : > { %2007 = vmatprep.subr.bf16.mxu1 %v2160_v45  ;;  %1439 = vmatprep.mubr.bf16.mxu0 %v1786_v11  ;;  %v2216_v45 = vld [vmem:[%s2718_s1 + $0x2f8] sm:$0xff]   ;;  %v2238_v11 = vld [vmem:[%s2718_s1 + $0x3a0] sm:$0xff]  }
  0x2b   : > { %1480 = vmatprep.mubr.bf16.mxu1 %v1788_v15  ;;  %v2242_v15 = vld [vmem:[%s2718_s1 + $0x3a8] sm:$0xff]  }
  0x2c   : > { %1986 = vmatpush3.bf16.msra.mxu0 %v2161_v46  ;;  %v2217_v46 = vld [vmem:[%s2718_s1 + $0x238] sm:$0xff]  }
  0x2d   : > { %2008 = vmatpush3.bf16.msra.mxu1 %v2162_v47  ;;  %1987 = vmatprep.subr.bf16.mxu0 %v2163_v48  ;;  %v2218_v47 = vld [vmem:[%s2718_s1 + $0x2b8] sm:$0xff]   ;;  %v209_v48 = vld [vmem:[%s2392_s7 + $0x20] sm:$0xff] }
  0x2e   : > { %2009 = vmatprep.subr.bf16.mxu1 %v2164_v49  ;;  %v217_v49 = vld [vmem:[%s2392_s7 + $0x60] sm:$0xff] }
  0x30   : > { %1988 = vmatpush3.bf16.msra.mxu0 %v2165_v50  ;;  %v210_v50 = vld [vmem:[%s2392_s7 + $0x28] sm:$0xff] }
  0x31   : > { %2010 = vmatpush3.bf16.msra.mxu1 %v2166_v51  ;;  %1989 = vmatprep.subr.bf16.mxu0 %v2167_v52  ;;  %v218_v51 = vld [vmem:[%s2392_s7 + $0x68] sm:$0xff]  ;;  %v1789_v52 = vcombine.low %v209_v48, %v217_v49 }
  0x32   : > { %2011 = vmatprep.subr.bf16.mxu1 %v2168_v53  ;;  %v1790_v53 = vcombine.high %v209_v48, %v217_v49 }
  0x34   : > { %1990 = vmatpush3.bf16.msra.mxu0 %v2169_v54  ;;  %v1791_v54 = vcombine.low %v210_v50, %v218_v51 }
  0x35   : > { %2012 = vmatpush3.bf16.msra.mxu1 %v2170_v55  ;;  %1991 = vmatprep.subr.bf16.mxu0 %v2171_v56  ;;  %v1792_v55 = vcombine.high %v210_v50, %v218_v51  ;;  %v2219_v56 = vld [vmem:[%s2718_s1 + $0x340] sm:$0xff]  }
  0x36   : > { %2013 = vmatprep.subr.bf16.mxu1 %v2172_v57  ;;  %v2220_v57 = vld [vmem:[%s2718_s1 + $0x3c0] sm:$0xff]  }
  0x38   : > { %1992 = vmatpush3.bf16.msra.mxu0 %v2173_v58  ;;  %v2221_v58 = vld [vmem:[%s2718_s1 + $0x300] sm:$0xff]  }
  0x39   : > { %2014 = vmatpush3.bf16.msra.mxu1 %v2174_v59  ;;  %1993 = vmatprep.subr.bf16.mxu0 %v2175_v60  ;;  %v2222_v59 = vld [vmem:[%s2718_s1 + $0x380] sm:$0xff]   ;;  %v2223_v60 = vld [vmem:[%s2718_s1 + $0x348] sm:$0xff]  }
  0x3a   : > { %2015 = vmatprep.subr.bf16.mxu1 %v2176_v61  ;;  %v2224_v61 = vld [vmem:[%s2718_s1 + $0x3c8] sm:$0xff]  }
  0x3c   : > { %1994 = vmatpush3.bf16.msra.mxu0 %v2177_v62  ;;  %v2225_v62 = vld [vmem:[%s2718_s1 + $0x308] sm:$0xff]  }
  0x3d   : > { %2016 = vmatpush3.bf16.msra.mxu1 %v2178_v63  ;;  %1995 = vmatprep.subr.bf16.mxu0 %v2179_v0  ;;  %v2226_v63 = vld [vmem:[%s2718_s1 + $0x388] sm:$0xff]   ;;  %v2227_v0 = vld [vmem:[%s2718_s1 + $0x350] sm:$0xff]  }
  0x3e   : > { %2017 = vmatprep.subr.bf16.mxu1 %v2180_v1  ;;  %v2228_v1 = vld [vmem:[%s2718_s1 + $0x3d0] sm:$0xff]  }
  0x40   : > { %1996 = vmatpush3.bf16.msra.mxu0 %v2181_v2  ;;  %v2229_v2 = vld [vmem:[%s2718_s1 + $0x310] sm:$0xff]  }
  0x41   : > { %2018 = vmatpush3.bf16.msra.mxu1 %v2182_v3  ;;  %1997 = vmatprep.subr.bf16.mxu0 %v2183_v4  ;;  %v2230_v3 = vld [vmem:[%s2718_s1 + $0x390] sm:$0xff]   ;;  %v2231_v4 = vld [vmem:[%s2718_s1 + $0x358] sm:$0xff]  }
  0x42   : > { %2019 = vmatprep.subr.bf16.mxu1 %v2184_v5  ;;  %v2232_v5 = vld [vmem:[%s2718_s1 + $0x3d8] sm:$0xff]  }
  0x44   : > { %1998 = vmatpush3.bf16.msra.mxu0 %v2185_v6  ;;  %v2233_v6 = vld [vmem:[%s2718_s1 + $0x318] sm:$0xff]  }
  0x45   : > { %2020 = vmatpush3.bf16.msra.mxu1 %v2186_v7  ;;  %2027 = vmatprep.subr.bf16.mxu0 %v2187_v16  ;;  %v2234_v7 = vld [vmem:[%s2718_s1 + $0x398] sm:$0xff]   ;;  %v2243_v16 = vld [vmem:[%s2718_s1 + $0x370] sm:$0xff]  }
  0x46   : > { %2049 = vmatprep.subr.bf16.mxu1 %v2188_v17  ;;  %v2244_v17 = vld [vmem:[%s2718_s1 + $0x3f0] sm:$0xff]  }
  0x47   : > { %1440 = vmatmul.mubr.bf16.vlgmr.msra.gmra.mrb[4].mxu0 %v1785_v10  ;;  %v2237_v10 = vld [vmem:[%s2718_s1 + $0x320] sm:$0xff]  }
  0x48   : > { %1481 = vmatmul.mubr.bf16.vlgmr.msra.gmra.mrb[4].mxu1 %v1787_v14  ;;  %2028 = vmatpush3.bf16.msra.mxu0 %v2189_v18  ;;  %v2241_v14 = vld [vmem:[%s2718_s1 + $0x328] sm:$0xff]   ;;  %v2245_v18 = vld [vmem:[%s2718_s1 + $0x330] sm:$0xff]  }
  0x49   : > { %2050 = vmatpush3.bf16.msra.mxu1 %v2190_v19  ;;  %2029 = vmatprep.subr.bf16.mxu0 %v2191_v20  ;;  %v2246_v19 = vld [vmem:[%s2718_s1 + $0x3b0] sm:$0xff]   ;;  %v2247_v20 = vld [vmem:[%s2718_s1 + $0x378] sm:$0xff]  }
  0x4a   : > { %2051 = vmatprep.subr.bf16.mxu1 %v2192_v21  ;;  %1521 = vmatprep.mubr.bf16.mxu0 %v1790_v53  ;;  %v2248_v21 = vld [vmem:[%s2718_s1 + $0x3f8] sm:$0xff]  }
  0x4b   : > { %1562 = vmatprep.mubr.bf16.mxu1 %v1792_v55 }
  0x4c   : > { %2030 = vmatpush3.bf16.msra.mxu0 %v2193_v22  ;;  %v2249_v22 = vld [vmem:[%s2718_s1 + $0x338] sm:$0xff]  }
  0x4d   : > { %2052 = vmatpush3.bf16.msra.mxu1 %v2194_v23  ;;  %2031 = vmatprep.subr.bf16.mxu0 %v2195_v24  ;;  %v2250_v23 = vld [vmem:[%s2718_s1 + $0x3b8] sm:$0xff]   ;;  %v211_v24 = vld [vmem:[%s2392_s7 + $0x30] sm:$0xff] }
  0x4e   : > { %2053 = vmatprep.subr.bf16.mxu1 %v2196_v25  ;;  %v219_v25 = vld [vmem:[%s2392_s7 + $0x70] sm:$0xff] }
  0x50   : > { %2032 = vmatpush3.bf16.msra.mxu0 %v2197_v26  ;;  %v212_v26 = vld [vmem:[%s2392_s7 + $0x38] sm:$0xff] }
  0x51   : > { %2054 = vmatpush3.bf16.msra.mxu1 %v2198_v27  ;;  %2033 = vmatprep.subr.bf16.mxu0 %v2199_v28  ;;  %v1793_v27 = vcombine.low %v211_v24, %v219_v25  ;;  %v1794_v28 = vcombine.high %v211_v24, %v219_v25 }
  0x52   : > { %2055 = vmatprep.subr.bf16.mxu1 %v2200_v29  ;;  %v220_v29 = vld [vmem:[%s2392_s7 + $0x78] sm:$0xff] }
  0x54   : > { %2034 = vmatpush3.bf16.msra.mxu0 %v2201_v30  ;;  %v1795_v30 = vcombine.low %v212_v26, %v220_v29 }
  0x55   : > { %2056 = vmatpush3.bf16.msra.mxu1 %v2202_v31  ;;  %2035 = vmatprep.subr.bf16.mxu0 %v2203_v32  ;;  %v1796_v31 = vcombine.high %v212_v26, %v220_v29 }
  0x56   : > { %2057 = vmatprep.subr.bf16.mxu1 %v2204_v33 }
  0x58   : > { %2036 = vmatpush3.bf16.msra.mxu0 %v2205_v34 }
  0x59   : > { %2058 = vmatpush3.bf16.msra.mxu1 %v2206_v35  ;;  %2037 = vmatprep.subr.bf16.mxu0 %v2207_v36 }
  0x5a   : > { %2059 = vmatprep.subr.bf16.mxu1 %v2208_v37 }
  0x5c   : > { %2038 = vmatpush3.bf16.msra.mxu0 %v2209_v38 }
  0x5d   : > { %2060 = vmatpush3.bf16.msra.mxu1 %v2210_v39  ;;  %2039 = vmatprep.subr.bf16.mxu0 %v2211_v40 }
  0x5e   : > { %2061 = vmatprep.subr.bf16.mxu1 %v2212_v41 }
  0x60   : > { %2040 = vmatpush3.bf16.msra.mxu0 %v2213_v42 }
  0x61   : > { %2062 = vmatpush3.bf16.msra.mxu1 %v2214_v43  ;;  %2041 = vmatprep.subr.bf16.mxu0 %v2215_v44 }
  0x62   : > { %2063 = vmatprep.subr.bf16.mxu1 %v2216_v45 }
  0x64   : > { %2042 = vmatpush3.bf16.msra.mxu0 %v2217_v46 }
  0x65   : > { %2064 = vmatpush3.bf16.msra.mxu1 %v2218_v47  ;;  %2071 = vmatprep.subr.bf16.mxu0 %v2219_v56 }
  0x66   : > { %2093 = vmatprep.subr.bf16.mxu1 %v2220_v57 }
  0x67   : > { %1522 = vmatmul.mubr.bf16.vlgmr.msra.gmra.mrb[8].mxu0 %v1789_v52 }
  0x68   : > { %1563 = vmatmul.mubr.bf16.vlgmr.msra.gmra.mrb[8].mxu1 %v1791_v54  ;;  %2072 = vmatpush3.bf16.msra.mxu0 %v2221_v58 }
  0x69   : > { %2094 = vmatpush3.bf16.msra.mxu1 %v2222_v59  ;;  %2073 = vmatprep.subr.bf16.mxu0 %v2223_v60 }
  0x6a   : > { %2095 = vmatprep.subr.bf16.mxu1 %v2224_v61  ;;  %1603 = vmatprep.mubr.bf16.mxu0 %v1794_v28 }
  0x6b   : > { %1644 = vmatprep.mubr.bf16.mxu1 %v1796_v31 }
  0x6c   : > { %2074 = vmatpush3.bf16.msra.mxu0 %v2225_v62 }
  0x6d   : > { %2096 = vmatpush3.bf16.msra.mxu1 %v2226_v63  ;;  %2075 = vmatprep.subr.bf16.mxu0 %v2227_v0 }
  0x6e   : > { %2097 = vmatprep.subr.bf16.mxu1 %v2228_v1 }
  0x70   : > { %2076 = vmatpush3.bf16.msra.mxu0 %v2229_v2 }
  0x71   : > { %2098 = vmatpush3.bf16.msra.mxu1 %v2230_v3  ;;  %2077 = vmatprep.subr.bf16.mxu0 %v2231_v4 }
  0x72   : > { %2099 = vmatprep.subr.bf16.mxu1 %v2232_v5 }
  0x74   : > { %2078 = vmatpush3.bf16.msra.mxu0 %v2233_v6 }
  0x75   : > { %2100 = vmatpush3.bf16.msra.mxu1 %v2234_v7  ;;  %2079 = vmatprep.subr.bf16.mxu0 %v2235_v8 }
  0x76   : > { %2101 = vmatprep.subr.bf16.mxu1 %v2236_v9 }
  0x78   : > { %2080 = vmatpush3.bf16.msra.mxu0 %v2237_v10 }
  0x79   : > { %2102 = vmatpush3.bf16.msra.mxu1 %v2238_v11  ;;  %2081 = vmatprep.subr.bf16.mxu0 %v2239_v12 }
  0x7a   : > { %2103 = vmatprep.subr.bf16.mxu1 %v2240_v13 }
  0x7c   : > { %2082 = vmatpush3.bf16.msra.mxu0 %v2241_v14 }
  0x7d   : > { %2104 = vmatpush3.bf16.msra.mxu1 %v2242_v15  ;;  %2083 = vmatprep.subr.bf16.mxu0 %v2243_v16 }
  0x7e   : > { %2105 = vmatprep.subr.bf16.mxu1 %v2244_v17 }
  0x80   : > { %2084 = vmatpush3.bf16.msra.mxu0 %v2245_v18 }
  0x81   : > { %2106 = vmatpush3.bf16.msra.mxu1 %v2246_v19  ;;  %2085 = vmatprep.subr.bf16.mxu0 %v2247_v20 }
  0x82   : > { %2107 = vmatprep.subr.bf16.mxu1 %v2248_v21 }
  0x84   : > { %2086 = vmatpush3.bf16.msra.mxu0 %v2249_v22 }
  0x85   : > { %2108 = vmatpush3.bf16.msra.mxu1 %v2250_v23 }
  0x87   : > { %1604 = vmatmul.mubr.bf16.vlgmr.msra.gmra.mrb[12].mxu0 %v1793_v27 }
  0x88   : > { %1645 = vmatmul.mubr.bf16.vlgmr.msra.gmra.mrb[12].mxu1 %v1795_v30 }
  0xfa   : > { %v1955_v32 = vpop.f32.mrb[0].mxu0 }
  0xfb   : > { %v1977_v33 = vpop.f32.mrb[0].mxu1  ;;  %v1956_v34 = vpop.f32.mrb[1].mxu0 }
  0xfc   : > { %v1957_v35 = vadd.f32 %v1956_v34, %v1955_v32  ;;  %v1978_v36 = vpop.f32.mrb[1].mxu1  ;;  %v1958_v37 = vpop.f32.mrb[2].mxu0 }
  0xfd   : > { %v1979_v38 = vadd.f32 %v1978_v36, %v1977_v33  ;;  %v1980_v39 = vpop.f32.mrb[2].mxu1  ;;  %v1959_v40 = vpop.f32.mrb[3].mxu0 }
  0xfe   : > { %v1960_v41 = vadd.f32 %v1959_v40, %v1958_v37  ;;  %v1981_v42 = vpop.f32.mrb[3].mxu1 }
  0xff   : > { %v1401_v43 = vadd.f32 %v1979_v38, %v1957_v35  ;;  %v1982_v44 = vadd.f32 %v1981_v42, %v1980_v39 }
 0x101   : > { %v1404_v45 = vadd.f32 %v1982_v44, %v1960_v41 }
 0x11a   : > { %v1999_v46 = vpop.f32.mrb[4].mxu0 }
 0x11b   : > { %v2021_v47 = vpop.f32.mrb[4].mxu1  ;;  %v2000_v48 = vpop.f32.mrb[5].mxu0 }
 0x11c   : > { %v2001_v49 = vadd.f32 %v2000_v48, %v1999_v46  ;;  %v2022_v50 = vpop.f32.mrb[5].mxu1  ;;  %v2002_v51 = vpop.f32.mrb[6].mxu0 }
 0x11d   : > { %v2023_v52 = vadd.f32 %v2022_v50, %v2021_v47  ;;  %v2024_v53 = vpop.f32.mrb[6].mxu1  ;;  %v2003_v54 = vpop.f32.mrb[7].mxu0 }
 0x11e   : > { %v1442_v55 = vadd.f32 %v2001_v49, %v1401_v43  ;;  %v2004_v56 = vadd.f32 %v2003_v54, %v2002_v51  ;;  %v2025_v57 = vpop.f32.mrb[7].mxu1 }
 0x11f   : > { %v2026_v58 = vadd.f32 %v2025_v57, %v2024_v53 }
 0x120   : > { %v1483_v59 = vadd.f32 %v2023_v52, %v1442_v55  ;;  %v1445_v60 = vadd.f32 %v2004_v56, %v1404_v45  ;;  %v1925_v55 = vld [vmem:[%s2719_s2] ss:$0 sm:$0xff] }
 0x122   : > { %v1486_v61 = vadd.f32 %v2026_v58, %v1445_v60  ;;  %v1926_v58 = vld [vmem:[%s2720_s3] ss:$0 sm:$0xff] }
 0x13a   : > { %v2043_v62 = vpop.f32.mrb[8].mxu0 }
 0x13b   : > { %v2065_v63 = vpop.f32.mrb[8].mxu1  ;;  %v2044_v0 = vpop.f32.mrb[9].mxu0 }
 0x13c   : > { %v2066_v1 = vpop.f32.mrb[9].mxu1  ;;  %v2045_v2 = vadd.f32 %v2044_v0, %v2043_v62  ;;  %v2046_v4 = vpop.f32.mrb[10].mxu0 }
 0x13d   : > { %v2067_v3 = vadd.f32 %v2066_v1, %v2065_v63  ;;  %v2068_v5 = vpop.f32.mrb[10].mxu1  ;;  %v2047_v6 = vpop.f32.mrb[11].mxu0 }
 0x13e   : > { %v2069_v7 = vpop.f32.mrb[11].mxu1  ;;  %v1524_v8 = vadd.f32 %v2045_v2, %v1483_v59  ;;  %v2048_v9 = vadd.f32 %v2047_v6, %v2046_v4 }
 0x13f   : > { %v2070_v10 = vadd.f32 %v2069_v7, %v2068_v5 }
 0x140   : > { %v1565_v11 = vadd.f32 %v2067_v3, %v1524_v8  ;;  %v1527_v12 = vadd.f32 %v2048_v9, %v1486_v61 }
 0x142   : > { %v1568_v13 = vadd.f32 %v2070_v10, %v1527_v12 }
 0x15a   : > { %v2087_v14 = vpop.f32.mrb[12].mxu0 }
 0x15b   : > { %v2109_v15 = vpop.f32.mrb[12].mxu1  ;;  %v2088_v16 = vpop.f32.mrb[13].mxu0 }
 0x15c   : > { %v2089_v17 = vadd.f32 %v2088_v16, %v2087_v14  ;;  %v2110_v18 = vpop.f32.mrb[13].mxu1  ;;  %v2090_v19 = vpop.f32.mrb[14].mxu0 }
 0x15d   : > { %v2111_v20 = vadd.f32 %v2110_v18, %v2109_v15  ;;  %v2112_v21 = vpop.f32.mrb[14].mxu1  ;;  %v2091_v22 = vpop.f32.mrb[15].mxu0 }
 0x15e   : > { %v1606_v23 = vadd.f32 %v2089_v17, %v1565_v11  ;;  %v2092_v24 = vadd.f32 %v2091_v22, %v2090_v19  ;;  %v2113_v25 = vpop.f32.mrb[15].mxu1 }
 0x15f   : > { %v2114_v26 = vadd.f32 %v2113_v25, %v2112_v21 }
 0x160   : > { %v1647_v27 = vadd.f32 %v2111_v20, %v1606_v23  ;;  %v1609_v28 = vadd.f32 %v2092_v24, %v1568_v13 }
 0x162   : > { %v1650_v29 = vadd.f32 %v2114_v26, %v1609_v28  ;;  %v1662_v30 = vmul.f32 %v1647_v27, %v1647_v27 }
 0x164   : > { %v1653_v31 = vadd.f32 %v1650_v29, %v1647_v27  ;;  %v1663_v32 = vmul.f32 %v1650_v29, %v1650_v29 }
 0x166   : > { %v1654_v33 = vrot.slane %v1653_v31, 4  ;;  %v1664_v34 = vadd.f32 %v1663_v32, %v1662_v30 }
 0x168   : > { %v1655_v35 = vadd.f32 %v1654_v33, %v1653_v31  ;;  %v1665_v36 = vrot.slane %v1664_v34, 4 }
 0x16a   : > { %v1656_v37 = vrot.slane %v1655_v35, 2  ;;  %v1666_v38 = vadd.f32 %v1665_v36, %v1664_v34 }
 0x16c   : > { %v1657_v39 = vadd.f32 %v1656_v37, %v1655_v35  ;;  %v1667_v40 = vrot.slane %v1666_v38, 2 }
 0x16e   : > { %v1658_v41 = vrot.slane %v1657_v39, 1  ;;  %v1668_v42 = vadd.f32 %v1667_v40, %v1666_v38 }
 0x170   : > { %v1659_v43 = vadd.f32 %v1658_v41, %v1657_v39  ;;  %v1669_v44 = vrot.slane %v1668_v42, 1 }
 0x172   : > { %v1661_v45 = vmul.f32 0.0625, %v1659_v43  ;;  %v1670_v46 = vadd.f32 %v1669_v44, %v1668_v42 }
 0x174   : > { %v1671_v47 = vmul.f32 0.0625, %v1670_v46  ;;  %v1672_v48 = vmul.f32 %v1661_v45, %v1661_v45  ;;  %v1675_v49 = vsub.f32 %v1647_v27, %v1661_v45  ;;  %v1676_v50 = vsub.f32 %v1650_v29, %v1661_v45 }
 0x176   : > { %v1673_v51 = vsub.f32 %v1671_v47, %v1672_v48 }
 0x178   : > { %v1674_v52 = vmax.f32 %v1673_v51, 0.0 }
 0x17a   : > { %v1677_v53 = vadd.f32 1e-05, %v1674_v52 }
 0x17c   : > { %2251 = vrsqrt.f32 %v1677_v53 }
 0x186   : > { %v2252_v54 = vpop.eup %2251 }
 0x187   : > { %v1679_v56 = vmul.f32 %v2252_v54, %v1675_v49  ;;  %v1680_v57 = vmul.f32 %v2252_v54, %v1676_v50 }
 0x189   : > { %v1688_v59 = vmul.f32 %v1925_v55, %v1679_v56  ;;  %v1689_v60 = vmul.f32 %v1925_v55, %v1680_v57 }
 0x18b   : > { %v1697_v61 = vadd.f32 %v1926_v58, %v1688_v59  ;;  %v1698_v62 = vadd.f32 %v1926_v58, %v1689_v60 }
 0x18d   : > { %vm1699_vm0 = vcmp.ge.f32.partialorder %v1697_v61, 0.0  ;;  %vm1700_vm1 = vcmp.ge.f32.partialorder %v1698_v62, 0.0  ;;  %v1701_v63 = vmul.f32 0.2, %v1697_v61  ;;  %v1702_v0 = vmul.f32 0.2, %v1698_v62 }
 0x18f   : > { %v1703_v1 = vsel %vm1699_vm0, %v1697_v61, %v1701_v63  ;;  %v1704_v2 = vsel %vm1700_vm1, %v1698_v62, %v1702_v0 }
 0x190   : > { %v1937_v3 = vpack.c.bf16 %v1704_v2, %v1703_v1 }
 0x192   : > { %1938 = vst [vmem:[%s202_s28] sm:$0xff] %v1937_v3  }
 0x193 PF: > { %s14_s15 = sadd.s32 1, %s2259_s15  }
 0x194   : > { %p11_p4 = scmp.ge.s32.totalorder %s14_s15, 4  }
 0x196   :  { %13 = sbr.rel (!%p11_p4) target bundleno = 1 (0x1), region = 66 }

// kernel: discriminator_forward.9
= control target key start
LH: loop header
LB: loop body
LE: loop exit
PB: predicated region body
PF: predicated region fallthrough
CT: control target
= control target key end

     0   :  { %v1925_v22 = vmov 1966171168   ;;  %v286_v24 = vlaneseq  ;;  %s2376_s1 = inlined_call_operand.vmem [shape: bf16[2048,128], index: 1, kind: input, shape index: {}]   ;;  %s2377_s0 = inlined_call_operand.vmem [shape: bf16[2,2048], index: 0, kind: input, shape index: {}]   ;;  %s2378_s2 = inlined_call_operand.vmem [shape: f32[1,128], index: 2, kind: input, shape index: {}]   ;;  %s2379_s3 = inlined_call_operand.vmem [shape: f32[2,128], index: 3, kind: output, shape index: {}]  }
   0x1   :  { %v1795_v0 = vld [vmem:[%s2376_s1 + $0x40] sm:$0xff]   ;;  %v1799_v4 = vld [vmem:[%s2376_s1 + $0x48] sm:$0xff]   ;;  %v1803_v8 = vld [vmem:[%s2376_s1 + $0x50] sm:$0xff]   ;;  %v284_v23 = vunpack.c.l.s4 %v1925_v22 }
   0x2   :  { %v1796_v1 = vld [vmem:[%s2376_s1 + $0xc0] sm:$0xff]   ;;  %1618 = vmatprep.subr.bf16.mxu0 %v1795_v0  ;;  %v1800_v5 = vld [vmem:[%s2376_s1 + $0xc8] sm:$0xff]   ;;  %v1804_v9 = vld [vmem:[%s2376_s1 + $0xd0] sm:$0xff]   ;;  %v287_v30 = vshrl.u32 %v286_v24, 7 }
   0x3   :  { %v1797_v2 = vld [vmem:[%s2376_s1] sm:$0xff]   ;;  %1640 = vmatprep.subr.bf16.mxu1 %v1796_v1  ;;  %v1801_v6 = vld [vmem:[%s2376_s1 + $0x8] sm:$0xff]   ;;  %v1805_v10 = vld [vmem:[%s2376_s1 + $0x10] sm:$0xff]   ;;  %v285_v29 = vunpack.c.0.s8 %v284_v23 }
   0x4   :  { %v1798_v3 = vld [vmem:[%s2376_s1 + $0x80] sm:$0xff]   ;;  %1619 = vmatpush3.bf16.msra.mxu0 %v1797_v2  ;;  %v1802_v7 = vld [vmem:[%s2376_s1 + $0x88] sm:$0xff]   ;;  %v1806_v11 = vld [vmem:[%s2376_s1 + $0x90] sm:$0xff]  }
   0x5   :  { %1641 = vmatpush3.bf16.msra.mxu1 %v1798_v3  ;;  %1620 = vmatprep.subr.bf16.mxu0 %v1799_v4  ;;  %v1807_v12 = vld [vmem:[%s2376_s1 + $0x58] sm:$0xff]   ;;  %v1811_v16 = vld [vmem:[%s2376_s1 + $0x60] sm:$0xff]   ;;  %v1815_v20 = vld [vmem:[%s2376_s1 + $0x68] sm:$0xff]   ;;  %v2036_v35 = vsub.s32 %v285_v29, %v287_v30 }
   0x6   :  { %1642 = vmatprep.subr.bf16.mxu1 %v1800_v5  ;;  %v1808_v13 = vld [vmem:[%s2376_s1 + $0xd8] sm:$0xff]   ;;  %v1812_v17 = vld [vmem:[%s2376_s1 + $0xe0] sm:$0xff]   ;;  %v1816_v21 = vld [vmem:[%s2376_s1 + $0xe8] sm:$0xff]  }
   0x7   :  { %v1809_v14 = vld [vmem:[%s2376_s1 + $0x18] sm:$0xff]   ;;  %v1813_v18 = vld [vmem:[%s2376_s1 + $0x20] sm:$0xff]   ;;  %v1817_v25 = vld [vmem:[%s2376_s1 + $0x28] sm:$0xff]  }
   0x8   :  { %1621 = vmatpush3.bf16.msra.mxu0 %v1801_v6  ;;  %v1810_v15 = vld [vmem:[%s2376_s1 + $0x98] sm:$0xff]   ;;  %v1814_v19 = vld [vmem:[%s2376_s1 + $0xa0] sm:$0xff]   ;;  %v1818_v26 = vld [vmem:[%s2376_s1 + $0xa8] sm:$0xff]  }
   0x9   :  { %1643 = vmatpush3.bf16.msra.mxu1 %v1802_v7  ;;  %1622 = vmatprep.subr.bf16.mxu0 %v1803_v8  ;;  %v1819_v27 = vld [vmem:[%s2376_s1 + $0x70] sm:$0xff]   ;;  %v1823_v33 = vld [vmem:[%s2376_s1 + $0x78] sm:$0xff]   ;;  %v15_v38 = vld [vmem:[%s2377_s0] sm:$0xff] }
   0xa   :  { %1644 = vmatprep.subr.bf16.mxu1 %v1804_v9  ;;  %v1820_v28 = vld [vmem:[%s2376_s1 + $0xf0] sm:$0xff]   ;;  %v1824_v34 = vld [vmem:[%s2376_s1 + $0xf8] sm:$0xff]   ;;  %v282_v39 = vcombine.high %v15_v38, %v15_v38  ;;  %v289_v40 = vrot.slane %v15_v38, %v2036_v35  ;;  %v1829_v41 = vld [vmem:[%s2376_s1 + $0x140] sm:$0xff]  }
   0xb   :  { %v1821_v31 = vld [vmem:[%s2376_s1 + $0x30] sm:$0xff]   ;;  %v1825_v36 = vld [vmem:[%s2376_s1 + $0x38] sm:$0xff]   ;;  %v1830_v42 = vld [vmem:[%s2376_s1 + $0x1c0] sm:$0xff]  }
   0xc   :  { %1623 = vmatpush3.bf16.msra.mxu0 %v1805_v10  ;;  %v1822_v32 = vld [vmem:[%s2376_s1 + $0xb0] sm:$0xff]   ;;  %v1826_v37 = vld [vmem:[%s2376_s1 + $0xb8] sm:$0xff]   ;;  %v297_v43 = vcombine.high %v289_v40, %v289_v40  ;;  %v305_v44 = vrot.slane %v289_v40, %v2036_v35  ;;  %v2056_v45 = vrot.slane %v282_v39, %v2036_v35  ;;  %v1831_v47 = vld [vmem:[%s2376_s1 + $0x100] sm:$0xff]  }
   0xd   :  { %1645 = vmatpush3.bf16.msra.mxu1 %v1806_v11  ;;  %1624 = vmatprep.subr.bf16.mxu0 %v1807_v12  ;;  %v1833_v50 = vld [vmem:[%s2376_s1 + $0x148] sm:$0xff]   ;;  %v1832_v52 = vld [vmem:[%s2376_s1 + $0x180] sm:$0xff]   ;;  %v1837_v57 = vld [vmem:[%s2376_s1 + $0x150] sm:$0xff]  }
   0xe   :  { %1646 = vmatprep.subr.bf16.mxu1 %v1808_v13  ;;  %v319_v46 = vrot.slane %v297_v43, %v2036_v35  ;;  %v298_v48 = vcombine.high %v2056_v45, %v2056_v45  ;;  %v327_v49 = vcombine.high %v305_v44, %v305_v44  ;;  %v1834_v54 = vld [vmem:[%s2376_s1 + $0x1c8] sm:$0xff]   ;;  %v1838_v59 = vld [vmem:[%s2376_s1 + $0x1d0] sm:$0xff]   ;;  %v1841_v61 = vld [vmem:[%s2376_s1 + $0x158] sm:$0xff]  }
   0xf   :  { %v1835_v55 = vld [vmem:[%s2376_s1 + $0x108] sm:$0xff]   ;;  %v1839_v60 = vld [vmem:[%s2376_s1 + $0x110] sm:$0xff]   ;;  %v1842_v63 = vld [vmem:[%s2376_s1 + $0x1d8] sm:$0xff]  }
  0x10   :  { %1625 = vmatpush3.bf16.msra.mxu0 %v1809_v14  ;;  %1196 = vmatprep.mubr.bf16.mxu0 %v319_v46  ;;  %v329_v51 = vcombine.high %v319_v46, %v319_v46  ;;  %v326_v53 = vrot.slane %v298_v48, %v2036_v35  ;;  %v1836_v58 = vld [vmem:[%s2376_s1 + $0x188] sm:$0xff]   ;;  %v1840_v62 = vld [vmem:[%s2376_s1 + $0x190] sm:$0xff]   ;;  %v1843_v0 = vld [vmem:[%s2376_s1 + $0x118] sm:$0xff]  }
  0x11   :  { %1647 = vmatpush3.bf16.msra.mxu1 %v1810_v15  ;;  %1626 = vmatprep.subr.bf16.mxu0 %v1811_v16  ;;  %v1845_v1 = vld [vmem:[%s2376_s1 + $0x160] sm:$0xff]   ;;  %v1844_v2 = vld [vmem:[%s2376_s1 + $0x198] sm:$0xff]   ;;  %v2116_v5 = vld [vmem:[%s2377_s0 + $0x8] sm:$0xff] }
  0x12   :  { %1648 = vmatprep.subr.bf16.mxu1 %v1812_v17  ;;  %1236 = vmatprep.mubr.bf16.mxu1 %v329_v51  ;;  %v330_v56 = vcombine.high %v326_v53, %v326_v53  ;;  %v1846_v3 = vld [vmem:[%s2376_s1 + $0x1e0] sm:$0xff]   ;;  %v1849_v6 = vld [vmem:[%s2376_s1 + $0x168] sm:$0xff]   ;;  %v1853_v10 = vld [vmem:[%s2376_s1 + $0x170] sm:$0xff]   ;;  %v2138_v12 = vrot.slane %v2116_v5, %v2036_v35  ;;  %v331_v46 = vcombine.high %v2116_v5, %v2116_v5 }
  0x13   :  { %v1847_v4 = vld [vmem:[%s2376_s1 + $0x120] sm:$0xff]   ;;  %v1850_v8 = vld [vmem:[%s2376_s1 + $0x1e8] sm:$0xff]   ;;  %v1854_v13 = vld [vmem:[%s2376_s1 + $0x1f0] sm:$0xff]  }
  0x14   :  { %1627 = vmatpush3.bf16.msra.mxu0 %v1813_v18  ;;  %v1848_v7 = vld [vmem:[%s2376_s1 + $0x1a0] sm:$0xff]   ;;  %v1851_v9 = vld [vmem:[%s2376_s1 + $0x128] sm:$0xff]   ;;  %v1855_v14 = vld [vmem:[%s2376_s1 + $0x130] sm:$0xff]   ;;  %v346_v17 = vcombine.high %v2138_v12, %v2138_v12 }
  0x15   :  { %1649 = vmatpush3.bf16.msra.mxu1 %v1814_v19  ;;  %1628 = vmatprep.subr.bf16.mxu0 %v1815_v20  ;;  %v1852_v11 = vld [vmem:[%s2376_s1 + $0x1a8] sm:$0xff]   ;;  %v1857_v15 = vld [vmem:[%s2376_s1 + $0x178] sm:$0xff]   ;;  %v1856_v16 = vld [vmem:[%s2376_s1 + $0x1b0] sm:$0xff]   ;;  %v312_v20 = vrot.slane %v2056_v45, %v2036_v35 }
  0x16   :  { %1650 = vmatprep.subr.bf16.mxu1 %v1816_v21  ;;  %v1858_v18 = vld [vmem:[%s2376_s1 + $0x1f8] sm:$0xff]   ;;  %v1861_v21 = vld [vmem:[%s2376_s1 + $0x240] sm:$0xff]   ;;  %v368_v23 = vrot.slane %v346_v17, %v2036_v35  ;;  %v1866_v30 = vld [vmem:[%s2376_s1 + $0x2c8] sm:$0xff]  }
  0x17   :  { %v1859_v19 = vld [vmem:[%s2376_s1 + $0x138] sm:$0xff]   ;;  %v1862_v24 = vld [vmem:[%s2376_s1 + $0x2c0] sm:$0xff]   ;;  %v1872_v38 = vld [vmem:[%s2376_s1 + $0x290] sm:$0xff]  }
  0x18   :  { %1629 = vmatpush3.bf16.msra.mxu0 %v1817_v25  ;;  %v1860_v22 = vld [vmem:[%s2376_s1 + $0x1b8] sm:$0xff]   ;;  %v1863_v25 = vld [vmem:[%s2376_s1 + $0x200] sm:$0xff]   ;;  %v378_v29 = vcombine.high %v368_v23, %v368_v23  ;;  %v1881_v45 = vld [vmem:[%s2376_s1 + $0x268] sm:$0xff]  }
  0x19   :  { %1651 = vmatpush3.bf16.msra.mxu1 %v1818_v26  ;;  %1630 = vmatprep.subr.bf16.mxu0 %v1819_v27  ;;  %v328_v26 = vcombine.high %v312_v20, %v312_v20  ;;  %v1865_v27 = vld [vmem:[%s2376_s1 + $0x248] sm:$0xff]   ;;  %v1874_v39 = vld [vmem:[%s2376_s1 + $0x2d8] sm:$0xff]   ;;  %v1878_v43 = vld [vmem:[%s2376_s1 + $0x2e0] sm:$0xff]  }
  0x1a   :  { %1652 = vmatprep.subr.bf16.mxu1 %v1820_v28  ;;  %v1864_v28 = vld [vmem:[%s2376_s1 + $0x280] sm:$0xff]   ;;  %v1875_v40 = vld [vmem:[%s2376_s1 + $0x218] sm:$0xff]   ;;  %v1882_v48 = vld [vmem:[%s2376_s1 + $0x2e8] sm:$0xff]  }
  0x1b   :  { %v1884_v51 = vld [vmem:[%s2376_s1 + $0x2a8] sm:$0xff]   ;;  %v1908_v17 = vld [vmem:[%s2376_s1 + $0x398] sm:$0xff]  }
  0x1c   :  { %1631 = vmatpush3.bf16.msra.mxu0 %v1821_v31  ;;  %v1867_v31 = vld [vmem:[%s2376_s1 + $0x208] sm:$0xff]  }
  0x1d   :  { %1653 = vmatpush3.bf16.msra.mxu1 %v1822_v32  ;;  %1632 = vmatprep.subr.bf16.mxu0 %v1823_v33  ;;  %v1869_v32 = vld [vmem:[%s2376_s1 + $0x250] sm:$0xff]   ;;  %v1868_v33 = vld [vmem:[%s2376_s1 + $0x288] sm:$0xff]  }
  0x1e   :  { %1654 = vmatprep.subr.bf16.mxu1 %v1824_v34  ;;  %v1870_v34 = vld [vmem:[%s2376_s1 + $0x2d0] sm:$0xff]  }
  0x20   :  { %1633 = vmatpush3.bf16.msra.mxu0 %v1825_v36  ;;  %v1871_v36 = vld [vmem:[%s2376_s1 + $0x210] sm:$0xff]  }
  0x21   :  { %1655 = vmatpush3.bf16.msra.mxu1 %v1826_v37  ;;  %1662 = vmatprep.subr.bf16.mxu0 %v1829_v41  ;;  %v1873_v37 = vld [vmem:[%s2376_s1 + $0x258] sm:$0xff]   ;;  %v1877_v41 = vld [vmem:[%s2376_s1 + $0x260] sm:$0xff]  }
  0x22   :  { %1684 = vmatprep.subr.bf16.mxu1 %v1830_v42  ;;  %v1876_v42 = vld [vmem:[%s2376_s1 + $0x298] sm:$0xff]  }
  0x23   :  { %1197 = vmatmul.mubr.bf16.vlgmr.msra.gmra.mrb[0].mxu0 %v305_v44  ;;  %v1879_v44 = vld [vmem:[%s2376_s1 + $0x220] sm:$0xff]  }
  0x24   :  { %1663 = vmatpush3.bf16.msra.mxu0 %v1831_v47  ;;  %1237 = vmatmul.mubr.bf16.vlgmr.msra.gmra.mrb[0].mxu1 %v327_v49  ;;  %v1880_v47 = vld [vmem:[%s2376_s1 + $0x2a0] sm:$0xff]   ;;  %v1883_v49 = vld [vmem:[%s2376_s1 + $0x228] sm:$0xff]  }
  0x25   :  { %1664 = vmatprep.subr.bf16.mxu0 %v1833_v50  ;;  %1685 = vmatpush3.bf16.msra.mxu1 %v1832_v52  ;;  %v1885_v50 = vld [vmem:[%s2376_s1 + $0x270] sm:$0xff]   ;;  %v2244_v52 = vrot.slane %v331_v46, %v2036_v35 }
  0x26   :  { %1276 = vmatprep.mubr.bf16.mxu0 %v326_v53  ;;  %1686 = vmatprep.subr.bf16.mxu1 %v1834_v54  ;;  %v1886_v53 = vld [vmem:[%s2376_s1 + $0x2f0] sm:$0xff]  }
  0x27   :  { %1316 = vmatprep.mubr.bf16.mxu1 %v330_v56  ;;  %v1887_v54 = vld [vmem:[%s2376_s1 + $0x230] sm:$0xff]  }
  0x28   :  { %1665 = vmatpush3.bf16.msra.mxu0 %v1835_v55  ;;  %v1889_v55 = vld [vmem:[%s2376_s1 + $0x278] sm:$0xff]   ;;  %v1888_v56 = vld [vmem:[%s2376_s1 + $0x2b0] sm:$0xff]  }
  0x29   :  { %1666 = vmatprep.subr.bf16.mxu0 %v1837_v57  ;;  %1687 = vmatpush3.bf16.msra.mxu1 %v1836_v58  ;;  %v347_v57 = vcombine.high %v2244_v52, %v2244_v52  ;;  %v1890_v58 = vld [vmem:[%s2376_s1 + $0x2f8] sm:$0xff]  }
  0x2a   :  { %1688 = vmatprep.subr.bf16.mxu1 %v1838_v59  ;;  %v1891_v59 = vld [vmem:[%s2376_s1 + $0x238] sm:$0xff]  }
  0x2c   :  { %1667 = vmatpush3.bf16.msra.mxu0 %v1839_v60  ;;  %v354_v60 = vrot.slane %v2138_v12, %v2036_v35  ;;  %v1905_v12 = vld [vmem:[%s2376_s1 + $0x358] sm:$0xff]  }
  0x2d   :  { %1668 = vmatprep.subr.bf16.mxu0 %v1841_v61  ;;  %1689 = vmatpush3.bf16.msra.mxu1 %v1840_v62  ;;  %v1893_v61 = vld [vmem:[%s2376_s1 + $0x340] sm:$0xff]   ;;  %v1892_v62 = vld [vmem:[%s2376_s1 + $0x2b8] sm:$0xff]  }
  0x2e   :  { %1690 = vmatprep.subr.bf16.mxu1 %v1842_v63  ;;  %v375_v63 = vrot.slane %v347_v57, %v2036_v35 }
  0x30   :  { %1669 = vmatpush3.bf16.msra.mxu0 %v1843_v0  ;;  %v1894_v0 = vld [vmem:[%s2376_s1 + $0x3c0] sm:$0xff]   ;;  %v379_v5 = vcombine.high %v375_v63, %v375_v63 }
  0x31   :  { %1670 = vmatprep.subr.bf16.mxu0 %v1845_v1  ;;  %1691 = vmatpush3.bf16.msra.mxu1 %v1844_v2  ;;  %v1895_v1 = vld [vmem:[%s2376_s1 + $0x300] sm:$0xff]   ;;  %v376_v2 = vcombine.high %v354_v60, %v354_v60 }
  0x32   :  { %1692 = vmatprep.subr.bf16.mxu1 %v1846_v3  ;;  %v1897_v3 = vld [vmem:[%s2376_s1 + $0x348] sm:$0xff]  }
  0x34   :  { %1671 = vmatpush3.bf16.msra.mxu0 %v1847_v4  ;;  %v1896_v4 = vld [vmem:[%s2376_s1 + $0x380] sm:$0xff]  }
  0x35   :  { %1672 = vmatprep.subr.bf16.mxu0 %v1849_v6  ;;  %1693 = vmatpush3.bf16.msra.mxu1 %v1848_v7  ;;  %v1898_v6 = vld [vmem:[%s2376_s1 + $0x3c8] sm:$0xff]  }
  0x36   :  { %1694 = vmatprep.subr.bf16.mxu1 %v1850_v8  ;;  %v1899_v7 = vld [vmem:[%s2376_s1 + $0x308] sm:$0xff]   ;;  %v1901_v8 = vld [vmem:[%s2376_s1 + $0x350] sm:$0xff]  }
  0x38   :  { %1673 = vmatpush3.bf16.msra.mxu0 %v1851_v9  ;;  %v1900_v9 = vld [vmem:[%s2376_s1 + $0x388] sm:$0xff]  }
  0x39   :  { %1674 = vmatprep.subr.bf16.mxu0 %v1853_v10  ;;  %1695 = vmatpush3.bf16.msra.mxu1 %v1852_v11  ;;  %v1902_v10 = vld [vmem:[%s2376_s1 + $0x3d0] sm:$0xff]  }
  0x3a   :  { %1696 = vmatprep.subr.bf16.mxu1 %v1854_v13  ;;  %v1903_v11 = vld [vmem:[%s2376_s1 + $0x310] sm:$0xff]  }
  0x3b   :  { %v1904_v13 = vld [vmem:[%s2376_s1 + $0x390] sm:$0xff]  }
  0x3c   :  { %1675 = vmatpush3.bf16.msra.mxu0 %v1855_v14  ;;  %v1906_v14 = vld [vmem:[%s2376_s1 + $0x3d8] sm:$0xff]  }
  0x3d   :  { %1676 = vmatprep.subr.bf16.mxu0 %v1857_v15  ;;  %1697 = vmatpush3.bf16.msra.mxu1 %v1856_v16  ;;  %v1907_v15 = vld [vmem:[%s2376_s1 + $0x318] sm:$0xff]   ;;  %v1909_v16 = vld [vmem:[%s2376_s1 + $0x360] sm:$0xff]  }
  0x3e   :  { %1698 = vmatprep.subr.bf16.mxu1 %v1858_v18  ;;  %v1910_v18 = vld [vmem:[%s2376_s1 + $0x3e0] sm:$0xff]  }
  0x40   :  { %1677 = vmatpush3.bf16.msra.mxu0 %v1859_v19  ;;  %v1911_v19 = vld [vmem:[%s2376_s1 + $0x320] sm:$0xff]  }
  0x41   :  { %1706 = vmatprep.subr.bf16.mxu0 %v1861_v21  ;;  %1699 = vmatpush3.bf16.msra.mxu1 %v1860_v22  ;;  %v1912_v21 = vld [vmem:[%s2376_s1 + $0x3a0] sm:$0xff]   ;;  %v1914_v22 = vld [vmem:[%s2376_s1 + $0x3e8] sm:$0xff]  }
  0x42   :  { %1728 = vmatprep.subr.bf16.mxu1 %v1862_v24  ;;  %v1917_v24 = vld [vmem:[%s2376_s1 + $0x370] sm:$0xff]  }
  0x43   :  { %1277 = vmatmul.mubr.bf16.vlgmr.msra.gmra.mrb[4].mxu0 %v312_v20  ;;  %v1913_v20 = vld [vmem:[%s2376_s1 + $0x368] sm:$0xff]  }
  0x44   :  { %1707 = vmatpush3.bf16.msra.mxu0 %v1863_v25  ;;  %1356 = vmatprep.mubr.bf16.mxu0 %v368_v23  ;;  %v1915_v23 = vld [vmem:[%s2376_s1 + $0x328] sm:$0xff]  }
  0x45   :  { %1317 = vmatmul.mubr.bf16.vlgmr.msra.gmra.mrb[4].mxu1 %v328_v26  ;;  %1708 = vmatprep.subr.bf16.mxu0 %v1865_v27  ;;  %v1916_v25 = vld [vmem:[%s2376_s1 + $0x3a8] sm:$0xff]   ;;  %v1918_v26 = vld [vmem:[%s2376_s1 + $0x3f0] sm:$0xff]  }
  0x46   :  { %1729 = vmatpush3.bf16.msra.mxu1 %v1864_v28  ;;  %1396 = vmatprep.mubr.bf16.mxu1 %v378_v29  ;;  %v1919_v27 = vld [vmem:[%s2376_s1 + $0x330] sm:$0xff]   ;;  %v1921_v28 = vld [vmem:[%s2376_s1 + $0x378] sm:$0xff]  }
  0x47   :  { %1730 = vmatprep.subr.bf16.mxu1 %v1866_v30  ;;  %v1920_v29 = vld [vmem:[%s2376_s1 + $0x3b0] sm:$0xff]   ;;  %v1922_v30 = vld [vmem:[%s2376_s1 + $0x3f8] sm:$0xff]  }
  0x48   :  { %1709 = vmatpush3.bf16.msra.mxu0 %v1867_v31  ;;  %v1923_v31 = vld [vmem:[%s2376_s1 + $0x338] sm:$0xff]  }
  0x49   :  { %1710 = vmatprep.subr.bf16.mxu0 %v1869_v32  ;;  %v361_v32 = vrot.slane %v2244_v52, %v2036_v35 }
  0x4a   :  { %1731 = vmatpush3.bf16.msra.mxu1 %v1868_v33  ;;  %v1924_v33 = vld [vmem:[%s2376_s1 + $0x3b8] sm:$0xff]  }
  0x4b   :  { %1732 = vmatprep.subr.bf16.mxu1 %v1870_v34  ;;  %v377_v34 = vcombine.high %v361_v32, %v361_v32 }
  0x4c   :  { %1711 = vmatpush3.bf16.msra.mxu0 %v1871_v36 }
  0x4d   :  { %1712 = vmatprep.subr.bf16.mxu0 %v1873_v37  ;;  %v1489_v37 = vld [vmem:[%s2378_s2] ss:$0 sm:$0xff] }
  0x4e   :  { %1733 = vmatpush3.bf16.msra.mxu1 %v1872_v38 }
  0x4f   :  { %1734 = vmatprep.subr.bf16.mxu1 %v1874_v39 }
  0x50   :  { %1713 = vmatpush3.bf16.msra.mxu0 %v1875_v40 }
  0x51   :  { %1714 = vmatprep.subr.bf16.mxu0 %v1877_v41 }
  0x52   :  { %1735 = vmatpush3.bf16.msra.mxu1 %v1876_v42 }
  0x53   :  { %1736 = vmatprep.subr.bf16.mxu1 %v1878_v43 }
  0x54   :  { %1715 = vmatpush3.bf16.msra.mxu0 %v1879_v44 }
  0x55   :  { %1716 = vmatprep.subr.bf16.mxu0 %v1881_v45 }
  0x56   :  { %1737 = vmatpush3.bf16.msra.mxu1 %v1880_v47 }
  0x57   :  { %1738 = vmatprep.subr.bf16.mxu1 %v1882_v48 }
  0x58   :  { %1717 = vmatpush3.bf16.msra.mxu0 %v1883_v49 }
  0x59   :  { %1718 = vmatprep.subr.bf16.mxu0 %v1885_v50 }
  0x5a   :  { %1739 = vmatpush3.bf16.msra.mxu1 %v1884_v51 }
  0x5b   :  { %1740 = vmatprep.subr.bf16.mxu1 %v1886_v53 }
  0x5c   :  { %1719 = vmatpush3.bf16.msra.mxu0 %v1887_v54 }
  0x5d   :  { %1720 = vmatprep.subr.bf16.mxu0 %v1889_v55 }
  0x5e   :  { %1741 = vmatpush3.bf16.msra.mxu1 %v1888_v56 }
  0x5f   :  { %1742 = vmatprep.subr.bf16.mxu1 %v1890_v58 }
  0x60   :  { %1721 = vmatpush3.bf16.msra.mxu0 %v1891_v59 }
  0x61   :  { %1750 = vmatprep.subr.bf16.mxu0 %v1893_v61 }
  0x62   :  { %1743 = vmatpush3.bf16.msra.mxu1 %v1892_v62 }
  0x63   :  { %1357 = vmatmul.mubr.bf16.vlgmr.msra.gmra.mrb[8].mxu0 %v354_v60  ;;  %1772 = vmatprep.subr.bf16.mxu1 %v1894_v0 }
  0x64   :  { %1751 = vmatpush3.bf16.msra.mxu0 %v1895_v1  ;;  %1436 = vmatprep.mubr.bf16.mxu0 %v375_v63 }
  0x65   :  { %1397 = vmatmul.mubr.bf16.vlgmr.msra.gmra.mrb[8].mxu1 %v376_v2  ;;  %1752 = vmatprep.subr.bf16.mxu0 %v1897_v3 }
  0x66   :  { %1773 = vmatpush3.bf16.msra.mxu1 %v1896_v4  ;;  %1476 = vmatprep.mubr.bf16.mxu1 %v379_v5 }
  0x67   :  { %1774 = vmatprep.subr.bf16.mxu1 %v1898_v6 }
  0x68   :  { %1753 = vmatpush3.bf16.msra.mxu0 %v1899_v7 }
  0x69   :  { %1754 = vmatprep.subr.bf16.mxu0 %v1901_v8 }
  0x6a   :  { %1775 = vmatpush3.bf16.msra.mxu1 %v1900_v9 }
  0x6b   :  { %1776 = vmatprep.subr.bf16.mxu1 %v1902_v10 }
  0x6c   :  { %1755 = vmatpush3.bf16.msra.mxu0 %v1903_v11 }
  0x6d   :  { %1756 = vmatprep.subr.bf16.mxu0 %v1905_v12 }
  0x6e   :  { %1777 = vmatpush3.bf16.msra.mxu1 %v1904_v13 }
  0x6f   :  { %1778 = vmatprep.subr.bf16.mxu1 %v1906_v14 }
  0x70   :  { %1757 = vmatpush3.bf16.msra.mxu0 %v1907_v15 }
  0x71   :  { %1758 = vmatprep.subr.bf16.mxu0 %v1909_v16 }
  0x72   :  { %1779 = vmatpush3.bf16.msra.mxu1 %v1908_v17 }
  0x73   :  { %1780 = vmatprep.subr.bf16.mxu1 %v1910_v18 }
  0x74   :  { %1759 = vmatpush3.bf16.msra.mxu0 %v1911_v19 }
  0x75   :  { %1760 = vmatprep.subr.bf16.mxu0 %v1913_v20 }
  0x76   :  { %1781 = vmatpush3.bf16.msra.mxu1 %v1912_v21 }
  0x77   :  { %1782 = vmatprep.subr.bf16.mxu1 %v1914_v22 }
  0x78   :  { %1761 = vmatpush3.bf16.msra.mxu0 %v1915_v23 }
  0x79   :  { %1762 = vmatprep.subr.bf16.mxu0 %v1917_v24 }
  0x7a   :  { %1783 = vmatpush3.bf16.msra.mxu1 %v1916_v25 }
  0x7b   :  { %1784 = vmatprep.subr.bf16.mxu1 %v1918_v26 }
  0x7c   :  { %1763 = vmatpush3.bf16.msra.mxu0 %v1919_v27 }
  0x7d   :  { %1764 = vmatprep.subr.bf16.mxu0 %v1921_v28 }
  0x7e   :  { %1785 = vmatpush3.bf16.msra.mxu1 %v1920_v29 }
  0x7f   :  { %1786 = vmatprep.subr.bf16.mxu1 %v1922_v30 }
  0x80   :  { %1765 = vmatpush3.bf16.msra.mxu0 %v1923_v31 }
  0x82   :  { %1787 = vmatpush3.bf16.msra.mxu1 %v1924_v33 }
  0x83   :  { %1437 = vmatmul.mubr.bf16.vlgmr.msra.gmra.mrb[12].mxu0 %v361_v32 }
  0x85   :  { %1477 = vmatmul.mubr.bf16.vlgmr.msra.gmra.mrb[12].mxu1 %v377_v34 }
  0xf6   :  { %v1634_v36 = vpop.f32.mrb[0].mxu0 }
  0xf7   :  { %v1635_v38 = vpop.f32.mrb[1].mxu0  ;;  %v1656_v39 = vpop.f32.mrb[0].mxu1 }
  0xf8   :  { %v1636_v40 = vadd.f32 %v1635_v38, %v1634_v36  ;;  %v1637_v35 = vpop.f32.mrb[2].mxu0  ;;  %v1657_v41 = vpop.f32.mrb[1].mxu1 }
  0xf9   :  { %v1638_v42 = vpop.f32.mrb[3].mxu0  ;;  %v1658_v44 = vadd.f32 %v1657_v41, %v1656_v39  ;;  %v1659_v45 = vpop.f32.mrb[2].mxu1 }
  0xfa   :  { %v1199_v43 = vadd.f32 %v1636_v40, %v1489_v37  ;;  %v1660_v46 = vpop.f32.mrb[3].mxu1 }
  0xfc   :  { %v1239_v47 = vadd.f32 %v1658_v44, %v1199_v43 }
 0x116   :  { %v1678_v48 = vpop.f32.mrb[4].mxu0 }
 0x117   :  { %v1679_v49 = vpop.f32.mrb[5].mxu0 }
 0x118   :  { %v1700_v50 = vpop.f32.mrb[4].mxu1  ;;  %v1680_v51 = vadd.f32 %v1679_v49, %v1678_v48  ;;  %v1681_v52 = vpop.f32.mrb[6].mxu0 }
 0x119   :  { %v1701_v53 = vpop.f32.mrb[5].mxu1  ;;  %v1682_v54 = vpop.f32.mrb[7].mxu0 }
 0x11a   :  { %v1279_v55 = vadd.f32 %v1680_v51, %v1239_v47  ;;  %v1702_v56 = vadd.f32 %v1701_v53, %v1700_v50  ;;  %v1703_v57 = vpop.f32.mrb[6].mxu1 }
 0x11b   :  { %v1704_v58 = vpop.f32.mrb[7].mxu1 }
 0x11c   :  { %v1319_v59 = vadd.f32 %v1702_v56, %v1279_v55 }
 0x136   :  { %v1722_v60 = vpop.f32.mrb[8].mxu0 }
 0x137   :  { %v1723_v61 = vpop.f32.mrb[9].mxu0 }
 0x138   :  { %v1744_v62 = vpop.f32.mrb[8].mxu1  ;;  %v1724_v63 = vadd.f32 %v1723_v61, %v1722_v60  ;;  %v1725_v0 = vpop.f32.mrb[10].mxu0 }
 0x139   :  { %v1745_v1 = vpop.f32.mrb[9].mxu1  ;;  %v1726_v2 = vpop.f32.mrb[11].mxu0 }
 0x13a   :  { %v1359_v3 = vadd.f32 %v1724_v63, %v1319_v59  ;;  %v1746_v4 = vadd.f32 %v1745_v1, %v1744_v62  ;;  %v1747_v5 = vpop.f32.mrb[10].mxu1 }
 0x13b   :  { %v1748_v6 = vpop.f32.mrb[11].mxu1 }
 0x13c   :  { %v1399_v7 = vadd.f32 %v1746_v4, %v1359_v3 }
 0x156   :  { %v1766_v8 = vpop.f32.mrb[12].mxu0 }
 0x157   :  { %v1767_v9 = vpop.f32.mrb[13].mxu0 }
 0x158   :  { %v1788_v10 = vpop.f32.mrb[12].mxu1  ;;  %v1768_v11 = vadd.f32 %v1767_v9, %v1766_v8  ;;  %v1769_v12 = vpop.f32.mrb[14].mxu0 }
 0x159   :  { %v1789_v13 = vpop.f32.mrb[13].mxu1  ;;  %v1770_v14 = vpop.f32.mrb[15].mxu0 }
 0x15a   :  { %v1439_v15 = vadd.f32 %v1768_v11, %v1399_v7  ;;  %v1790_v16 = vadd.f32 %v1789_v13, %v1788_v10  ;;  %v1791_v17 = vpop.f32.mrb[14].mxu1 }
 0x15b   :  { %v1792_v18 = vpop.f32.mrb[15].mxu1 }
 0x15c   :  { %v1479_v19 = vadd.f32 %v1790_v16, %v1439_v15 }
 0x15e   :  { %1484 = vst [vmem:[%s2379_s3] sm:$0x3] %v1479_v19 }

</bundles_post_ra>
